<compile_context>
chip_gen: v6e
topology: v6e:2x2x1
jax: 0.10.0
libtpu: 0.0.40
codegen_flags: <defaults>
</compile_context>

<pallas_src>
import functools

import jax
import jax.numpy as jnp
from jax.experimental import pallas as pl
from jax.experimental.pallas import tpu as pltpu

POOL_SIZES = (5, 9, 13)  # module default


def _spp_kernel(x_ref, o_ref, pad_ref, *, H, W, sizes, slots, neg):
    """x_ref:  (H, W, C_BLK) channels-last slab for one (n, c-block).
    o_ref:  (n_feat, H, W, C_BLK) pooled features (reversed pool order) + x.
    pad_ref: (H+2P, W+2P, C_BLK) VMEM scratch, -inf border of width P."""
    P = max(sizes) // 2
    Hp, Wp = H + 2 * P, W + 2 * P

    # Build the -inf padded working slab in VMEM (no HBM pad pass). The full
    # re-fill every grid step is required: the cascade writes into the border
    # strips, so stale values from the previous (n, c-block) must be cleared.
    pad_ref[...] = jnp.full(pad_ref.shape, neg, x_ref.dtype)
    pad_ref[P:P + H, P:P + W, :] = x_ref[...]

    # Identity feature goes in the last slot (matches torch.cat([...,x], 1)).
    o_ref[len(sizes)] = x_ref[...]

    # SPPF cascade, in place in pad_ref. Each level applies an incremental
    # (k - k_prev + 1)-wide separable max pool; the valid region shrinks by r
    # on each side per level and its center (H, W) crop is exactly pool_k(x).
    off = 0        # current border offset of the valid region inside pad_ref
    prev_k = 1
    for k in sizes:                       # ascending pool sizes
        s = k - prev_k + 1                # incremental (odd) window
        r = s // 2
        prev_k = k
        Hi, Wi = Hp - 2 * off, Wp - 2 * off
        Ho, Wo = Hi - 2 * r, Wi - 2 * r

        # Row pass: s offset loads along H (outermost axis -> cheap loads).
        rowmax = pad_ref[off:off + Ho, off:off + Wi, :]
        for dh in range(1, s):
            rowmax = jnp.maximum(
                rowmax, pad_ref[off + dh:off + dh + Ho, off:off + Wi, :])
        pad_ref[off + r:off + r + Ho, off:off + Wi, :] = rowmax

        # Col pass: s offset loads along W (sublane axis, not lanes).
        out = pad_ref[off + r:off + r + Ho, off:off + Wo, :]
        for dw in range(1, s):
            out = jnp.maximum(
                out, pad_ref[off + r:off + r + Ho, off + dw:off + dw + Wo, :])

        off += r
        if k == sizes[-1]:
            # Last level: result is exactly (H, W); store directly (lane-dense).
            o_ref[slots[k]] = out
        else:
            # Keep the (larger) pooled region for the next cascade level and
            # emit its center (H, W) crop as this level's feature.
            pad_ref[off:off + Ho, off:off + Wo, :] = out
            o_ref[slots[k]] = pad_ref[P:P + H, P:P + W, :]


def _pick_c_block(C, H, W, n_feat, pmax, itemsize,
                  budget_bytes=20 * 1024 * 1024):
    """Largest channel block that keeps the double-buffered working set small
    enough for every TPU generation (incl. v7x's 64 MiB VMEM).

    When the channel axis has to be split, only multiples of 128 are legal
    block widths (lane-dense stores + Mosaic's (8,128) tiling rule on the
    last block dim); otherwise the whole C axis is taken as one block."""
    per_c = itemsize * (2 * (1 + n_feat) * H * W
                        + (H + 2 * pmax) * (W + 2 * pmax))
    if C * per_c <= budget_bytes:
        return C
    lane_dense = [d for d in range(128, C, 128)
                  if C % d == 0 and d * per_c <= budget_bytes]
    if lane_dense:
        return max(lane_dense)
    # No fitting lane-dense divisor: fall back to the smallest legal split
    # (largest VMEM headroom we can get without violating the (8,128) rule).
    any_lane_dense = [d for d in range(128, C, 128) if C % d == 0]
    return min(any_lane_dense) if any_lane_dense else C


def spatial_pyramid_pooling(x, pool_sizes=POOL_SIZES):
    """x: (N, C, H, W) -> (N, (len(pool_sizes)+1)*C, H, W), NCHW, matching the
    PyTorch module's forward (reversed pool order, identity last)."""
    N, C, H, W = x.shape
    pool_sizes = tuple(pool_sizes)
    assert all(k % 2 == 1 and k > 1 for k in pool_sizes), "odd pool sizes only"
    sizes = tuple(sorted(pool_sizes))
    assert len(set(sizes)) == len(sizes), "pool sizes must be distinct"
    n_feat = len(pool_sizes) + 1
    pmax = max(pool_sizes) // 2
    Hp, Wp = H + 2 * pmax, W + 2 * pmax

    # Output slot per pool size: torch concat order is reversed(pool_sizes).
    slots = {k: i for i, k in enumerate(reversed(pool_sizes))}

    if jnp.issubdtype(x.dtype, jnp.floating):
        neg = float("-inf")
    else:
        neg = int(jnp.iinfo(x.dtype).min)

    itemsize = jnp.dtype(x.dtype).itemsize
    c_blk = _pick_c_block(C, H, W, n_feat, pmax, itemsize)
    assert C % c_blk == 0

    # Layout plumbing: channels-last so C is the 128-lane axis in the kernel.
    x_cl = jnp.transpose(x, (0, 2, 3, 1))  # (N, H, W, C)

    kernel = functools.partial(
        _spp_kernel, H=H, W=W, sizes=sizes, slots=slots, neg=neg)

    # Working set: double-buffered input + n_feat outputs, single scratch slab.
    vmem_need = itemsize * c_blk * (2 * (1 + n_feat) * H * W + Hp * Wp)
    vmem_limit = int(min(max(2 * vmem_need, 32 * 1024 * 1024),
                         64 * 1024 * 1024))

    # Memory-bound: ~1 read + n_feat writes of the input-sized slab.
    cost = pl.CostEstimate(
        flops=int(N * C * H * W * 2 * sum((k - 1) for k in sizes)),
        transcendentals=0,
        bytes_accessed=int(itemsize * N * C * H * W * (1 + n_feat)),
    )

    out = pl.pallas_call(
        kernel,
        out_shape=jax.ShapeDtypeStruct((N, n_feat, H, W, C), x.dtype),
        grid=(N, C // c_blk),
        in_specs=[
            pl.BlockSpec((None, H, W, c_blk), lambda n, c: (n, 0, 0, c)),
        ],
        out_specs=pl.BlockSpec(
            (None, n_feat, H, W, c_blk), lambda n, c: (n, 0, 0, 0, c)),
        scratch_shapes=[pltpu.VMEM((Hp, Wp, c_blk), x.dtype)],
        compiler_params=pltpu.CompilerParams(
            dimension_semantics=("parallel", "parallel"),
            vmem_limit_bytes=vmem_limit,
        ),
        cost_estimate=cost,
    )(x_cl)

    # (N, n_feat, H, W, C) -> (N, n_feat, C, H, W) -> (N, n_feat*C, H, W)
    # matches torch.cat([pool13(all C), pool9, pool5, x], dim=1).
    return jnp.transpose(out, (0, 1, 4, 2, 3)).reshape(N, n_feat * C, H, W)


def _reference_spp(x, pool_sizes=POOL_SIZES):
    """Pure-JAX reference matching the PyTorch module."""
    feats = []
    for k in reversed(pool_sizes):
        p = k // 2
        f = jax.lax.reduce_window(
            x, -jnp.inf, jax.lax.max,
            window_dimensions=(1, 1, k, k),
            window_strides=(1, 1, 1, 1),
            padding=[(0, 0), (0, 0), (p, p), (p, p)],
        )
        feats.append(f)
    feats.append(x)
    return jnp.concatenate(feats, axis=1)


if __name__ == "__main__":
    key = jax.random.PRNGKey(0)
    N, C, H, W = 2, 4, 16, 16
    x = jax.random.normal(key, (N, C, H, W), dtype=jnp.float32)

    spp = jax.jit(spatial_pyramid_pooling)
    y = spp(x)
    y = jax.block_until_ready(y)

    assert y.shape == (N, 4 * C, H, W), y.shape

    y_ref = _reference_spp(x)
    assert jnp.allclose(y, y_ref), "mismatch vs reference"

    print("KERNEL_OK")
</pallas_src>

<mosaic_0001>
module attributes {stable_mosaic.version = 11 : i64} {
  func.func @_spp_kernel(%arg0: i32, %arg1: i32, %arg2: memref<1x16x16x4xf32, #tpu.memory_space<vmem>>, %arg3: memref<1x4x16x16x4xf32, #tpu.memory_space<vmem>>, %arg4: memref<28x28x4xf32, #tpu.memory_space<vmem>>) attributes {dimension_semantics = [#tpu.dimension_semantics<parallel>, #tpu.dimension_semantics<parallel>], iteration_bounds = array<i64: 2, 1>, scalar_prefetch = 0 : i64, scratch_operands = 1 : i64, tpu.core_type = #tpu.core_type<tc>, window_params = [{transform_indices = @transform_0, window_bounds = array<i64: 1, 16, 16, 4>}, {transform_indices = @transform_1, window_bounds = array<i64: 1, 4, 16, 16, 4>}]} {
    %cst = arith.constant 0xFF800000 : f32
    %0 = vector.broadcast %cst : f32 to vector<28x28x4xf32>
    %c0 = arith.constant 0 : index
    %c0_0 = arith.constant 0 : index
    %c0_1 = arith.constant 0 : index
    %1 = vector.load %arg4[%c0, %c0_0, %c0_1] : memref<28x28x4xf32, #tpu.memory_space<vmem>>, vector<28x28x4xf32>
    tpu.vector_store %arg4[%c0, %c0_0, %c0_1], %0 {strides = array<i32>} : memref<28x28x4xf32, #tpu.memory_space<vmem>>, vector<28x28x4xf32>,
    %c0_2 = arith.constant 0 : index
    %c0_3 = arith.constant 0 : index
    %c0_4 = arith.constant 0 : index
    %c0_5 = arith.constant 0 : index
    %2 = vector.load %arg2[%c0_2, %c0_3, %c0_4, %c0_5] : memref<1x16x16x4xf32, #tpu.memory_space<vmem>>, vector<1x16x16x4xf32>
    %3 = vector.shape_cast %2 : vector<1x16x16x4xf32> to vector<16x16x4xf32>
    %c6 = arith.constant 6 : index
    %c6_6 = arith.constant 6 : index
    %c0_7 = arith.constant 0 : index
    %4 = vector.load %arg4[%c6, %c6_6, %c0_7] : memref<28x28x4xf32, #tpu.memory_space<vmem>>, vector<16x16x4xf32>
    tpu.vector_store %arg4[%c6, %c6_6, %c0_7], %3 {strides = array<i32>} : memref<28x28x4xf32, #tpu.memory_space<vmem>>, vector<16x16x4xf32>,
    %c0_8 = arith.constant 0 : index
    %c0_9 = arith.constant 0 : index
    %c0_10 = arith.constant 0 : index
    %c0_11 = arith.constant 0 : index
    %5 = vector.load %arg2[%c0_8, %c0_9, %c0_10, %c0_11] : memref<1x16x16x4xf32, #tpu.memory_space<vmem>>, vector<1x16x16x4xf32>
    %6 = vector.shape_cast %5 : vector<1x16x16x4xf32> to vector<16x16x4xf32>
    %c0_12 = arith.constant 0 : index
    %c3 = arith.constant 3 : index
    %c0_13 = arith.constant 0 : index
    %c0_14 = arith.constant 0 : index
    %c0_15 = arith.constant 0 : index
    %7 = vector.load %arg3[%c0_12, %c3, %c0_13, %c0_14, %c0_15] : memref<1x4x16x16x4xf32, #tpu.memory_space<vmem>>, vector<1x1x16x16x4xf32>
    %8 = vector.shape_cast %7 : vector<1x1x16x16x4xf32> to vector<16x16x4xf32>
    %9 = vector.shape_cast %6 : vector<16x16x4xf32> to vector<1x1x16x16x4xf32>
    tpu.vector_store %arg3[%c0_12, %c3, %c0_13, %c0_14, %c0_15], %9 {strides = array<i32>} : memref<1x4x16x16x4xf32, #tpu.memory_space<vmem>>, vector<1x1x16x16x4xf32>,
    %c0_16 = arith.constant 0 : index
    %c0_17 = arith.constant 0 : index
    %c0_18 = arith.constant 0 : index
    %10 = vector.load %arg4[%c0_16, %c0_17, %c0_18] : memref<28x28x4xf32, #tpu.memory_space<vmem>>, vector<24x28x4xf32>
    %c1 = arith.constant 1 : index
    %c0_19 = arith.constant 0 : index
    %c0_20 = arith.constant 0 : index
    %11 = vector.load %arg4[%c1, %c0_19, %c0_20] : memref<28x28x4xf32, #tpu.memory_space<vmem>>, vector<24x28x4xf32>
    %12 = arith.maximumf %10, %11 : vector<24x28x4xf32>
    %c2 = arith.constant 2 : index
    %c0_21 = arith.constant 0 : index
    %c0_22 = arith.constant 0 : index
    %13 = vector.load %arg4[%c2, %c0_21, %c0_22] : memref<28x28x4xf32, #tpu.memory_space<vmem>>, vector<24x28x4xf32>
    %14 = arith.maximumf %12, %13 : vector<24x28x4xf32>
    %c3_23 = arith.constant 3 : index
    %c0_24 = arith.constant 0 : index
    %c0_25 = arith.constant 0 : index
    %15 = vector.load %arg4[%c3_23, %c0_24, %c0_25] : memref<28x28x4xf32, #tpu.memory_space<vmem>>, vector<24x28x4xf32>
    %16 = arith.maximumf %14, %15 : vector<24x28x4xf32>
    %c4 = arith.constant 4 : index
    %c0_26 = arith.constant 0 : index
    %c0_27 = arith.constant 0 : index
    %17 = vector.load %arg4[%c4, %c0_26, %c0_27] : memref<28x28x4xf32, #tpu.memory_space<vmem>>, vector<24x28x4xf32>
    %18 = arith.maximumf %16, %17 : vector<24x28x4xf32>
    %c2_28 = arith.constant 2 : index
    %c0_29 = arith.constant 0 : index
    %c0_30 = arith.constant 0 : index
    %19 = vector.load %arg4[%c2_28, %c0_29, %c0_30] : memref<28x28x4xf32, #tpu.memory_space<vmem>>, vector<24x28x4xf32>
    tpu.vector_store %arg4[%c2_28, %c0_29, %c0_30], %18 {strides = array<i32>} : memref<28x28x4xf32, #tpu.memory_space<vmem>>, vector<24x28x4xf32>,
    %c2_31 = arith.constant 2 : index
    %c0_32 = arith.constant 0 : index
    %c0_33 = arith.constant 0 : index
    %20 = vector.load %arg4[%c2_31, %c0_32, %c0_33] : memref<28x28x4xf32, #tpu.memory_space<vmem>>, vector<24x24x4xf32>
    %c2_34 = arith.constant 2 : index
    %c1_35 = arith.constant 1 : index
    %c0_36 = arith.constant 0 : index
    %21 = vector.load %arg4[%c2_34, %c1_35, %c0_36] : memref<28x28x4xf32, #tpu.memory_space<vmem>>, vector<24x24x4xf32>
    %22 = arith.maximumf %20, %21 : vector<24x24x4xf32>
    %c2_37 = arith.constant 2 : index
    %c2_38 = arith.constant 2 : index
    %c0_39 = arith.constant 0 : index
    %23 = vector.load %arg4[%c2_37, %c2_38, %c0_39] : memref<28x28x4xf32, #tpu.memory_space<vmem>>, vector<24x24x4xf32>
    %24 = arith.maximumf %22, %23 : vector<24x24x4xf32>
    %c2_40 = arith.constant 2 : index
    %c3_41 = arith.constant 3 : index
    %c0_42 = arith.constant 0 : index
    %25 = vector.load %arg4[%c2_40, %c3_41, %c0_42] : memref<28x28x4xf32, #tpu.memory_space<vmem>>, vector<24x24x4xf32>
    %26 = arith.maximumf %24, %25 : vector<24x24x4xf32>
    %c2_43 = arith.constant 2 : index
    %c4_44 = arith.constant 4 : index
    %c0_45 = arith.constant 0 : index
    %27 = vector.load %arg4[%c2_43, %c4_44, %c0_45] : memref<28x28x4xf32, #tpu.memory_space<vmem>>, vector<24x24x4xf32>
    %28 = arith.maximumf %26, %27 : vector<24x24x4xf32>
    %c2_46 = arith.constant 2 : index
    %c2_47 = arith.constant 2 : index
    %c0_48 = arith.constant 0 : index
    %29 = vector.load %arg4[%c2_46, %c2_47, %c0_48] : memref<28x28x4xf32, #tpu.memory_space<vmem>>, vector<24x24x4xf32>
    tpu.vector_store %arg4[%c2_46, %c2_47, %c0_48], %28 {strides = array<i32>} : memref<28x28x4xf32, #tpu.memory_space<vmem>>, vector<24x24x4xf32>,
    %c6_49 = arith.constant 6 : index
    %c6_50 = arith.constant 6 : index
    %c0_51 = arith.constant 0 : index
    %30 = vector.load %arg4[%c6_49, %c6_50, %c0_51] : memref<28x28x4xf32, #tpu.memory_space<vmem>>, vector<16x16x4xf32>
    %c0_52 = arith.constant 0 : index
    %c2_53 = arith.constant 2 : index
    %c0_54 = arith.constant 0 : index
    %c0_55 = arith.constant 0 : index
    %c0_56 = arith.constant 0 : index
    %31 = vector.load %arg3[%c0_52, %c2_53, %c0_54, %c0_55, %c0_56] : memref<1x4x16x16x4xf32, #tpu.memory_space<vmem>>, vector<1x1x16x16x4xf32>
    %32 = vector.shape_cast %31 : vector<1x1x16x16x4xf32> to vector<16x16x4xf32>
    %33 = vector.shape_cast %30 : vector<16x16x4xf32> to vector<1x1x16x16x4xf32>
    tpu.vector_store %arg3[%c0_52, %c2_53, %c0_54, %c0_55, %c0_56], %33 {strides = array<i32>} : memref<1x4x16x16x4xf32, #tpu.memory_space<vmem>>, vector<1x1x16x16x4xf32>,
    %c2_57 = arith.constant 2 : index
    %c2_58 = arith.constant 2 : index
    %c0_59 = arith.constant 0 : index
    %34 = vector.load %arg4[%c2_57, %c2_58, %c0_59] : memref<28x28x4xf32, #tpu.memory_space<vmem>>, vector<20x24x4xf32>
    %c3_60 = arith.constant 3 : index
    %c2_61 = arith.constant 2 : index
    %c0_62 = arith.constant 0 : index
    %35 = vector.load %arg4[%c3_60, %c2_61, %c0_62] : memref<28x28x4xf32, #tpu.memory_space<vmem>>, vector<20x24x4xf32>
    %36 = arith.maximumf %34, %35 : vector<20x24x4xf32>
    %c4_63 = arith.constant 4 : index
    %c2_64 = arith.constant 2 : index
    %c0_65 = arith.constant 0 : index
    %37 = vector.load %arg4[%c4_63, %c2_64, %c0_65] : memref<28x28x4xf32, #tpu.memory_space<vmem>>, vector<20x24x4xf32>
    %38 = arith.maximumf %36, %37 : vector<20x24x4xf32>
    %c5 = arith.constant 5 : index
    %c2_66 = arith.constant 2 : index
    %c0_67 = arith.constant 0 : index
    %39 = vector.load %arg4[%c5, %c2_66, %c0_67] : memref<28x28x4xf32, #tpu.memory_space<vmem>>, vector<20x24x4xf32>
    %40 = arith.maximumf %38, %39 : vector<20x24x4xf32>
    %c6_68 = arith.constant 6 : index
    %c2_69 = arith.constant 2 : index
    %c0_70 = arith.constant 0 : index
    %41 = vector.load %arg4[%c6_68, %c2_69, %c0_70] : memref<28x28x4xf32, #tpu.memory_space<vmem>>, vector<20x24x4xf32>
    %42 = arith.maximumf %40, %41 : vector<20x24x4xf32>
    %c4_71 = arith.constant 4 : index
    %c2_72 = arith.constant 2 : index
    %c0_73 = arith.constant 0 : index
    %43 = vector.load %arg4[%c4_71, %c2_72, %c0_73] : memref<28x28x4xf32, #tpu.memory_space<vmem>>, vector<20x24x4xf32>
    tpu.vector_store %arg4[%c4_71, %c2_72, %c0_73], %42 {strides = array<i32>} : memref<28x28x4xf32, #tpu.memory_space<vmem>>, vector<20x24x4xf32>,
    %c4_74 = arith.constant 4 : index
    %c2_75 = arith.constant 2 : index
    %c0_76 = arith.constant 0 : index
    %44 = vector.load %arg4[%c4_74, %c2_75, %c0_76] : memref<28x28x4xf32, #tpu.memory_space<vmem>>, vector<20x20x4xf32>
    %c4_77 = arith.constant 4 : index
    %c3_78 = arith.constant 3 : index
    %c0_79 = arith.constant 0 : index
    %45 = vector.load %arg4[%c4_77, %c3_78, %c0_79] : memref<28x28x4xf32, #tpu.memory_space<vmem>>, vector<20x20x4xf32>
    %46 = arith.maximumf %44, %45 : vector<20x20x4xf32>
    %c4_80 = arith.constant 4 : index
    %c4_81 = arith.constant 4 : index
    %c0_82 = arith.constant 0 : index
    %47 = vector.load %arg4[%c4_80, %c4_81, %c0_82] : memref<28x28x4xf32, #tpu.memory_space<vmem>>, vector<20x20x4xf32>
    %48 = arith.maximumf %46, %47 : vector<20x20x4xf32>
    %c4_83 = arith.constant 4 : index
    %c5_84 = arith.constant 5 : index
    %c0_85 = arith.constant 0 : index
    %49 = vector.load %arg4[%c4_83, %c5_84, %c0_85] : memref<28x28x4xf32, #tpu.memory_space<vmem>>, vector<20x20x4xf32>
    %50 = arith.maximumf %48, %49 : vector<20x20x4xf32>
    %c4_86 = arith.constant 4 : index
    %c6_87 = arith.constant 6 : index
    %c0_88 = arith.constant 0 : index
    %51 = vector.load %arg4[%c4_86, %c6_87, %c0_88] : memref<28x28x4xf32, #tpu.memory_space<vmem>>, vector<20x20x4xf32>
    %52 = arith.maximumf %50, %51 : vector<20x20x4xf32>
    %c4_89 = arith.constant 4 : index
    %c4_90 = arith.constant 4 : index
    %c0_91 = arith.constant 0 : index
    %53 = vector.load %arg4[%c4_89, %c4_90, %c0_91] : memref<28x28x4xf32, #tpu.memory_space<vmem>>, vector<20x20x4xf32>
    tpu.vector_store %arg4[%c4_89, %c4_90, %c0_91], %52 {strides = array<i32>} : memref<28x28x4xf32, #tpu.memory_space<vmem>>, vector<20x20x4xf32>,
    %c6_92 = arith.constant 6 : index
    %c6_93 = arith.constant 6 : index
    %c0_94 = arith.constant 0 : index
    %54 = vector.load %arg4[%c6_92, %c6_93, %c0_94] : memref<28x28x4xf32, #tpu.memory_space<vmem>>, vector<16x16x4xf32>
    %c0_95 = arith.constant 0 : index
    %c1_96 = arith.constant 1 : index
    %c0_97 = arith.constant 0 : index
    %c0_98 = arith.constant 0 : index
    %c0_99 = arith.constant 0 : index
    %55 = vector.load %arg3[%c0_95, %c1_96, %c0_97, %c0_98, %c0_99] : memref<1x4x16x16x4xf32, #tpu.memory_space<vmem>>, vector<1x1x16x16x4xf32>
    %56 = vector.shape_cast %55 : vector<1x1x16x16x4xf32> to vector<16x16x4xf32>
    %57 = vector.shape_cast %54 : vector<16x16x4xf32> to vector<1x1x16x16x4xf32>
    tpu.vector_store %arg3[%c0_95, %c1_96, %c0_97, %c0_98, %c0_99], %57 {strides = array<i32>} : memref<1x4x16x16x4xf32, #tpu.memory_space<vmem>>, vector<1x1x16x16x4xf32>,
    %c4_100 = arith.constant 4 : index
    %c4_101 = arith.constant 4 : index
    %c0_102 = arith.constant 0 : index
    %58 = vector.load %arg4[%c4_100, %c4_101, %c0_102] : memref<28x28x4xf32, #tpu.memory_space<vmem>>, vector<16x20x4xf32>
    %c5_103 = arith.constant 5 : index
    %c4_104 = arith.constant 4 : index
    %c0_105 = arith.constant 0 : index
    %59 = vector.load %arg4[%c5_103, %c4_104, %c0_105] : memref<28x28x4xf32, #tpu.memory_space<vmem>>, vector<16x20x4xf32>
    %60 = arith.maximumf %58, %59 : vector<16x20x4xf32>
    %c6_106 = arith.constant 6 : index
    %c4_107 = arith.constant 4 : index
    %c0_108 = arith.constant 0 : index
    %61 = vector.load %arg4[%c6_106, %c4_107, %c0_108] : memref<28x28x4xf32, #tpu.memory_space<vmem>>, vector<16x20x4xf32>
    %62 = arith.maximumf %60, %61 : vector<16x20x4xf32>
    %c7 = arith.constant 7 : index
    %c4_109 = arith.constant 4 : index
    %c0_110 = arith.constant 0 : index
    %63 = vector.load %arg4[%c7, %c4_109, %c0_110] : memref<28x28x4xf32, #tpu.memory_space<vmem>>, vector<16x20x4xf32>
    %64 = arith.maximumf %62, %63 : vector<16x20x4xf32>
    %c8 = arith.constant 8 : index
    %c4_111 = arith.constant 4 : index
    %c0_112 = arith.constant 0 : index
    %65 = vector.load %arg4[%c8, %c4_111, %c0_112] : memref<28x28x4xf32, #tpu.memory_space<vmem>>, vector<16x20x4xf32>
    %66 = arith.maximumf %64, %65 : vector<16x20x4xf32>
    %c6_113 = arith.constant 6 : index
    %c4_114 = arith.constant 4 : index
    %c0_115 = arith.constant 0 : index
    %67 = vector.load %arg4[%c6_113, %c4_114, %c0_115] : memref<28x28x4xf32, #tpu.memory_space<vmem>>, vector<16x20x4xf32>
    tpu.vector_store %arg4[%c6_113, %c4_114, %c0_115], %66 {strides = array<i32>} : memref<28x28x4xf32, #tpu.memory_space<vmem>>, vector<16x20x4xf32>,
    %c6_116 = arith.constant 6 : index
    %c4_117 = arith.constant 4 : index
    %c0_118 = arith.constant 0 : index
    %68 = vector.load %arg4[%c6_116, %c4_117, %c0_118] : memref<28x28x4xf32, #tpu.memory_space<vmem>>, vector<16x16x4xf32>
    %c6_119 = arith.constant 6 : index
    %c5_120 = arith.constant 5 : index
    %c0_121 = arith.constant 0 : index
    %69 = vector.load %arg4[%c6_119, %c5_120, %c0_121] : memref<28x28x4xf32, #tpu.memory_space<vmem>>, vector<16x16x4xf32>
    %70 = arith.maximumf %68, %69 : vector<16x16x4xf32>
    %c6_122 = arith.constant 6 : index
    %c6_123 = arith.constant 6 : index
    %c0_124 = arith.constant 0 : index
    %71 = vector.load %arg4[%c6_122, %c6_123, %c0_124] : memref<28x28x4xf32, #tpu.memory_space<vmem>>, vector<16x16x4xf32>
    %72 = arith.maximumf %70, %71 : vector<16x16x4xf32>
    %c6_125 = arith.constant 6 : index
    %c7_126 = arith.constant 7 : index
    %c0_127 = arith.constant 0 : index
    %73 = vector.load %arg4[%c6_125, %c7_126, %c0_127] : memref<28x28x4xf32, #tpu.memory_space<vmem>>, vector<16x16x4xf32>
    %74 = arith.maximumf %72, %73 : vector<16x16x4xf32>
    %c6_128 = arith.constant 6 : index
    %c8_129 = arith.constant 8 : index
    %c0_130 = arith.constant 0 : index
    %75 = vector.load %arg4[%c6_128, %c8_129, %c0_130] : memref<28x28x4xf32, #tpu.memory_space<vmem>>, vector<16x16x4xf32>
    %76 = arith.maximumf %74, %75 : vector<16x16x4xf32>
    %c0_131 = arith.constant 0 : index
    %c0_132 = arith.constant 0 : index
    %c0_133 = arith.constant 0 : index
    %c0_134 = arith.constant 0 : index
    %c0_135 = arith.constant 0 : index
    %77 = vector.load %arg3[%c0_131, %c0_132, %c0_133, %c0_134, %c0_135] : memref<1x4x16x16x4xf32, #tpu.memory_space<vmem>>, vector<1x1x16x16x4xf32>
    %78 = vector.shape_cast %77 : vector<1x1x16x16x4xf32> to vector<16x16x4xf32>
    %79 = vector.shape_cast %76 : vector<16x16x4xf32> to vector<1x1x16x16x4xf32>
    tpu.vector_store %arg3[%c0_131, %c0_132, %c0_133, %c0_134, %c0_135], %79 {strides = array<i32>} : memref<1x4x16x16x4xf32, #tpu.memory_space<vmem>>, vector<1x1x16x16x4xf32>,
    return
  }
  func.func @transform_0(%arg0: i32, %arg1: i32) -> (i32, i32, i32, i32) {
    %c0_i32 = arith.constant 0 : i32
    %c0_i32_0 = arith.constant 0 : i32
    %c0_i32_1 = arith.constant 0 : i32
    return %arg0, %c0_i32, %c0_i32_0, %arg1 : i32, i32, i32, i32
  }
  func.func @transform_1(%arg0: i32, %arg1: i32) -> (i32, i32, i32, i32, i32) {
    %c0_i32 = arith.constant 0 : i32
    %c0_i32_0 = arith.constant 0 : i32
    %c0_i32_1 = arith.constant 0 : i32
    %c0_i32_2 = arith.constant 0 : i32
    return %arg0, %c0_i32, %c0_i32_0, %c0_i32_1, %arg1 : i32, i32, i32, i32, i32
  }
}

</mosaic_0001>

<bundles_post_ra>
// kernel: spatial_pyramid_pooling.1
= control target key start
LH: loop header
LB: loop body
LE: loop exit
PB: predicated region body
PF: predicated region fallthrough
CT: control target
= control target key end

     0   :  { %s4461_s6 = smov 0   ;;  %s4463_s7 = smov 0   ;;  %s8289_s0 = inlined_call_operand.vmem [shape: f32[2,16,16,4], index: 0, kind: input, shape index: {}]   ;;  %s8290_s1 = inlined_call_operand.vmem [shape: f32[2,4,16,16,4], index: 1, kind: output, shape index: {}]  }
   0x1   :  { %s4465_s8 = smov 0  }
   0x2 LB: > { %s23_s9 = sadd.s32 1, %s4444_s7  ;;  %p4296_p0 = scmp.ge.s32.totalorder %s4448_s8, 1  ;;  %s4448_s8 = sphi %s4465_s8, %s11_s8   ;;  %s4444_s7 = sphi %s4463_s7, %s9094_s7   ;;  %s4440_s6 = sphi %s4461_s6, %s9093_s6  }
   0x3   : > { %p25_p1 = scmp.ge.s32.totalorder %s23_s9, 2  ;;  %p106_p2 = scmp.lt.s32.totalorder %s4448_s8, 3 }
   0x5   : > { %s9096_s9 = smov (%p25_p1, %s23_s9), 0  ;;  %p107_p3 = pnand %p4296_p0, %p106_p2 }
   0x7   : > { %110 = sbr.rel (%p107_p3) target bundleno = 863 (0x35f), region = 24 }
   0xc   : > { %vm148_vm0 = vcmask 31744   ;;  %vm152_vm1 = vcmask 27648   ;;  %p132_p4 = scmp.lt.s32.totalorder %s4440_s6, 1  ;;  %v4450_v0 = vmov -inf  }
   0xd   : > { %149 = vst.msk [vmem:[#allocation2] sm:$0xff] %vm148_vm0, %v4450_v0  ;;  %150 = vst.msk [vmem:[#allocation2 + $0x8] sm:$0xff] %vm148_vm0, %v4450_v0 }
   0xe   : > { %151 = vst.msk [vmem:[#allocation2 + $0x10] sm:$0xff] %vm148_vm0, %v4450_v0  ;;  %154 = vst.msk [vmem:[#allocation2 + $0x20] sm:$0xff] %vm148_vm0, %v4450_v0  ;;  %s9098_s6 = smov (!%p132_p4, %s4440_s6), 1 }
   0xf   : > { %155 = vst.msk [vmem:[#allocation2 + $0x28] sm:$0xff] %vm148_vm0, %v4450_v0  ;;  %156 = vst.msk [vmem:[#allocation2 + $0x30] sm:$0xff] %vm148_vm0, %v4450_v0  ;;  %s4399_s10 = sshll.u32 %s9098_s6, 8  ;;  %s4400_s14 = sshll.u32 %s9098_s6, 10 }
  0x10   : > { %158 = vst.msk [vmem:[#allocation2 + $0x40] sm:$0xff] %vm148_vm0, %v4450_v0  ;;  %159 = vst.msk [vmem:[#allocation2 + $0x48] sm:$0xff] %vm148_vm0, %v4450_v0  ;;  %s4715_s13 = scalar_lea.vmem %s8289_s0, %s4399_s10  ;;  %s6063_s17 = scalar_lea.vmem %s8290_s1, %s4400_s14 }
  0x11   : > { %160 = vst.msk [vmem:[#allocation2 + $0x50] sm:$0xff] %vm148_vm0, %v4450_v0  ;;  %162 = vst.msk [vmem:[#allocation2 + $0x60] sm:$0xff] %vm148_vm0, %v4450_v0  ;;  %v262_v1 = vld [vmem:[%s4715_s13] sm:$0xff]  ;;  %v263_v2 = vld [vmem:[%s4715_s13 + $0x8] sm:$0xff] }
  0x12   : > { %163 = vst.msk [vmem:[#allocation2 + $0x68] sm:$0xff] %vm148_vm0, %v4450_v0  ;;  %164 = vst.msk [vmem:[#allocation2 + $0x70] sm:$0xff] %vm148_vm0, %v4450_v0  ;;  %v264_v3 = vld [vmem:[%s4715_s13 + $0x10] sm:$0xff]  ;;  %v265_v4 = vld [vmem:[%s4715_s13 + $0x18] sm:$0xff] }
  0x13   : > { %166 = vst.msk [vmem:[#allocation2 + $0x80] sm:$0xff] %vm148_vm0, %v4450_v0  ;;  %167 = vst.msk [vmem:[#allocation2 + $0x88] sm:$0xff] %vm148_vm0, %v4450_v0  ;;  %v266_v5 = vld [vmem:[%s4715_s13 + $0x20] sm:$0xff]  ;;  %v267_v6 = vld [vmem:[%s4715_s13 + $0x28] sm:$0xff] }
  0x14   : > { %168 = vst.msk [vmem:[#allocation2 + $0x90] sm:$0xff] %vm148_vm0, %v4450_v0  ;;  %170 = vst.msk [vmem:[#allocation2 + $0xa0] sm:$0xff] %vm148_vm0, %v4450_v0  ;;  %v268_v7 = vld [vmem:[%s4715_s13 + $0x30] sm:$0xff]  ;;  %v269_v8 = vld [vmem:[%s4715_s13 + $0x38] sm:$0xff] }
  0x15   : > { %171 = vst.msk [vmem:[#allocation2 + $0xa8] sm:$0xff] %vm148_vm0, %v4450_v0  ;;  %172 = vst.msk [vmem:[#allocation2 + $0xb0] sm:$0xff] %vm148_vm0, %v4450_v0  ;;  %v270_v9 = vld [vmem:[%s4715_s13 + $0x40] sm:$0xff]  ;;  %v271_v10 = vld [vmem:[%s4715_s13 + $0x48] sm:$0xff] }
  0x16   : > { %174 = vst.msk [vmem:[#allocation2 + $0xc0] sm:$0xff] %vm148_vm0, %v4450_v0  ;;  %175 = vst.msk [vmem:[#allocation2 + $0xc8] sm:$0xff] %vm148_vm0, %v4450_v0  ;;  %v272_v11 = vld [vmem:[%s4715_s13 + $0x50] sm:$0xff]  ;;  %v273_v12 = vld [vmem:[%s4715_s13 + $0x58] sm:$0xff] }
  0x17   : > { %176 = vst.msk [vmem:[#allocation2 + $0xd0] sm:$0xff] %vm148_vm0, %v4450_v0  ;;  %178 = vst.msk [vmem:[#allocation2 + $0xe0] sm:$0xff] %vm148_vm0, %v4450_v0  ;;  %v274_v13 = vld [vmem:[%s4715_s13 + $0x60] sm:$0xff]  ;;  %v275_v14 = vld [vmem:[%s4715_s13 + $0x68] sm:$0xff] }
  0x18   : > { %179 = vst.msk [vmem:[#allocation2 + $0xe8] sm:$0xff] %vm148_vm0, %v4450_v0  ;;  %180 = vst.msk [vmem:[#allocation2 + $0xf0] sm:$0xff] %vm148_vm0, %v4450_v0  ;;  %v276_v15 = vld [vmem:[%s4715_s13 + $0x70] sm:$0xff]  ;;  %v277_v16 = vld [vmem:[%s4715_s13 + $0x78] sm:$0xff] }
  0x19   : > { %182 = vst.msk [vmem:[#allocation2 + $0x100] sm:$0xff] %vm148_vm0, %v4450_v0  ;;  %183 = vst.msk [vmem:[#allocation2 + $0x108] sm:$0xff] %vm148_vm0, %v4450_v0  ;;  %v278_v17 = vld [vmem:[%s4715_s13 + $0x80] sm:$0xff]  ;;  %v279_v18 = vld [vmem:[%s4715_s13 + $0x88] sm:$0xff] }
  0x1a   : > { %184 = vst.msk [vmem:[#allocation2 + $0x110] sm:$0xff] %vm148_vm0, %v4450_v0  ;;  %186 = vst.msk [vmem:[#allocation2 + $0x120] sm:$0xff] %vm148_vm0, %v4450_v0  ;;  %v280_v19 = vld [vmem:[%s4715_s13 + $0x90] sm:$0xff]  ;;  %v281_v20 = vld [vmem:[%s4715_s13 + $0x98] sm:$0xff] }
  0x1b   : > { %187 = vst.msk [vmem:[#allocation2 + $0x128] sm:$0xff] %vm148_vm0, %v4450_v0  ;;  %188 = vst.msk [vmem:[#allocation2 + $0x130] sm:$0xff] %vm148_vm0, %v4450_v0  ;;  %v282_v21 = vld [vmem:[%s4715_s13 + $0xa0] sm:$0xff]  ;;  %v283_v22 = vld [vmem:[%s4715_s13 + $0xa8] sm:$0xff] }
  0x1c   : > { %190 = vst.msk [vmem:[#allocation2 + $0x140] sm:$0xff] %vm148_vm0, %v4450_v0  ;;  %191 = vst.msk [vmem:[#allocation2 + $0x148] sm:$0xff] %vm148_vm0, %v4450_v0  ;;  %v284_v23 = vld [vmem:[%s4715_s13 + $0xb0] sm:$0xff]  ;;  %v285_v24 = vld [vmem:[%s4715_s13 + $0xb8] sm:$0xff] }
  0x1d   : > { %192 = vst.msk [vmem:[#allocation2 + $0x150] sm:$0xff] %vm148_vm0, %v4450_v0  ;;  %194 = vst.msk [vmem:[#allocation2 + $0x160] sm:$0xff] %vm148_vm0, %v4450_v0  ;;  %v286_v25 = vld [vmem:[%s4715_s13 + $0xc0] sm:$0xff]  ;;  %v287_v26 = vld [vmem:[%s4715_s13 + $0xc8] sm:$0xff] }
  0x1e   : > { %195 = vst.msk [vmem:[#allocation2 + $0x168] sm:$0xff] %vm148_vm0, %v4450_v0  ;;  %196 = vst.msk [vmem:[#allocation2 + $0x170] sm:$0xff] %vm148_vm0, %v4450_v0  ;;  %v288_v27 = vld [vmem:[%s4715_s13 + $0xd0] sm:$0xff]  ;;  %v289_v28 = vld [vmem:[%s4715_s13 + $0xd8] sm:$0xff] }
  0x1f   : > { %198 = vst.msk [vmem:[#allocation2 + $0x180] sm:$0xff] %vm148_vm0, %v4450_v0  ;;  %199 = vst.msk [vmem:[#allocation2 + $0x188] sm:$0xff] %vm148_vm0, %v4450_v0  ;;  %v290_v29 = vld [vmem:[%s4715_s13 + $0xe0] sm:$0xff]  ;;  %v291_v30 = vld [vmem:[%s4715_s13 + $0xe8] sm:$0xff] }
  0x20   : > { %200 = vst.msk [vmem:[#allocation2 + $0x190] sm:$0xff] %vm148_vm0, %v4450_v0  ;;  %202 = vst.msk [vmem:[#allocation2 + $0x1a0] sm:$0xff] %vm148_vm0, %v4450_v0  ;;  %v292_v31 = vld [vmem:[%s4715_s13 + $0xf0] sm:$0xff]  ;;  %v293_v32 = vld [vmem:[%s4715_s13 + $0xf8] sm:$0xff] }
  0x21   : > { %203 = vst.msk [vmem:[#allocation2 + $0x1a8] sm:$0xff] %vm148_vm0, %v4450_v0  ;;  %204 = vst.msk [vmem:[#allocation2 + $0x1b0] sm:$0xff] %vm148_vm0, %v4450_v0  ;;  %v392_v33 = vld [vmem:[#allocation2] sm:$0xff]  ;;  %v393_v42 = vld [vmem:[#allocation2 + $0x8] sm:$0xff] }
  0x22   : > { %206 = vst.msk [vmem:[#allocation2 + $0x1c0] sm:$0xff] %vm148_vm0, %v4450_v0  ;;  %207 = vst.msk [vmem:[#allocation2 + $0x1c8] sm:$0xff] %vm148_vm0, %v4450_v0  ;;  %v396_v34 = vld [vmem:[#allocation2 + $0x20] sm:$0xff]  ;;  %v397_v43 = vld [vmem:[#allocation2 + $0x28] sm:$0xff] }
  0x23   : > { %208 = vst.msk [vmem:[#allocation2 + $0x1d0] sm:$0xff] %vm148_vm0, %v4450_v0  ;;  %210 = vst.msk [vmem:[#allocation2 + $0x1e0] sm:$0xff] %vm148_vm0, %v4450_v0  ;;  %v400_v35 = vld [vmem:[#allocation2 + $0x40] sm:$0xff]  ;;  %v585_v37 = vmax.f32 %v392_v33, %v396_v34  ;;  %v401_v44 = vld [vmem:[#allocation2 + $0x48] sm:$0xff]  ;;  %v586_v50 = vmax.f32 %v393_v42, %v397_v43 }
  0x24   : > { %211 = vst.msk [vmem:[#allocation2 + $0x1e8] sm:$0xff] %vm148_vm0, %v4450_v0  ;;  %212 = vst.msk [vmem:[#allocation2 + $0x1f0] sm:$0xff] %vm148_vm0, %v4450_v0  ;;  %v497_v36 = vld [vmem:[#allocation2 + $0x60] sm:$0xff]  ;;  %v589_v38 = vmax.f32 %v396_v34, %v400_v35  ;;  %v4787_v49 = vld [vmem:[#allocation2 + $0x68] sm:$0xff]  ;;  %v590_v53 = vmax.f32 %v397_v43, %v401_v44 }
  0x25   : > { %214 = vst.msk [vmem:[#allocation2 + $0x200] sm:$0xff] %vm148_vm0, %v4450_v0  ;;  %215 = vst.msk [vmem:[#allocation2 + $0x208] sm:$0xff] %vm148_vm0, %v4450_v0  ;;  %v593_v39 = vmax.f32 %v400_v35, %v497_v36  ;;  %v4781_v40 = vld [vmem:[#allocation2 + $0x80] sm:$0xff]  ;;  %v778_v46 = vmax.f32 %v585_v37, %v400_v35  ;;  %v4789_v51 = vld [vmem:[#allocation2 + $0x88] sm:$0xff]  ;;  %v594_v54 = vmax.f32 %v401_v44, %v4787_v49 }
  0x26   : > { %216 = vst.msk [vmem:[#allocation2 + $0x210] sm:$0xff] %vm148_vm0, %v4450_v0  ;;  %218 = vst.msk [vmem:[#allocation2 + $0x220] sm:$0xff] %vm148_vm0, %v4450_v0  ;;  %v4783_v41 = vld [vmem:[#allocation2 + $0xa0] sm:$0xff]  ;;  %v597_v45 = vmax.f32 %v497_v36, %v4781_v40  ;;  %v782_v47 = vmax.f32 %v589_v38, %v497_v36  ;;  %v394_v55 = vld [vmem:[#allocation2 + $0x10] sm:$0xff]  ;;  %v598_v58 = vmax.f32 %v4787_v49, %v4789_v51 }
  0x27   : > { %219 = vst.msk [vmem:[#allocation2 + $0x228] sm:$0xff] %vm148_vm0, %v4450_v0  ;;  %220 = vst.msk [vmem:[#allocation2 + $0x230] sm:$0xff] %vm148_vm0, %v4450_v0  ;;  %v786_v48 = vmax.f32 %v593_v39, %v4781_v40  ;;  %v398_v56 = vld [vmem:[#allocation2 + $0x30] sm:$0xff]  ;;  %v971_v59 = vmax.f32 %v778_v46, %v497_v36  ;;  %v779_v62 = vmax.f32 %v586_v50, %v401_v44  ;;  %v4801_v63 = vld [vmem:[#allocation2 + $0xa8] sm:$0xff] }
  0x28   : > { %222 = vst.msk [vmem:[#allocation2 + $0x240] sm:$0xff] %vm148_vm0, %v4450_v0  ;;  %223 = vst.msk [vmem:[#allocation2 + $0x248] sm:$0xff] %vm148_vm0, %v4450_v0  ;;  %v4795_v57 = vmax.f32 %v597_v45, %v4783_v41  ;;  %v975_v60 = vmax.f32 %v782_v47, %v4781_v40 }
  0x29   : > { %224 = vst.msk [vmem:[#allocation2 + $0x250] sm:$0xff] %vm148_vm0, %v4450_v0  ;;  %226 = vst.msk [vmem:[#allocation2 + $0x260] sm:$0xff] %vm148_vm0, %v4450_v0  ;;  %v979_v61 = vmax.f32 %v786_v48, %v4783_v41  ;;  %v791_v48 = vmax.f32 %v598_v58, %v4801_v63 }
  0x2a   : > { %227 = vst.msk [vmem:[#allocation2 + $0x268] sm:$0xff] %vm148_vm0, %v4450_v0  ;;  %228 = vst.msk [vmem:[#allocation2 + $0x270] sm:$0xff] %vm148_vm0, %v4450_v0 }
  0x2b   : > { %230 = vst.msk [vmem:[#allocation2 + $0x280] sm:$0xff] %vm148_vm0, %v4450_v0  ;;  %231 = vst.msk [vmem:[#allocation2 + $0x288] sm:$0xff] %vm148_vm0, %v4450_v0 }
  0x2c   : > { %232 = vst.msk [vmem:[#allocation2 + $0x290] sm:$0xff] %vm148_vm0, %v4450_v0  ;;  %234 = vst.msk [vmem:[#allocation2 + $0x2a0] sm:$0xff] %vm148_vm0, %v4450_v0 }
  0x2d   : > { %235 = vst.msk [vmem:[#allocation2 + $0x2a8] sm:$0xff] %vm148_vm0, %v4450_v0  ;;  %236 = vst.msk [vmem:[#allocation2 + $0x2b0] sm:$0xff] %vm148_vm0, %v4450_v0 }
  0x2e   : > { %238 = vst.msk [vmem:[#allocation2 + $0x2c0] sm:$0xff] %vm148_vm0, %v4450_v0  ;;  %239 = vst.msk [vmem:[#allocation2 + $0x2c8] sm:$0xff] %vm148_vm0, %v4450_v0 }
  0x2f   : > { %240 = vst.msk [vmem:[#allocation2 + $0x2d0] sm:$0xff] %vm148_vm0, %v4450_v0  ;;  %242 = vst.msk [vmem:[#allocation2 + $0x2e0] sm:$0xff] %vm148_vm0, %v4450_v0 }
  0x30   : > { %243 = vst.msk [vmem:[#allocation2 + $0x2e8] sm:$0xff] %vm148_vm0, %v4450_v0  ;;  %244 = vst.msk [vmem:[#allocation2 + $0x2f0] sm:$0xff] %vm148_vm0, %v4450_v0 }
  0x31   : > { %246 = vst.msk [vmem:[#allocation2 + $0x300] sm:$0xff] %vm148_vm0, %v4450_v0  ;;  %247 = vst.msk [vmem:[#allocation2 + $0x308] sm:$0xff] %vm148_vm0, %v4450_v0 }
  0x32   : > { %248 = vst.msk [vmem:[#allocation2 + $0x310] sm:$0xff] %vm148_vm0, %v4450_v0  ;;  %250 = vst.msk [vmem:[#allocation2 + $0x320] sm:$0xff] %vm148_vm0, %v4450_v0 }
  0x33   : > { %251 = vst.msk [vmem:[#allocation2 + $0x328] sm:$0xff] %vm148_vm0, %v4450_v0  ;;  %252 = vst.msk [vmem:[#allocation2 + $0x330] sm:$0xff] %vm148_vm0, %v4450_v0 }
  0x34   : > { %254 = vst.msk [vmem:[#allocation2 + $0x340] sm:$0xff] %vm148_vm0, %v4450_v0  ;;  %255 = vst.msk [vmem:[#allocation2 + $0x348] sm:$0xff] %vm148_vm0, %v4450_v0 }
  0x35   : > { %256 = vst.msk [vmem:[#allocation2 + $0x350] sm:$0xff] %vm148_vm0, %v4450_v0  ;;  %258 = vst.msk [vmem:[#allocation2 + $0x360] sm:$0xff] %vm148_vm0, %v4450_v0 }
  0x36   : > { %259 = vst.msk [vmem:[#allocation2 + $0x368] sm:$0xff] %vm148_vm0, %v4450_v0  ;;  %260 = vst.msk [vmem:[#allocation2 + $0x370] sm:$0xff] %vm148_vm0, %v4450_v0 }
  0x37   : > { %153 = vst.msk [vmem:[#allocation2 + $0x18] sm:$0xf] %vm152_vm1, %v4450_v0  ;;  %157 = vst.msk [vmem:[#allocation2 + $0x38] sm:$0xf] %vm152_vm1, %v4450_v0 }
  0x38   : > { %161 = vst.msk [vmem:[#allocation2 + $0x58] sm:$0xf] %vm152_vm1, %v4450_v0  ;;  %165 = vst.msk [vmem:[#allocation2 + $0x78] sm:$0xf] %vm152_vm1, %v4450_v0 }
  0x39   : > { %169 = vst.msk [vmem:[#allocation2 + $0x98] sm:$0xf] %vm152_vm1, %v4450_v0  ;;  %173 = vst.msk [vmem:[#allocation2 + $0xb8] sm:$0xf] %vm152_vm1, %v4450_v0 }
  0x3a   : > { %177 = vst.msk [vmem:[#allocation2 + $0xd8] sm:$0xf] %vm152_vm1, %v4450_v0  ;;  %181 = vst.msk [vmem:[#allocation2 + $0xf8] sm:$0xf] %vm152_vm1, %v4450_v0 }
  0x3b   : > { %185 = vst.msk [vmem:[#allocation2 + $0x118] sm:$0xf] %vm152_vm1, %v4450_v0  ;;  %189 = vst.msk [vmem:[#allocation2 + $0x138] sm:$0xf] %vm152_vm1, %v4450_v0 }
  0x3c   : > { %193 = vst.msk [vmem:[#allocation2 + $0x158] sm:$0xf] %vm152_vm1, %v4450_v0  ;;  %197 = vst.msk [vmem:[#allocation2 + $0x178] sm:$0xf] %vm152_vm1, %v4450_v0 }
  0x3d   : > { %201 = vst.msk [vmem:[#allocation2 + $0x198] sm:$0xf] %vm152_vm1, %v4450_v0  ;;  %205 = vst.msk [vmem:[#allocation2 + $0x1b8] sm:$0xf] %vm152_vm1, %v4450_v0 }
  0x3e   : > { %209 = vst.msk [vmem:[#allocation2 + $0x1d8] sm:$0xf] %vm152_vm1, %v4450_v0  ;;  %213 = vst.msk [vmem:[#allocation2 + $0x1f8] sm:$0xf] %vm152_vm1, %v4450_v0 }
  0x3f   : > { %217 = vst.msk [vmem:[#allocation2 + $0x218] sm:$0xf] %vm152_vm1, %v4450_v0  ;;  %221 = vst.msk [vmem:[#allocation2 + $0x238] sm:$0xf] %vm152_vm1, %v4450_v0  ;;  %v878_v34 = vld [vmem:[#allocation2 + $0x78] sm:$0xf] }
  0x40   : > { %225 = vst.msk [vmem:[#allocation2 + $0x258] sm:$0xf] %vm152_vm1, %v4450_v0  ;;  %229 = vst.msk [vmem:[#allocation2 + $0x278] sm:$0xf] %vm152_vm1, %v4450_v0  ;;  %v693_v33 = vld [vmem:[#allocation2 + $0x98] sm:$0xf] }
  0x41   : > { %233 = vst.msk [vmem:[#allocation2 + $0x298] sm:$0xf] %vm152_vm1, %v4450_v0  ;;  %237 = vst.msk [vmem:[#allocation2 + $0x2b8] sm:$0xf] %vm152_vm1, %v4450_v0  ;;  %v886_v38 = vld [vmem:[#allocation2 + $0xb8] sm:$0xf] }
  0x42   : > { %241 = vst.msk [vmem:[#allocation2 + $0x2d8] sm:$0xf] %vm152_vm1, %v4450_v0  ;;  %245 = vst.msk [vmem:[#allocation2 + $0x2f8] sm:$0xf] %vm152_vm1, %v4450_v0  ;;  %v1071_v39 = vld [vmem:[#allocation2 + $0x98] sm:$0xf] }
  0x43   : > { %249 = vst.msk [vmem:[#allocation2 + $0x318] sm:$0xf] %vm152_vm1, %v4450_v0  ;;  %253 = vst.msk [vmem:[#allocation2 + $0x338] sm:$0xf] %vm152_vm1, %v4450_v0  ;;  %v407_v43 = vld [vmem:[#allocation2 + $0x78] sm:$0xf] }
  0x44   : > { %257 = vst.msk [vmem:[#allocation2 + $0x358] sm:$0xf] %vm152_vm1, %v4450_v0  ;;  %261 = vst.msk [vmem:[#allocation2 + $0x378] sm:$0xf] %vm152_vm1, %v4450_v0  ;;  %v402_v0 = vld [vmem:[#allocation2 + $0x50] sm:$0xff] }
  0x45   : > { %295 = vst.msk [vmem:[#allocation2 + $0xc6] sm:$0xff] %vm148_vm0, %v262_v1  ;;  %296 = vst.msk [vmem:[#allocation2 + $0xce] sm:$0xff] %vm148_vm0, %v263_v2  ;;  %v4803_v1 = vld [vmem:[#allocation2 + $0x70] sm:$0xff]  ;;  %v783_v2 = vmax.f32 %v590_v53, %v4787_v49  ;;  %v1079_v46 = vld [vmem:[#allocation2 + $0xd8] sm:$0xf] }
  0x46   : > { %297 = vst.msk [vmem:[#allocation2 + $0xe6] sm:$0xff] %vm148_vm0, %v264_v3  ;;  %298 = vst.msk [vmem:[#allocation2 + $0xee] sm:$0xff] %vm148_vm0, %v265_v4  ;;  %v787_v3 = vmax.f32 %v594_v54, %v4789_v51  ;;  %v504_v50 = vld [vmem:[#allocation2 + $0x98] sm:$0xf] }
  0x47   : > { %299 = vst.msk [vmem:[#allocation2 + $0x106] sm:$0xff] %vm148_vm0, %v266_v5  ;;  %300 = vst.msk [vmem:[#allocation2 + $0x10e] sm:$0xff] %vm148_vm0, %v267_v6  ;;  %v587_v5 = vmax.f32 %v394_v55, %v398_v56  ;;  %v591_v6 = vmax.f32 %v398_v56, %v402_v0  ;;  %v689_v53 = vld [vmem:[#allocation2 + $0x78] sm:$0xf] }
  0x48   : > { %301 = vst.msk [vmem:[#allocation2 + $0x126] sm:$0xff] %vm148_vm0, %v268_v7  ;;  %302 = vst.msk [vmem:[#allocation2 + $0x12e] sm:$0xff] %vm148_vm0, %v269_v8  ;;  %v4809_v7 = vld [vmem:[#allocation2 + $0x90] sm:$0xff]  ;;  %v395_v8 = vld [vmem:[#allocation2 + $0x18] sm:$0xf] }
  0x49   : > { %303 = vst.msk [vmem:[#allocation2 + $0x146] sm:$0xff] %vm148_vm0, %v270_v9  ;;  %304 = vst.msk [vmem:[#allocation2 + $0x14e] sm:$0xff] %vm148_vm0, %v271_v10  ;;  %v1164_v9 = vmax.f32 %v971_v59, %v4781_v40  ;;  %v1168_v10 = vmax.f32 %v975_v60, %v4783_v41  ;;  %v411_v60 = vld [vmem:[#allocation2 + $0x98] sm:$0xf] }
  0x4a   : > { %305 = vst.msk [vmem:[#allocation2 + $0x166] sm:$0xff] %vm148_vm0, %v272_v11  ;;  %306 = vst.msk [vmem:[#allocation2 + $0x16e] sm:$0xff] %vm148_vm0, %v273_v12  ;;  %v972_v12 = vmax.f32 %v779_v62, %v4787_v49  ;;  %v599_v49 = vmax.f32 %v4803_v1, %v4809_v7 }
  0x4b   : > { %307 = vst.msk [vmem:[#allocation2 + $0x186] sm:$0xff] %vm148_vm0, %v274_v13  ;;  %308 = vst.msk [vmem:[#allocation2 + $0x18e] sm:$0xff] %vm148_vm0, %v275_v14  ;;  %v4815_v13 = vld [vmem:[#allocation2 + $0x38] sm:$0xf] }
  0x4c   : > { %309 = vst.msk [vmem:[#allocation2 + $0x1a6] sm:$0xff] %vm148_vm0, %v276_v15  ;;  %310 = vst.msk [vmem:[#allocation2 + $0x1ae] sm:$0xff] %vm148_vm0, %v277_v16  ;;  %v4791_v52 = vld [vmem:[#allocation2 + $0xc0] sm:$0xff]  ;;  %v4807_v4 = vld [vmem:[#allocation2 + $0xc8] sm:$0xff]  ;;  %v976_v16 = vmax.f32 %v783_v2, %v4789_v51 }
  0x4d   : > { %311 = vst.msk [vmem:[#allocation2 + $0x1c6] sm:$0xff] %vm148_vm0, %v278_v17  ;;  %312 = vst.msk [vmem:[#allocation2 + $0x1ce] sm:$0xff] %vm148_vm0, %v279_v18  ;;  %v1172_v11 = vmax.f32 %v979_v61, %v4791_v52  ;;  %v403_v14 = vld [vmem:[#allocation2 + $0x58] sm:$0xf]  ;;  %v980_v17 = vmax.f32 %v787_v3, %v4801_v63  ;;  %v595_v18 = vmax.f32 %v402_v0, %v4803_v1  ;;  %v4840_v47 = vld [vmem:[#allocation2 + $0xe0] sm:$0xff] }
  0x4e   : > { %313 = vst.msk [vmem:[#allocation2 + $0x1e6] sm:$0xff] %vm148_vm0, %v280_v19  ;;  %314 = vst.msk [vmem:[#allocation2 + $0x1ee] sm:$0xff] %vm148_vm0, %v281_v20  ;;  %v492_v15 = vld [vmem:[#allocation2 + $0x38] sm:$0xf]  ;;  %v780_v19 = vmax.f32 %v587_v5, %v402_v0  ;;  %v983_v42 = vmax.f32 %v4795_v57, %v4791_v52  ;;  %v4849_v59 = vld [vmem:[#allocation2 + $0xe8] sm:$0xff]  ;;  %v984_v62 = vmax.f32 %v791_v48, %v4807_v4 }
  0x4f   : > { %315 = vst.msk [vmem:[#allocation2 + $0x206] sm:$0xff] %vm148_vm0, %v282_v21  ;;  %316 = vst.msk [vmem:[#allocation2 + $0x20e] sm:$0xff] %vm148_vm0, %v283_v22  ;;  %v496_v20 = vld [vmem:[#allocation2 + $0x58] sm:$0xf] }
  0x50   : > { %317 = vst.msk [vmem:[#allocation2 + $0x226] sm:$0xff] %vm148_vm0, %v284_v23  ;;  %318 = vst.msk [vmem:[#allocation2 + $0x22e] sm:$0xff] %vm148_vm0, %v285_v24  ;;  %v500_v21 = vld [vmem:[#allocation2 + $0x78] sm:$0xf]  ;;  %v1165_v23 = vmax.f32 %v972_v12, %v4789_v51  ;;  %v784_v24 = vmax.f32 %v591_v6, %v4803_v1  ;;  %v1176_v57 = vmax.f32 %v983_v42, %v4840_v47 }
  0x51   : > { %319 = vst.msk [vmem:[#allocation2 + $0x246] sm:$0xff] %vm148_vm0, %v286_v25  ;;  %320 = vst.msk [vmem:[#allocation2 + $0x24e] sm:$0xff] %vm148_vm0, %v287_v26  ;;  %v685_v22 = vld [vmem:[#allocation2 + $0x58] sm:$0xf]  ;;  %v4823_v25 = vld [vmem:[#allocation2 + $0xb0] sm:$0xff]  ;;  %v588_v26 = vmax.f32 %v395_v8, %v492_v15  ;;  %v596_v36 = vmax.f32 %v403_v14, %v500_v21  ;;  %v1177_v15 = vmax.f32 %v984_v62, %v4849_v59 }
  0x52   : > { %321 = vst.msk [vmem:[#allocation2 + $0x266] sm:$0xff] %vm148_vm0, %v288_v27  ;;  %322 = vst.msk [vmem:[#allocation2 + $0x26e] sm:$0xff] %vm148_vm0, %v289_v28  ;;  %v592_v27 = vmax.f32 %v4815_v13, %v496_v20  ;;  %v1169_v28 = vmax.f32 %v976_v16, %v4801_v63  ;;  %v977_v35 = vmax.f32 %v784_v24, %v4809_v7  ;;  %v415_v61 = vld [vmem:[#allocation2 + $0xb8] sm:$0xf] }
  0x53   : > { %323 = vst.msk [vmem:[#allocation2 + $0x286] sm:$0xff] %vm148_vm0, %v290_v29  ;;  %324 = vst.msk [vmem:[#allocation2 + $0x28e] sm:$0xff] %vm148_vm0, %v291_v30  ;;  %v1173_v29 = vmax.f32 %v980_v17, %v4807_v4  ;;  %v788_v30 = vmax.f32 %v595_v18, %v4809_v7  ;;  %v781_v37 = vmax.f32 %v588_v26, %v685_v22  ;;  %v882_v2 = vld [vmem:[#allocation2 + $0x98] sm:$0xf] }
  0x54   : > { %325 = vst.msk [vmem:[#allocation2 + $0x2a6] sm:$0xff] %vm148_vm0, %v292_v31  ;;  %326 = vst.msk [vmem:[#allocation2 + $0x2ae] sm:$0xff] %vm148_vm0, %v293_v32  ;;  %v973_v31 = vmax.f32 %v780_v19, %v4803_v1  ;;  %v4832_v32 = vld [vmem:[#allocation2 + $0xd0] sm:$0xff]  ;;  %v1170_v54 = vmax.f32 %v977_v35, %v4823_v25  ;;  %v789_v55 = vmax.f32 %v596_v36, %v693_v33  ;;  %v508_v3 = vld [vmem:[#allocation2 + $0xb8] sm:$0xf] }
  0x55   : > { %1260 = vst.msk [vmem:[#allocation2 + $0x40] sm:$0xff] %vm148_vm0, %v1164_v9  ;;  %1264 = vst.msk [vmem:[#allocation2 + $0x60] sm:$0xff] %vm148_vm0, %v1168_v10  ;;  %v981_v44 = vmax.f32 %v788_v30, %v4823_v25  ;;  %v974_v56 = vmax.f32 %v781_v37, %v878_v34  ;;  %v792_v0 = vmax.f32 %v599_v49, %v4823_v25  ;;  %v697_v5 = vld [vmem:[#allocation2 + $0xb8] sm:$0xf]  ;;  %v4855_v9 = vld [vmem:[#allocation2 + $0xf0] sm:$0xff] }
  0x56   : > { %1268 = vst.msk [vmem:[#allocation2 + $0x80] sm:$0xff] %vm148_vm0, %v1172_v11  ;;  %1261 = vst.msk [vmem:[#allocation2 + $0x48] sm:$0xff] %vm148_vm0, %v1165_v23  ;;  %v1166_v45 = vmax.f32 %v973_v31, %v4809_v7  ;;  %v600_v1 = vmax.f32 %v407_v43, %v504_v50  ;;  %v982_v6 = vmax.f32 %v789_v55, %v886_v38  ;;  %v890_v12 = vld [vmem:[#allocation2 + $0xd8] sm:$0xf] }
  0x57   : > { %1265 = vst.msk [vmem:[#allocation2 + $0x68] sm:$0xff] %vm148_vm0, %v1169_v28  ;;  %1269 = vst.msk [vmem:[#allocation2 + $0x88] sm:$0xff] %vm148_vm0, %v1173_v29  ;;  %v1174_v58 = vmax.f32 %v981_v44, %v4832_v32  ;;  %v1167_v8 = vmax.f32 %v974_v56, %v1071_v39  ;;  %v785_v10 = vmax.f32 %v592_v27, %v689_v53  ;;  %v419_v13 = vld [vmem:[#allocation2 + $0xd8] sm:$0xf] }
  0x58   : > { %1262 = vst.msk [vmem:[#allocation2 + $0x50] sm:$0xff] %vm148_vm0, %v1166_v45  ;;  %1266 = vst.msk [vmem:[#allocation2 + $0x70] sm:$0xff] %vm148_vm0, %v1170_v54  ;;  %v604_v11 = vmax.f32 %v411_v60, %v508_v3  ;;  %v512_v14 = vld [vmem:[#allocation2 + $0xd8] sm:$0xf]  ;;  %v985_v16 = vmax.f32 %v792_v0, %v4832_v32  ;;  %v793_v18 = vmax.f32 %v600_v1, %v697_v5 }
  0x59   : > { %1272 = vst.msk [vmem:[#allocation2 + $0xa0] sm:$0xff] %vm148_vm0, %v1176_v57  ;;  %v1075_v17 = vld [vmem:[#allocation2 + $0xb8] sm:$0xf]  ;;  %1270 = vst.msk [vmem:[#allocation2 + $0x90] sm:$0xff] %vm148_vm0, %v1174_v58  ;;  %v608_v19 = vmax.f32 %v415_v61, %v512_v14  ;;  %v1175_v22 = vmax.f32 %v982_v6, %v1079_v46  ;;  %v978_v23 = vmax.f32 %v785_v10, %v882_v2 }
  0x5a   : > { %v701_v20 = vld [vmem:[#allocation2 + $0xd8] sm:$0xf]  ;;  %1263 = vst.msk [vmem:[#allocation2 + $0x58] sm:$0xf] %vm152_vm1, %v1167_v8  ;;  %v1178_v29 = vmax.f32 %v985_v16, %v4855_v9  ;;  %v986_v30 = vmax.f32 %v793_v18, %v890_v12  ;;  %v601_v5 = vmax.f32 %v4781_v40, %v4783_v41 }
  0x5b   : > { %v894_v21 = vld [vmem:[#allocation2 + $0xf8] sm:$0xf]  ;;  %v797_v26 = vmax.f32 %v604_v11, %v701_v20  ;;  %1273 = vst.msk [vmem:[#allocation2 + $0xa8] sm:$0xff] %vm148_vm0, %v1177_v15  ;;  %v1171_v36 = vmax.f32 %v978_v23, %v1075_v17 }
  0x5c   : > { %v1083_v24 = vld [vmem:[#allocation2 + $0xf8] sm:$0xf]  ;;  %1271 = vst.msk [vmem:[#allocation2 + $0x98] sm:$0xf] %vm152_vm1, %v1175_v22 }
  0x5d   : > { %v516_v27 = vld [vmem:[#allocation2 + $0xf8] sm:$0xf]  ;;  %v990_v37 = vmax.f32 %v797_v26, %v894_v21  ;;  %v1179_v43 = vmax.f32 %v986_v30, %v1083_v24  ;;  %1274 = vst.msk [vmem:[#allocation2 + $0xb0] sm:$0xff] %vm148_vm0, %v1178_v29 }
  0x5e   : > { %v705_v28 = vld [vmem:[#allocation2 + $0xf8] sm:$0xf]  ;;  %v612_v33 = vmax.f32 %v419_v13, %v516_v27  ;;  %1267 = vst.msk [vmem:[#allocation2 + $0x78] sm:$0xf] %vm152_vm1, %v1171_v36  ;;  %v602_v36 = vmax.f32 %v4789_v51, %v4801_v63  ;;  %v606_v51 = vmax.f32 %v4801_v63, %v4807_v4 }
  0x5f   : > { %v1087_v31 = vld [vmem:[#allocation2 + $0x118] sm:$0xf]  ;;  %v801_v34 = vmax.f32 %v608_v19, %v705_v28  ;;  %v1358_v53 = vld [vmem:[#allocation2 + $0x50] sm:$0xff]  ;;  %1275 = vst.msk [vmem:[#allocation2 + $0xb8] sm:$0xf] %vm152_vm1, %v1179_v43 }
  0x60   : > { %v898_v35 = vld [vmem:[#allocation2 + $0x118] sm:$0xf]  ;;  %v1183_v46 = vmax.f32 %v990_v37, %v1087_v31  ;;  %v1364_v57 = vld [vmem:[#allocation2 + $0x90] sm:$0xff] }
  0x61   : > { %v1091_v38 = vld [vmem:[#allocation2 + $0x138] sm:$0xf]  ;;  %v994_v44 = vmax.f32 %v801_v34, %v898_v35  ;;  %v1361_v2 = vld [vmem:[#allocation2 + $0x70] sm:$0xff]  ;;  %v605_v34 = vmax.f32 %v4783_v41, %v4791_v52  ;;  %v4881_v35 = vmax.f32 %v601_v5, %v4791_v52 }
  0x62   : > { %v709_v39 = vld [vmem:[#allocation2 + $0x118] sm:$0xf]  ;;  %1279 = vst.msk [vmem:[#allocation2 + $0xd8] sm:$0xf] %vm152_vm1, %v1183_v46  ;;  %v4874_v26 = vld [vmem:[#allocation2 + $0x4b] sm:$0xff] }
  0x63   : > { %v902_v42 = vld [vmem:[#allocation2 + $0x138] sm:$0xf]  ;;  %v805_v45 = vmax.f32 %v612_v33, %v709_v39  ;;  %v1187_v54 = vmax.f32 %v994_v44, %v1091_v38  ;;  %v4876_v40 = vld [vmem:[#allocation2 + $0x4c] sm:$0xff] }
  0x64   : > { %v423_v48 = vld [vmem:[#allocation2 + $0xf8] sm:$0xf] }
  0x65   : > { %v520_v49 = vld [vmem:[#allocation2 + $0x118] sm:$0xf]  ;;  %v998_v55 = vmax.f32 %v805_v45, %v902_v42  ;;  %1283 = vst.msk [vmem:[#allocation2 + $0xf8] sm:$0xf] %vm152_vm1, %v1187_v54 }
  0x66   : > { %v1095_v50 = vld [vmem:[#allocation2 + $0x158] sm:$0xf]  ;;  %v616_v60 = vmax.f32 %v423_v48, %v520_v49  ;;  %v4885_v48 = vld [vmem:[#allocation2 + $0x8b] sm:$0xff] }
  0x67   : > { %v1430_v56 = vld [vmem:[#allocation2 + $0x51] sm:$0xff]  ;;  %v1191_v61 = vmax.f32 %v998_v55, %v1095_v50 }
  0x68   : > { %v1502_v58 = vmax.f32 %v1358_v53, %v1430_v56  ;;  %v427_v62 = vld [vmem:[#allocation2 + $0x118] sm:$0xf]  ;;  %v4887_v49 = vld [vmem:[#allocation2 + $0x8c] sm:$0xff]  ;;  %v603_v56 = vmax.f32 %v4809_v7, %v4823_v25 }
  0x69   : > { %v524_v0 = vld [vmem:[#allocation2 + $0x138] sm:$0xf]  ;;  %1287 = vst.msk [vmem:[#allocation2 + $0x118] sm:$0xf] %vm152_vm1, %v1191_v61 }
  0x6a   : > { %v1574_v1 = vld [vmem:[#allocation2 + $0x52] sm:$0xff]  ;;  %v620_v17 = vmax.f32 %v427_v62, %v524_v0 }
  0x6b   : > { %v1436_v3 = vld [vmem:[#allocation2 + $0x91] sm:$0xff]  ;;  %v1646_v6 = vmax.f32 %v1502_v58, %v1574_v1 }
  0x6c   : > { %v1718_v8 = vld [vmem:[#allocation2 + $0x53] sm:$0xff]  ;;  %v1508_v10 = vmax.f32 %v1364_v57, %v1436_v3 }
  0x6d   : > { %v431_v11 = vld [vmem:[#allocation2 + $0x138] sm:$0xf]  ;;  %v1790_v19 = vmax.f32 %v1646_v6, %v1718_v8  ;;  %v4896_v3 = vld [vmem:[#allocation2 + $0x6c] sm:$0xff] }
  0x6e   : > { %v713_v12 = vld [vmem:[#allocation2 + $0x138] sm:$0xf] }
  0x6f   : > { %v1862_v13 = vld [vmem:[#allocation2 + $0x54] sm:$0xff]  ;;  %v809_v18 = vmax.f32 %v616_v60, %v713_v12 }
  0x70   : > { %v1433_v14 = vld [vmem:[#allocation2 + $0x71] sm:$0xff]  ;;  %v1934_v37 = vmax.f32 %v1790_v19, %v1862_v13 }
  0x71   : > { %v1580_v15 = vld [vmem:[#allocation2 + $0x92] sm:$0xff]  ;;  %v1505_v20 = vmax.f32 %v1361_v2, %v1433_v14 }
  0x72   : > { %v1724_v16 = vld [vmem:[#allocation2 + $0x93] sm:$0xff]  ;;  %v1652_v22 = vmax.f32 %v1508_v10, %v1580_v15  ;;  %2006 = vst.msk [vmem:[#allocation2 + $0x52] sm:$0xff] %vm148_vm0, %v1934_v37  ;;  %v4894_v2 = vld [vmem:[#allocation2 + $0x6b] sm:$0xff]  ;;  %v4900_v10 = vmax.f32 %v605_v34, %v4840_v47  ;;  %v799_v34 = vmax.f32 %v606_v51, %v4849_v59 }
  0x73   : > { %v1577_v21 = vld [vmem:[#allocation2 + $0x72] sm:$0xff] }
  0x74   : > { %v906_v23 = vld [vmem:[#allocation2 + $0x158] sm:$0xf]  ;;  %v1649_v38 = vmax.f32 %v1505_v20, %v1577_v21  ;;  %v1796_v39 = vmax.f32 %v1652_v22, %v1724_v16 }
  0x75   : > { %v1099_v24 = vld [vmem:[#allocation2 + $0x178] sm:$0xf]  ;;  %v1002_v29 = vmax.f32 %v809_v18, %v906_v23  ;;  %v795_v18 = vmax.f32 %v602_v36, %v4807_v4 }
  0x76   : > { %v1721_v27 = vld [vmem:[#allocation2 + $0x73] sm:$0xff] }
  0x77   : > { %v1868_v28 = vld [vmem:[#allocation2 + $0x94] sm:$0xff]  ;;  %v1195_v50 = vmax.f32 %v1002_v29, %v1099_v24  ;;  %v1793_v57 = vmax.f32 %v1649_v38, %v1721_v27  ;;  %v796_v27 = vmax.f32 %v603_v56, %v4832_v32 }
  0x78   : > { %v435_v30 = vld [vmem:[#allocation2 + $0x158] sm:$0xf]  ;;  %v1940_v60 = vmax.f32 %v1796_v39, %v1868_v28 }
  0x79   : > { %v528_v31 = vld [vmem:[#allocation2 + $0x158] sm:$0xf]  ;;  %1291 = vst.msk [vmem:[#allocation2 + $0x138] sm:$0xf] %vm152_vm1, %v1195_v50 }
  0x7a   : > { %v717_v33 = vld [vmem:[#allocation2 + $0x158] sm:$0xf]  ;;  %v624_v42 = vmax.f32 %v431_v11, %v528_v31  ;;  %v607_v11 = vmax.f32 %v4823_v25, %v4832_v32  ;;  %2012 = vst.msk [vmem:[#allocation2 + $0x92] sm:$0xff] %vm148_vm0, %v1940_v60  ;;  %v989_v60 = vmax.f32 %v796_v27, %v4855_v9 }
  0x7b   : > { %v910_v43 = vld [vmem:[#allocation2 + $0x178] sm:$0xf]  ;;  %v813_v41 = vmax.f32 %v620_v17, %v717_v33  ;;  %v987_v33 = vmax.f32 %v4881_v35, %v4840_v47 }
  0x7c   : > { %v1103_v44 = vld [vmem:[#allocation2 + $0x198] sm:$0xf] }
  0x7d   : > { %v439_v45 = vld [vmem:[#allocation2 + $0x178] sm:$0xf]  ;;  %v1006_v5 = vmax.f32 %v813_v41, %v910_v43  ;;  %v609_v43 = vmax.f32 %v4791_v52, %v4840_v47  ;;  %v988_v41 = vmax.f32 %v795_v18, %v4849_v59 }
  0x7e   : > { %v1865_v46 = vld [vmem:[#allocation2 + $0x74] sm:$0xff] }
  0x7f   : > { %v532_v53 = vld [vmem:[#allocation2 + $0x178] sm:$0xf]  ;;  %v1937_v12 = vmax.f32 %v1793_v57, %v1865_v46  ;;  %v1199_v19 = vmax.f32 %v1006_v5, %v1103_v44  ;;  %v611_v5 = vmax.f32 %v4832_v32, %v4855_v9  ;;  %v4938_v32 = vld [vmem:[#allocation2 + $0x110] sm:$0xff] }
  0x80   : > { %v721_v54 = vld [vmem:[#allocation2 + $0x178] sm:$0xf]  ;;  %v628_v61 = vmax.f32 %v435_v30, %v532_v53  ;;  %v800_v53 = vmax.f32 %v607_v11, %v4855_v9 }
  0x81   : > { %v914_v55 = vld [vmem:[#allocation2 + $0x198] sm:$0xf]  ;;  %v817_v58 = vmax.f32 %v624_v42, %v721_v54  ;;  %2009 = vst.msk [vmem:[#allocation2 + $0x72] sm:$0xff] %vm148_vm0, %v1937_v12  ;;  %v4932_v12 = vld [vmem:[#allocation2 + $0x108] sm:$0xff] }
  0x82   : > { %v1107_v62 = vld [vmem:[#allocation2 + $0x1b8] sm:$0xf]  ;;  %1295 = vst.msk [vmem:[#allocation2 + $0x158] sm:$0xf] %vm152_vm1, %v1199_v19 }
  0x83   : > { %v443_v0 = vld [vmem:[#allocation2 + $0x198] sm:$0xf]  ;;  %v1010_v13 = vmax.f32 %v817_v58, %v914_v55 }
  0x84   : > { %v536_v1 = vld [vmem:[#allocation2 + $0x198] sm:$0xf] }
  0x85   : > { %v632_v63 = vmax.f32 %v439_v45, %v536_v1  ;;  %v725_v6 = vld [vmem:[#allocation2 + $0x198] sm:$0xf]  ;;  %v1203_v25 = vmax.f32 %v1010_v13, %v1107_v62  ;;  %v610_v1 = vmax.f32 %v4807_v4, %v4849_v59  ;;  %v992_v4 = vmax.f32 %v799_v34, %v4932_v12 }
  0x86   : > { %v918_v8 = vld [vmem:[#allocation2 + $0x1b8] sm:$0xf]  ;;  %v821_v14 = vmax.f32 %v628_v61, %v725_v6  ;;  %v614_v34 = vmax.f32 %v4849_v59, %v4932_v12 }
  0x87   : > { %v1111_v7 = vld [vmem:[#allocation2 + $0x1d8] sm:$0xf]  ;;  %1299 = vst.msk [vmem:[#allocation2 + $0x178] sm:$0xf] %vm152_vm1, %v1203_v25  ;;  %v4950_v25 = vld [vmem:[#allocation2 + $0x130] sm:$0xff] }
  0x88   : > { %v447_v15 = vld [vmem:[#allocation2 + $0x1b8] sm:$0xf]  ;;  %v1014_v28 = vmax.f32 %v821_v14, %v918_v8  ;;  %v4934_v14 = vld [vmem:[#allocation2 + $0x120] sm:$0xff] }
  0x89   : > { %v540_v16 = vld [vmem:[#allocation2 + $0x1b8] sm:$0xf] }
  0x8a   : > { %v729_v17 = vld [vmem:[#allocation2 + $0x1b8] sm:$0xf]  ;;  %v636_v20 = vmax.f32 %v443_v0, %v540_v16  ;;  %v1207_v44 = vmax.f32 %v1014_v28, %v1111_v7  ;;  %v4922_v0 = vld [vmem:[#allocation2 + $0x100] sm:$0xff]  ;;  %v1367_v16 = vld [vmem:[#allocation2 + $0xb0] sm:$0xff] }
  0x8b   : > { %v825_v21 = vmax.f32 %v632_v63, %v729_v17  ;;  %v922_v22 = vld [vmem:[#allocation2 + $0x1d8] sm:$0xf]  ;;  %v991_v7 = vmax.f32 %v4900_v10, %v4922_v0  ;;  %v1180_v11 = vmax.f32 %v987_v33, %v4922_v0  ;;  %v613_v17 = vmax.f32 %v4840_v47, %v4922_v0 }
  0x8c   : > { %v1115_v23 = vld [vmem:[#allocation2 + $0x1f8] sm:$0xf]  ;;  %1303 = vst.msk [vmem:[#allocation2 + $0x198] sm:$0xf] %vm152_vm1, %v1207_v44  ;;  %v802_v28 = vmax.f32 %v609_v43, %v4922_v0 }
  0x8d   : > { %v451_v24 = vld [vmem:[#allocation2 + $0x1d8] sm:$0xf]  ;;  %v1018_v36 = vmax.f32 %v825_v21, %v922_v22  ;;  %v1184_v19 = vmax.f32 %v991_v7, %v4934_v14  ;;  %v993_v21 = vmax.f32 %v800_v53, %v4938_v32  ;;  %v1182_v22 = vmax.f32 %v989_v60, %v4938_v32  ;;  %1276 = vst.msk [vmem:[#allocation2 + $0xc0] sm:$0xff] %vm148_vm0, %v1180_v11 }
  0x8e   : > { %v544_v29 = vld [vmem:[#allocation2 + $0x1d8] sm:$0xf]  ;;  %v617_v53 = vmax.f32 %v4922_v0, %v4934_v14  ;;  %v4984_v0 = vld [vmem:[#allocation2 + $0x150] sm:$0xff] }
  0x8f   : > { %v733_v30 = vld [vmem:[#allocation2 + $0x1d8] sm:$0xf]  ;;  %v640_v37 = vmax.f32 %v447_v15, %v544_v29  ;;  %v1211_v54 = vmax.f32 %v1018_v36, %v1115_v23  ;;  %v1181_v15 = vmax.f32 %v988_v41, %v4932_v12  ;;  %v1186_v29 = vmax.f32 %v993_v21, %v4950_v25  ;;  %1278 = vst.msk [vmem:[#allocation2 + $0xd0] sm:$0xff] %vm148_vm0, %v1182_v22 }
  0x90   : > { %v926_v31 = vld [vmem:[#allocation2 + $0x1f8] sm:$0xf]  ;;  %v829_v38 = vmax.f32 %v636_v20, %v733_v30  ;;  %v4944_v20 = vld [vmem:[#allocation2 + $0x128] sm:$0xff]  ;;  %1280 = vst.msk [vmem:[#allocation2 + $0xe0] sm:$0xff] %vm148_vm0, %v1184_v19  ;;  %v803_v36 = vmax.f32 %v610_v1, %v4932_v12 }
  0x91   : > { %v4912_v39 = vld [vmem:[#allocation2 + $0x1f8] sm:$0xf]  ;;  %1307 = vst.msk [vmem:[#allocation2 + $0x1b8] sm:$0xf] %vm152_vm1, %v1211_v54  ;;  %v1185_v27 = vmax.f32 %v992_v4, %v4944_v20  ;;  %v806_v54 = vmax.f32 %v613_v17, %v4934_v14  ;;  %v4991_v4 = vld [vmem:[#allocation2 + $0x160] sm:$0xff] }
  0x92   : > { %v548_v42 = vld [vmem:[#allocation2 + $0x1f8] sm:$0xf]  ;;  %v1022_v55 = vmax.f32 %v829_v38, %v926_v31  ;;  %1277 = vst.msk [vmem:[#allocation2 + $0xc8] sm:$0xff] %vm148_vm0, %v1181_v15  ;;  %1282 = vst.msk [vmem:[#allocation2 + $0xf0] sm:$0xff] %vm148_vm0, %v1186_v29  ;;  %v4993_v15 = vld [vmem:[#allocation2 + $0xab] sm:$0xff] }
  0x93   : > { %v1119_v45 = vld [vmem:[#allocation2 + $0x218] sm:$0xf]  ;;  %v644_v46 = vmax.f32 %v451_v24, %v548_v42  ;;  %1281 = vst.msk [vmem:[#allocation2 + $0xe8] sm:$0xff] %vm148_vm0, %v1185_v27 }
  0x94   : > { %v737_v50 = vld [vmem:[#allocation2 + $0x1f8] sm:$0xf]  ;;  %v1215_v63 = vmax.f32 %v1022_v55, %v1119_v45  ;;  %v995_v45 = vmax.f32 %v802_v28, %v4934_v14 }
  0x95   : > { %v930_v35 = vld [vmem:[#allocation2 + $0x218] sm:$0xf]  ;;  %v833_v51 = vmax.f32 %v640_v37, %v737_v50  ;;  %v615_v37 = vmax.f32 %v4855_v9, %v4938_v32  ;;  %v996_v9 = vmax.f32 %v803_v36, %v4944_v20 }
  0x96   : > { %v552_v56 = vld [vmem:[#allocation2 + $0x218] sm:$0xf]  ;;  %1311 = vst.msk [vmem:[#allocation2 + $0x1d8] sm:$0xf] %vm152_vm1, %v1215_v63  ;;  %v1370_v19 = vld [vmem:[#allocation2 + $0xd0] sm:$0xff] }
  0x97   : > { %v741_v57 = vld [vmem:[#allocation2 + $0x218] sm:$0xf]  ;;  %v648_v61 = vmax.f32 %v4912_v39, %v552_v56  ;;  %v1026_v6 = vmax.f32 %v833_v51, %v930_v35 }
  0x98   : > { %v1123_v52 = vld [vmem:[#allocation2 + $0x238] sm:$0xf]  ;;  %v837_v58 = vmax.f32 %v644_v46, %v741_v57  ;;  %v804_v46 = vmax.f32 %v611_v5, %v4938_v32  ;;  %v4982_v5 = vld [vmem:[#allocation2 + $0x148] sm:$0xff] }
  0x99   : > { %v934_v62 = vld [vmem:[#allocation2 + $0x238] sm:$0xf]  ;;  %v1219_v10 = vmax.f32 %v1026_v6, %v1123_v52  ;;  %v4978_v52 = vld [vmem:[#allocation2 + $0x140] sm:$0xff]  ;;  %v618_v6 = vmax.f32 %v4932_v12, %v4944_v20  ;;  %v1189_v11 = vmax.f32 %v996_v9, %v4982_v5  ;;  %v619_v12 = vmax.f32 %v4938_v32, %v4950_v25 }
  0x9a   : > { %v1127_v8 = vld [vmem:[#allocation2 + $0x258] sm:$0xf]  ;;  %v1030_v13 = vmax.f32 %v837_v58, %v934_v62  ;;  %v1188_v1 = vmax.f32 %v995_v45, %v4978_v52  ;;  %v999_v63 = vmax.f32 %v806_v54, %v4978_v52  ;;  %v810_v27 = vmax.f32 %v617_v53, %v4978_v52  ;;  %v5028_v45 = vld [vmem:[#allocation2 + $0x180] sm:$0xff]  ;;  %v5035_v53 = vld [vmem:[#allocation2 + $0x188] sm:$0xff] }
  0x9b   : > { %v459_v18 = vld [vmem:[#allocation2 + $0x218] sm:$0xf]  ;;  %1315 = vst.msk [vmem:[#allocation2 + $0x1f8] sm:$0xf] %vm152_vm1, %v1219_v10  ;;  %v622_v29 = vmax.f32 %v4944_v20, %v4982_v5 }
  0x9c   : > { %v1439_v23 = vld [vmem:[#allocation2 + $0xb1] sm:$0xff]  ;;  %v1223_v24 = vmax.f32 %v1030_v13, %v1127_v8  ;;  %1284 = vst.msk [vmem:[#allocation2 + $0x100] sm:$0xff] %vm148_vm0, %v1188_v1  ;;  %v1192_v10 = vmax.f32 %v999_v63, %v4991_v4  ;;  %1285 = vst.msk [vmem:[#allocation2 + $0x108] sm:$0xff] %vm148_vm0, %v1189_v11 }
  0x9d   : > { %v1511_v47 = vmax.f32 %v1367_v16, %v1439_v23  ;;  %v1583_v30 = vld [vmem:[#allocation2 + $0xb2] sm:$0xff]  ;;  %v808_v23 = vmax.f32 %v615_v37, %v4950_v25  ;;  %v1003_v37 = vmax.f32 %v810_v27, %v4991_v4 }
  0x9e   : > { %v4956_v31 = vld [vmem:[#allocation2 + $0x238] sm:$0xf]  ;;  %1319 = vst.msk [vmem:[#allocation2 + $0x218] sm:$0xf] %vm152_vm1, %v1223_v24  ;;  %v4995_v16 = vld [vmem:[#allocation2 + $0xac] sm:$0xff]  ;;  %v621_v24 = vmax.f32 %v4934_v14, %v4978_v52 }
  0x9f   : > { %v556_v33 = vld [vmem:[#allocation2 + $0x238] sm:$0xf]  ;;  %v1655_v38 = vmax.f32 %v1511_v47, %v1583_v30  ;;  %1288 = vst.msk [vmem:[#allocation2 + $0x120] sm:$0xff] %vm148_vm0, %v1192_v10  ;;  %v811_v30 = vmax.f32 %v618_v6, %v4982_v5  ;;  %v1373_v14 = vld [vmem:[#allocation2 + $0xf0] sm:$0xff]  ;;  %v1001_v36 = vmax.f32 %v808_v23, %v4984_v0  ;;  %v629_v10 = vmax.f32 %v4991_v4, %v5028_v45 }
  0xa0   : > { %v1727_v39 = vld [vmem:[#allocation2 + $0xb3] sm:$0xff]  ;;  %v652_v42 = vmax.f32 %v459_v18, %v556_v33  ;;  %v807_v18 = vmax.f32 %v614_v34, %v4944_v20  ;;  %v5018_v34 = vld [vmem:[#allocation2 + $0x168] sm:$0xff] }
  0xa1   : > { %v745_v43 = vld [vmem:[#allocation2 + $0x238] sm:$0xf]  ;;  %v1799_v55 = vmax.f32 %v1655_v38, %v1727_v39  ;;  %v623_v38 = vmax.f32 %v4950_v25, %v4984_v0  ;;  %v812_v39 = vmax.f32 %v619_v12, %v4984_v0  ;;  %v815_v63 = vmax.f32 %v622_v29, %v5018_v34  ;;  %v5058_v12 = vld [vmem:[#allocation2 + $0xcc] sm:$0xff] }
  0xa2   : > { %v938_v44 = vld [vmem:[#allocation2 + $0x258] sm:$0xf]  ;;  %v841_v59 = vmax.f32 %v648_v61, %v745_v43  ;;  %v997_v61 = vmax.f32 %v804_v46, %v4950_v25  ;;  %v1000_v28 = vmax.f32 %v807_v18, %v4982_v5  ;;  %v1004_v46 = vmax.f32 %v811_v30, %v5018_v34  ;;  %v5056_v18 = vld [vmem:[#allocation2 + $0xcb] sm:$0xff] }
  0xa3   : > { %v1871_v50 = vld [vmem:[#allocation2 + $0xb4] sm:$0xff]  ;;  %v1196_v25 = vmax.f32 %v1003_v37, %v5028_v45  ;;  %v630_v29 = vmax.f32 %v5018_v34, %v5035_v53 }
  0xa4   : > { %v4969_v35 = vld [vmem:[#allocation2 + $0x258] sm:$0xf]  ;;  %v1034_v58 = vmax.f32 %v841_v59, %v938_v44  ;;  %v1943_v8 = vmax.f32 %v1799_v55, %v1871_v50  ;;  %v1190_v13 = vmax.f32 %v997_v61, %v4984_v0  ;;  %v1193_v20 = vmax.f32 %v1000_v28, %v5018_v34  ;;  %v5026_v44 = vld [vmem:[#allocation2 + $0x170] sm:$0xff] }
  0xa5   : > { %v749_v41 = vld [vmem:[#allocation2 + $0x258] sm:$0xf]  ;;  %v656_v56 = vmax.f32 %v4956_v31, %v4969_v35  ;;  %v625_v50 = vmax.f32 %v4978_v52, %v4991_v4  ;;  %v1194_v9 = vmax.f32 %v1001_v36, %v5026_v44  ;;  %v1005_v54 = vmax.f32 %v812_v39, %v5026_v44  ;;  %1292 = vst.msk [vmem:[#allocation2 + $0x140] sm:$0xff] %vm148_vm0, %v1196_v25  ;;  %v5092_v25 = vld [vmem:[#allocation2 + $0x1c8] sm:$0xff] }
  0xa6   : > { %v1131_v51 = vld [vmem:[#allocation2 + $0x278] sm:$0xf]  ;;  %v845_v57 = vmax.f32 %v652_v42, %v749_v41  ;;  %2015 = vst.msk [vmem:[#allocation2 + $0xb2] sm:$0xff] %vm148_vm0, %v1943_v8  ;;  %1286 = vst.msk [vmem:[#allocation2 + $0x110] sm:$0xff] %vm148_vm0, %v1190_v13  ;;  %v814_v52 = vmax.f32 %v621_v24, %v4991_v4  ;;  %v626_v61 = vmax.f32 %v4982_v5, %v5018_v34  ;;  %v5083_v34 = vld [vmem:[#allocation2 + $0x1c0] sm:$0xff] }
  0xa7   : > { %v942_v60 = vld [vmem:[#allocation2 + $0x278] sm:$0xf]  ;;  %v1227_v17 = vmax.f32 %v1034_v58, %v1131_v51  ;;  %1289 = vst.msk [vmem:[#allocation2 + $0x128] sm:$0xff] %vm148_vm0, %v1193_v20  ;;  %1290 = vst.msk [vmem:[#allocation2 + $0x130] sm:$0xff] %vm148_vm0, %v1194_v9  ;;  %v627_v6 = vmax.f32 %v4984_v0, %v5026_v44  ;;  %v5061_v0 = vld [vmem:[#allocation2 + $0x1a0] sm:$0xff]  ;;  %v818_v23 = vmax.f32 %v625_v50, %v5028_v45 }
  0xa8   : > { %v1135_v62 = vld [vmem:[#allocation2 + $0x298] sm:$0xf]  ;;  %v1038_v7 = vmax.f32 %v845_v57, %v942_v60  ;;  %v1197_v57 = vmax.f32 %v1004_v46, %v5035_v53  ;;  %v5040_v60 = vld [vmem:[#allocation2 + $0x190] sm:$0xff]  ;;  %v1007_v5 = vmax.f32 %v814_v52, %v5028_v45  ;;  %v819_v30 = vmax.f32 %v626_v61, %v5035_v53 }
  0xa9   : > { %v1442_v21 = vld [vmem:[#allocation2 + $0xd1] sm:$0xff]  ;;  %1323 = vst.msk [vmem:[#allocation2 + $0x238] sm:$0xf] %vm152_vm1, %v1227_v17  ;;  %v1198_v1 = vmax.f32 %v1005_v54, %v5040_v60  ;;  %v816_v17 = vmax.f32 %v623_v38, %v5026_v44  ;;  %v1011_v39 = vmax.f32 %v818_v23, %v5061_v0  ;;  %v631_v50 = vmax.f32 %v5026_v44, %v5040_v60 }
  0xaa   : > { %v1231_v22 = vmax.f32 %v1038_v7, %v1135_v62  ;;  %v1514_v47 = vmax.f32 %v1370_v19, %v1442_v21  ;;  %v5010_v32 = vld [vmem:[#allocation2 + $0x258] sm:$0xf]  ;;  %1293 = vst.msk [vmem:[#allocation2 + $0x148] sm:$0xff] %vm148_vm0, %v1197_v57  ;;  %v1200_v4 = vmax.f32 %v1007_v5, %v5061_v0  ;;  %v5076_v38 = vld [vmem:[#allocation2 + $0x1b0] sm:$0xff]  ;;  %v633_v54 = vmax.f32 %v5028_v45, %v5061_v0 }
  0xab   : > { %v1586_v33 = vld [vmem:[#allocation2 + $0xd2] sm:$0xff]  ;;  %1294 = vst.msk [vmem:[#allocation2 + $0x150] sm:$0xff] %vm148_vm0, %v1198_v1  ;;  %v1009_v28 = vmax.f32 %v816_v17, %v5040_v60  ;;  %v1204_v9 = vmax.f32 %v1011_v39, %v5083_v34  ;;  %v5115_v17 = vld [vmem:[#allocation2 + $0x1e0] sm:$0xff] }
  0xac   : > { %1327 = vst.msk [vmem:[#allocation2 + $0x258] sm:$0xf] %vm152_vm1, %v1231_v22  ;;  %v1658_v42 = vmax.f32 %v1514_v47, %v1586_v33  ;;  %v1445_v43 = vld [vmem:[#allocation2 + $0xf1] sm:$0xff]  ;;  %v1008_v22 = vmax.f32 %v815_v63, %v5035_v53  ;;  %v5067_v47 = vld [vmem:[#allocation2 + $0x1a8] sm:$0xff] }
  0xad   : > { %v1730_v59 = vld [vmem:[#allocation2 + $0xd3] sm:$0xff]  ;;  %v1517_v41 = vmax.f32 %v1373_v14, %v1445_v43  ;;  %v5073_v33 = vld [vmem:[#allocation2 + $0xeb] sm:$0xff]  ;;  %1296 = vst.msk [vmem:[#allocation2 + $0x160] sm:$0xff] %vm148_vm0, %v1200_v4  ;;  %v1202_v20 = vmax.f32 %v1009_v28, %v5076_v38  ;;  %v1012_v46 = vmax.f32 %v819_v30, %v5067_v47  ;;  %1300 = vst.msk [vmem:[#allocation2 + $0x180] sm:$0xff] %vm148_vm0, %v1204_v9 }
  0xae   : > { %v1802_v55 = vmax.f32 %v1658_v42, %v1730_v59  ;;  %v1589_v51 = vld [vmem:[#allocation2 + $0xf2] sm:$0xff]  ;;  %8478 = vst [vmem:[#allocation3_spill] sm:$0xff] %v5073_v33  ;;  %v1201_v37 = vmax.f32 %v1008_v22, %v5067_v47  ;;  %v820_v59 = vmax.f32 %v627_v6, %v5040_v60  ;;  %v638_v4 = vmax.f32 %v5067_v47, %v5092_v25  ;;  %v1585_v33 = vld [vmem:[#allocation2 + $0xca] sm:$0xff] }
  0xaf   : > { %v1874_v58 = vld [vmem:[#allocation2 + $0xd4] sm:$0xff]  ;;  %v1661_v62 = vmax.f32 %v1517_v41, %v1589_v51  ;;  %v5079_v42 = vld [vmem:[#allocation2 + $0xec] sm:$0xff]  ;;  %1298 = vst.msk [vmem:[#allocation2 + $0x170] sm:$0xff] %vm148_vm0, %v1202_v20  ;;  %v1205_v44 = vmax.f32 %v1012_v46, %v5092_v25 }
  0xb0   : > { %v1946_v8 = vmax.f32 %v1802_v55, %v1874_v58  ;;  %v1733_v7 = vld [vmem:[#allocation2 + $0xf3] sm:$0xff]  ;;  %8479 = vst [vmem:[#allocation4_spill] sm:$0xff] %v5079_v42  ;;  %1297 = vst.msk [vmem:[#allocation2 + $0x168] sm:$0xff] %vm148_vm0, %v1201_v37  ;;  %v822_v55 = vmax.f32 %v629_v10, %v5061_v0  ;;  %v1013_v61 = vmax.f32 %v820_v59, %v5076_v38  ;;  %v5103_v1 = vld [vmem:[#allocation2 + $0x10b] sm:$0xff] }
  0xb1   : > { %v1376_v11 = vld [vmem:[#allocation2 + $0x110] sm:$0xff]  ;;  %v1805_v19 = vmax.f32 %v1661_v62, %v1733_v7  ;;  %v634_v58 = vmax.f32 %v5035_v53, %v5067_v47  ;;  %v823_v62 = vmax.f32 %v630_v29, %v5067_v47  ;;  %8480 = vst [vmem:[#allocation5_spill] sm:$0xff] %v5103_v1  ;;  %1301 = vst.msk [vmem:[#allocation2 + $0x188] sm:$0xff] %vm148_vm0, %v1205_v44  ;;  %v1368_v1 = vld [vmem:[#allocation2 + $0xc0] sm:$0xff] }
  0xb2   : > { %v1448_v13 = vld [vmem:[#allocation2 + $0x111] sm:$0xff]  ;;  %2018 = vst.msk [vmem:[#allocation2 + $0xd2] sm:$0xff] %vm148_vm0, %v1946_v8  ;;  %v1015_v7 = vmax.f32 %v822_v55, %v5083_v34  ;;  %v641_v55 = vmax.f32 %v5083_v34, %v5115_v17 }
  0xb3   : > { %v1520_v21 = vmax.f32 %v1376_v11, %v1448_v13  ;;  %v1877_v24 = vld [vmem:[#allocation2 + $0xf4] sm:$0xff]  ;;  %v5105_v63 = vld [vmem:[#allocation2 + $0x10c] sm:$0xff]  ;;  %v635_v11 = vmax.f32 %v5040_v60, %v5076_v38  ;;  %v1016_v10 = vmax.f32 %v823_v62, %v5092_v25 }
  0xb4   : > { %v1592_v27 = vld [vmem:[#allocation2 + $0x112] sm:$0xff]  ;;  %v1949_v14 = vmax.f32 %v1805_v19, %v1877_v24  ;;  %8481 = vst [vmem:[#allocation6_spill] sm:$0xff] %v5105_v63  ;;  %v824_v19 = vmax.f32 %v631_v50, %v5076_v38  ;;  %v1208_v60 = vmax.f32 %v1015_v7, %v5115_v17  ;;  %v5123_v24 = vld [vmem:[#allocation2 + $0x1e8] sm:$0xff] }
  0xb5   : > { %v1664_v36 = vmax.f32 %v1520_v21, %v1592_v27  ;;  %v1736_v43 = vld [vmem:[#allocation2 + $0x113] sm:$0xff]  ;;  %v637_v21 = vmax.f32 %v5061_v0, %v5083_v34  ;;  %v826_v27 = vmax.f32 %v633_v54, %v5083_v34  ;;  %v1209_v30 = vmax.f32 %v1016_v10, %v5123_v24  ;;  %v5144_v54 = vld [vmem:[#allocation2 + $0x208] sm:$0xff] }
  0xb6   : > { %2021 = vst.msk [vmem:[#allocation2 + $0xf2] sm:$0xff] %vm148_vm0, %v1949_v14  ;;  %v1880_v51 = vld [vmem:[#allocation2 + $0x114] sm:$0xff]  ;;  %v827_v14 = vmax.f32 %v634_v58, %v5092_v25  ;;  %1304 = vst.msk [vmem:[#allocation2 + $0x1a0] sm:$0xff] %vm148_vm0, %v1208_v60  ;;  %v5151_v62 = vld [vmem:[#allocation2 + $0x12b] sm:$0xff] }
  0xb7   : > { %v1808_v41 = vmax.f32 %v1664_v36, %v1736_v43  ;;  %v1379_v57 = vld [vmem:[#allocation2 + $0x130] sm:$0xff]  ;;  %v1019_v43 = vmax.f32 %v826_v27, %v5115_v17  ;;  %1305 = vst.msk [vmem:[#allocation2 + $0x1a8] sm:$0xff] %vm148_vm0, %v1209_v30  ;;  %v830_v58 = vmax.f32 %v637_v21, %v5115_v17  ;;  %8482 = vst [vmem:[#allocation7_spill] sm:$0xff] %v5151_v62  ;;  %v1434_v62 = vld [vmem:[#allocation2 + $0x81] sm:$0xff] }
  0xb8   : > { %v1451_v52 = vld [vmem:[#allocation2 + $0x131] sm:$0xff]  ;;  %v1020_v9 = vmax.f32 %v827_v14, %v5123_v24  ;;  %v831_v21 = vmax.f32 %v638_v4, %v5123_v24 }
  0xb9   : > { %v1952_v45 = vmax.f32 %v1808_v41, %v1880_v51  ;;  %v1523_v6 = vmax.f32 %v1379_v57, %v1451_v52  ;;  %v5108_v8 = vld [vmem:[#allocation2 + $0x1d0] sm:$0xff]  ;;  %v5141_v41 = vld [vmem:[#allocation2 + $0x200] sm:$0xff] }
  0xba   : > { %v1595_v13 = vld [vmem:[#allocation2 + $0x132] sm:$0xff]  ;;  %v1206_v53 = vmax.f32 %v1013_v61, %v5108_v8  ;;  %v1017_v0 = vmax.f32 %v824_v19, %v5108_v8  ;;  %v639_v47 = vmax.f32 %v5076_v38, %v5108_v8  ;;  %v828_v20 = vmax.f32 %v635_v11, %v5108_v8 }
  0xbb   : > { %v1382_v5 = vld [vmem:[#allocation2 + $0x150] sm:$0xff]  ;;  %2024 = vst.msk [vmem:[#allocation2 + $0x112] sm:$0xff] %vm148_vm0, %v1952_v45  ;;  %v1667_v22 = vmax.f32 %v1523_v6, %v1595_v13  ;;  %v1212_v44 = vmax.f32 %v1019_v43, %v5141_v41  ;;  %v1213_v34 = vmax.f32 %v1020_v9, %v5144_v54  ;;  %v642_v13 = vmax.f32 %v5092_v25, %v5123_v24 }
  0xbc   : > { %v1454_v23 = vld [vmem:[#allocation2 + $0x151] sm:$0xff]  ;;  %1302 = vst.msk [vmem:[#allocation2 + $0x190] sm:$0xff] %vm148_vm0, %v1206_v53  ;;  %v1023_v19 = vmax.f32 %v830_v58, %v5141_v41  ;;  %v645_v30 = vmax.f32 %v5115_v17, %v5141_v41  ;;  %v646_v43 = vmax.f32 %v5123_v24, %v5144_v54 }
  0xbd   : > { %v1739_v28 = vld [vmem:[#allocation2 + $0x133] sm:$0xff]  ;;  %v1526_v29 = vmax.f32 %v1382_v5, %v1454_v23  ;;  %1308 = vst.msk [vmem:[#allocation2 + $0x1c0] sm:$0xff] %vm148_vm0, %v1212_v44  ;;  %v5168_v23 = vld [vmem:[#allocation2 + $0x14b] sm:$0xff]  ;;  %1309 = vst.msk [vmem:[#allocation2 + $0x1c8] sm:$0xff] %vm148_vm0, %v1213_v34 }
  0xbe   : > { %v1811_v36 = vmax.f32 %v1667_v22, %v1739_v28  ;;  %v1598_v37 = vld [vmem:[#allocation2 + $0x152] sm:$0xff]  ;;  %8484 = vst [vmem:[#allocation9_spill] sm:$0xff] %v5168_v23  ;;  %v5173_v28 = vld [vmem:[#allocation2 + $0x220] sm:$0xff]  ;;  %v1432_v23 = vld [vmem:[#allocation2 + $0x69] sm:$0xff] }
  0xbf   : > { %v5133_v39 = vld [vmem:[#allocation2 + $0x1f0] sm:$0xff]  ;;  %v1670_v50 = vmax.f32 %v1526_v29, %v1598_v37  ;;  %v834_v37 = vmax.f32 %v641_v55, %v5141_v41 }
  0xc0   : > { %v1883_v46 = vld [vmem:[#allocation2 + $0x134] sm:$0xff]  ;;  %v1210_v59 = vmax.f32 %v1017_v0, %v5133_v39  ;;  %v1021_v61 = vmax.f32 %v828_v20, %v5133_v39  ;;  %v5153_v45 = vld [vmem:[#allocation2 + $0x12c] sm:$0xff]  ;;  %v643_v22 = vmax.f32 %v5108_v8, %v5133_v39  ;;  %v832_v29 = vmax.f32 %v639_v47, %v5133_v39 }
  0xc1   : > { %v1955_v51 = vmax.f32 %v1811_v36, %v1883_v46  ;;  %v1742_v57 = vld [vmem:[#allocation2 + $0x153] sm:$0xff]  ;;  %8483 = vst [vmem:[#allocation8_spill] sm:$0xff] %v5153_v45  ;;  %v1216_v8 = vmax.f32 %v1023_v19, %v5173_v28  ;;  %v1024_v36 = vmax.f32 %v831_v21, %v5144_v54  ;;  %v5185_v46 = vld [vmem:[#allocation2 + $0x228] sm:$0xff]  ;;  %v1027_v24 = vmax.f32 %v834_v37, %v5173_v28  ;;  %v1362_v45 = vld [vmem:[#allocation2 + $0x80] sm:$0xff] }
  0xc2   : > { %v1385_v38 = vld [vmem:[#allocation2 + $0x170] sm:$0xff]  ;;  %v1814_v6 = vmax.f32 %v1670_v50, %v1742_v57  ;;  %1306 = vst.msk [vmem:[#allocation2 + $0x1b0] sm:$0xff] %vm148_vm0, %v1210_v59  ;;  %v835_v59 = vmax.f32 %v642_v13, %v5144_v54  ;;  %v5194_v57 = vld [vmem:[#allocation2 + $0x240] sm:$0xff]  ;;  %v5205_v13 = vld [vmem:[#allocation2 + $0x248] sm:$0xff]  ;;  %v649_v21 = vmax.f32 %v5141_v41, %v5173_v28 }
  0xc3   : > { %v1457_v52 = vld [vmem:[#allocation2 + $0x171] sm:$0xff]  ;;  %2027 = vst.msk [vmem:[#allocation2 + $0x132] sm:$0xff] %vm148_vm0, %v1955_v51  ;;  %1312 = vst.msk [vmem:[#allocation2 + $0x1e0] sm:$0xff] %vm148_vm0, %v1216_v8  ;;  %v1217_v55 = vmax.f32 %v1024_v36, %v5185_v46  ;;  %v839_v36 = vmax.f32 %v646_v43, %v5185_v46 }
  0xc4   : > { %v1529_v7 = vmax.f32 %v1385_v38, %v1457_v52  ;;  %v5157_v11 = vld [vmem:[#allocation2 + $0x210] sm:$0xff]  ;;  %v1028_v34 = vmax.f32 %v835_v59, %v5185_v46 }
  0xc5   : > { %v1886_v5 = vld [vmem:[#allocation2 + $0x154] sm:$0xff]  ;;  %v1214_v10 = vmax.f32 %v1021_v61, %v5157_v11  ;;  %v5170_v60 = vld [vmem:[#allocation2 + $0x14c] sm:$0xff]  ;;  %v1025_v17 = vmax.f32 %v832_v29, %v5157_v11  ;;  %v647_v38 = vmax.f32 %v5133_v39, %v5157_v11  ;;  %v836_v52 = vmax.f32 %v643_v22, %v5157_v11  ;;  %1313 = vst.msk [vmem:[#allocation2 + $0x1e8] sm:$0xff] %vm148_vm0, %v1217_v55 }
  0xc6   : > { %v1601_v53 = vld [vmem:[#allocation2 + $0x172] sm:$0xff]  ;;  %8485 = vst [vmem:[#allocation10_spill] sm:$0xff] %v5170_v60  ;;  %v1958_v25 = vmax.f32 %v1814_v6, %v1886_v5  ;;  %v1220_v39 = vmax.f32 %v1027_v24, %v5194_v57  ;;  %v838_v22 = vmax.f32 %v645_v30, %v5173_v28  ;;  %v1221_v29 = vmax.f32 %v1028_v34, %v5205_v13  ;;  %v5241_v34 = vld [vmem:[#allocation2 + $0x268] sm:$0xff]  ;;  %v1359_v60 = vld [vmem:[#allocation2 + $0x60] sm:$0xff] }
  0xc7   : > { %v1673_v27 = vmax.f32 %v1529_v7, %v1601_v53  ;;  %v1745_v0 = vld [vmem:[#allocation2 + $0x173] sm:$0xff]  ;;  %1310 = vst.msk [vmem:[#allocation2 + $0x1d0] sm:$0xff] %vm148_vm0, %v1214_v10  ;;  %v5199_v44 = vld [vmem:[#allocation2 + $0x16b] sm:$0xff] }
  0xc8   : > { %v1388_v4 = vld [vmem:[#allocation2 + $0x190] sm:$0xff]  ;;  %2030 = vst.msk [vmem:[#allocation2 + $0x152] sm:$0xff] %vm148_vm0, %v1958_v25  ;;  %8486 = vst [vmem:[#allocation11_spill] sm:$0xff] %v5199_v44  ;;  %v1031_v30 = vmax.f32 %v838_v22, %v5194_v57  ;;  %v1360_v44 = vld [vmem:[#allocation2 + $0x68] sm:$0xff] }
  0xc9   : > { %v1460_v14 = vld [vmem:[#allocation2 + $0x191] sm:$0xff]  ;;  %v1817_v47 = vmax.f32 %v1673_v27, %v1745_v0  ;;  %1316 = vst.msk [vmem:[#allocation2 + $0x200] sm:$0xff] %vm148_vm0, %v1220_v39  ;;  %1317 = vst.msk [vmem:[#allocation2 + $0x208] sm:$0xff] %vm148_vm0, %v1221_v29 }
  0xca   : > { %v1532_v20 = vmax.f32 %v1388_v4, %v1460_v14  ;;  %v5188_v50 = vld [vmem:[#allocation2 + $0x230] sm:$0xff]  ;;  %v650_v4 = vmax.f32 %v5144_v54, %v5185_v46  ;;  %v5227_v54 = vld [vmem:[#allocation2 + $0x260] sm:$0xff] }
  0xcb   : > { %v1889_v9 = vld [vmem:[#allocation2 + $0x174] sm:$0xff]  ;;  %v5201_v61 = vld [vmem:[#allocation2 + $0x16c] sm:$0xff]  ;;  %v1218_v7 = vmax.f32 %v1025_v17, %v5188_v50  ;;  %v1029_v19 = vmax.f32 %v836_v52, %v5188_v50  ;;  %v651_v37 = vmax.f32 %v5157_v11, %v5188_v50  ;;  %v1224_v11 = vmax.f32 %v1031_v30, %v5227_v54 }
  0xcc   : > { %v1604_v51 = vld [vmem:[#allocation2 + $0x192] sm:$0xff]  ;;  %8487 = vst [vmem:[#allocation12_spill] sm:$0xff] %v5201_v61  ;;  %v1961_v58 = vmax.f32 %v1817_v47, %v1889_v9  ;;  %v840_v9 = vmax.f32 %v647_v38, %v5188_v50 }
  0xcd   : > { %v1676_v6 = vmax.f32 %v1532_v20, %v1604_v51  ;;  %v1748_v5 = vld [vmem:[#allocation2 + $0x193] sm:$0xff]  ;;  %1314 = vst.msk [vmem:[#allocation2 + $0x1f0] sm:$0xff] %vm148_vm0, %v1218_v7  ;;  %v653_v51 = vmax.f32 %v5173_v28, %v5194_v57  ;;  %v5232_v55 = vld [vmem:[#allocation2 + $0x18b] sm:$0xff]  ;;  %1320 = vst.msk [vmem:[#allocation2 + $0x220] sm:$0xff] %vm148_vm0, %v1224_v11 }
  0xce   : > { %v1391_v53 = vld [vmem:[#allocation2 + $0x1b0] sm:$0xff]  ;;  %2033 = vst.msk [vmem:[#allocation2 + $0x172] sm:$0xff] %vm148_vm0, %v1961_v58  ;;  %8488 = vst [vmem:[#allocation13_spill] sm:$0xff] %v5232_v55  ;;  %v1032_v58 = vmax.f32 %v839_v36, %v5205_v13  ;;  %v5263_v36 = vld [vmem:[#allocation2 + $0x278] sm:$0xf] }
  0xcf   : > { %v1463_v10 = vld [vmem:[#allocation2 + $0x1b1] sm:$0xff]  ;;  %v1820_v25 = vmax.f32 %v1676_v6, %v1748_v5  ;;  %v842_v6 = vmax.f32 %v649_v21, %v5194_v57 }
  0xd0   : > { %v1535_v27 = vmax.f32 %v1391_v53, %v1463_v10  ;;  %v5216_v0 = vld [vmem:[#allocation2 + $0x250] sm:$0xff]  ;;  %v654_v53 = vmax.f32 %v5185_v46, %v5205_v13  ;;  %v843_v10 = vmax.f32 %v650_v4, %v5205_v13  ;;  %v1225_v21 = vmax.f32 %v1032_v58, %v5241_v34 }
  0xd1   : > { %v1892_v14 = vld [vmem:[#allocation2 + $0x194] sm:$0xff]  ;;  %v1222_v41 = vmax.f32 %v1029_v19, %v5216_v0  ;;  %v5234_v24 = vld [vmem:[#allocation2 + $0x18c] sm:$0xff]  ;;  %v1033_v28 = vmax.f32 %v840_v9, %v5216_v0  ;;  %v1035_v22 = vmax.f32 %v842_v6, %v5227_v54  ;;  %v655_v29 = vmax.f32 %v5188_v50, %v5216_v0 }
  0xd2   : > { %v1607_v8 = vld [vmem:[#allocation2 + $0x1b2] sm:$0xff]  ;;  %v1964_v47 = vmax.f32 %v1820_v25, %v1892_v14  ;;  %8489 = vst [vmem:[#allocation14_spill] sm:$0xff] %v5234_v24  ;;  %v5252_v25 = vld [vmem:[#allocation2 + $0x280] sm:$0xff]  ;;  %v844_v30 = vmax.f32 %v651_v37, %v5216_v0  ;;  %1321 = vst.msk [vmem:[#allocation2 + $0x228] sm:$0xff] %vm148_vm0, %v1225_v21  ;;  %v847_v21 = vmax.f32 %v654_v53, %v5241_v34 }
  0xd3   : > { %v1679_v20 = vmax.f32 %v1535_v27, %v1607_v8  ;;  %v1394_v17 = vld [vmem:[#allocation2 + $0x1d0] sm:$0xff]  ;;  %1318 = vst.msk [vmem:[#allocation2 + $0x210] sm:$0xff] %vm148_vm0, %v1222_v41  ;;  %v5254_v27 = vld [vmem:[#allocation2 + $0x288] sm:$0xff]  ;;  %v1036_v41 = vmax.f32 %v843_v10, %v5241_v34  ;;  %v1228_v50 = vmax.f32 %v1035_v22, %v5252_v25 }
  0xd4   : > { %v1466_v59 = vld [vmem:[#allocation2 + $0x1d1] sm:$0xff]  ;;  %2036 = vst.msk [vmem:[#allocation2 + $0x192] sm:$0xff] %vm148_vm0, %v1964_v47 }
  0xd5   : > { %v1751_v43 = vld [vmem:[#allocation2 + $0x1b3] sm:$0xff]  ;;  %v1538_v52 = vmax.f32 %v1394_v17, %v1466_v59  ;;  %v5258_v14 = vld [vmem:[#allocation2 + $0x1ab] sm:$0xff]  ;;  %v1229_v58 = vmax.f32 %v1036_v41, %v5254_v27  ;;  %1324 = vst.msk [vmem:[#allocation2 + $0x240] sm:$0xff] %vm148_vm0, %v1228_v50 }
  0xd6   : > { %v1823_v38 = vmax.f32 %v1679_v20, %v1751_v43  ;;  %v1610_v7 = vld [vmem:[#allocation2 + $0x1d2] sm:$0xff]  ;;  %8490 = vst [vmem:[#allocation15_spill] sm:$0xff] %v5258_v14  ;;  %v657_v43 = vmax.f32 %v5194_v57, %v5227_v54  ;;  %v5299_v50 = vld [vmem:[#allocation2 + $0x2a8] sm:$0xff] }
  0xd7   : > { %v5244_v5 = vld [vmem:[#allocation2 + $0x270] sm:$0xff]  ;;  %v1682_v19 = vmax.f32 %v1538_v52, %v1610_v7  ;;  %v846_v52 = vmax.f32 %v653_v51, %v5227_v54  ;;  %v658_v7 = vmax.f32 %v5205_v13, %v5241_v34  ;;  %1325 = vst.msk [vmem:[#allocation2 + $0x248] sm:$0xff] %vm148_vm0, %v1229_v58  ;;  %v1139_v58 = vld [vmem:[#allocation2 + $0x2b8] sm:$0xf] }
  0xd8   : > { %v1895_v39 = vld [vmem:[#allocation2 + $0x1b4] sm:$0xff]  ;;  %v1226_v4 = vmax.f32 %v1033_v28, %v5244_v5  ;;  %v5265_v47 = vld [vmem:[#allocation2 + $0x1ac] sm:$0xff]  ;;  %v1037_v6 = vmax.f32 %v844_v30, %v5244_v5  ;;  %v659_v22 = vmax.f32 %v5216_v0, %v5244_v5  ;;  %v848_v41 = vmax.f32 %v655_v29, %v5244_v5 }
  0xd9   : > { %v1967_v46 = vmax.f32 %v1823_v38, %v1895_v39  ;;  %v1754_v8 = vld [vmem:[#allocation2 + $0x1d3] sm:$0xff]  ;;  %8491 = vst [vmem:[#allocation16_spill] sm:$0xff] %v5265_v47  ;;  %v5278_v38 = vld [vmem:[#allocation2 + $0x2a0] sm:$0xff]  ;;  %v5282_v10 = vld [vmem:[#allocation2 + $0x1cb] sm:$0xff]  ;;  %v660_v30 = vmax.f32 %v5010_v32, %v5263_v36  ;;  %v1040_v0 = vmax.f32 %v847_v21, %v5254_v27 }
  0xda   : > { %v1826_v20 = vmax.f32 %v1682_v19, %v1754_v8  ;;  %v1397_v17 = vld [vmem:[#allocation2 + $0x1f0] sm:$0xff]  ;;  %1322 = vst.msk [vmem:[#allocation2 + $0x230] sm:$0xff] %vm148_vm0, %v1226_v4  ;;  %v753_v28 = vld [vmem:[#allocation2 + $0x278] sm:$0xf]  ;;  %8492 = vst [vmem:[#allocation17_spill] sm:$0xff] %v5282_v10  ;;  %v1039_v19 = vmax.f32 %v846_v52, %v5252_v25 }
  0xdb   : > { %v1469_v59 = vld [vmem:[#allocation2 + $0x1f1] sm:$0xff]  ;;  %2039 = vst.msk [vmem:[#allocation2 + $0x1b2] sm:$0xff] %vm148_vm0, %v1967_v46  ;;  %v849_v29 = vmax.f32 %v656_v56, %v753_v28  ;;  %v1233_v31 = vmax.f32 %v1040_v0, %v5299_v50  ;;  %v5315_v56 = vld [vmem:[#allocation2 + $0x2c0] sm:$0xff]  ;;  %v662_v28 = vmax.f32 %v5241_v34, %v5254_v27 }
  0xdc   : > { %v5269_v9 = vld [vmem:[#allocation2 + $0x290] sm:$0xff]  ;;  %v1541_v11 = vmax.f32 %v1397_v17, %v1469_v59  ;;  %v1232_v59 = vmax.f32 %v1039_v19, %v5278_v38  ;;  %v5308_v36 = vld [vmem:[#allocation2 + $0x278] sm:$0xf] }
  0xdd   : > { %v1898_v37 = vld [vmem:[#allocation2 + $0x1d4] sm:$0xff]  ;;  %v5284_v57 = vld [vmem:[#allocation2 + $0x1cc] sm:$0xff]  ;;  %v1230_v13 = vmax.f32 %v1037_v6, %v5269_v9  ;;  %v1041_v32 = vmax.f32 %v848_v41, %v5269_v9  ;;  %v661_v6 = vmax.f32 %v5227_v54, %v5252_v25  ;;  %1329 = vst.msk [vmem:[#allocation2 + $0x268] sm:$0xff] %vm148_vm0, %v1233_v31 }
  0xde   : > { %8493 = vst [vmem:[#allocation18_spill] sm:$0xff] %v5284_v57  ;;  %v1970_v51 = vmax.f32 %v1826_v20, %v1898_v37  ;;  %v1613_v39 = vld [vmem:[#allocation2 + $0x1f2] sm:$0xff]  ;;  %1328 = vst.msk [vmem:[#allocation2 + $0x260] sm:$0xff] %vm148_vm0, %v1232_v59 }
  0xdf   : > { %v1685_v46 = vmax.f32 %v1541_v11, %v1613_v39  ;;  %v1400_v8 = vld [vmem:[#allocation2 + $0x210] sm:$0xff]  ;;  %v946_v20 = vld [vmem:[#allocation2 + $0x298] sm:$0xf]  ;;  %1326 = vst.msk [vmem:[#allocation2 + $0x250] sm:$0xff] %vm148_vm0, %v1230_v13  ;;  %v851_v13 = vmax.f32 %v658_v7, %v5254_v27 }
  0xe0   : > { %v1472_v4 = vld [vmem:[#allocation2 + $0x211] sm:$0xff]  ;;  %2042 = vst.msk [vmem:[#allocation2 + $0x1d2] sm:$0xff] %vm148_vm0, %v1970_v51  ;;  %v850_v51 = vmax.f32 %v657_v43, %v5252_v25  ;;  %v1042_v35 = vmax.f32 %v849_v29, %v946_v20  ;;  %v5331_v29 = vld [vmem:[#allocation2 + $0x2c8] sm:$0xff] }
  0xe1   : > { %v1757_v17 = vld [vmem:[#allocation2 + $0x1f3] sm:$0xff]  ;;  %v1544_v53 = vmax.f32 %v1400_v8, %v1472_v4 }
  0xe2   : > { %v5301_v52 = vld [vmem:[#allocation2 + $0x2b0] sm:$0xff]  ;;  %v1829_v37 = vmax.f32 %v1685_v46, %v1757_v17  ;;  %v5319_v21 = vld [vmem:[#allocation2 + $0x298] sm:$0xf]  ;;  %v1043_v4 = vmax.f32 %v850_v51, %v5278_v38  ;;  %v1235_v0 = vmax.f32 %v1042_v35, %v1139_v58 }
  0xe3   : > { %v1616_v11 = vld [vmem:[#allocation2 + $0x212] sm:$0xff]  ;;  %v1234_v43 = vmax.f32 %v1041_v32, %v5301_v52  ;;  %v664_v58 = vmax.f32 %v5308_v36, %v5319_v21 }
  0xe4   : > { %v1901_v39 = vld [vmem:[#allocation2 + $0x1f4] sm:$0xff]  ;;  %v1688_v19 = vmax.f32 %v1544_v53, %v1616_v11  ;;  %v5321_v46 = vld [vmem:[#allocation2 + $0x1eb] sm:$0xff]  ;;  %v852_v11 = vmax.f32 %v659_v22, %v5269_v9  ;;  %v1236_v51 = vmax.f32 %v1043_v4, %v5315_v56  ;;  %1331 = vst.msk [vmem:[#allocation2 + $0x278] sm:$0xf] %vm152_vm1, %v1235_v0 }
  0xe5   : > { %8494 = vst [vmem:[#allocation19_spill] sm:$0xff] %v5321_v46  ;;  %v1973_v8 = vmax.f32 %v1829_v37, %v1901_v39  ;;  %v1760_v54 = vld [vmem:[#allocation2 + $0x213] sm:$0xff]  ;;  %v663_v37 = vmax.f32 %v5244_v5, %v5269_v9  ;;  %1330 = vst.msk [vmem:[#allocation2 + $0x270] sm:$0xff] %vm148_vm0, %v1234_v43  ;;  %v1044_v39 = vmax.f32 %v851_v13, %v5299_v50  ;;  %v5346_v5 = vld [vmem:[#allocation2 + $0x20b] sm:$0xff] }
  0xe6   : > { %v5326_v41 = vld [vmem:[#allocation2 + $0x298] sm:$0xf]  ;;  %v5328_v17 = vld [vmem:[#allocation2 + $0x1ec] sm:$0xff]  ;;  %v1832_v53 = vmax.f32 %v1688_v19, %v1760_v54  ;;  %8496 = vst [vmem:[#allocation21_spill] sm:$0xff] %v5346_v5  ;;  %v1045_v43 = vmax.f32 %v852_v11, %v5301_v52  ;;  %v854_v13 = vmax.f32 %v661_v6, %v5278_v38  ;;  %1332 = vst.msk [vmem:[#allocation2 + $0x280] sm:$0xff] %vm148_vm0, %v1236_v51 }
  0xe7   : > { %v757_v20 = vld [vmem:[#allocation2 + $0x298] sm:$0xf]  ;;  %8495 = vst [vmem:[#allocation20_spill] sm:$0xff] %v5328_v17  ;;  %v1403_v59 = vld [vmem:[#allocation2 + $0x230] sm:$0xff]  ;;  %2045 = vst.msk [vmem:[#allocation2 + $0x1f2] sm:$0xff] %vm148_vm0, %v1973_v8  ;;  %v1237_v36 = vmax.f32 %v1044_v39, %v5331_v29  ;;  %v855_v5 = vmax.f32 %v662_v28, %v5299_v50 }
  0xe8   : > { %v1475_v34 = vld [vmem:[#allocation2 + $0x231] sm:$0xff]  ;;  %v853_v4 = vmax.f32 %v660_v30, %v757_v20 }
  0xe9   : > { %v1904_v7 = vld [vmem:[#allocation2 + $0x214] sm:$0xff]  ;;  %v1547_v32 = vmax.f32 %v1403_v59, %v1475_v34  ;;  %v5348_v22 = vld [vmem:[#allocation2 + $0x20c] sm:$0xff]  ;;  %v5355_v34 = vld [vmem:[#allocation2 + $0x2e0] sm:$0xff]  ;;  %1333 = vst.msk [vmem:[#allocation2 + $0x288] sm:$0xff] %vm148_vm0, %v1237_v36  ;;  %v1048_v28 = vmax.f32 %v855_v5, %v5331_v29  ;;  %v665_v5 = vmax.f32 %v5252_v25, %v5278_v38  ;;  %v669_v25 = vmax.f32 %v5278_v38, %v5315_v56 }
  0xea   : > { %v5340_v19 = vld [vmem:[#allocation2 + $0x2d0] sm:$0xff]  ;;  %v950_v31 = vld [vmem:[#allocation2 + $0x2b8] sm:$0xf]  ;;  %8497 = vst [vmem:[#allocation22_spill] sm:$0xff] %v5348_v22  ;;  %v1976_v8 = vmax.f32 %v1832_v53, %v1904_v7  ;;  %v856_v53 = vmax.f32 %v663_v37, %v5301_v52  ;;  %v5366_v37 = vld [vmem:[#allocation2 + $0x2e8] sm:$0xff]  ;;  %v670_v38 = vmax.f32 %v5299_v50, %v5331_v29 }
  0xeb   : > { %v5344_v35 = vld [vmem:[#allocation2 + $0x2b8] sm:$0xf]  ;;  %v1406_v11 = vld [vmem:[#allocation2 + $0x250] sm:$0xff]  ;;  %v1238_v6 = vmax.f32 %v1045_v43, %v5340_v19  ;;  %v1046_v20 = vmax.f32 %v853_v4, %v950_v31 }
  0xec   : > { %v1619_v54 = vld [vmem:[#allocation2 + $0x232] sm:$0xff]  ;;  %2048 = vst.msk [vmem:[#allocation2 + $0x212] sm:$0xff] %vm148_vm0, %v1976_v8  ;;  %v668_v51 = vmax.f32 %v5326_v41, %v5344_v35  ;;  %v1049_v8 = vmax.f32 %v856_v53, %v5340_v19 }
  0xed   : > { %v1691_v59 = vmax.f32 %v1547_v32, %v1619_v54  ;;  %v1143_v21 = vld [vmem:[#allocation2 + $0x2d8] sm:$0xf]  ;;  %v1047_v32 = vmax.f32 %v854_v13, %v5315_v56  ;;  %v5369_v22 = vld [vmem:[#allocation2 + $0x2f0] sm:$0xff]  ;;  %1334 = vst.msk [vmem:[#allocation2 + $0x290] sm:$0xff] %vm148_vm0, %v1238_v6 }
  0xee   : > { %v761_v7 = vld [vmem:[#allocation2 + $0x2b8] sm:$0xf]  ;;  %v1239_v4 = vmax.f32 %v1046_v20, %v1143_v21  ;;  %v5379_v36 = vld [vmem:[#allocation2 + $0x22c] sm:$0xff] }
  0xef   : > { %v1763_v0 = vld [vmem:[#allocation2 + $0x233] sm:$0xff]  ;;  %v1240_v41 = vmax.f32 %v1047_v32, %v5355_v34  ;;  %v857_v13 = vmax.f32 %v664_v58, %v761_v7  ;;  %8499 = vst [vmem:[#allocation24_spill] sm:$0xff] %v5379_v36  ;;  %v858_v7 = vmax.f32 %v665_v5, %v5315_v56  ;;  %v666_v32 = vmax.f32 %v5254_v27, %v5299_v50 }
  0xf0   : > { %v1478_v30 = vld [vmem:[#allocation2 + $0x251] sm:$0xff]  ;;  %v1835_v39 = vmax.f32 %v1691_v59, %v1763_v0  ;;  %1335 = vst.msk [vmem:[#allocation2 + $0x298] sm:$0xf] %vm152_vm1, %v1239_v4  ;;  %v671_v27 = vmax.f32 %v5301_v52, %v5340_v19 }
  0xf1   : > { %v1550_v54 = vmax.f32 %v1406_v11, %v1478_v30  ;;  %v954_v17 = vld [vmem:[#allocation2 + $0x2d8] sm:$0xf]  ;;  %v5377_v59 = vld [vmem:[#allocation2 + $0x22b] sm:$0xff]  ;;  %v1241_v11 = vmax.f32 %v1048_v28, %v5366_v37  ;;  %v1242_v30 = vmax.f32 %v1049_v8, %v5369_v22  ;;  %1336 = vst.msk [vmem:[#allocation2 + $0x2a0] sm:$0xff] %vm148_vm0, %v1240_v41  ;;  %v5395_v8 = vld [vmem:[#allocation2 + $0x300] sm:$0xff]  ;;  %v859_v5 = vmax.f32 %v666_v32, %v5331_v29 }
  0xf2   : > { %v1907_v43 = vld [vmem:[#allocation2 + $0x234] sm:$0xff]  ;;  %8498 = vst [vmem:[#allocation23_spill] sm:$0xff] %v5377_v59  ;;  %v1050_v58 = vmax.f32 %v857_v13, %v954_v17  ;;  %v667_v17 = vmax.f32 %v5269_v9, %v5301_v52  ;;  %v1051_v13 = vmax.f32 %v858_v7, %v5355_v34 }
  0xf3   : > { %v1622_v31 = vld [vmem:[#allocation2 + $0x252] sm:$0xff]  ;;  %v1979_v53 = vmax.f32 %v1835_v39, %v1907_v43  ;;  %1337 = vst.msk [vmem:[#allocation2 + $0x2a8] sm:$0xff] %vm148_vm0, %v1241_v11  ;;  %1338 = vst.msk [vmem:[#allocation2 + $0x2b0] sm:$0xff] %vm148_vm0, %v1242_v30 }
  0xf4   : > { %v5373_v35 = vld [vmem:[#allocation2 + $0x2b8] sm:$0xf]  ;;  %v1694_v0 = vmax.f32 %v1550_v54, %v1622_v31  ;;  %v1409_v20 = vld [vmem:[#allocation2 + $0x270] sm:$0xff]  ;;  %v860_v30 = vmax.f32 %v667_v17, %v5340_v19 }
  0xf5   : > { %v1147_v6 = vld [vmem:[#allocation2 + $0x2f8] sm:$0xf]  ;;  %2051 = vst.msk [vmem:[#allocation2 + $0x232] sm:$0xff] %vm148_vm0, %v1979_v53  ;;  %v5403_v43 = vld [vmem:[#allocation2 + $0x24b] sm:$0xff] }
  0xf6   : > { %v1766_v21 = vld [vmem:[#allocation2 + $0x253] sm:$0xff]  ;;  %8500 = vst [vmem:[#allocation25_spill] sm:$0xff] %v5403_v43  ;;  %v1243_v41 = vmax.f32 %v1050_v58, %v1147_v6  ;;  %v1244_v6 = vmax.f32 %v1051_v13, %v5395_v8  ;;  %v5415_v58 = vld [vmem:[#allocation2 + $0x308] sm:$0xff] }
  0xf7   : > { %v5390_v39 = vld [vmem:[#allocation2 + $0x2d8] sm:$0xf]  ;;  %v1838_v54 = vmax.f32 %v1694_v0, %v1766_v21  ;;  %v5407_v0 = vld [vmem:[#allocation2 + $0x24c] sm:$0xff] }
  0xf8   : > { %v1481_v28 = vld [vmem:[#allocation2 + $0x271] sm:$0xff]  ;;  %8501 = vst [vmem:[#allocation26_spill] sm:$0xff] %v5407_v0  ;;  %v672_v9 = vmax.f32 %v5373_v35, %v5390_v39  ;;  %1339 = vst.msk [vmem:[#allocation2 + $0x2b8] sm:$0xf] %vm152_vm1, %v1243_v41  ;;  %v864_v41 = vmax.f32 %v671_v27, %v5369_v22 }
  0xf9   : > { %v1910_v31 = vld [vmem:[#allocation2 + $0x254] sm:$0xff]  ;;  %v1553_v4 = vmax.f32 %v1409_v20, %v1481_v28  ;;  %v1052_v20 = vmax.f32 %v859_v5, %v5366_v37  ;;  %1340 = vst.msk [vmem:[#allocation2 + $0x2c0] sm:$0xff] %vm148_vm0, %v1244_v6 }
  0xfa   : > { %v765_v53 = vld [vmem:[#allocation2 + $0x2d8] sm:$0xf]  ;;  %v1982_v11 = vmax.f32 %v1838_v54, %v1910_v31  ;;  %v5417_v7 = vld [vmem:[#allocation2 + $0x310] sm:$0xff]  ;;  %v862_v54 = vmax.f32 %v669_v25, %v5355_v34  ;;  %v5424_v31 = vld [vmem:[#allocation2 + $0x320] sm:$0xff] }
  0xfb   : > { %v1625_v50 = vld [vmem:[#allocation2 + $0x272] sm:$0xff]  ;;  %v861_v52 = vmax.f32 %v668_v51, %v765_v53  ;;  %v1053_v51 = vmax.f32 %v860_v30, %v5369_v22  ;;  %v1245_v25 = vmax.f32 %v1052_v20, %v5415_v58  ;;  %v5431_v53 = vld [vmem:[#allocation2 + $0x328] sm:$0xff]  ;;  %v673_v30 = vmax.f32 %v5315_v56, %v5355_v34 }
  0xfc   : > { %v958_v21 = vld [vmem:[#allocation2 + $0x2f8] sm:$0xf]  ;;  %v1697_v36 = vmax.f32 %v1553_v4, %v1625_v50  ;;  %2054 = vst.msk [vmem:[#allocation2 + $0x252] sm:$0xff] %vm148_vm0, %v1982_v11  ;;  %v1412_v35 = vld [vmem:[#allocation2 + $0x290] sm:$0xff]  ;;  %v863_v4 = vmax.f32 %v670_v38, %v5366_v37  ;;  %v1055_v5 = vmax.f32 %v862_v54, %v5395_v8  ;;  %v1057_v6 = vmax.f32 %v864_v41, %v5417_v7 }
  0xfd   : > { %v1151_v32 = vld [vmem:[#allocation2 + $0x318] sm:$0xf]  ;;  %v1054_v17 = vmax.f32 %v861_v52, %v958_v21  ;;  %v5433_v11 = vld [vmem:[#allocation2 + $0x330] sm:$0xff]  ;;  %v1246_v38 = vmax.f32 %v1053_v51, %v5417_v7  ;;  %1341 = vst.msk [vmem:[#allocation2 + $0x2c8] sm:$0xff] %vm148_vm0, %v1245_v25  ;;  %v1156_v25 = vld [vmem:[#allocation2 + $0x340] sm:$0xff] }
  0xfe   : > { %v1769_v28 = vld [vmem:[#allocation2 + $0x273] sm:$0xff]  ;;  %v1248_v56 = vmax.f32 %v1055_v5, %v5424_v31  ;;  %v1250_v51 = vmax.f32 %v1057_v6, %v5433_v11  ;;  %v675_v5 = vmax.f32 %v5340_v19, %v5369_v22  ;;  %v678_v19 = vmax.f32 %v5366_v37, %v5415_v58 }
  0xff   : > { %v5422_v39 = vld [vmem:[#allocation2 + $0x2d8] sm:$0xf]  ;;  %v1841_v13 = vmax.f32 %v1697_v36, %v1769_v28  ;;  %v1247_v27 = vmax.f32 %v1054_v17, %v1151_v32  ;;  %v1056_v36 = vmax.f32 %v863_v4, %v5415_v58  ;;  %v5440_v28 = vld [vmem:[#allocation2 + $0x26b] sm:$0xff]  ;;  %1342 = vst.msk [vmem:[#allocation2 + $0x2d0] sm:$0xff] %vm148_vm0, %v1246_v38  ;;  %v866_v4 = vmax.f32 %v673_v30, %v5395_v8 }
 0x100   : > { %v769_v50 = vld [vmem:[#allocation2 + $0x2f8] sm:$0xf]  ;;  %8502 = vst [vmem:[#allocation27_spill] sm:$0xff] %v5440_v28  ;;  %v5442_v54 = vld [vmem:[#allocation2 + $0x26c] sm:$0xff]  ;;  %1344 = vst.msk [vmem:[#allocation2 + $0x2e0] sm:$0xff] %vm148_vm0, %v1248_v56  ;;  %v868_v6 = vmax.f32 %v675_v5, %v5417_v7 }
 0x101   : > { %v1913_v52 = vld [vmem:[#allocation2 + $0x274] sm:$0xff]  ;;  %8503 = vst [vmem:[#allocation28_spill] sm:$0xff] %v5442_v54  ;;  %v865_v59 = vmax.f32 %v672_v9, %v769_v50  ;;  %1343 = vst.msk [vmem:[#allocation2 + $0x2d8] sm:$0xf] %vm152_vm1, %v1247_v27  ;;  %v1249_v32 = vmax.f32 %v1056_v36, %v5431_v53  ;;  %v1157_v36 = vld [vmem:[#allocation2 + $0x348] sm:$0xff] }
 0x102   : > { %v1484_v21 = vld [vmem:[#allocation2 + $0x291] sm:$0xff]  ;;  %v1985_v0 = vmax.f32 %v1841_v13, %v1913_v52  ;;  %1346 = vst.msk [vmem:[#allocation2 + $0x2f0] sm:$0xff] %vm148_vm0, %v1250_v51  ;;  %v1161_v5 = vld [vmem:[#allocation2 + $0x368] sm:$0xff] }
 0x103   : > { %v580_v20 = vld [vmem:[#allocation2 + $0x2f8] sm:$0xf]  ;;  %v1556_v43 = vmax.f32 %v1412_v35, %v1484_v21  ;;  %v1415_v57 = vld [vmem:[#allocation2 + $0x2b0] sm:$0xff]  ;;  %v674_v35 = vmax.f32 %v5331_v29, %v5366_v37  ;;  %1345 = vst.msk [vmem:[#allocation2 + $0x2e8] sm:$0xff] %vm148_vm0, %v1249_v32  ;;  %v871_v37 = vmax.f32 %v678_v19, %v5431_v53 }
 0x104   : > { %v1628_v46 = vld [vmem:[#allocation2 + $0x292] sm:$0xff]  ;;  %2057 = vst.msk [vmem:[#allocation2 + $0x272] sm:$0xff] %vm148_vm0, %v1985_v0  ;;  %v676_v50 = vmax.f32 %v5422_v39, %v580_v20 }
 0x105   : > { %v962_v17 = vld [vmem:[#allocation2 + $0x318] sm:$0xf]  ;;  %v1700_v41 = vmax.f32 %v1556_v43, %v1628_v46  ;;  %v1059_v46 = vmax.f32 %v866_v4, %v5424_v31  ;;  %v867_v43 = vmax.f32 %v674_v35, %v5415_v58  ;;  %v5467_v20 = vld [vmem:[#allocation2 + $0x350] sm:$0xff] }
 0x106   : > { %v1058_v9 = vmax.f32 %v865_v59, %v962_v17  ;;  %v1155_v13 = vld [vmem:[#allocation2 + $0x338] sm:$0xf]  ;;  %v677_v59 = vmax.f32 %v5355_v34, %v5395_v8  ;;  %v5469_v56 = vld [vmem:[#allocation2 + $0x28b] sm:$0xff] }
 0x107   : > { %v1772_v52 = vld [vmem:[#allocation2 + $0x293] sm:$0xff]  ;;  %8504 = vst [vmem:[#allocation29_spill] sm:$0xff] %v5469_v56  ;;  %v1252_v32 = vmax.f32 %v1059_v46, %v1156_v25  ;;  %v1060_v51 = vmax.f32 %v867_v43, %v5431_v53  ;;  %v679_v53 = vmax.f32 %v5369_v22, %v5417_v7  ;;  %v5485_v22 = vld [vmem:[#allocation2 + $0x2ab] sm:$0xff] }
 0x108   : > { %v1487_v21 = vld [vmem:[#allocation2 + $0x2b1] sm:$0xff]  ;;  %v1844_v0 = vmax.f32 %v1700_v41, %v1772_v52  ;;  %v1251_v27 = vmax.f32 %v1058_v9, %v1155_v13  ;;  %v870_v8 = vmax.f32 %v677_v59, %v5424_v31  ;;  %v1061_v41 = vmax.f32 %v868_v6, %v5433_v11  ;;  %v1160_v13 = vld [vmem:[#allocation2 + $0x360] sm:$0xff]  ;;  %8506 = vst [vmem:[#allocation31_spill] sm:$0xff] %v5485_v22 }
 0x109   : > { %v1631_v38 = vld [vmem:[#allocation2 + $0x2b2] sm:$0xff]  ;;  %v1559_v30 = vmax.f32 %v1415_v57, %v1487_v21  ;;  %1348 = vst.msk [vmem:[#allocation2 + $0x300] sm:$0xff] %vm148_vm0, %v1252_v32  ;;  %v1253_v21 = vmax.f32 %v1060_v51, %v1157_v36  ;;  %v1064_v31 = vmax.f32 %v871_v37, %v1157_v36  ;;  %v872_v36 = vmax.f32 %v679_v53, %v5433_v11  ;;  %v1573_v53 = vld [vmem:[#allocation2 + $0x4a] sm:$0xff] }
 0x10a   : > { %v487_v29 = vld [vmem:[#allocation2 + $0x2f8] sm:$0xf]  ;;  %v5474_v58 = vld [vmem:[#allocation2 + $0x28c] sm:$0xff]  ;;  %v1063_v43 = vmax.f32 %v870_v8, %v1156_v25 }
 0x10b   : > { %v1916_v39 = vld [vmem:[#allocation2 + $0x294] sm:$0xff]  ;;  %8505 = vst [vmem:[#allocation30_spill] sm:$0xff] %v5474_v58  ;;  %v1703_v35 = vmax.f32 %v1559_v30, %v1631_v38  ;;  %1347 = vst.msk [vmem:[#allocation2 + $0x2f8] sm:$0xf] %vm152_vm1, %v1251_v27  ;;  %v1257_v25 = vmax.f32 %v1064_v31, %v1161_v5  ;;  %v5487_v7 = vld [vmem:[#allocation2 + $0x2ac] sm:$0xff]  ;;  %v1065_v11 = vmax.f32 %v872_v36, %v5467_v20 }
 0x10c   : > { %v584_v17 = vld [vmem:[#allocation2 + $0x318] sm:$0xf]  ;;  %v1988_v57 = vmax.f32 %v1844_v0, %v1916_v39  ;;  %v1418_v0 = vld [vmem:[#allocation2 + $0x2d0] sm:$0xff]  ;;  %1349 = vst.msk [vmem:[#allocation2 + $0x308] sm:$0xff] %vm148_vm0, %v1253_v21  ;;  %v1256_v32 = vmax.f32 %v1063_v43, %v1160_v13  ;;  %8507 = vst [vmem:[#allocation32_spill] sm:$0xff] %v5487_v7 }
 0x10d   : > { %v773_v4 = vld [vmem:[#allocation2 + $0x318] sm:$0xf]  ;;  %v680_v30 = vmax.f32 %v487_v29, %v584_v17  ;;  %1353 = vst.msk [vmem:[#allocation2 + $0x328] sm:$0xff] %vm148_vm0, %v1257_v25  ;;  %v1356_v13 = vld [vmem:[#allocation2 + $0x40] sm:$0xff]  ;;  %v1357_v5 = vld [vmem:[#allocation2 + $0x48] sm:$0xff] }
 0x10e   : > { %v966_v34 = vld [vmem:[#allocation2 + $0x338] sm:$0xf]  ;;  %v869_v9 = vmax.f32 %v676_v50, %v773_v4  ;;  %2060 = vst.msk [vmem:[#allocation2 + $0x292] sm:$0xff] %vm148_vm0, %v1988_v57  ;;  %v1254_v50 = vmax.f32 %v1061_v41, %v5467_v20  ;;  %v1421_v57 = vld [vmem:[#allocation2 + $0x2f0] sm:$0xff]  ;;  %1352 = vst.msk [vmem:[#allocation2 + $0x320] sm:$0xff] %vm148_vm0, %v1256_v32 }
 0x10f   : > { %v1775_v52 = vld [vmem:[#allocation2 + $0x2b3] sm:$0xff]  ;;  %v1572_v20 = vld [vmem:[#allocation2 + $0x42] sm:$0xff] }
 0x110   : > { %v1159_v46 = vld [vmem:[#allocation2 + $0x358] sm:$0xf]  ;;  %v1847_v38 = vmax.f32 %v1703_v35, %v1775_v52  ;;  %v1062_v39 = vmax.f32 %v869_v9, %v966_v34  ;;  %1350 = vst.msk [vmem:[#allocation2 + $0x310] sm:$0xff] %vm148_vm0, %v1254_v50  ;;  %v1162_v34 = vld [vmem:[#allocation2 + $0x370] sm:$0xff]  ;;  %v1428_v52 = vld [vmem:[#allocation2 + $0x41] sm:$0xff] }
 0x111   : > { %v777_v59 = vld [vmem:[#allocation2 + $0x338] sm:$0xf]  ;;  %v1258_v43 = vmax.f32 %v1065_v11, %v1162_v34  ;;  %v1500_v31 = vmax.f32 %v1356_v13, %v1428_v52  ;;  %v5495_v50 = vld [vmem:[#allocation2 + $0x2cb] sm:$0xff] }
 0x112   : > { %v1919_v19 = vld [vmem:[#allocation2 + $0x2b4] sm:$0xff]  ;;  %v1255_v37 = vmax.f32 %v1062_v39, %v1159_v46  ;;  %v873_v29 = vmax.f32 %v680_v30, %v777_v59  ;;  %8508 = vst [vmem:[#allocation33_spill] sm:$0xff] %v5495_v50  ;;  %v5497_v39 = vld [vmem:[#allocation2 + $0x2cc] sm:$0xff] }
 0x113   : > { %v1490_v27 = vld [vmem:[#allocation2 + $0x2d1] sm:$0xff]  ;;  %v1991_v4 = vmax.f32 %v1847_v38, %v1919_v19  ;;  %8509 = vst [vmem:[#allocation34_spill] sm:$0xff] %v5497_v39  ;;  %1354 = vst.msk [vmem:[#allocation2 + $0x330] sm:$0xff] %vm148_vm0, %v1258_v43  ;;  %v1644_v25 = vmax.f32 %v1500_v31, %v1572_v20 }
 0x114   : > { %v1634_v6 = vld [vmem:[#allocation2 + $0x2d2] sm:$0xff]  ;;  %v1562_v8 = vmax.f32 %v1418_v0, %v1490_v27  ;;  %1351 = vst.msk [vmem:[#allocation2 + $0x318] sm:$0xf] %vm152_vm1, %v1255_v37  ;;  %v1429_v0 = vld [vmem:[#allocation2 + $0x49] sm:$0xff] }
 0x115   : > { %v970_v51 = vld [vmem:[#allocation2 + $0x358] sm:$0xf]  ;;  %2063 = vst.msk [vmem:[#allocation2 + $0x2b2] sm:$0xff] %vm148_vm0, %v1991_v4  ;;  %v1501_v32 = vmax.f32 %v1357_v5, %v1429_v0  ;;  %v1716_v4 = vld [vmem:[#allocation2 + $0x43] sm:$0xff]  ;;  %v5505_v13 = vld [vmem:[#allocation2 + $0x2eb] sm:$0xff] }
 0x116   : > { %v1778_v17 = vld [vmem:[#allocation2 + $0x2d3] sm:$0xff]  ;;  %v1706_v41 = vmax.f32 %v1562_v8, %v1634_v6  ;;  %v1066_v9 = vmax.f32 %v873_v29, %v970_v51  ;;  %8510 = vst [vmem:[#allocation35_spill] sm:$0xff] %v5505_v13 }
 0x117   : > { %v1163_v35 = vld [vmem:[#allocation2 + $0x378] sm:$0xf]  ;;  %v1424_v34 = vld [vmem:[#allocation2 + $0x310] sm:$0xff]  ;;  %v1645_v29 = vmax.f32 %v1501_v32, %v1573_v53 }
 0x118   : > { %v1493_v21 = vld [vmem:[#allocation2 + $0x2f1] sm:$0xff]  ;;  %v1850_v59 = vmax.f32 %v1706_v41, %v1778_v17  ;;  %v1259_v19 = vmax.f32 %v1066_v9, %v1163_v35  ;;  %v1788_v17 = vmax.f32 %v1644_v25, %v1716_v4  ;;  %v1860_v41 = vld [vmem:[#allocation2 + $0x44] sm:$0xff] }
 0x119   : > { %v1637_v46 = vld [vmem:[#allocation2 + $0x2f2] sm:$0xff]  ;;  %v1565_v38 = vmax.f32 %v1421_v57, %v1493_v21  ;;  %v1789_v21 = vmax.f32 %v1645_v29, %v4874_v26 }
 0x11a   : > { %v1922_v30 = vld [vmem:[#allocation2 + $0x2d4] sm:$0xff]  ;;  %1355 = vst.msk [vmem:[#allocation2 + $0x338] sm:$0xf] %vm152_vm1, %v1259_v19  ;;  %v5516_v20 = vld [vmem:[#allocation2 + $0x2ec] sm:$0xff] }
 0x11b   : > { %v1781_v27 = vld [vmem:[#allocation2 + $0x2f3] sm:$0xff]  ;;  %v1994_v36 = vmax.f32 %v1850_v59, %v1922_v30  ;;  %v1709_v51 = vmax.f32 %v1565_v38, %v1637_v46  ;;  %v1932_v46 = vmax.f32 %v1788_v17, %v1860_v41  ;;  %8511 = vst [vmem:[#allocation36_spill] sm:$0xff] %v5516_v20  ;;  %v1933_v32 = vmax.f32 %v1789_v21, %v4876_v40  ;;  %v5608_v47 = vld [vmem:[#allocation2 + $0x32b] sm:$0xff] }
 0x11c   : > { %v1925_v6 = vld [vmem:[#allocation2 + $0x2f4] sm:$0xff]  ;;  %8516 = vst [vmem:[#allocation41_spill] sm:$0xff] %v5608_v47  ;;  %v5610_v14 = vld [vmem:[#allocation2 + $0x32c] sm:$0xff] }
 0x11d   : > { %v2143_v8 = vld [vmem:[#allocation2 + $0x52] sm:$0xff]  ;;  %2066 = vst.msk [vmem:[#allocation2 + $0x2d2] sm:$0xff] %vm148_vm0, %v1994_v36  ;;  %v1853_v35 = vmax.f32 %v1709_v51, %v1781_v27  ;;  %2004 = vst.msk [vmem:[#allocation2 + $0x42] sm:$0xff] %vm148_vm0, %v1932_v46 }
 0x11e   : > { %v5501_v37 = vld [vmem:[#allocation2 + $0xb2] sm:$0xff]  ;;  %2005 = vst.msk [vmem:[#allocation2 + $0x4a] sm:$0xff] %vm148_vm0, %v1933_v32  ;;  %8517 = vst [vmem:[#allocation42_spill] sm:$0xff] %v5610_v14 }
 0x11f   : > { %v2146_v57 = vld [vmem:[#allocation2 + $0x72] sm:$0xff]  ;;  %v1997_v31 = vmax.f32 %v1853_v35, %v1925_v6 }
 0x120   : > { %v2149_v11 = vld [vmem:[#allocation2 + $0x92] sm:$0xff]  ;;  %v2263_v0 = vmax.f32 %v2143_v8, %v2146_v57 }
 0x121   : > { %v2269_v9 = vmax.f32 %v2149_v11, %v5501_v37  ;;  %v1496_v5 = vld [vmem:[#allocation2 + $0x311] sm:$0xff]  ;;  %v2266_v26 = vmax.f32 %v2146_v57, %v2149_v11  ;;  %2069 = vst.msk [vmem:[#allocation2 + $0x2f2] sm:$0xff] %vm148_vm0, %v1997_v31 }
 0x122   : > { %v1640_v52 = vld [vmem:[#allocation2 + $0x312] sm:$0xff]  ;;  %v1568_v53 = vmax.f32 %v1424_v34, %v1496_v5  ;;  %v5538_v21 = vmax.f32 %v2263_v0, %v2149_v11 }
 0x123   : > { %v5508_v43 = vld [vmem:[#allocation2 + $0xd2] sm:$0xff]  ;;  %v2386_v11 = vmax.f32 %v2266_v26, %v5501_v37 }
 0x124   : > { %v5510_v59 = vld [vmem:[#allocation2 + $0xf2] sm:$0xff]  ;;  %v1712_v6 = vmax.f32 %v1568_v53, %v1640_v52  ;;  %v2272_v4 = vmax.f32 %v5501_v37, %v5508_v43  ;;  %v5556_v0 = vmax.f32 %v2269_v9, %v5508_v43 }
 0x125   : > { %v5512_v38 = vld [vmem:[#allocation2 + $0x112] sm:$0xff]  ;;  %v2275_v40 = vmax.f32 %v5508_v43, %v5510_v59 }
 0x126   : > { %v5514_v19 = vld [vmem:[#allocation2 + $0x132] sm:$0xff]  ;;  %v2278_v17 = vmax.f32 %v5510_v59, %v5512_v38  ;;  %v5567_v7 = vmax.f32 %v2272_v4, %v5510_v59 }
 0x127   : > { %v1784_v30 = vld [vmem:[#allocation2 + $0x313] sm:$0xff]  ;;  %v2281_v57 = vmax.f32 %v5512_v38, %v5514_v19  ;;  %v5540_v46 = vld [vmem:[#allocation2 + $0x30b] sm:$0xff] }
 0x128   : > { %v1928_v27 = vld [vmem:[#allocation2 + $0x314] sm:$0xff]  ;;  %v1856_v35 = vmax.f32 %v1712_v6, %v1784_v30  ;;  %8512 = vst [vmem:[#allocation37_spill] sm:$0xff] %v5540_v46  ;;  %v5542_v31 = vld [vmem:[#allocation2 + $0x30c] sm:$0xff] }
 0x129   : > { %v1427_v25 = vld [vmem:[#allocation2 + $0x330] sm:$0xff]  ;;  %8513 = vst [vmem:[#allocation38_spill] sm:$0xff] %v5542_v31 }
 0x12a   : > { %v5521_v36 = vld [vmem:[#allocation2 + $0x152] sm:$0xff] }
 0x12b   : > { %v5523_v51 = vld [vmem:[#allocation2 + $0x172] sm:$0xff]  ;;  %v2284_v30 = vmax.f32 %v5514_v19, %v5521_v36 }
 0x12c   : > { %v1499_v8 = vld [vmem:[#allocation2 + $0x331] sm:$0xff]  ;;  %v2287_v6 = vmax.f32 %v5521_v36, %v5523_v51 }
 0x12d   : > { %v1643_v34 = vld [vmem:[#allocation2 + $0x332] sm:$0xff]  ;;  %v1571_v41 = vmax.f32 %v1427_v25, %v1499_v8  ;;  %v2000_v25 = vmax.f32 %v1856_v35, %v1928_v27  ;;  %v5581_v35 = vmax.f32 %v2278_v17, %v5514_v19  ;;  %v5606_v10 = vmax.f32 %v2284_v30, %v5523_v51 }
 0x12e   : > { %v5528_v29 = vld [vmem:[#allocation2 + $0x192] sm:$0xff] }
 0x12f   : > { %v1787_v5 = vld [vmem:[#allocation2 + $0x333] sm:$0xff]  ;;  %v1715_v8 = vmax.f32 %v1571_v41, %v1643_v34  ;;  %v2290_v50 = vmax.f32 %v5523_v51, %v5528_v29  ;;  %v5578_v34 = vmax.f32 %v2275_v40, %v5512_v38  ;;  %v5584_v41 = vmax.f32 %v2281_v57, %v5521_v36  ;;  %2072 = vst.msk [vmem:[#allocation2 + $0x312] sm:$0xff] %vm148_vm0, %v2000_v25 }
 0x130   : > { %v5536_v52 = vld [vmem:[#allocation2 + $0x1b2] sm:$0xff]  ;;  %v5613_v24 = vmax.f32 %v2287_v6, %v5528_v29 }
 0x131   : > { %v1931_v53 = vld [vmem:[#allocation2 + $0x334] sm:$0xff]  ;;  %v2293_v27 = vmax.f32 %v5528_v29, %v5536_v52  ;;  %v1859_v4 = vmax.f32 %v1715_v8, %v1787_v5  ;;  %v5616_v55 = vmax.f32 %v2290_v50, %v5536_v52 }
 0x132   : > { %v5544_v32 = vld [vmem:[#allocation2 + $0x1d2] sm:$0xff] }
 0x133   : > { %v5546_v20 = vld [vmem:[#allocation2 + $0x1f2] sm:$0xff]  ;;  %v2296_v58 = vmax.f32 %v5536_v52, %v5544_v32  ;;  %v2003_v25 = vmax.f32 %v1859_v4, %v1931_v53  ;;  %v2504_v53 = vmax.f32 %v5538_v21, %v5501_v37  ;;  %v2507_v4 = vmax.f32 %v2386_v11, %v5508_v43 }
 0x134   : > { %v5548_v39 = vld [vmem:[#allocation2 + $0x212] sm:$0xff]  ;;  %v2299_v40 = vmax.f32 %v5544_v32, %v5546_v20  ;;  %v5623_v30 = vmax.f32 %v2293_v27, %v5544_v32 }
 0x135   : > { %v5558_v31 = vld [vmem:[#allocation2 + $0x232] sm:$0xff]  ;;  %v2302_v17 = vmax.f32 %v5546_v20, %v5548_v39  ;;  %2075 = vst.msk [vmem:[#allocation2 + $0x332] sm:$0xff] %vm148_vm0, %v2003_v25  ;;  %v5626_v47 = vmax.f32 %v2296_v58, %v5546_v20 }
 0x136   : > { %v5560_v46 = vld [vmem:[#allocation2 + $0x252] sm:$0xff]  ;;  %v2305_v57 = vmax.f32 %v5548_v39, %v5558_v31  ;;  %v5631_v50 = vmax.f32 %v2299_v40, %v5548_v39  ;;  %v2516_v40 = vmax.f32 %v5578_v34, %v5514_v19  ;;  %v1431_v34 = vld [vmem:[#allocation2 + $0x61] sm:$0xff] }
 0x137   : > { %v5562_v13 = vld [vmem:[#allocation2 + $0x272] sm:$0xff]  ;;  %v2308_v8 = vmax.f32 %v5558_v31, %v5560_v46  ;;  %v5634_v37 = vmax.f32 %v2302_v17, %v5558_v31  ;;  %v2519_v17 = vmax.f32 %v5581_v35, %v5521_v36  ;;  %v1438_v35 = vld [vmem:[#allocation2 + $0xa9] sm:$0xff] }
 0x138   : > { %v5569_v22 = vld [vmem:[#allocation2 + $0x292] sm:$0xff]  ;;  %v2311_v28 = vmax.f32 %v5560_v46, %v5562_v13  ;;  %v5637_v21 = vmax.f32 %v2305_v57, %v5560_v46  ;;  %v1437_v57 = vld [vmem:[#allocation2 + $0xa1] sm:$0xff] }
 0x139   : > { %v5571_v26 = vld [vmem:[#allocation2 + $0x2b2] sm:$0xff]  ;;  %v2314_v56 = vmax.f32 %v5562_v13, %v5569_v22  ;;  %v5640_v27 = vmax.f32 %v2308_v8, %v5562_v13 }
 0x13a   : > { %8514 = vst [vmem:[#allocation39_spill] sm:$0xff] %v5571_v26  ;;  %v5573_v9 = vld [vmem:[#allocation2 + $0x2d2] sm:$0xff]  ;;  %v2317_v54 = vmax.f32 %v5569_v22, %v5571_v26  ;;  %8518 = vst [vmem:[#allocation43_spill] sm:$0xff] %v5637_v21  ;;  %v5643_v58 = vmax.f32 %v2311_v28, %v5569_v22  ;;  %v1722_v21 = vld [vmem:[#allocation2 + $0x83] sm:$0xff] }
 0x13b   : > { %8515 = vst [vmem:[#allocation40_spill] sm:$0xff] %v5573_v9  ;;  %v2320_v5 = vmax.f32 %v5571_v26, %v5573_v9  ;;  %v2380_v61 = vld [vmem:[#allocation2 + $0x2f2] sm:$0xff]  ;;  %v2434_v6 = vmax.f32 %v2314_v56, %v5571_v26  ;;  %8519 = vst [vmem:[#allocation44_spill] sm:$0xff] %v5640_v27  ;;  %v2510_v56 = vmax.f32 %v5556_v0, %v5510_v59 }
 0x13c   : > { %v2437_v14 = vmax.f32 %v2317_v54, %v5573_v9  ;;  %8520 = vst [vmem:[#allocation45_spill] sm:$0xff] %v5643_v58  ;;  %v2513_v54 = vmax.f32 %v5567_v7, %v5512_v38  ;;  %v2501_v28 = vld [vmem:[#allocation2 + $0x312] sm:$0xff]  ;;  %v2624_v0 = vmax.f32 %v2504_v53, %v5508_v43  ;;  %v2627_v7 = vmax.f32 %v2507_v4, %v5510_v59  ;;  %v1435_v43 = vld [vmem:[#allocation2 + $0x89] sm:$0xff] }
 0x13d   : > { %v2440_v11 = vmax.f32 %v2320_v5, %v2380_v61  ;;  %v2555_v25 = vmax.f32 %v2434_v6, %v5573_v9  ;;  %v1366_v5 = vld [vmem:[#allocation2 + $0xa8] sm:$0xff]  ;;  %v5681_v53 = vmax.f32 %v2510_v56, %v5512_v38  ;;  %v2621_v42 = vld [vmem:[#allocation2 + $0x332] sm:$0xff]  ;;  %v5690_v9 = vmax.f32 %v2519_v17, %v5523_v51 }
 0x13e   : > { %v2558_v8 = vmax.f32 %v2437_v14, %v2380_v61  ;;  %v1363_v14 = vld [vmem:[#allocation2 + $0x88] sm:$0xff]  ;;  %2684 = vst.msk [vmem:[#allocation2 + $0x92] sm:$0xff] %vm148_vm0, %v2624_v0  ;;  %2687 = vst.msk [vmem:[#allocation2 + $0xb2] sm:$0xff] %vm148_vm0, %v2627_v7  ;;  %v5684_v4 = vmax.f32 %v2513_v54, %v5514_v19  ;;  %v5687_v7 = vmax.f32 %v2516_v40, %v5521_v36 }
 0x13f   : > { %v2561_v6 = vmax.f32 %v2440_v11, %v2501_v28  ;;  %v1365_v11 = vld [vmem:[#allocation2 + $0xa0] sm:$0xff]  ;;  %8521 = vst [vmem:[#allocation46_spill] sm:$0xff] %v5681_v53  ;;  %8524 = vst [vmem:[#allocation49_spill] sm:$0xff] %v5690_v9  ;;  %v5692_v63 = vmax.f32 %v2555_v25, %v2380_v61  ;;  %v1369_v59 = vld [vmem:[#allocation2 + $0xc8] sm:$0xff]  ;;  %v1503_v54 = vmax.f32 %v1359_v60, %v1431_v34 }
 0x140   : > { %8522 = vst [vmem:[#allocation47_spill] sm:$0xff] %v5684_v4  ;;  %v1440_v0 = vld [vmem:[#allocation2 + $0xc1] sm:$0xff]  ;;  %8523 = vst [vmem:[#allocation48_spill] sm:$0xff] %v5687_v7  ;;  %v2678_v27 = vmax.f32 %v2558_v8, %v2501_v28  ;;  %v1441_v58 = vld [vmem:[#allocation2 + $0xc9] sm:$0xff]  ;;  %v1504_v4 = vmax.f32 %v1360_v44, %v1432_v23  ;;  %v1506_v26 = vmax.f32 %v1362_v45, %v1434_v62 }
 0x141   : > { %8525 = vst [vmem:[#allocation50_spill] sm:$0xff] %v5692_v63  ;;  %v1576_v38 = vld [vmem:[#allocation2 + $0x6a] sm:$0xff]  ;;  %v2681_v19 = vmax.f32 %v2561_v6, %v2621_v42  ;;  %v1575_v36 = vld [vmem:[#allocation2 + $0x62] sm:$0xff]  ;;  %v1507_v7 = vmax.f32 %v1363_v14, %v1435_v43  ;;  %v1509_v9 = vmax.f32 %v1365_v11, %v1437_v57  ;;  %v1510_v61 = vmax.f32 %v1366_v5, %v1438_v35 }
 0x142   : > { %v1579_v56 = vld [vmem:[#allocation2 + $0x8a] sm:$0xff]  ;;  %2738 = vst.msk [vmem:[#allocation2 + $0x2d2] sm:$0xff] %vm148_vm0, %v2678_v27  ;;  %v1578_v17 = vld [vmem:[#allocation2 + $0x82] sm:$0xff]  ;;  %v1512_v25 = vmax.f32 %v1368_v1, %v1440_v0  ;;  %v1647_v28 = vmax.f32 %v1503_v54, %v1575_v36  ;;  %v1648_v8 = vmax.f32 %v1504_v4, %v1576_v38  ;;  %v1513_v60 = vmax.f32 %v1369_v59, %v1441_v58 }
 0x143   : > { %v1582_v53 = vld [vmem:[#allocation2 + $0xaa] sm:$0xff]  ;;  %2741 = vst.msk [vmem:[#allocation2 + $0x2f2] sm:$0xff] %vm148_vm0, %v2681_v19  ;;  %v1650_v63 = vmax.f32 %v1506_v26, %v1578_v17  ;;  %v1581_v42 = vld [vmem:[#allocation2 + $0xa2] sm:$0xff]  ;;  %v1651_v45 = vmax.f32 %v1507_v7, %v1579_v56  ;;  %v8526_v58 = vmax.f32 %v5584_v41, %v5523_v51 }
 0x144   : > { %v1719_v40 = vld [vmem:[#allocation2 + $0x63] sm:$0xff]  ;;  %v1653_v27 = vmax.f32 %v1509_v9, %v1581_v42  ;;  %v1654_v34 = vmax.f32 %v1510_v61, %v1582_v53  ;;  %v1792_v1 = vmax.f32 %v1648_v8, %v4894_v2  ;;  %v1657_v11 = vmax.f32 %v1513_v60, %v1585_v33 }
 0x145   : > { %v1584_v23 = vld [vmem:[#allocation2 + $0xc2] sm:$0xff]  ;;  %v1791_v57 = vmax.f32 %v1647_v28, %v1719_v40  ;;  %v1794_v5 = vmax.f32 %v1650_v63, %v1722_v21  ;;  %v5701_v59 = vmax.f32 %v8526_v58, %v5528_v29  ;;  %v2744_v9 = vld [vmem:[#allocation2 + $0x92] sm:$0xf]  ;;  %v1795_v7 = vmax.f32 %v1651_v45, %v4885_v48  ;;  %v1588_v61 = vld [vmem:[#allocation2 + $0xea] sm:$0xff] }
 0x146   : > { %v1863_v62 = vld [vmem:[#allocation2 + $0x64] sm:$0xff]  ;;  %v1656_v14 = vmax.f32 %v1512_v25, %v1584_v23  ;;  %v2804_v53 = vld [vmem:[#allocation2 + $0x93] sm:$0xf]  ;;  %v1798_v56 = vmax.f32 %v1654_v34, %v4993_v15  ;;  %v8527_v33 = vmax.f32 %v5606_v10, %v5528_v29  ;;  %v1936_v51 = vmax.f32 %v1792_v1, %v4896_v3 }
 0x147   : > { %v1866_v44 = vld [vmem:[#allocation2 + $0x84] sm:$0xff]  ;;  %v2747_v21 = vld [vmem:[#allocation2 + $0xb2] sm:$0xf]  ;;  %v1935_v54 = vmax.f32 %v1791_v57, %v1863_v62  ;;  %v8528_v48 = vmax.f32 %v5613_v24, %v5536_v52  ;;  %v1939_v15 = vmax.f32 %v1795_v7, %v4887_v49  ;;  %v2864_v25 = vmax.f32 %v2744_v9, %v2804_v53 }
 0x148   : > { %v1725_v6 = vld [vmem:[#allocation2 + $0xa3] sm:$0xff]  ;;  %v5709_v63 = vmax.f32 %v8527_v33, %v5536_v52  ;;  %v2807_v19 = vld [vmem:[#allocation2 + $0xb3] sm:$0xf]  ;;  %v1938_v41 = vmax.f32 %v1794_v5, %v1866_v44  ;;  %v1942_v10 = vmax.f32 %v1798_v56, %v4995_v16  ;;  %2008 = vst.msk [vmem:[#allocation2 + $0x6a] sm:$0xff] %vm148_vm0, %v1936_v51  ;;  %v1801_v28 = vmax.f32 %v1657_v11, %v5056_v18 }
 0x149   : > { %v1371_v43 = vld [vmem:[#allocation2 + $0xe0] sm:$0xff]  ;;  %v1372_v4 = vld [vmem:[#allocation2 + $0xe8] sm:$0xff]  ;;  %v1797_v38 = vmax.f32 %v1653_v27, %v1725_v6  ;;  %v5716_v40 = vmax.f32 %v8528_v48, %v5544_v32  ;;  %2007 = vst.msk [vmem:[#allocation2 + $0x62] sm:$0xff] %vm148_vm0, %v1935_v54  ;;  %v8529_v49 = vmax.f32 %v5616_v55, %v5544_v32  ;;  %v2867_v16 = vmax.f32 %v2747_v21, %v2807_v19  ;;  %v2924_v1 = vld [vmem:[#allocation2 + $0x94] sm:$0xf] }
 0x14a   : > { %v1869_v35 = vld [vmem:[#allocation2 + $0xa4] sm:$0xff]  ;;  %2010 = vst.msk [vmem:[#allocation2 + $0x82] sm:$0xff] %vm148_vm0, %v1938_v41  ;;  %2011 = vst.msk [vmem:[#allocation2 + $0x8a] sm:$0xff] %vm148_vm0, %v1939_v15  ;;  %v8530_v18 = vmax.f32 %v5623_v30, %v5546_v20  ;;  %v8531_v55 = vmax.f32 %v5626_v47, %v5548_v39  ;;  %v1945_v27 = vmax.f32 %v1801_v28, %v5058_v12  ;;  %v8543_v48 = vld [vmem:[#allocation45_spill] sm:$0xff] }
 0x14b   : > { %v1443_v26 = vld [vmem:[#allocation2 + $0xe1] sm:$0xff]  ;;  %v1444_v0 = vld [vmem:[#allocation2 + $0xe9] sm:$0xff]  ;;  %v1941_v17 = vmax.f32 %v1797_v38, %v1869_v35  ;;  %v5728_v52 = vmax.f32 %v8529_v49, %v5546_v20  ;;  %2014 = vst.msk [vmem:[#allocation2 + $0xaa] sm:$0xff] %vm148_vm0, %v1942_v10  ;;  %v8532_v20 = vmax.f32 %v5631_v50, %v5558_v31  ;;  %v8533_v47 = vmax.f32 %v5634_v37, %v5560_v46  ;;  %v3044_v10 = vld [vmem:[#allocation2 + $0x95] sm:$0xf] }
 0x14c   : > { %v1374_v2 = vld [vmem:[#allocation2 + $0x100] sm:$0xff]  ;;  %v1515_v24 = vmax.f32 %v1371_v43, %v1443_v26  ;;  %v1516_v42 = vmax.f32 %v1372_v4, %v1444_v0  ;;  %v1375_v60 = vld [vmem:[#allocation2 + $0x108] sm:$0xff]  ;;  %v5737_v45 = vmax.f32 %v8530_v18, %v5548_v39  ;;  %v5743_v32 = vmax.f32 %v8531_v55, %v5558_v31  ;;  %v2927_v31 = vld [vmem:[#allocation2 + $0xb4] sm:$0xf] }
 0x14d   : > { %v1446_v36 = vld [vmem:[#allocation2 + $0x101] sm:$0xff]  ;;  %2013 = vst.msk [vmem:[#allocation2 + $0xa2] sm:$0xff] %vm148_vm0, %v1941_v17  ;;  %v1447_v23 = vld [vmem:[#allocation2 + $0x109] sm:$0xff]  ;;  %v5750_v30 = vmax.f32 %v8532_v20, %v5560_v46  ;;  %v5756_v39 = vmax.f32 %v8533_v47, %v5562_v13  ;;  %v2984_v50 = vmax.f32 %v2864_v25, %v2924_v1  ;;  %v5766_v7 = vmax.f32 %v2867_v16, %v2927_v31 }
 0x14e   : > { %v1728_v29 = vld [vmem:[#allocation2 + $0xc3] sm:$0xff]  ;;  %v1518_v62 = vmax.f32 %v1374_v2, %v1446_v36  ;;  %v1660_v12 = vmax.f32 %v1516_v42, %v1588_v61  ;;  %v1519_v46 = vmax.f32 %v1375_v60, %v1447_v23  ;;  %v8547_v1 = vld [vmem:[#allocation5_spill] sm:$0xff] }
 0x14f   : > { %v1800_v3 = vmax.f32 %v1656_v14, %v1728_v29  ;;  %v1872_v8 = vld [vmem:[#allocation2 + $0xc4] sm:$0xff]  ;;  %v5781_v29 = vld [vmem:[#allocation2 + $0xb5] sm:$0xf] }
 0x150   : > { %v1587_v34 = vld [vmem:[#allocation2 + $0xe2] sm:$0xff]  ;;  %v1591_v43 = vld [vmem:[#allocation2 + $0x10a] sm:$0xff]  ;;  %2017 = vst.msk [vmem:[#allocation2 + $0xca] sm:$0xff] %vm148_vm0, %v1945_v27 }
 0x151   : > { %v1944_v44 = vmax.f32 %v1800_v3, %v1872_v8  ;;  %v1377_v6 = vld [vmem:[#allocation2 + $0x120] sm:$0xff]  ;;  %v1659_v5 = vmax.f32 %v1515_v24, %v1587_v34  ;;  %v1378_v58 = vld [vmem:[#allocation2 + $0x128] sm:$0xff]  ;;  %v1663_v61 = vmax.f32 %v1519_v46, %v1591_v43  ;;  %v3164_v43 = vld [vmem:[#allocation2 + $0x96] sm:$0xf] }
 0x152   : > { %v1449_v14 = vld [vmem:[#allocation2 + $0x121] sm:$0xff]  ;;  %v1450_v9 = vld [vmem:[#allocation2 + $0x129] sm:$0xff] }
 0x153   : > { %v2141_v57 = vld [vmem:[#allocation2 + $0x42] sm:$0xff]  ;;  %2016 = vst.msk [vmem:[#allocation2 + $0xc2] sm:$0xff] %vm148_vm0, %v1944_v44  ;;  %v2142_v53 = vld [vmem:[#allocation2 + $0x4a] sm:$0xff]  ;;  %v1521_v21 = vmax.f32 %v1377_v6, %v1449_v14  ;;  %v1522_v42 = vmax.f32 %v1378_v58, %v1450_v9  ;;  %v3107_v14 = vmax.f32 %v5766_v7, %v5781_v29  ;;  %v8548_v7 = vld [vmem:[#allocation6_spill] sm:$0xff] }
 0x154   : > { %v1731_v35 = vld [vmem:[#allocation2 + $0xe3] sm:$0xff] }
 0x155   : > { %v1590_v11 = vld [vmem:[#allocation2 + $0x102] sm:$0xff]  ;;  %v1803_v38 = vmax.f32 %v1659_v5, %v1731_v35  ;;  %v2145_v24 = vld [vmem:[#allocation2 + $0x6a] sm:$0xff] }
 0x156   : > { %v8534_v4 = vld [vmem:[#allocation43_spill] sm:$0xff]  ;;  %v1662_v37 = vmax.f32 %v1518_v62, %v1590_v11  ;;  %v8539_v54 = vld [vmem:[#allocation44_spill] sm:$0xff]  ;;  %v3104_v62 = vmax.f32 %v2984_v50, %v3044_v10  ;;  %v2262_v55 = vmax.f32 %v2142_v53, %v2145_v24 }
 0x157   : > { %v8535_v26 = vmax.f32 %v8534_v4, %v5562_v13  ;;  %v8537_v56 = vld [vmem:[#allocation3_spill] sm:$0xff]  ;;  %v8540_v51 = vmax.f32 %v8539_v54, %v5569_v22  ;;  %v8542_v36 = vld [vmem:[#allocation40_spill] sm:$0xff] }
 0x158   : > { %v1804_v2 = vmax.f32 %v1660_v12, %v8537_v56  ;;  %v1875_v33 = vld [vmem:[#allocation2 + $0xe4] sm:$0xff] }
 0x159   : > { %v5762_v0 = vmax.f32 %v8535_v26, %v5569_v22  ;;  %v1734_v13 = vld [vmem:[#allocation2 + $0x103] sm:$0xff]  ;;  %v1947_v16 = vmax.f32 %v1803_v38, %v1875_v33 }
 0x15a   : > { %v8538_v19 = vld [vmem:[#allocation39_spill] sm:$0xff]  ;;  %v1806_v25 = vmax.f32 %v1662_v37, %v1734_v13  ;;  %v8546_v8 = vld [vmem:[#allocation4_spill] sm:$0xff]  ;;  %v5809_v13 = vmax.f32 %v3104_v62, %v3164_v43 }
 0x15b   : > { %8536 = vst [vmem:[#allocation43_spill] sm:$0xff] %v5762_v0  ;;  %v5773_v41 = vmax.f32 %v8540_v51, %v8538_v19  ;;  %v8544_v15 = vmax.f32 %v8543_v48, %v8538_v19  ;;  %v1593_v3 = vld [vmem:[#allocation2 + $0x122] sm:$0xff]  ;;  %v1948_v22 = vmax.f32 %v1804_v2, %v8546_v8  ;;  %v1594_v23 = vld [vmem:[#allocation2 + $0x12a] sm:$0xff]  ;;  %2019 = vst.msk [vmem:[#allocation2 + $0xe2] sm:$0xff] %vm148_vm0, %v1947_v16 }
 0x15c   : > { %v2144_v28 = vld [vmem:[#allocation2 + $0x62] sm:$0xff]  ;;  %v1665_v60 = vmax.f32 %v1521_v21, %v1593_v3  ;;  %v2148_v27 = vld [vmem:[#allocation2 + $0x8a] sm:$0xff]  ;;  %v1666_v56 = vmax.f32 %v1522_v42, %v1594_v23 }
 0x15d   : > { %8541 = vst [vmem:[#allocation3_spill] sm:$0xff] %v5773_v41  ;;  %v5779_v17 = vmax.f32 %v8544_v15, %v8542_v36  ;;  %v2147_v49 = vld [vmem:[#allocation2 + $0x82] sm:$0xff]  ;;  %v2261_v18 = vmax.f32 %v2141_v57, %v2144_v28  ;;  %v5786_v6 = vld [vmem:[#allocation2 + $0xaa] sm:$0xff]  ;;  %v2265_v20 = vmax.f32 %v2145_v24, %v2148_v27  ;;  %2020 = vst.msk [vmem:[#allocation2 + $0xea] sm:$0xff] %vm148_vm0, %v1948_v22 }
 0x15e   : > { %v2264_v44 = vmax.f32 %v2144_v28, %v2147_v49  ;;  %v5784_v34 = vld [vmem:[#allocation2 + $0xa2] sm:$0xff]  ;;  %v1807_v57 = vmax.f32 %v1663_v61, %v8547_v1  ;;  %v2382_v11 = vmax.f32 %v2262_v55, %v2148_v27  ;;  %v5806_v53 = vld [vmem:[#allocation2 + $0xca] sm:$0xff]  ;;  %v2268_v19 = vmax.f32 %v2148_v27, %v5786_v6  ;;  %v3167_v15 = vld [vmem:[#allocation2 + $0xb6] sm:$0xf] }
 0x15f   : > { %8545 = vst [vmem:[#allocation39_spill] sm:$0xff] %v5779_v17  ;;  %v2267_v47 = vmax.f32 %v2147_v49, %v5784_v34  ;;  %v1878_v5 = vld [vmem:[#allocation2 + $0x104] sm:$0xff]  ;;  %v2381_v35 = vmax.f32 %v2261_v18, %v2147_v49  ;;  %v2385_v58 = vmax.f32 %v2265_v20, %v5786_v6  ;;  %v5836_v43 = vmax.f32 %v3107_v14, %v3167_v15 }
 0x160   : > { %v1737_v12 = vld [vmem:[#allocation2 + $0x123] sm:$0xff]  ;;  %v2384_v4 = vmax.f32 %v2264_v44, %v5784_v34  ;;  %v1950_v26 = vmax.f32 %v1806_v25, %v1878_v5  ;;  %v1951_v38 = vmax.f32 %v1807_v57, %v8548_v7  ;;  %v2503_v54 = vmax.f32 %v2382_v11, %v5786_v6 }
 0x161   : > { %v5795_v31 = vld [vmem:[#allocation2 + $0x140] sm:$0xff]  ;;  %v5797_v50 = vld [vmem:[#allocation2 + $0x148] sm:$0xff]  ;;  %v1809_v2 = vmax.f32 %v1665_v60, %v1737_v12  ;;  %v2502_v21 = vmax.f32 %v2381_v35, %v5784_v34  ;;  %v2506_v25 = vmax.f32 %v2385_v58, %v5806_v53  ;;  %v2271_v20 = vmax.f32 %v5786_v6, %v5806_v53 }
 0x162   : > { %v5799_v46 = vld [vmem:[#allocation2 + $0x141] sm:$0xff]  ;;  %v5801_v37 = vld [vmem:[#allocation2 + $0x149] sm:$0xff]  ;;  %2022 = vst.msk [vmem:[#allocation2 + $0x102] sm:$0xff] %vm148_vm0, %v1950_v26  ;;  %2023 = vst.msk [vmem:[#allocation2 + $0x10a] sm:$0xff] %vm148_vm0, %v1951_v38  ;;  %v2623_v24 = vmax.f32 %v2503_v54, %v5806_v53 }
 0x163   : > { %v5804_v9 = vld [vmem:[#allocation2 + $0xc2] sm:$0xff]  ;;  %v1524_v23 = vmax.f32 %v5795_v31, %v5799_v46  ;;  %v1525_v62 = vmax.f32 %v5797_v50, %v5801_v37  ;;  %v1597_v14 = vld [vmem:[#allocation2 + $0x14a] sm:$0xff] }
 0x164   : > { %v1383_v33 = vld [vmem:[#allocation2 + $0x160] sm:$0xff]  ;;  %v1384_v51 = vld [vmem:[#allocation2 + $0x168] sm:$0xff]  ;;  %v2270_v10 = vmax.f32 %v5784_v34, %v5804_v9  ;;  %v2387_v29 = vmax.f32 %v2267_v47, %v5804_v9  ;;  %v2505_v61 = vmax.f32 %v2384_v4, %v5804_v9  ;;  %v2622_v28 = vmax.f32 %v2502_v21, %v5804_v9  ;;  %2683 = vst.msk [vmem:[#allocation2 + $0x8a] sm:$0xff] %vm148_vm0, %v2623_v24 }
 0x165   : > { %v1455_v36 = vld [vmem:[#allocation2 + $0x161] sm:$0xff]  ;;  %v1456_v48 = vld [vmem:[#allocation2 + $0x169] sm:$0xff]  ;;  %v5842_v47 = vmax.f32 %v2268_v19, %v5806_v53 }
 0x166   : > { %v1881_v3 = vld [vmem:[#allocation2 + $0x124] sm:$0xff]  ;;  %v1527_v18 = vmax.f32 %v1383_v33, %v1455_v36  ;;  %v1528_v55 = vmax.f32 %v1384_v51, %v1456_v48  ;;  %2682 = vst.msk [vmem:[#allocation2 + $0x82] sm:$0xff] %vm148_vm0, %v2622_v28 }
 0x167   : > { %v8549_v49 = vld [vmem:[#allocation7_spill] sm:$0xff]  ;;  %v1953_v8 = vmax.f32 %v1809_v2, %v1881_v3  ;;  %v5826_v42 = vld [vmem:[#allocation2 + $0x188] sm:$0xff] }
 0x168   : > { %v1810_v16 = vmax.f32 %v1666_v56, %v8549_v49  ;;  %v5824_v22 = vld [vmem:[#allocation2 + $0x180] sm:$0xff]  ;;  %v1459_v44 = vld [vmem:[#allocation2 + $0x189] sm:$0xff]  ;;  %v1669_v56 = vmax.f32 %v1525_v62, %v1597_v14 }
 0x169   : > { %v5828_v60 = vld [vmem:[#allocation2 + $0x181] sm:$0xff]  ;;  %v5847_v57 = vld [vmem:[#allocation2 + $0xea] sm:$0xff]  ;;  %2025 = vst.msk [vmem:[#allocation2 + $0x122] sm:$0xff] %vm148_vm0, %v1953_v8  ;;  %v1531_v58 = vmax.f32 %v5826_v42, %v1459_v44 }
 0x16a   : > { %v5834_v27 = vld [vmem:[#allocation2 + $0x1a0] sm:$0xff]  ;;  %v8550_v5 = vld [vmem:[#allocation8_spill] sm:$0xff]  ;;  %v2626_v31 = vmax.f32 %v2506_v25, %v5847_v57  ;;  %v1530_v37 = vmax.f32 %v5824_v22, %v5828_v60  ;;  %v2274_v54 = vmax.f32 %v5806_v53, %v5847_v57  ;;  %v5870_v51 = vmax.f32 %v2271_v20, %v5847_v57  ;;  %v8551_v22 = vld [vmem:[#allocation9_spill] sm:$0xff] }
 0x16b   : > { %v1461_v34 = vld [vmem:[#allocation2 + $0x1a1] sm:$0xff]  ;;  %v1954_v12 = vmax.f32 %v1810_v16, %v8550_v5  ;;  %v1600_v26 = vld [vmem:[#allocation2 + $0x16a] sm:$0xff]  ;;  %v2509_v36 = vmax.f32 %v5842_v47, %v5847_v57  ;;  %v1813_v42 = vmax.f32 %v1669_v56, %v8551_v22 }
 0x16c   : > { %v5845_v1 = vld [vmem:[#allocation2 + $0xe2] sm:$0xff]  ;;  %v1672_v21 = vmax.f32 %v1528_v55, %v1600_v26  ;;  %v1603_v19 = vld [vmem:[#allocation2 + $0x18a] sm:$0xff]  ;;  %2686 = vst.msk [vmem:[#allocation2 + $0xaa] sm:$0xff] %vm148_vm0, %v2626_v31 }
 0x16d   : > { %v2273_v35 = vmax.f32 %v5804_v9, %v5845_v1  ;;  %v5854_v11 = vmax.f32 %v2270_v10, %v5845_v1  ;;  %v2508_v6 = vmax.f32 %v2387_v29, %v5845_v1  ;;  %v2625_v4 = vmax.f32 %v2505_v61, %v5845_v1  ;;  %2026 = vst.msk [vmem:[#allocation2 + $0x12a] sm:$0xff] %vm148_vm0, %v1954_v12  ;;  %v1596_v50 = vld [vmem:[#allocation2 + $0x142] sm:$0xff]  ;;  %v5877_v15 = vld [vmem:[#allocation2 + $0x10a] sm:$0xff] }
 0x16e   : > { %v1599_v46 = vld [vmem:[#allocation2 + $0x162] sm:$0xff]  ;;  %v1533_v9 = vmax.f32 %v5834_v27, %v1461_v34  ;;  %v1668_v38 = vmax.f32 %v1524_v23, %v1596_v50  ;;  %v2277_v3 = vmax.f32 %v5847_v57, %v5877_v15  ;;  %v1606_v27 = vld [vmem:[#allocation2 + $0x1aa] sm:$0xff]  ;;  %v1675_v12 = vmax.f32 %v1531_v58, %v1603_v19 }
 0x16f   : > { %2685 = vst.msk [vmem:[#allocation2 + $0xa2] sm:$0xff] %vm148_vm0, %v2625_v4  ;;  %v5865_v7 = vld [vmem:[#allocation2 + $0x102] sm:$0xff]  ;;  %v1671_v33 = vmax.f32 %v1527_v18, %v1599_v46  ;;  %v2743_v20 = vld [vmem:[#allocation2 + $0x8a] sm:$0xff]  ;;  %v8553_v46 = vld [vmem:[#allocation10_spill] sm:$0xff] }
 0x170   : > { %v1740_v2 = vld [vmem:[#allocation2 + $0x143] sm:$0xff]  ;;  %v2276_v48 = vmax.f32 %v5845_v1, %v5865_v7  ;;  %v5880_v61 = vmax.f32 %v2273_v35, %v5865_v7  ;;  %v5885_v25 = vmax.f32 %v2508_v6, %v5865_v7  ;;  %v2803_v4 = vld [vmem:[#allocation2 + $0x8b] sm:$0xff] }
 0x171   : > { %v1390_v10 = vld [vmem:[#allocation2 + $0x1a8] sm:$0xff]  ;;  %v1812_v8 = vmax.f32 %v1668_v38, %v1740_v2  ;;  %v8552_v23 = vld [vmem:[#allocation11_spill] sm:$0xff]  ;;  %v1957_v38 = vmax.f32 %v1813_v42, %v8553_v46  ;;  %v8555_v58 = vld [vmem:[#allocation13_spill] sm:$0xff] }
 0x172   : > { %v1462_v29 = vld [vmem:[#allocation2 + $0x1a9] sm:$0xff]  ;;  %v1816_v62 = vmax.f32 %v1672_v21, %v8552_v23  ;;  %v5891_v44 = vld [vmem:[#allocation2 + $0x1c0] sm:$0xff]  ;;  %v1819_v19 = vmax.f32 %v1675_v12, %v8555_v58 }
 0x173   : > { %v1884_v28 = vld [vmem:[#allocation2 + $0x144] sm:$0xff]  ;;  %v1534_v14 = vmax.f32 %v1390_v10, %v1462_v29  ;;  %v2923_v21 = vld [vmem:[#allocation2 + $0x8c] sm:$0xff] }
 0x174   : > { %v1743_v24 = vld [vmem:[#allocation2 + $0x163] sm:$0xff]  ;;  %v1956_v50 = vmax.f32 %v1812_v8, %v1884_v28  ;;  %v3043_v22 = vld [vmem:[#allocation2 + $0x8d] sm:$0xff]  ;;  %2029 = vst.msk [vmem:[#allocation2 + $0x14a] sm:$0xff] %vm148_vm0, %v1957_v38 }
 0x175   : > { %v1887_v49 = vld [vmem:[#allocation2 + $0x164] sm:$0xff]  ;;  %v1815_v60 = vmax.f32 %v1671_v33, %v1743_v24  ;;  %v2863_v33 = vmax.f32 %v2743_v20, %v2803_v4  ;;  %v3163_v10 = vld [vmem:[#allocation2 + $0x8e] sm:$0xff]  ;;  %v1678_v8 = vmax.f32 %v1534_v14, %v1606_v27 }
 0x176   : > { %v1602_v16 = vld [vmem:[#allocation2 + $0x182] sm:$0xff]  ;;  %2028 = vst.msk [vmem:[#allocation2 + $0x142] sm:$0xff] %vm148_vm0, %v1956_v50  ;;  %v2926_v4 = vld [vmem:[#allocation2 + $0xac] sm:$0xff] }
 0x177   : > { %v1746_v18 = vld [vmem:[#allocation2 + $0x183] sm:$0xff]  ;;  %v1674_v5 = vmax.f32 %v1530_v37, %v1602_v16  ;;  %v1959_v56 = vmax.f32 %v1815_v60, %v1887_v49  ;;  %v5899_v16 = vmax.f32 %v2274_v54, %v5877_v15  ;;  %v2983_v60 = vmax.f32 %v2863_v33, %v2923_v21  ;;  %3284 = vst.msk [vmem:[#allocation2 + $0x94] sm:$0xf] %vm152_vm1, %v5809_v13 }
 0x178   : > { %v1605_v55 = vld [vmem:[#allocation2 + $0x1a2] sm:$0xff]  ;;  %v2512_v54 = vmax.f32 %v5870_v51, %v5877_v15  ;;  %v3046_v51 = vld [vmem:[#allocation2 + $0xad] sm:$0xff] }
 0x179   : > { %v2742_v34 = vld [vmem:[#allocation2 + $0x82] sm:$0xff]  ;;  %v1677_v35 = vmax.f32 %v1533_v9, %v1605_v55  ;;  %v1818_v37 = vmax.f32 %v1674_v5, %v1746_v18  ;;  %2031 = vst.msk [vmem:[#allocation2 + $0x162] sm:$0xff] %vm148_vm0, %v1959_v56  ;;  %v2806_v55 = vld [vmem:[#allocation2 + $0xab] sm:$0xff] }
 0x17a   : > { %v2802_v47 = vld [vmem:[#allocation2 + $0x83] sm:$0xff] }
 0x17b   : > { %v1749_v6 = vld [vmem:[#allocation2 + $0x1a3] sm:$0xff]  ;;  %v2862_v26 = vmax.f32 %v2742_v34, %v2802_v47  ;;  %v5911_v34 = vmax.f32 %v2509_v36, %v5877_v15 }
 0x17c   : > { %v2922_v31 = vld [vmem:[#allocation2 + $0x84] sm:$0xff]  ;;  %v1821_v42 = vmax.f32 %v1677_v35, %v1749_v6  ;;  %v3103_v6 = vmax.f32 %v2983_v60, %v3043_v22 }
 0x17d   : > { %v5894_v2 = vld [vmem:[#allocation2 + $0x1c1] sm:$0xff]  ;;  %v2982_v9 = vmax.f32 %v2862_v26, %v2922_v31  ;;  %v3166_v26 = vld [vmem:[#allocation2 + $0xae] sm:$0xff]  ;;  %v8556_v31 = vld [vmem:[#allocation14_spill] sm:$0xff] }
 0x17e   : > { %v3042_v24 = vld [vmem:[#allocation2 + $0x85] sm:$0xff]  ;;  %v1536_v20 = vmax.f32 %v5891_v44, %v5894_v2  ;;  %v1963_v50 = vmax.f32 %v1819_v19, %v8556_v31  ;;  %3287 = vst.msk [vmem:[#allocation2 + $0xb4] sm:$0xf] %vm152_vm1, %v5836_v43 }
 0x17f   : > { %v8554_v23 = vld [vmem:[#allocation12_spill] sm:$0xff]  ;;  %v3102_v27 = vmax.f32 %v2982_v9, %v3042_v24 }
 0x180   : > { %v1960_v53 = vmax.f32 %v1816_v62, %v8554_v23  ;;  %v2745_v29 = vld [vmem:[#allocation2 + $0xa2] sm:$0xff]  ;;  %v2746_v62 = vld [vmem:[#allocation2 + $0xaa] sm:$0xff]  ;;  %v3223_v23 = vmax.f32 %v3103_v6, %v3163_v10 }
 0x181   : > { %v5901_v28 = vld [vmem:[#allocation2 + $0x122] sm:$0xff]  ;;  %v2866_v12 = vmax.f32 %v2746_v62, %v2806_v55  ;;  %v2163_v2 = vld [vmem:[#allocation2 + $0x12a] sm:$0xff] }
 0x182   : > { %v1890_v49 = vld [vmem:[#allocation2 + $0x184] sm:$0xff]  ;;  %2032 = vst.msk [vmem:[#allocation2 + $0x16a] sm:$0xff] %vm148_vm0, %v1960_v53  ;;  %v2279_v13 = vmax.f32 %v5865_v7, %v5901_v28  ;;  %v2514_v58 = vmax.f32 %v5880_v61, %v5901_v28  ;;  %v2280_v19 = vmax.f32 %v5877_v15, %v2163_v2  ;;  %v2515_v57 = vmax.f32 %v5899_v16, %v2163_v2 }
 0x183   : > { %v2805_v18 = vld [vmem:[#allocation2 + $0xa3] sm:$0xff]  ;;  %v1962_v36 = vmax.f32 %v1818_v37, %v1890_v49  ;;  %v2986_v56 = vmax.f32 %v2866_v12, %v2926_v4  ;;  %v2396_v37 = vmax.f32 %v2276_v48, %v5901_v28  ;;  %2035 = vst.msk [vmem:[#allocation2 + $0x18a] sm:$0xff] %vm148_vm0, %v1963_v50  ;;  %v5949_v15 = vmax.f32 %v2512_v54, %v2163_v2 }
 0x184   : > { %v3162_v47 = vld [vmem:[#allocation2 + $0x86] sm:$0xff]  ;;  %v2865_v5 = vmax.f32 %v2745_v29, %v2805_v18  ;;  %v2397_v29 = vmax.f32 %v2277_v3, %v2163_v2 }
 0x185   : > { %v2925_v14 = vld [vmem:[#allocation2 + $0xa4] sm:$0xff]  ;;  %v3222_v38 = vmax.f32 %v3102_v27, %v3162_v47  ;;  %2034 = vst.msk [vmem:[#allocation2 + $0x182] sm:$0xff] %vm148_vm0, %v1962_v36  ;;  %v3106_v9 = vmax.f32 %v2986_v56, %v3046_v51  ;;  %3283 = vst.msk [vmem:[#allocation2 + $0x8c] sm:$0xff] %vm148_vm0, %v3223_v23 }
 0x186   : > { %v1893_v35 = vld [vmem:[#allocation2 + $0x1a4] sm:$0xff]  ;;  %v2985_v44 = vmax.f32 %v2865_v5, %v2925_v14 }
 0x187   : > { %v8557_v53 = vld [vmem:[#allocation15_spill] sm:$0xff]  ;;  %v1965_v33 = vmax.f32 %v1821_v42, %v1893_v35  ;;  %v1393_v21 = vld [vmem:[#allocation2 + $0x1c8] sm:$0xff]  ;;  %3282 = vst.msk [vmem:[#allocation2 + $0x84] sm:$0xff] %vm148_vm0, %v3222_v38  ;;  %v8559_v42 = vmax.f32 %v5854_v11, %v5865_v7  ;;  %v3226_v47 = vmax.f32 %v3106_v9, %v3166_v26 }
 0x188   : > { %v1822_v46 = vmax.f32 %v1678_v8, %v8557_v53  ;;  %v1465_v24 = vld [vmem:[#allocation2 + $0x1c9] sm:$0xff]  ;;  %v5937_v49 = vld [vmem:[#allocation2 + $0x1e0] sm:$0xff] }
 0x189   : > { %v3045_v22 = vld [vmem:[#allocation2 + $0xa5] sm:$0xff]  ;;  %2037 = vst.msk [vmem:[#allocation2 + $0x1a2] sm:$0xff] %vm148_vm0, %v1965_v33  ;;  %v5946_v60 = vmax.f32 %v8559_v42, %v5901_v28  ;;  %v1537_v55 = vmax.f32 %v1393_v21, %v1465_v24 }
 0x18a   : > { %v3105_v43 = vmax.f32 %v2985_v44, %v3045_v22  ;;  %v3165_v10 = vld [vmem:[#allocation2 + $0xa6] sm:$0xff] }
 0x18b   : > { %v8558_v1 = vld [vmem:[#allocation16_spill] sm:$0xff]  ;;  %3286 = vst.msk [vmem:[#allocation2 + $0xac] sm:$0xff] %vm148_vm0, %v3226_v47 }
 0x18c   : > { %v1966_v48 = vmax.f32 %v1822_v46, %v8558_v1  ;;  %v1608_v61 = vld [vmem:[#allocation2 + $0x1c2] sm:$0xff]  ;;  %v2166_v62 = vld [vmem:[#allocation2 + $0x14a] sm:$0xff]  ;;  %v3225_v27 = vmax.f32 %v3105_v43, %v3165_v10 }
 0x18d   : > { %v5939_v8 = vld [vmem:[#allocation2 + $0x1e1] sm:$0xff]  ;;  %v2169_v14 = vld [vmem:[#allocation2 + $0x16a] sm:$0xff]  ;;  %v2283_v6 = vmax.f32 %v2163_v2, %v2166_v62  ;;  %v2400_v4 = vmax.f32 %v2280_v19, %v2166_v62  ;;  %v5953_v16 = vmax.f32 %v1536_v20, %v1608_v61  ;;  %v2518_v54 = vmax.f32 %v2397_v29, %v2166_v62 }
 0x18e   : > { %v2165_v3 = vld [vmem:[#allocation2 + $0x142] sm:$0xff]  ;;  %2038 = vst.msk [vmem:[#allocation2 + $0x1aa] sm:$0xff] %vm148_vm0, %v1966_v48  ;;  %3285 = vst.msk [vmem:[#allocation2 + $0xa4] sm:$0xff] %vm148_vm0, %v3225_v27  ;;  %v2286_v36 = vmax.f32 %v2166_v62, %v2169_v14  ;;  %v1609_v53 = vld [vmem:[#allocation2 + $0x1ca] sm:$0xff]  ;;  %v5961_v38 = vmax.f32 %v2515_v57, %v2166_v62 }
 0x18f   : > { %v2168_v18 = vld [vmem:[#allocation2 + $0x162] sm:$0xff]  ;;  %v2282_v5 = vmax.f32 %v5901_v28, %v2165_v3  ;;  %v2399_v12 = vmax.f32 %v2279_v13, %v2165_v3  ;;  %v2517_v7 = vmax.f32 %v2396_v37, %v2165_v3  ;;  %v1539_v28 = vmax.f32 %v5937_v49, %v5939_v8  ;;  %v5967_v2 = vld [vmem:[#allocation2 + $0x18a] sm:$0xff] }
 0x190   : > { %v1396_v35 = vld [vmem:[#allocation2 + $0x1e8] sm:$0xff]  ;;  %v2285_v51 = vmax.f32 %v2165_v3, %v2168_v18  ;;  %v2403_v31 = vmax.f32 %v2283_v6, %v2169_v14  ;;  %v5959_v46 = vmax.f32 %v2514_v58, %v2165_v3  ;;  %v2521_v44 = vmax.f32 %v2400_v4, %v2169_v14  ;;  %v1398_v1 = vld [vmem:[#allocation2 + $0x200] sm:$0xff]  ;;  %v8560_v6 = vld [vmem:[#allocation17_spill] sm:$0xff] }
 0x191   : > { %v1468_v11 = vld [vmem:[#allocation2 + $0x1e9] sm:$0xff]  ;;  %v2402_v26 = vmax.f32 %v2282_v5, %v2168_v18  ;;  %v2520_v13 = vmax.f32 %v2399_v12, %v2168_v18  ;;  %v5963_v20 = vmax.f32 %v2517_v7, %v2168_v18  ;;  %v1681_v22 = vmax.f32 %v1537_v55, %v1609_v53  ;;  %v1470_v3 = vld [vmem:[#allocation2 + $0x201] sm:$0xff] }
 0x192   : > { %v1540_v50 = vmax.f32 %v1396_v35, %v1468_v11  ;;  %v5965_v56 = vld [vmem:[#allocation2 + $0x182] sm:$0xff]  ;;  %v1612_v37 = vld [vmem:[#allocation2 + $0x1ea] sm:$0xff]  ;;  %v5976_v58 = vmax.f32 %v2518_v54, %v2169_v14  ;;  %v2289_v19 = vmax.f32 %v2169_v14, %v5967_v2  ;;  %v5980_v43 = vmax.f32 %v2286_v36, %v5967_v2 }
 0x193   : > { %v2288_v33 = vmax.f32 %v2168_v18, %v5965_v56  ;;  %v5971_v21 = vmax.f32 %v2285_v51, %v5965_v56  ;;  %v2523_v24 = vmax.f32 %v2402_v26, %v5965_v56  ;;  %v5974_v23 = vld [vmem:[#allocation2 + $0x1a2] sm:$0xff]  ;;  %v2524_v9 = vmax.f32 %v2403_v31, %v5967_v2  ;;  %v1615_v11 = vld [vmem:[#allocation2 + $0x20a] sm:$0xff] }
 0x194   : > { %v1752_v10 = vld [vmem:[#allocation2 + $0x1c3] sm:$0xff]  ;;  %v5984_v61 = vmax.f32 %v2520_v13, %v5965_v56  ;;  %v5987_v49 = vmax.f32 %v2521_v44, %v5967_v2  ;;  %v1825_v4 = vmax.f32 %v1681_v22, %v8560_v6  ;;  %v1684_v51 = vmax.f32 %v1540_v50, %v1612_v37 }
 0x195   : > { %v1611_v29 = vld [vmem:[#allocation2 + $0x1e2] sm:$0xff]  ;;  %v5992_v42 = vmax.f32 %v2288_v33, %v5974_v23  ;;  %v5994_v57 = vld [vmem:[#allocation2 + $0x1aa] sm:$0xff]  ;;  %v5999_v55 = vmax.f32 %v2523_v24, %v5974_v23  ;;  %v1824_v7 = vmax.f32 %v5953_v16, %v1752_v10  ;;  %v1542_v44 = vmax.f32 %v1398_v1, %v1470_v3  ;;  %v8561_v10 = vld [vmem:[#allocation18_spill] sm:$0xff] }
 0x196   : > { %v1399_v48 = vld [vmem:[#allocation2 + $0x208] sm:$0xff]  ;;  %v6004_v47 = vmax.f32 %v2289_v19, %v5994_v57  ;;  %v1401_v14 = vld [vmem:[#allocation2 + $0x220] sm:$0xff]  ;;  %v1683_v54 = vmax.f32 %v1539_v28, %v1611_v29  ;;  %v6011_v53 = vmax.f32 %v2524_v9, %v5994_v57  ;;  %v1969_v22 = vmax.f32 %v1825_v4, %v8561_v10 }
 0x197   : > { %v1471_v62 = vld [vmem:[#allocation2 + $0x209] sm:$0xff]  ;;  %v1473_v26 = vld [vmem:[#allocation2 + $0x221] sm:$0xff] }
 0x198   : > { %v1896_v5 = vld [vmem:[#allocation2 + $0x1c4] sm:$0xff]  ;;  %v1543_v33 = vmax.f32 %v1399_v48, %v1471_v62  ;;  %v1545_v9 = vmax.f32 %v1401_v14, %v1473_v26 }
 0x199   : > { %v1755_v12 = vld [vmem:[#allocation2 + $0x1e3] sm:$0xff]  ;;  %v1968_v16 = vmax.f32 %v1824_v7, %v1896_v5  ;;  %2041 = vst.msk [vmem:[#allocation2 + $0x1ca] sm:$0xff] %vm148_vm0, %v1969_v22 }
 0x19a   : > { %v1402_v35 = vld [vmem:[#allocation2 + $0x228] sm:$0xff]  ;;  %v1404_v36 = vld [vmem:[#allocation2 + $0x240] sm:$0xff]  ;;  %v1827_v28 = vmax.f32 %v1683_v54, %v1755_v12  ;;  %v1687_v41 = vmax.f32 %v1543_v33, %v1615_v11  ;;  %v8564_v11 = vld [vmem:[#allocation21_spill] sm:$0xff] }
 0x19b   : > { %v1474_v13 = vld [vmem:[#allocation2 + $0x229] sm:$0xff]  ;;  %v1476_v19 = vld [vmem:[#allocation2 + $0x241] sm:$0xff]  ;;  %2040 = vst.msk [vmem:[#allocation2 + $0x1c2] sm:$0xff] %vm148_vm0, %v1968_v16 }
 0x19c   : > { %v1405_v24 = vld [vmem:[#allocation2 + $0x248] sm:$0xff]  ;;  %v8562_v50 = vld [vmem:[#allocation19_spill] sm:$0xff]  ;;  %v1546_v0 = vmax.f32 %v1402_v35, %v1474_v13  ;;  %v1831_v14 = vmax.f32 %v1687_v41, %v8564_v11 }
 0x19d   : > { %v1477_v27 = vld [vmem:[#allocation2 + $0x249] sm:$0xff]  ;;  %v1828_v37 = vmax.f32 %v1684_v51, %v8562_v50  ;;  %v1407_v8 = vld [vmem:[#allocation2 + $0x260] sm:$0xff]  ;;  %v1548_v51 = vmax.f32 %v1404_v36, %v1476_v19  ;;  %v8565_v19 = vld [vmem:[#allocation22_spill] sm:$0xff] }
 0x19e   : > { %v1618_v18 = vld [vmem:[#allocation2 + $0x22a] sm:$0xff]  ;;  %v1614_v6 = vld [vmem:[#allocation2 + $0x202] sm:$0xff]  ;;  %v1549_v10 = vmax.f32 %v1405_v24, %v1477_v27  ;;  %v1975_v41 = vmax.f32 %v1831_v14, %v8565_v19 }
 0x19f   : > { %v1899_v29 = vld [vmem:[#allocation2 + $0x1e4] sm:$0xff]  ;;  %v1686_v31 = vmax.f32 %v1542_v44, %v1614_v6  ;;  %v1690_v26 = vmax.f32 %v1546_v0, %v1618_v18 }
 0x1a0   : > { %v1621_v17 = vld [vmem:[#allocation2 + $0x24a] sm:$0xff]  ;;  %v1479_v48 = vld [vmem:[#allocation2 + $0x261] sm:$0xff]  ;;  %v1971_v62 = vmax.f32 %v1827_v28, %v1899_v29 }
 0x1a1   : > { %v1408_v1 = vld [vmem:[#allocation2 + $0x268] sm:$0xff]  ;;  %v1410_v6 = vld [vmem:[#allocation2 + $0x280] sm:$0xff]  ;;  %v1693_v28 = vmax.f32 %v1549_v10, %v1621_v17 }
 0x1a2   : > { %v1480_v3 = vld [vmem:[#allocation2 + $0x269] sm:$0xff]  ;;  %2043 = vst.msk [vmem:[#allocation2 + $0x1e2] sm:$0xff] %vm148_vm0, %v1971_v62  ;;  %v1482_v27 = vld [vmem:[#allocation2 + $0x281] sm:$0xff] }
 0x1a3   : > { %v8563_v5 = vld [vmem:[#allocation20_spill] sm:$0xff]  ;;  %v1552_v29 = vmax.f32 %v1408_v1, %v1480_v3  ;;  %v8566_v0 = vld [vmem:[#allocation23_spill] sm:$0xff] }
 0x1a4   : > { %v1972_v12 = vmax.f32 %v1828_v37, %v8563_v5  ;;  %v1758_v7 = vld [vmem:[#allocation2 + $0x203] sm:$0xff]  ;;  %v1551_v37 = vmax.f32 %v1407_v8, %v1479_v48  ;;  %v1834_v18 = vmax.f32 %v1690_v26, %v8566_v0 }
 0x1a5   : > { %v1902_v4 = vld [vmem:[#allocation2 + $0x204] sm:$0xff]  ;;  %v1830_v44 = vmax.f32 %v1686_v31, %v1758_v7 }
 0x1a6   : > { %v1617_v54 = vld [vmem:[#allocation2 + $0x222] sm:$0xff]  ;;  %v1624_v50 = vld [vmem:[#allocation2 + $0x26a] sm:$0xff]  ;;  %2044 = vst.msk [vmem:[#allocation2 + $0x1ea] sm:$0xff] %vm148_vm0, %v1972_v12  ;;  %2047 = vst.msk [vmem:[#allocation2 + $0x20a] sm:$0xff] %vm148_vm0, %v1975_v41 }
 0x1a7   : > { %v1689_v35 = vmax.f32 %v1545_v9, %v1617_v54  ;;  %v1761_v13 = vld [vmem:[#allocation2 + $0x223] sm:$0xff]  ;;  %v1974_v31 = vmax.f32 %v1830_v44, %v1902_v4  ;;  %v8567_v12 = vld [vmem:[#allocation25_spill] sm:$0xff]  ;;  %v1696_v8 = vmax.f32 %v1552_v29, %v1624_v50 }
 0x1a8   : > { %v1620_v33 = vld [vmem:[#allocation2 + $0x242] sm:$0xff] }
 0x1a9   : > { %v1905_v16 = vld [vmem:[#allocation2 + $0x224] sm:$0xff]  ;;  %v1692_v22 = vmax.f32 %v1548_v51, %v1620_v33  ;;  %v1833_v9 = vmax.f32 %v1689_v35, %v1761_v13  ;;  %v1837_v51 = vmax.f32 %v1693_v28, %v8567_v12  ;;  %2046 = vst.msk [vmem:[#allocation2 + $0x202] sm:$0xff] %vm148_vm0, %v1974_v31  ;;  %v1554_v35 = vmax.f32 %v1410_v6, %v1482_v27  ;;  %v8569_v33 = vld [vmem:[#allocation26_spill] sm:$0xff] }
 0x1aa   : > { %v1411_v36 = vld [vmem:[#allocation2 + $0x288] sm:$0xff]  ;;  %v6023_v54 = vld [vmem:[#allocation2 + $0x2a0] sm:$0xff] }
 0x1ab   : > { %v1483_v24 = vld [vmem:[#allocation2 + $0x289] sm:$0xff]  ;;  %v6028_v48 = vld [vmem:[#allocation2 + $0x2a1] sm:$0xff]  ;;  %v1977_v4 = vmax.f32 %v1833_v9, %v1905_v16 }
 0x1ac   : > { %v1764_v5 = vld [vmem:[#allocation2 + $0x243] sm:$0xff]  ;;  %v1555_v26 = vmax.f32 %v1411_v36, %v1483_v24  ;;  %v8571_v24 = vmax.f32 %v5965_v56, %v5974_v23  ;;  %v8573_v56 = vmax.f32 %v5967_v2, %v5994_v57 }
 0x1ad   : > { %v1623_v7 = vld [vmem:[#allocation2 + $0x262] sm:$0xff]  ;;  %v1836_v62 = vmax.f32 %v1692_v22, %v1764_v5  ;;  %v1627_v13 = vld [vmem:[#allocation2 + $0x28a] sm:$0xff]  ;;  %v1981_v22 = vmax.f32 %v1837_v51, %v8569_v33  ;;  %2049 = vst.msk [vmem:[#allocation2 + $0x222] sm:$0xff] %vm148_vm0, %v1977_v4  ;;  %v8572_v5 = vmax.f32 %v5971_v21, %v5974_v23  ;;  %v8574_v21 = vmax.f32 %v5980_v43, %v5994_v57 }
 0x1ae   : > { %v1695_v17 = vmax.f32 %v1551_v37, %v1623_v7  ;;  %v6026_v1 = vld [vmem:[#allocation2 + $0x2a8] sm:$0xff]  ;;  %v8570_v37 = vld [vmem:[#allocation27_spill] sm:$0xff]  ;;  %v6042_v41 = vmax.f32 %v1555_v26, %v1627_v13 }
 0x1af   : > { %v6030_v3 = vld [vmem:[#allocation2 + $0x2a9] sm:$0xff]  ;;  %v1840_v29 = vmax.f32 %v1696_v8, %v8570_v37 }
 0x1b0   : > { %v8568_v10 = vld [vmem:[#allocation24_spill] sm:$0xff] }
 0x1b1   : > { %v1978_v44 = vmax.f32 %v1834_v18, %v8568_v10  ;;  %v1908_v11 = vld [vmem:[#allocation2 + $0x244] sm:$0xff] }
 0x1b2   : > { %v1767_v14 = vld [vmem:[#allocation2 + $0x263] sm:$0xff]  ;;  %v1980_v50 = vmax.f32 %v1836_v62, %v1908_v11  ;;  %2053 = vst.msk [vmem:[#allocation2 + $0x24a] sm:$0xff] %vm148_vm0, %v1981_v22 }
 0x1b3   : > { %v1839_v28 = vmax.f32 %v1695_v17, %v1767_v14  ;;  %v1626_v19 = vld [vmem:[#allocation2 + $0x282] sm:$0xff]  ;;  %v2178_v31 = vld [vmem:[#allocation2 + $0x1ca] sm:$0xff]  ;;  %2050 = vst.msk [vmem:[#allocation2 + $0x22a] sm:$0xff] %vm148_vm0, %v1978_v44 }
 0x1b4   : > { %v2177_v0 = vld [vmem:[#allocation2 + $0x1c2] sm:$0xff]  ;;  %v6040_v16 = vmax.f32 %v1554_v35, %v1626_v19  ;;  %2052 = vst.msk [vmem:[#allocation2 + $0x242] sm:$0xff] %vm148_vm0, %v1980_v50  ;;  %v2295_v62 = vmax.f32 %v5994_v57, %v2178_v31  ;;  %v2530_v12 = vmax.f32 %v6004_v47, %v2178_v31  ;;  %v6075_v17 = vld [vmem:[#allocation2 + $0x1ea] sm:$0xff] }
 0x1b5   : > { %v2294_v27 = vmax.f32 %v5974_v23, %v2177_v0  ;;  %v2411_v9 = vmax.f32 %v8571_v24, %v2177_v0  ;;  %v2529_v18 = vmax.f32 %v5992_v42, %v2177_v0  ;;  %v6056_v7 = vmax.f32 %v8572_v5, %v2177_v0  ;;  %v2180_v51 = vld [vmem:[#allocation2 + $0x1e2] sm:$0xff]  ;;  %v6091_v13 = vld [vmem:[#allocation2 + $0x20a] sm:$0xff] }
 0x1b6   : > { %v2412_v42 = vmax.f32 %v8573_v56, %v2178_v31  ;;  %v6073_v23 = vmax.f32 %v8574_v21, %v2178_v31  ;;  %v2297_v8 = vmax.f32 %v2177_v0, %v2180_v51  ;;  %v2298_v11 = vmax.f32 %v2178_v31, %v6075_v17  ;;  %v1911_v57 = vld [vmem:[#allocation2 + $0x264] sm:$0xff]  ;;  %v8576_v19 = vld [vmem:[#allocation29_spill] sm:$0xff] }
 0x1b7   : > { %v2414_v4 = vmax.f32 %v2294_v27, %v2180_v51  ;;  %v2532_v10 = vmax.f32 %v2411_v9, %v2180_v51  ;;  %v6077_v44 = vmax.f32 %v2529_v18, %v2180_v51  ;;  %v6081_v2 = vmax.f32 %v2295_v62, %v6075_v17  ;;  %v6087_v14 = vld [vmem:[#allocation2 + $0x283] sm:$0xff]  ;;  %v2077_v31 = vld [vmem:[#allocation2 + $0xce] sm:$0xff]  ;;  %v8577_v9 = vld [vmem:[#allocation46_spill] sm:$0xff] }
 0x1b8   : > { %v2533_v47 = vmax.f32 %v2412_v42, %v6075_v17  ;;  %v6085_v43 = vmax.f32 %v2530_v12, %v6075_v17  ;;  %v2076_v35 = vld [vmem:[#allocation2 + $0xc6] sm:$0xff]  ;;  %v1983_v50 = vmax.f32 %v1839_v28, %v1911_v57  ;;  %v1842_v37 = vmax.f32 %v6040_v16, %v6087_v14  ;;  %4334 = vst.msk [vmem:[%s6063_s17 + $0x208] sm:$0xff] %vm148_vm0, %v2077_v31  ;;  %v2079_v18 = vld [vmem:[#allocation2 + $0xee] sm:$0xff] }
 0x1b9   : > { %v6089_v26 = vld [vmem:[#allocation2 + $0x202] sm:$0xff]  ;;  %4333 = vst.msk [vmem:[%s6063_s17 + $0x200] sm:$0xff] %vm148_vm0, %v2076_v35  ;;  %2688 = vst.msk [vmem:[#allocation2 + $0xc2] sm:$0xff] %vm148_vm0, %v5885_v25  ;;  %v6116_v62 = vld [vmem:[#allocation2 + $0x2aa] sm:$0xff]  ;;  %v2301_v56 = vmax.f32 %v6075_v17, %v6091_v13  ;;  %v6121_v42 = vmax.f32 %v2298_v11, %v6091_v13  ;;  %v2536_v12 = vmax.f32 %v6081_v2, %v6091_v13 }
 0x1ba   : > { %v8575_v33 = vld [vmem:[#allocation28_spill] sm:$0xff]  ;;  %v2300_v27 = vmax.f32 %v2180_v51, %v6089_v26  ;;  %v6104_v24 = vmax.f32 %v2297_v8, %v6089_v26  ;;  %v2535_v28 = vmax.f32 %v2414_v4, %v6089_v26  ;;  %2689 = vst.msk [vmem:[#allocation2 + $0xca] sm:$0xff] %vm148_vm0, %v5911_v34  ;;  %2690 = vst.msk [vmem:[#allocation2 + $0xd2] sm:$0xff] %vm148_vm0, %v8577_v9  ;;  %v8578_v17 = vld [vmem:[#allocation47_spill] sm:$0xff] }
 0x1bb   : > { %v1984_v22 = vmax.f32 %v1840_v29, %v8575_v33  ;;  %v6108_v29 = vmax.f32 %v2532_v10, %v6089_v26  ;;  %v2078_v25 = vld [vmem:[#allocation2 + $0xe6] sm:$0xff]  ;;  %v6126_v34 = vmax.f32 %v2533_v47, %v6091_v13  ;;  %2055 = vst.msk [vmem:[#allocation2 + $0x262] sm:$0xff] %vm148_vm0, %v1983_v50  ;;  %4336 = vst.msk [vmem:[%s6063_s17 + $0x218] sm:$0xff] %vm148_vm0, %v2079_v18  ;;  %v2081_v4 = vld [vmem:[#allocation2 + $0x10e] sm:$0xff] }
 0x1bc   : > { %v2080_v5 = vld [vmem:[#allocation2 + $0x106] sm:$0xff]  ;;  %4335 = vst.msk [vmem:[%s6063_s17 + $0x210] sm:$0xff] %vm148_vm0, %v2078_v25  ;;  %2691 = vst.msk [vmem:[#allocation2 + $0xe2] sm:$0xff] %vm148_vm0, %v5946_v60  ;;  %v2095_v14 = vld [vmem:[#allocation2 + $0x1ee] sm:$0xff] }
 0x1bd   : > { %v6128_v21 = vld [vmem:[#allocation2 + $0x222] sm:$0xff]  ;;  %v6130_v51 = vld [vmem:[#allocation2 + $0x22a] sm:$0xff]  ;;  %2056 = vst.msk [vmem:[#allocation2 + $0x26a] sm:$0xff] %vm148_vm0, %v1984_v22  ;;  %2692 = vst.msk [vmem:[#allocation2 + $0xea] sm:$0xff] %vm148_vm0, %v5949_v15 }
 0x1be   : > { %v6134_v8 = vld [vmem:[#allocation2 + $0x2a2] sm:$0xff]  ;;  %2693 = vst.msk [vmem:[#allocation2 + $0xf2] sm:$0xff] %vm148_vm0, %v8578_v17  ;;  %4337 = vst.msk [vmem:[%s6063_s17 + $0x220] sm:$0xff] %vm148_vm0, %v2080_v5  ;;  %v2303_v10 = vmax.f32 %v6089_v26, %v6128_v21  ;;  %v6153_v60 = vmax.f32 %v2300_v27, %v6128_v21  ;;  %v2538_v11 = vmax.f32 %v6104_v24, %v6128_v21  ;;  %v6162_v47 = vld [vmem:[#allocation2 + $0x24a] sm:$0xff] }
 0x1bf   : > { %2694 = vst.msk [vmem:[#allocation2 + $0x102] sm:$0xff] %vm148_vm0, %v5959_v46  ;;  %v6158_v15 = vmax.f32 %v2535_v28, %v6128_v21  ;;  %v6160_v2 = vld [vmem:[#allocation2 + $0x242] sm:$0xff]  ;;  %4338 = vst.msk [vmem:[%s6063_s17 + $0x228] sm:$0xff] %vm148_vm0, %v2081_v4  ;;  %v2304_v28 = vmax.f32 %v6091_v13, %v6130_v51  ;;  %v6189_v9 = vmax.f32 %v2301_v56, %v6130_v51  ;;  %v2083_v56 = vld [vmem:[#allocation2 + $0x12e] sm:$0xff] }
 0x1c0   : > { %v6164_v57 = vld [vmem:[#allocation2 + $0x2c0] sm:$0xff]  ;;  %v6166_v46 = vld [vmem:[#allocation2 + $0x2c8] sm:$0xff]  ;;  %2695 = vst.msk [vmem:[#allocation2 + $0x10a] sm:$0xff] %vm148_vm0, %v5961_v38  ;;  %v2539_v25 = vmax.f32 %v6121_v42, %v6130_v51  ;;  %v6194_v18 = vmax.f32 %v2536_v12, %v6130_v51  ;;  %v6211_v36 = vmax.f32 %v2303_v10, %v6160_v2  ;;  %v2541_v6 = vmax.f32 %v6153_v60, %v6160_v2 }
 0x1c1   : > { %v6168_v35 = vld [vmem:[#allocation2 + $0x2c1] sm:$0xff]  ;;  %v6170_v26 = vld [vmem:[#allocation2 + $0x2c9] sm:$0xff]  ;;  %v6216_v0 = vmax.f32 %v2538_v11, %v6160_v2  ;;  %4340 = vst.msk [vmem:[%s6063_s17 + $0x238] sm:$0xff] %vm148_vm0, %v2083_v56  ;;  %v6237_v56 = vmax.f32 %v2304_v28, %v6162_v47  ;;  %4352 = vst.msk [vmem:[%s6063_s17 + $0x298] sm:$0xff] %vm148_vm0, %v2095_v14 }
 0x1c2   : > { %v6172_v50 = vld [vmem:[#allocation2 + $0x2e0] sm:$0xff]  ;;  %v6174_v33 = vld [vmem:[#allocation2 + $0x2e8] sm:$0xff]  ;;  %v1560_v16 = vmax.f32 %v6164_v57, %v6168_v35  ;;  %2717 = vst.msk [vmem:[#allocation2 + $0x1f2] sm:$0xff] %vm148_vm0, %v5743_v32 }
 0x1c3   : > { %v6176_v22 = vld [vmem:[#allocation2 + $0x2e1] sm:$0xff]  ;;  %v6178_v31 = vld [vmem:[#allocation2 + $0x2e9] sm:$0xff] }
 0x1c4   : > { %v8579_v27 = vld [vmem:[#allocation48_spill] sm:$0xff]  ;;  %v6196_v17 = vld [vmem:[#allocation2 + $0x300] sm:$0xff] }
 0x1c5   : > { %2696 = vst.msk [vmem:[#allocation2 + $0x112] sm:$0xff] %vm148_vm0, %v8579_v27  ;;  %v2082_v24 = vld [vmem:[#allocation2 + $0x126] sm:$0xff]  ;;  %v2085_v12 = vld [vmem:[#allocation2 + $0x14e] sm:$0xff]  ;;  %v2306_v27 = vmax.f32 %v6128_v21, %v6160_v2 }
 0x1c6   : > { %v1914_v5 = vld [vmem:[#allocation2 + $0x284] sm:$0xff]  ;;  %4339 = vst.msk [vmem:[%s6063_s17 + $0x230] sm:$0xff] %vm148_vm0, %v2082_v24  ;;  %2697 = vst.msk [vmem:[#allocation2 + $0x122] sm:$0xff] %vm148_vm0, %v5963_v20  ;;  %v8580_v20 = vld [vmem:[#allocation49_spill] sm:$0xff]  ;;  %v2307_v24 = vmax.f32 %v6130_v51, %v6162_v47 }
 0x1c7   : > { %v6198_v38 = vld [vmem:[#allocation2 + $0x308] sm:$0xff]  ;;  %2698 = vst.msk [vmem:[#allocation2 + $0x12a] sm:$0xff] %vm148_vm0, %v5976_v58  ;;  %2699 = vst.msk [vmem:[#allocation2 + $0x132] sm:$0xff] %vm148_vm0, %v8580_v20  ;;  %v8582_v20 = vmax.f32 %v6042_v41, %v8576_v19  ;;  %v1561_v41 = vmax.f32 %v6166_v46, %v6170_v26  ;;  %v6345_v26 = vld [vmem:[#allocation2 + $0x320] sm:$0xff] }
 0x1c8   : > { %v6200_v4 = vld [vmem:[#allocation2 + $0x301] sm:$0xff]  ;;  %v6202_v13 = vld [vmem:[#allocation2 + $0x309] sm:$0xff]  ;;  %4342 = vst.msk [vmem:[%s6063_s17 + $0x248] sm:$0xff] %vm148_vm0, %v2085_v12  ;;  %2702 = vst.msk [vmem:[#allocation2 + $0x152] sm:$0xff] %vm148_vm0, %v5701_v59 }
 0x1c9   : > { %v2084_v42 = vld [vmem:[#allocation2 + $0x146] sm:$0xff]  ;;  %v2087_v58 = vld [vmem:[#allocation2 + $0x16e] sm:$0xff]  ;;  %v1566_v46 = vmax.f32 %v6196_v17, %v6200_v4  ;;  %v1567_v35 = vmax.f32 %v6198_v38, %v6202_v13 }
 0x1ca   : > { %4341 = vst.msk [vmem:[%s6063_s17 + $0x240] sm:$0xff] %vm148_vm0, %v2084_v42  ;;  %2700 = vst.msk [vmem:[#allocation2 + $0x142] sm:$0xff] %vm148_vm0, %v5984_v61  ;;  %v2086_v10 = vld [vmem:[#allocation2 + $0x166] sm:$0xff]  ;;  %v6242_v42 = vmax.f32 %v2539_v25, %v6162_v47  ;;  %v2089_v59 = vld [vmem:[#allocation2 + $0x18e] sm:$0xff] }
 0x1cb   : > { %2701 = vst.msk [vmem:[#allocation2 + $0x14a] sm:$0xff] %vm148_vm0, %v5987_v49  ;;  %v2088_v11 = vld [vmem:[#allocation2 + $0x186] sm:$0xff]  ;;  %4343 = vst.msk [vmem:[%s6063_s17 + $0x250] sm:$0xff] %vm148_vm0, %v2086_v10  ;;  %v2091_v28 = vld [vmem:[#allocation2 + $0x1ae] sm:$0xff]  ;;  %v8583_v10 = vmax.f32 %v6023_v54, %v6028_v48 }
 0x1cc   : > { %v6244_v12 = vld [vmem:[#allocation2 + $0x2a3] sm:$0xff]  ;;  %2703 = vst.msk [vmem:[#allocation2 + $0x162] sm:$0xff] %vm148_vm0, %v5999_v55  ;;  %4344 = vst.msk [vmem:[%s6063_s17 + $0x258] sm:$0xff] %vm148_vm0, %v2087_v58  ;;  %v1986_v55 = vmax.f32 %v1842_v37, %v1914_v5  ;;  %v2097_v19 = vld [vmem:[#allocation2 + $0x20e] sm:$0xff] }
 0x1cd   : > { %2704 = vst.msk [vmem:[#allocation2 + $0x16a] sm:$0xff] %vm148_vm0, %v6011_v53  ;;  %2705 = vst.msk [vmem:[#allocation2 + $0x172] sm:$0xff] %vm148_vm0, %v5709_v63  ;;  %v2090_v49 = vld [vmem:[#allocation2 + $0x1a6] sm:$0xff]  ;;  %v8581_v53 = vld [vmem:[#allocation30_spill] sm:$0xff]  ;;  %v6273_v58 = vmax.f32 %v8583_v10, %v6134_v8 }
 0x1ce   : > { %4345 = vst.msk [vmem:[%s6063_s17 + $0x260] sm:$0xff] %vm148_vm0, %v2088_v11  ;;  %2706 = vst.msk [vmem:[#allocation2 + $0x182] sm:$0xff] %vm148_vm0, %v6056_v7  ;;  %v6260_v25 = vld [vmem:[#allocation2 + $0x2ca] sm:$0xff]  ;;  %v1987_v63 = vmax.f32 %v8582_v20, %v8581_v53  ;;  %v8584_v7 = vmax.f32 %v6026_v1, %v6030_v3  ;;  %v6281_v61 = vld [vmem:[#allocation2 + $0x2c2] sm:$0xff] }
 0x1cf   : > { %4346 = vst.msk [vmem:[%s6063_s17 + $0x268] sm:$0xff] %vm148_vm0, %v2089_v59  ;;  %2707 = vst.msk [vmem:[#allocation2 + $0x18a] sm:$0xff] %vm148_vm0, %v6073_v23  ;;  %v2092_v54 = vld [vmem:[#allocation2 + $0x1c6] sm:$0xff]  ;;  %v2093_v1 = vld [vmem:[#allocation2 + $0x1ce] sm:$0xff]  ;;  %v1563_v23 = vmax.f32 %v6172_v50, %v6176_v22 }
 0x1d0   : > { %v6279_v11 = vmax.f32 %v8584_v7, %v6116_v62  ;;  %2708 = vst.msk [vmem:[#allocation2 + $0x192] sm:$0xff] %vm148_vm0, %v5716_v40  ;;  %4347 = vst.msk [vmem:[%s6063_s17 + $0x270] sm:$0xff] %vm148_vm0, %v2090_v49  ;;  %v2094_v48 = vld [vmem:[#allocation2 + $0x1e6] sm:$0xff]  ;;  %v2099_v38 = vld [vmem:[#allocation2 + $0x22e] sm:$0xff]  ;;  %v1705_v49 = vmax.f32 %v1561_v41, %v6260_v25 }
 0x1d1   : > { %2709 = vst.msk [vmem:[#allocation2 + $0x1a2] sm:$0xff] %vm148_vm0, %v6077_v44  ;;  %4348 = vst.msk [vmem:[%s6063_s17 + $0x278] sm:$0xff] %vm148_vm0, %v2091_v28  ;;  %v6299_v40 = vld [vmem:[#allocation2 + $0x2ea] sm:$0xff]  ;;  %v6311_v44 = vld [vmem:[#allocation2 + $0x2e2] sm:$0xff] }
 0x1d2   : > { %2710 = vst.msk [vmem:[#allocation2 + $0x1aa] sm:$0xff] %vm148_vm0, %v6085_v43  ;;  %2711 = vst.msk [vmem:[#allocation2 + $0x1b2] sm:$0xff] %vm148_vm0, %v5728_v52  ;;  %v6301_v3 = vld [vmem:[#allocation2 + $0x30a] sm:$0xff]  ;;  %v1564_v52 = vmax.f32 %v6174_v33, %v6178_v31  ;;  %v6313_v43 = vld [vmem:[#allocation2 + $0x302] sm:$0xff]  ;;  %v1707_v20 = vmax.f32 %v1563_v23, %v6311_v44 }
 0x1d3   : > { %4349 = vst.msk [vmem:[%s6063_s17 + $0x280] sm:$0xff] %vm148_vm0, %v2092_v54  ;;  %2712 = vst.msk [vmem:[#allocation2 + $0x1c2] sm:$0xff] %vm148_vm0, %v6108_v29  ;;  %v2096_v37 = vld [vmem:[#allocation2 + $0x206] sm:$0xff]  ;;  %v2101_v13 = vld [vmem:[#allocation2 + $0x24e] sm:$0xff]  ;;  %v1710_v25 = vmax.f32 %v1566_v46, %v6313_v43 }
 0x1d4   : > { %4350 = vst.msk [vmem:[%s6063_s17 + $0x288] sm:$0xff] %vm148_vm0, %v2093_v1  ;;  %2713 = vst.msk [vmem:[#allocation2 + $0x1ca] sm:$0xff] %vm148_vm0, %v6126_v34  ;;  %v6329_v62 = vld [vmem:[#allocation2 + $0x262] sm:$0xff]  ;;  %v6331_v29 = vld [vmem:[#allocation2 + $0x26a] sm:$0xff] }
 0x1d5   : > { %2714 = vst.msk [vmem:[#allocation2 + $0x1d2] sm:$0xff] %vm148_vm0, %v5737_v45  ;;  %4351 = vst.msk [vmem:[%s6063_s17 + $0x290] sm:$0xff] %vm148_vm0, %v2094_v48  ;;  %v1845_v45 = vmax.f32 %v6273_v58, %v6244_v12  ;;  %v8585_v34 = vld [vmem:[#allocation31_spill] sm:$0xff]  ;;  %v6347_v5 = vld [vmem:[#allocation2 + $0x328] sm:$0xff]  ;;  %v6373_v32 = vmax.f32 %v2306_v27, %v6329_v62  ;;  %v6389_v21 = vmax.f32 %v2307_v24, %v6331_v29 }
 0x1d6   : > { %2715 = vst.msk [vmem:[#allocation2 + $0x1e2] sm:$0xff] %vm148_vm0, %v6158_v15  ;;  %2058 = vst.msk [vmem:[#allocation2 + $0x282] sm:$0xff] %vm148_vm0, %v1986_v55  ;;  %v1846_v8 = vmax.f32 %v6279_v11, %v8585_v34  ;;  %v1917_v15 = vld [vmem:[#allocation2 + $0x2a4] sm:$0xff]  ;;  %v2103_v24 = vld [vmem:[#allocation2 + $0x26e] sm:$0xff]  ;;  %v1704_v12 = vmax.f32 %v1560_v16, %v6281_v61  ;;  %v1708_v61 = vmax.f32 %v1564_v52, %v6299_v40 }
 0x1d7   : > { %2059 = vst.msk [vmem:[#allocation2 + $0x28a] sm:$0xff] %vm148_vm0, %v1987_v63  ;;  %v6339_v57 = vld [vmem:[#allocation2 + $0x2c3] sm:$0xff]  ;;  %2716 = vst.msk [vmem:[#allocation2 + $0x1ea] sm:$0xff] %vm148_vm0, %v6194_v18  ;;  %v2309_v18 = vmax.f32 %v6160_v2, %v6329_v62  ;;  %v1711_v63 = vmax.f32 %v1567_v35, %v6301_v3  ;;  %v8590_v50 = vld [vmem:[#allocation33_spill] sm:$0xff] }
 0x1d8   : > { %v6349_v59 = vld [vmem:[#allocation2 + $0x321] sm:$0xff]  ;;  %4353 = vst.msk [vmem:[%s6063_s17 + $0x2a0] sm:$0xff] %vm148_vm0, %v2096_v37  ;;  %2718 = vst.msk [vmem:[#allocation2 + $0x202] sm:$0xff] %vm148_vm0, %v6216_v0  ;;  %v2544_v0 = vmax.f32 %v6211_v36, %v6329_v62  ;;  %v2545_v36 = vmax.f32 %v6237_v56, %v6331_v29  ;;  %v1498_v2 = vld [vmem:[#allocation2 + $0x329] sm:$0xff]  ;;  %v1989_v56 = vmax.f32 %v1845_v45, %v1917_v15 }
 0x1d9   : > { %4354 = vst.msk [vmem:[%s6063_s17 + $0x2a8] sm:$0xff] %vm148_vm0, %v2097_v19  ;;  %2719 = vst.msk [vmem:[#allocation2 + $0x20a] sm:$0xff] %vm148_vm0, %v6242_v42  ;;  %v2098_v17 = vld [vmem:[#allocation2 + $0x226] sm:$0xff]  ;;  %v2310_v42 = vmax.f32 %v6162_v47, %v6331_v29  ;;  %v1848_v58 = vmax.f32 %v1704_v12, %v6339_v57  ;;  %v1849_v22 = vmax.f32 %v1705_v49, %v8590_v50  ;;  %v8592_v3 = vld [vmem:[#allocation37_spill] sm:$0xff] }
 0x1da   : > { %2720 = vst.msk [vmem:[#allocation2 + $0x212] sm:$0xff] %vm148_vm0, %v5750_v30  ;;  %v2661_v30 = vmax.f32 %v2541_v6, %v6329_v62  ;;  %4355 = vst.msk [vmem:[%s6063_s17 + $0x2b0] sm:$0xff] %vm148_vm0, %v2098_v17  ;;  %v2100_v4 = vld [vmem:[#allocation2 + $0x246] sm:$0xff]  ;;  %v8586_v6 = vmax.f32 %v6189_v9, %v6162_v47  ;;  %v1569_v7 = vmax.f32 %v6345_v26, %v6349_v59  ;;  %v8593_v43 = vld [vmem:[#allocation34_spill] sm:$0xff] }
 0x1db   : > { %4356 = vst.msk [vmem:[%s6063_s17 + $0x2b8] sm:$0xff] %vm148_vm0, %v2099_v38  ;;  %2723 = vst.msk [vmem:[#allocation2 + $0x232] sm:$0xff] %vm148_vm0, %v5756_v39  ;;  %v8587_v51 = vld [vmem:[#allocation43_spill] sm:$0xff]  ;;  %v8588_v47 = vld [vmem:[#allocation32_spill] sm:$0xff]  ;;  %v1570_v33 = vmax.f32 %v6347_v5, %v1498_v2  ;;  %v1855_v16 = vmax.f32 %v1711_v63, %v8592_v3  ;;  %v1993_v14 = vmax.f32 %v1849_v22, %v8593_v43 }
 0x1dc   : > { %v2662_v60 = vmax.f32 %v8586_v6, %v6331_v29  ;;  %4357 = vst.msk [vmem:[%s6063_s17 + $0x2c0] sm:$0xff] %vm148_vm0, %v2100_v4  ;;  %4358 = vst.msk [vmem:[%s6063_s17 + $0x2c8] sm:$0xff] %vm148_vm0, %v2101_v13  ;;  %v2102_v27 = vld [vmem:[#allocation2 + $0x266] sm:$0xff]  ;;  %v1990_v9 = vmax.f32 %v1846_v8, %v8588_v47  ;;  %v8597_v13 = vld [vmem:[#allocation41_spill] sm:$0xff] }
 0x1dd   : > { %2726 = vst.msk [vmem:[#allocation2 + $0x252] sm:$0xff] %vm148_vm0, %v8587_v51  ;;  %v1779_v28 = vld [vmem:[#allocation2 + $0x2e3] sm:$0xff]  ;;  %2721 = vst.msk [vmem:[#allocation2 + $0x222] sm:$0xff] %vm148_vm0, %v2661_v30  ;;  %v8596_v30 = vld [vmem:[#allocation38_spill] sm:$0xff] }
 0x1de   : > { %v1782_v55 = vld [vmem:[#allocation2 + $0x303] sm:$0xff]  ;;  %4359 = vst.msk [vmem:[%s6063_s17 + $0x2d0] sm:$0xff] %vm148_vm0, %v2102_v27  ;;  %4360 = vst.msk [vmem:[%s6063_s17 + $0x2d8] sm:$0xff] %vm148_vm0, %v2103_v24  ;;  %v1851_v11 = vmax.f32 %v1707_v20, %v1779_v28  ;;  %v2105_v35 = vld [vmem:[#allocation2 + $0x28e] sm:$0xff]  ;;  %v1999_v38 = vmax.f32 %v1855_v16, %v8596_v30 }
 0x1df   : > { %v8589_v39 = vld [vmem:[#allocation3_spill] sm:$0xff]  ;;  %v1642_v53 = vld [vmem:[#allocation2 + $0x32a] sm:$0xff]  ;;  %2722 = vst.msk [vmem:[#allocation2 + $0x22a] sm:$0xff] %vm148_vm0, %v2662_v60  ;;  %2061 = vst.msk [vmem:[#allocation2 + $0x2a2] sm:$0xff] %vm148_vm0, %v1989_v56  ;;  %v1854_v40 = vmax.f32 %v1710_v25, %v1782_v55 }
 0x1e0   : > { %2729 = vst.msk [vmem:[#allocation2 + $0x272] sm:$0xff] %vm148_vm0, %v8589_v39  ;;  %v1641_v10 = vld [vmem:[#allocation2 + $0x322] sm:$0xff]  ;;  %2062 = vst.msk [vmem:[#allocation2 + $0x2aa] sm:$0xff] %vm148_vm0, %v1990_v9  ;;  %v6437_v52 = vld [vmem:[#allocation2 + $0x28a] sm:$0xff]  ;;  %v1714_v19 = vmax.f32 %v1570_v33, %v1642_v53 }
 0x1e1   : > { %v1920_v31 = vld [vmem:[#allocation2 + $0x2c4] sm:$0xff]  ;;  %v1713_v37 = vmax.f32 %v1569_v7, %v1641_v10  ;;  %v2313_v26 = vmax.f32 %v6331_v29, %v6437_v52  ;;  %v2430_v5 = vmax.f32 %v2310_v42, %v6437_v52  ;;  %v2548_v59 = vmax.f32 %v6389_v21, %v6437_v52  ;;  %4362 = vst.msk [vmem:[%s6063_s17 + $0x2e8] sm:$0xff] %vm148_vm0, %v2105_v35  ;;  %v8598_v28 = vld [vmem:[#allocation50_spill] sm:$0xff]  ;;  %v2798_v55 = vld [vmem:[#allocation2 + $0x2d2] sm:$0xf] }
 0x1e2   : > { %v8591_v54 = vld [vmem:[#allocation35_spill] sm:$0xff]  ;;  %v1992_v44 = vmax.f32 %v1848_v58, %v1920_v31  ;;  %v2665_v17 = vmax.f32 %v2545_v36, %v6437_v52  ;;  %2065 = vst.msk [vmem:[#allocation2 + $0x2ca] sm:$0xff] %vm148_vm0, %v1993_v14  ;;  %v1858_v42 = vmax.f32 %v1714_v19, %v8597_v13  ;;  %v8599_v53 = vld [vmem:[#allocation42_spill] sm:$0xff]  ;;  %v2861_v3 = vld [vmem:[#allocation2 + $0x2f3] sm:$0xf] }
 0x1e3   : > { %v1852_v1 = vmax.f32 %v1708_v61, %v8591_v54  ;;  %v1923_v48 = vld [vmem:[#allocation2 + $0x2e4] sm:$0xff]  ;;  %v2858_v61 = vld [vmem:[#allocation2 + $0x2d3] sm:$0xf] }
 0x1e4   : > { %v1926_v41 = vld [vmem:[#allocation2 + $0x304] sm:$0xff]  ;;  %2064 = vst.msk [vmem:[#allocation2 + $0x2c2] sm:$0xff] %vm148_vm0, %v1992_v44  ;;  %2725 = vst.msk [vmem:[#allocation2 + $0x24a] sm:$0xff] %vm148_vm0, %v2665_v17  ;;  %v2002_v20 = vmax.f32 %v1858_v42, %v8599_v53  ;;  %v2918_v54 = vmax.f32 %v2798_v55, %v2858_v61  ;;  %v2978_v19 = vld [vmem:[#allocation2 + $0x2d4] sm:$0xf] }
 0x1e5   : > { %v2195_v23 = vld [vmem:[#allocation2 + $0x282] sm:$0xff]  ;;  %v1998_v29 = vmax.f32 %v1854_v40, %v1926_v41  ;;  %2071 = vst.msk [vmem:[#allocation2 + $0x30a] sm:$0xff] %vm148_vm0, %v1999_v38  ;;  %v2801_v40 = vld [vmem:[#allocation2 + $0x2f2] sm:$0xf] }
 0x1e6   : > { %v2104_v45 = vld [vmem:[#allocation2 + $0x286] sm:$0xff]  ;;  %v2312_v34 = vmax.f32 %v6329_v62, %v2195_v23  ;;  %v2429_v8 = vmax.f32 %v2309_v18, %v2195_v23  ;;  %v2547_v15 = vmax.f32 %v6373_v32, %v2195_v23  ;;  %v2664_v57 = vmax.f32 %v2544_v0, %v2195_v23  ;;  %v2981_v17 = vld [vmem:[#allocation2 + $0x2f4] sm:$0xf] }
 0x1e7   : > { %v1785_v46 = vld [vmem:[#allocation2 + $0x323] sm:$0xff]  ;;  %4361 = vst.msk [vmem:[%s6063_s17 + $0x2e0] sm:$0xff] %vm148_vm0, %v2104_v45  ;;  %v1995_v18 = vmax.f32 %v1851_v11, %v1923_v48  ;;  %2070 = vst.msk [vmem:[#allocation2 + $0x302] sm:$0xff] %vm148_vm0, %v1998_v29  ;;  %v2107_v56 = vld [vmem:[#allocation2 + $0x2ae] sm:$0xff] }
 0x1e8   : > { %v8594_v62 = vld [vmem:[#allocation39_spill] sm:$0xff]  ;;  %v8595_v32 = vld [vmem:[#allocation36_spill] sm:$0xff]  ;;  %2724 = vst.msk [vmem:[#allocation2 + $0x242] sm:$0xff] %vm148_vm0, %v2664_v57  ;;  %v1857_v4 = vmax.f32 %v1713_v37, %v1785_v46  ;;  %4364 = vst.msk [vmem:[%s6063_s17 + $0x2f8] sm:$0xff] %vm148_vm0, %v2107_v56  ;;  %v3038_v57 = vmax.f32 %v2918_v54, %v2978_v19 }
 0x1e9   : > { %2732 = vst.msk [vmem:[#allocation2 + $0x292] sm:$0xff] %vm148_vm0, %v8594_v62  ;;  %v1996_v0 = vmax.f32 %v1852_v1, %v8595_v32  ;;  %v1929_v21 = vld [vmem:[#allocation2 + $0x324] sm:$0xff]  ;;  %2067 = vst.msk [vmem:[#allocation2 + $0x2e2] sm:$0xff] %vm148_vm0, %v1995_v18  ;;  %v3098_v62 = vld [vmem:[#allocation2 + $0x2d5] sm:$0xf] }
 0x1ea   : > { %v2198_v36 = vld [vmem:[#allocation2 + $0x2a2] sm:$0xff]  ;;  %v2199_v6 = vld [vmem:[#allocation2 + $0x2aa] sm:$0xff]  ;;  %2735 = vst.msk [vmem:[#allocation2 + $0x2b2] sm:$0xff] %vm148_vm0, %v8598_v28  ;;  %v2001_v39 = vmax.f32 %v1857_v4, %v1929_v21  ;;  %2074 = vst.msk [vmem:[#allocation2 + $0x32a] sm:$0xff] %vm148_vm0, %v2002_v20  ;;  %v3158_v32 = vmax.f32 %v3038_v57, %v3098_v62 }
 0x1eb   : > { %2068 = vst.msk [vmem:[#allocation2 + $0x2ea] sm:$0xff] %vm148_vm0, %v1996_v0  ;;  %v2106_v60 = vld [vmem:[#allocation2 + $0x2a6] sm:$0xff]  ;;  %v2315_v2 = vmax.f32 %v2195_v23, %v2198_v36  ;;  %v2432_v51 = vmax.f32 %v2312_v34, %v2198_v36  ;;  %v2550_v27 = vmax.f32 %v2429_v8, %v2198_v36  ;;  %v2667_v24 = vmax.f32 %v2547_v15, %v2198_v36  ;;  %v3101_v0 = vld [vmem:[#allocation2 + $0x2f5] sm:$0xf] }
 0x1ec   : > { %4363 = vst.msk [vmem:[%s6063_s17 + $0x2f0] sm:$0xff] %vm148_vm0, %v2106_v60  ;;  %v2316_v47 = vmax.f32 %v6437_v52, %v2199_v6  ;;  %v2433_v9 = vmax.f32 %v2313_v26, %v2199_v6  ;;  %v2551_v12 = vmax.f32 %v2430_v5, %v2199_v6  ;;  %v2668_v49 = vmax.f32 %v2548_v59, %v2199_v6  ;;  %v2258_v25 = vld [vmem:[#allocation2 + $0x2c2] sm:$0xff]  ;;  %v2259_v63 = vld [vmem:[#allocation2 + $0x2ca] sm:$0xff]  ;;  %v3218_v29 = vld [vmem:[#allocation2 + $0x2d6] sm:$0xf] }
 0x1ed   : > { %2727 = vst.msk [vmem:[#allocation2 + $0x262] sm:$0xff] %vm148_vm0, %v2667_v24  ;;  %v2318_v10 = vmax.f32 %v2198_v36, %v2258_v25  ;;  %v2435_v58 = vmax.f32 %v2315_v2, %v2258_v25  ;;  %v2553_v50 = vmax.f32 %v2432_v51, %v2258_v25  ;;  %v2670_v22 = vmax.f32 %v2550_v27, %v2258_v25  ;;  %v2500_v37 = vld [vmem:[#allocation2 + $0x30a] sm:$0xff]  ;;  %v3221_v36 = vld [vmem:[#allocation2 + $0x2f6] sm:$0xf]  ;;  %v6529_v62 = vld [vmem:[#allocation2 + $0x132] sm:$0xf] }
 0x1ee   : > { %2728 = vst.msk [vmem:[#allocation2 + $0x26a] sm:$0xff] %vm148_vm0, %v2668_v49  ;;  %2073 = vst.msk [vmem:[#allocation2 + $0x322] sm:$0xff] %vm148_vm0, %v2001_v39  ;;  %v2319_v7 = vmax.f32 %v2199_v6, %v2259_v63  ;;  %v2436_v33 = vmax.f32 %v2316_v47, %v2259_v63  ;;  %v2554_v31 = vmax.f32 %v2433_v9, %v2259_v63  ;;  %v2499_v14 = vld [vmem:[#allocation2 + $0x302] sm:$0xff]  ;;  %v6514_v57 = vld [vmem:[#allocation2 + $0xeb] sm:$0xff] }
 0x1ef   : > { %v2671_v11 = vmax.f32 %v2551_v12, %v2259_v63  ;;  %2730 = vst.msk [vmem:[#allocation2 + $0x282] sm:$0xff] %vm148_vm0, %v2670_v22  ;;  %v2921_v15 = vmax.f32 %v2801_v40, %v2861_v3  ;;  %v3278_v38 = vmax.f32 %v3158_v32, %v3218_v29  ;;  %v6503_v19 = vld [vmem:[#allocation2 + $0xe3] sm:$0xff]  ;;  %8603 = vst [vmem:[#allocation4_spill] sm:$0xff] %v6514_v57  ;;  %v6537_v29 = vld [vmem:[#allocation2 + $0x133] sm:$0xf] }
 0x1f0   : > { %v2378_v1 = vld [vmem:[#allocation2 + $0x2e2] sm:$0xff]  ;;  %8609 = vst [vmem:[#allocation11_spill] sm:$0xff] %v6529_v62  ;;  %8613 = vst [vmem:[#allocation14_spill] sm:$0xff] %v6537_v29  ;;  %v6629_v57 = vld [vmem:[#allocation2 + $0x1f3] sm:$0xf] }
 0x1f1   : > { %v2438_v16 = vmax.f32 %v2318_v10, %v2378_v1  ;;  %v2556_v41 = vmax.f32 %v2435_v58, %v2378_v1  ;;  %v2673_v23 = vmax.f32 %v2553_v50, %v2378_v1  ;;  %2731 = vst.msk [vmem:[#allocation2 + $0x28a] sm:$0xff] %vm148_vm0, %v2671_v11  ;;  %v2620_v26 = vld [vmem:[#allocation2 + $0x32a] sm:$0xff]  ;;  %v3041_v18 = vmax.f32 %v2921_v15, %v2981_v17  ;;  %v6661_v62 = vld [vmem:[#allocation2 + $0x242] sm:$0xff] }
 0x1f2   : > { %v2379_v48 = vld [vmem:[#allocation2 + $0x2ea] sm:$0xff] }
 0x1f3   : > { %v2439_v52 = vmax.f32 %v2319_v7, %v2379_v48  ;;  %v2557_v44 = vmax.f32 %v2436_v33, %v2379_v48  ;;  %v2674_v43 = vmax.f32 %v2554_v31, %v2379_v48  ;;  %v2559_v45 = vmax.f32 %v2438_v16, %v2499_v14  ;;  %2733 = vst.msk [vmem:[#allocation2 + $0x2a2] sm:$0xff] %vm148_vm0, %v2673_v23  ;;  %v6491_v23 = vld [vmem:[#allocation2 + $0xca] sm:$0xff] }
 0x1f4   : > { %v2676_v34 = vmax.f32 %v2556_v41, %v2499_v14  ;;  %v3161_v30 = vmax.f32 %v3041_v18, %v3101_v0  ;;  %v6489_v41 = vld [vmem:[#allocation2 + $0xc2] sm:$0xff]  ;;  %v6499_v14 = vld [vmem:[#allocation2 + $0xcb] sm:$0xff]  ;;  %v6531_v18 = vld [vmem:[#allocation2 + $0x113] sm:$0xf] }
 0x1f5   : > { %v2560_v8 = vmax.f32 %v2439_v52, %v2500_v37  ;;  %v2677_v46 = vmax.f32 %v2557_v44, %v2500_v37  ;;  %2734 = vst.msk [vmem:[#allocation2 + $0x2aa] sm:$0xff] %vm148_vm0, %v2674_v43  ;;  %v2619_v35 = vld [vmem:[#allocation2 + $0x322] sm:$0xff]  ;;  %v6493_v52 = vld [vmem:[#allocation2 + $0xd2] sm:$0xf]  ;;  %v6512_v15 = vld [vmem:[#allocation2 + $0x10a] sm:$0xff] }
 0x1f6   : > { %2736 = vst.msk [vmem:[#allocation2 + $0x2c2] sm:$0xff] %vm148_vm0, %v2676_v34  ;;  %v2679_v5 = vmax.f32 %v2559_v45, %v2619_v35  ;;  %v3281_v56 = vmax.f32 %v3161_v30, %v3221_v36  ;;  %v6495_v44 = vld [vmem:[#allocation2 + $0xe2] sm:$0xff]  ;;  %v6501_v37 = vld [vmem:[#allocation2 + $0xd3] sm:$0xf]  ;;  %v6506_v45 = vld [vmem:[#allocation2 + $0xea] sm:$0xff] }
 0x1f7   : > { %2737 = vst.msk [vmem:[#allocation2 + $0x2ca] sm:$0xff] %vm148_vm0, %v2677_v46  ;;  %v2680_v59 = vmax.f32 %v2560_v8, %v2620_v26  ;;  %v6497_v43 = vld [vmem:[#allocation2 + $0xc3] sm:$0xff]  ;;  %v6508_v34 = vld [vmem:[#allocation2 + $0xf2] sm:$0xf]  ;;  %8602 = vst [vmem:[#allocation45_spill] sm:$0xff] %v6512_v15 }
 0x1f8   : > { %2739 = vst.msk [vmem:[#allocation2 + $0x2e2] sm:$0xff] %vm148_vm0, %v2679_v5  ;;  %8600 = vst [vmem:[#allocation44_spill] sm:$0xff] %v6508_v34  ;;  %v6510_v8 = vld [vmem:[#allocation2 + $0x102] sm:$0xff]  ;;  %v6516_v46 = vld [vmem:[#allocation2 + $0xf3] sm:$0xf] }
 0x1f9   : > { %2740 = vst.msk [vmem:[#allocation2 + $0x2ea] sm:$0xff] %vm148_vm0, %v2680_v59  ;;  %8601 = vst [vmem:[#allocation40_spill] sm:$0xff] %v6510_v8  ;;  %v6518_v35 = vld [vmem:[#allocation2 + $0x103] sm:$0xff]  ;;  %v6520_v26 = vld [vmem:[#allocation2 + $0x10b] sm:$0xff] }
 0x1fa   : > { %8604 = vst [vmem:[#allocation5_spill] sm:$0xff] %v6516_v46  ;;  %8605 = vst [vmem:[#allocation6_spill] sm:$0xff] %v6518_v35  ;;  %v6523_v5 = vld [vmem:[#allocation2 + $0x112] sm:$0xf]  ;;  %v6525_v59 = vld [vmem:[#allocation2 + $0x122] sm:$0xff] }
 0x1fb   : > { %8606 = vst [vmem:[#allocation7_spill] sm:$0xff] %v6520_v26  ;;  %8607 = vst [vmem:[#allocation8_spill] sm:$0xff] %v6525_v59  ;;  %v6527_v17 = vld [vmem:[#allocation2 + $0x12a] sm:$0xff]  ;;  %v6539_v30 = vld [vmem:[#allocation2 + $0x142] sm:$0xff] }
 0x1fc   : > { %8608 = vst [vmem:[#allocation9_spill] sm:$0xff] %v6527_v17  ;;  %8610 = vst [vmem:[#allocation10_spill] sm:$0xff] %v6531_v18  ;;  %v6533_v32 = vld [vmem:[#allocation2 + $0x123] sm:$0xff]  ;;  %v6535_v0 = vld [vmem:[#allocation2 + $0x12b] sm:$0xff] }
 0x1fd   : > { %v2796_v4 = vld [vmem:[#allocation2 + $0x2c2] sm:$0xff]  ;;  %8611 = vst [vmem:[#allocation12_spill] sm:$0xff] %v6533_v32  ;;  %8612 = vst [vmem:[#allocation13_spill] sm:$0xff] %v6535_v0  ;;  %v6551_v36 = vld [vmem:[#allocation2 + $0x153] sm:$0xf] }
 0x1fe   : > { %v2797_v13 = vld [vmem:[#allocation2 + $0x2ca] sm:$0xff]  ;;  %8619 = vst [vmem:[#allocation20_spill] sm:$0xff] %v6551_v36  ;;  %v6639_v15 = vld [vmem:[#allocation2 + $0x212] sm:$0xf]  ;;  %v6641_v35 = vld [vmem:[#allocation2 + $0x222] sm:$0xff] }
 0x1ff   : > { %v2856_v42 = vld [vmem:[#allocation2 + $0x2c3] sm:$0xff]  ;;  %v2857_v21 = vld [vmem:[#allocation2 + $0x2cb] sm:$0xff]  ;;  %8638 = vst [vmem:[#allocation33_spill] sm:$0xff] %v6641_v35  ;;  %v6651_v18 = vld [vmem:[#allocation2 + $0x213] sm:$0xf] }
 0x200   : > { %v2916_v6 = vmax.f32 %v2796_v4, %v2856_v42  ;;  %v2917_v60 = vmax.f32 %v2797_v13, %v2857_v21  ;;  %v2976_v2 = vld [vmem:[#allocation2 + $0x2c4] sm:$0xff]  ;;  %v2977_v51 = vld [vmem:[#allocation2 + $0x2cc] sm:$0xff]  ;;  %8640 = vst [vmem:[#allocation37_spill] sm:$0xff] %v6651_v18 }
 0x201   : > { %v3097_v27 = vld [vmem:[#allocation2 + $0x2cd] sm:$0xff]  ;;  %v2799_v12 = vld [vmem:[#allocation2 + $0x2e2] sm:$0xff] }
 0x202   : > { %v3217_v24 = vld [vmem:[#allocation2 + $0x2ce] sm:$0xff]  ;;  %v3036_v47 = vmax.f32 %v2916_v6, %v2976_v2  ;;  %v3037_v9 = vmax.f32 %v2917_v60, %v2977_v51  ;;  %v2859_v28 = vld [vmem:[#allocation2 + $0x2e3] sm:$0xff] }
 0x203   : > { %3338 = vst.msk [vmem:[#allocation2 + $0x2d4] sm:$0xf] %vm152_vm1, %v3278_v38  ;;  %v2800_v49 = vld [vmem:[#allocation2 + $0x2ea] sm:$0xff]  ;;  %v2919_v53 = vmax.f32 %v2799_v12, %v2859_v28  ;;  %v6543_v4 = vld [vmem:[#allocation2 + $0x152] sm:$0xf]  ;;  %v6545_v13 = vld [vmem:[#allocation2 + $0x162] sm:$0xff] }
 0x204   : > { %v3096_v55 = vld [vmem:[#allocation2 + $0x2c5] sm:$0xff]  ;;  %v3157_v61 = vmax.f32 %v3037_v9, %v3097_v27  ;;  %v3100_v22 = vld [vmem:[#allocation2 + $0x2ed] sm:$0xff]  ;;  %8615 = vst [vmem:[#allocation16_spill] sm:$0xff] %v6543_v4  ;;  %8616 = vst [vmem:[#allocation17_spill] sm:$0xff] %v6545_v13 }
 0x205   : > { %v2860_v39 = vld [vmem:[#allocation2 + $0x2eb] sm:$0xff]  ;;  %v3156_v20 = vmax.f32 %v3036_v47, %v3096_v55  ;;  %v6547_v42 = vld [vmem:[#allocation2 + $0x143] sm:$0xff] }
 0x206   : > { %v3216_v25 = vld [vmem:[#allocation2 + $0x2c6] sm:$0xff]  ;;  %v2920_v63 = vmax.f32 %v2800_v49, %v2860_v39  ;;  %v3220_v7 = vld [vmem:[#allocation2 + $0x2ee] sm:$0xff]  ;;  %v3277_v31 = vmax.f32 %v3157_v61, %v3217_v24  ;;  %8617 = vst [vmem:[#allocation18_spill] sm:$0xff] %v6547_v42 }
 0x207   : > { %v2979_v10 = vld [vmem:[#allocation2 + $0x2e4] sm:$0xff]  ;;  %v2980_v58 = vld [vmem:[#allocation2 + $0x2ec] sm:$0xff]  ;;  %v3276_v33 = vmax.f32 %v3156_v20, %v3216_v25  ;;  %3341 = vst.msk [vmem:[#allocation2 + $0x2f4] sm:$0xf] %vm152_vm1, %v3281_v56 }
 0x208   : > { %v3039_v50 = vmax.f32 %v2919_v53, %v2979_v10  ;;  %v3040_v11 = vmax.f32 %v2920_v63, %v2980_v58  ;;  %v3099_v54 = vld [vmem:[#allocation2 + $0x2e5] sm:$0xff]  ;;  %3337 = vst.msk [vmem:[#allocation2 + $0x2cc] sm:$0xff] %vm148_vm0, %v3277_v31  ;;  %v6557_v2 = vld [vmem:[#allocation2 + $0x172] sm:$0xf] }
 0x209   : > { %3336 = vst.msk [vmem:[#allocation2 + $0x2c4] sm:$0xff] %vm148_vm0, %v3276_v33  ;;  %v3219_v40 = vld [vmem:[#allocation2 + $0x2e6] sm:$0xff]  ;;  %8621 = vst [vmem:[#allocation22_spill] sm:$0xff] %v6557_v2  ;;  %v6565_v56 = vld [vmem:[#allocation2 + $0x173] sm:$0xf] }
 0x20a   : > { %v3159_v1 = vmax.f32 %v3039_v50, %v3099_v54  ;;  %v3160_v48 = vmax.f32 %v3040_v11, %v3100_v22  ;;  %v6541_v38 = vld [vmem:[#allocation2 + $0x14a] sm:$0xff]  ;;  %v6559_v51 = vld [vmem:[#allocation2 + $0x182] sm:$0xff]  ;;  %8625 = vst [vmem:[#allocation26_spill] sm:$0xff] %v6565_v56  ;;  %v6571_v12 = vld [vmem:[#allocation2 + $0x192] sm:$0xf] }
 0x20b   : > { %8614 = vst [vmem:[#allocation15_spill] sm:$0xff] %v6541_v38  ;;  %v6549_v21 = vld [vmem:[#allocation2 + $0x14b] sm:$0xff]  ;;  %v6553_v6 = vld [vmem:[#allocation2 + $0x163] sm:$0xff]  ;;  %8622 = vst [vmem:[#allocation23_spill] sm:$0xff] %v6559_v51 }
 0x20c   : > { %v3279_v3 = vmax.f32 %v3159_v1, %v3219_v40  ;;  %v3280_v16 = vmax.f32 %v3160_v48, %v3220_v7  ;;  %8618 = vst [vmem:[#allocation19_spill] sm:$0xff] %v6549_v21  ;;  %8620 = vst [vmem:[#allocation21_spill] sm:$0xff] %v6553_v6  ;;  %v6555_v60 = vld [vmem:[#allocation2 + $0x16a] sm:$0xff]  ;;  %v6573_v49 = vld [vmem:[#allocation2 + $0x1a2] sm:$0xff] }
 0x20d   : > { %v6561_v27 = vld [vmem:[#allocation2 + $0x18a] sm:$0xff]  ;;  %v6577_v55 = vld [vmem:[#allocation2 + $0x1b2] sm:$0xf]  ;;  %v6595_v50 = vld [vmem:[#allocation2 + $0x1c2] sm:$0xff] }
 0x20e   : > { %3339 = vst.msk [vmem:[#allocation2 + $0x2e4] sm:$0xff] %vm148_vm0, %v3279_v3  ;;  %3340 = vst.msk [vmem:[#allocation2 + $0x2ec] sm:$0xff] %vm148_vm0, %v3280_v16  ;;  %v6563_v24 = vld [vmem:[#allocation2 + $0x16b] sm:$0xff]  ;;  %v6567_v47 = vld [vmem:[#allocation2 + $0x183] sm:$0xff] }
 0x20f   : > { %8623 = vst [vmem:[#allocation25_spill] sm:$0xff] %v6561_v27  ;;  %8624 = vst [vmem:[#allocation24_spill] sm:$0xff] %v6563_v24  ;;  %v6569_v9 = vld [vmem:[#allocation2 + $0x18b] sm:$0xff]  ;;  %v6579_v39 = vld [vmem:[#allocation2 + $0x193] sm:$0xf] }
 0x210   : > { %8626 = vst [vmem:[#allocation27_spill] sm:$0xff] %v6567_v47  ;;  %8627 = vst [vmem:[#allocation28_spill] sm:$0xff] %v6569_v9  ;;  %v6575_v28 = vld [vmem:[#allocation2 + $0x1aa] sm:$0xff]  ;;  %v6585_v61 = vld [vmem:[#allocation2 + $0x1b3] sm:$0xf]  ;;  %v8661_v9 = vmax.f32 %v6493_v52, %v6501_v37 }
 0x211   : > { %8628 = vst [vmem:[#allocation29_spill] sm:$0xff] %v6575_v28  ;;  %8629 = vst [vmem:[#allocation46_spill] sm:$0xff] %v6577_v55  ;;  %v6581_v53 = vld [vmem:[#allocation2 + $0x1a3] sm:$0xff]  ;;  %v6583_v20 = vld [vmem:[#allocation2 + $0x1ab] sm:$0xff] }
 0x212   : > { %8630 = vst [vmem:[#allocation47_spill] sm:$0xff] %v6579_v39  ;;  %8631 = vst [vmem:[#allocation48_spill] sm:$0xff] %v6581_v53  ;;  %v6597_v22 = vld [vmem:[#allocation2 + $0x1ca] sm:$0xff]  ;;  %v6599_v7 = vld [vmem:[#allocation2 + $0x1d2] sm:$0xf] }
 0x213   : > { %8632 = vst [vmem:[#allocation49_spill] sm:$0xff] %v6583_v20  ;;  %8633 = vst [vmem:[#allocation30_spill] sm:$0xff] %v6585_v61  ;;  %v6601_v33 = vld [vmem:[#allocation2 + $0x1e2] sm:$0xff]  ;;  %v6605_v11 = vld [vmem:[#allocation2 + $0x1cb] sm:$0xff] }
 0x214   : > { %8634 = vst [vmem:[#allocation31_spill] sm:$0xff] %v6601_v33  ;;  %v6603_v31 = vld [vmem:[#allocation2 + $0x1c3] sm:$0xff]  ;;  %v6607_v54 = vld [vmem:[#allocation2 + $0x1d3] sm:$0xf]  ;;  %v6627_v1 = vld [vmem:[#allocation2 + $0x1eb] sm:$0xff] }
 0x215   : > { %8635 = vst [vmem:[#allocation43_spill] sm:$0xff] %v6607_v54  ;;  %v6617_v16 = vld [vmem:[#allocation2 + $0x1ea] sm:$0xff]  ;;  %v6619_v58 = vld [vmem:[#allocation2 + $0x1f2] sm:$0xf]  ;;  %v6621_v10 = vld [vmem:[#allocation2 + $0x202] sm:$0xff] }
 0x216   : > { %v6623_v63 = vld [vmem:[#allocation2 + $0x20a] sm:$0xff]  ;;  %v6645_v46 = vld [vmem:[#allocation2 + $0x232] sm:$0xf]  ;;  %v6667_v32 = vld [vmem:[#allocation2 + $0x262] sm:$0xff] }
 0x217   : > { %8636 = vst [vmem:[#allocation32_spill] sm:$0xff] %v6623_v63  ;;  %v6625_v25 = vld [vmem:[#allocation2 + $0x1e3] sm:$0xff]  ;;  %v6649_v40 = vld [vmem:[#allocation2 + $0x20b] sm:$0xff]  ;;  %8642 = vst [vmem:[#allocation39_spill] sm:$0xff] %v6667_v32  ;;  %v8659_v32 = vmax.f32 %v6491_v23, %v6499_v14 }
 0x218   : > { %8637 = vst [vmem:[#allocation3_spill] sm:$0xff] %v6625_v25  ;;  %v6643_v8 = vld [vmem:[#allocation2 + $0x22a] sm:$0xff]  ;;  %8639 = vst [vmem:[#allocation35_spill] sm:$0xff] %v6649_v40  ;;  %v6665_v17 = vld [vmem:[#allocation2 + $0x252] sm:$0xf] }
 0x219   : > { %v6647_v34 = vld [vmem:[#allocation2 + $0x203] sm:$0xff]  ;;  %8641 = vst [vmem:[#allocation34_spill] sm:$0xff] %v6665_v17  ;;  %v6671_v48 = vld [vmem:[#allocation2 + $0x22b] sm:$0xff]  ;;  %v6673_v42 = vld [vmem:[#allocation2 + $0x233] sm:$0xf] }
 0x21a   : > { %v6663_v0 = vld [vmem:[#allocation2 + $0x24a] sm:$0xff]  ;;  %v6685_v36 = vld [vmem:[#allocation2 + $0x272] sm:$0xf]  ;;  %v6687_v4 = vld [vmem:[#allocation2 + $0x282] sm:$0xff] }
 0x21b   : > { %v6669_v59 = vld [vmem:[#allocation2 + $0x223] sm:$0xff]  ;;  %8644 = vst [vmem:[#allocation38_spill] sm:$0xff] %v6685_v36  ;;  %8645 = vst [vmem:[#allocation41_spill] sm:$0xff] %v6687_v4  ;;  %v6693_v3 = vld [vmem:[#allocation2 + $0x24b] sm:$0xff] }
 0x21c   : > { %8643 = vst [vmem:[#allocation36_spill] sm:$0xff] %v6669_v59  ;;  %v6683_v13 = vld [vmem:[#allocation2 + $0x26a] sm:$0xff]  ;;  %v6695_v24 = vld [vmem:[#allocation2 + $0x253] sm:$0xf]  ;;  %v6707_v47 = vld [vmem:[#allocation2 + $0x2a2] sm:$0xff] }
 0x21d   : > { %v6689_v21 = vld [vmem:[#allocation2 + $0x28a] sm:$0xff]  ;;  %8647 = vst [vmem:[#allocation42_spill] sm:$0xff] %v6695_v24  ;;  %v6705_v27 = vld [vmem:[#allocation2 + $0x292] sm:$0xf] }
 0x21e   : > { %8646 = vst [vmem:[#allocation50_spill] sm:$0xff] %v6689_v21  ;;  %v6691_v38 = vld [vmem:[#allocation2 + $0x243] sm:$0xff]  ;;  %v6711_v56 = vld [vmem:[#allocation2 + $0x2b2] sm:$0xf] }
 0x21f   : > { %v6709_v51 = vld [vmem:[#allocation2 + $0x2aa] sm:$0xff]  ;;  %8649 = vst [vmem:[#allocation52_spill] sm:$0xff] %v6711_v56  ;;  %v6717_v39 = vld [vmem:[#allocation2 + $0x273] sm:$0xf]  ;;  %v8663_v56 = vmax.f32 %v6495_v44, %v6503_v19 }
 0x220   : > { %8648 = vst [vmem:[#allocation51_spill] sm:$0xff] %v6709_v51  ;;  %v6713_v2 = vld [vmem:[#allocation2 + $0x263] sm:$0xff]  ;;  %v6715_v26 = vld [vmem:[#allocation2 + $0x26b] sm:$0xff]  ;;  %8651 = vst [vmem:[#allocation54_spill] sm:$0xff] %v6717_v39 }
 0x221   : > { %8650 = vst [vmem:[#allocation53_spill] sm:$0xff] %v6713_v2  ;;  %v6727_v55 = vld [vmem:[#allocation2 + $0x283] sm:$0xff]  ;;  %v6729_v20 = vld [vmem:[#allocation2 + $0x28b] sm:$0xff]  ;;  %v6731_v28 = vld [vmem:[#allocation2 + $0x293] sm:$0xf]  ;;  %v8658_v2 = vmax.f32 %v6489_v41, %v6497_v43 }
 0x222   : > { %8652 = vst [vmem:[#allocation55_spill] sm:$0xff] %v6727_v55  ;;  %8653 = vst [vmem:[#allocation56_spill] sm:$0xff] %v6729_v20  ;;  %v6741_v54 = vld [vmem:[#allocation2 + $0x2a3] sm:$0xff]  ;;  %v6743_v61 = vld [vmem:[#allocation2 + $0x2ab] sm:$0xff] }
 0x223   : > { %8654 = vst [vmem:[#allocation57_spill] sm:$0xff] %v6731_v28  ;;  %8655 = vst [vmem:[#allocation58_spill] sm:$0xff] %v6741_v54  ;;  %v6745_v25 = vld [vmem:[#allocation2 + $0x2b3] sm:$0xf]  ;;  %v2928_v18 = vld [vmem:[#allocation2 + $0xc4] sm:$0xff] }
 0x224   : > { %8656 = vst [vmem:[#allocation59_spill] sm:$0xff] %v6743_v61  ;;  %8657 = vst [vmem:[#allocation60_spill] sm:$0xff] %v6745_v25  ;;  %v2929_v53 = vld [vmem:[#allocation2 + $0xcc] sm:$0xff]  ;;  %v2930_v59 = vld [vmem:[#allocation2 + $0xd4] sm:$0xf]  ;;  %v6782_v28 = vmax.f32 %v8658_v2, %v2928_v18 }
 0x225   : > { %v2931_v35 = vld [vmem:[#allocation2 + $0xe4] sm:$0xff]  ;;  %v2932_v63 = vld [vmem:[#allocation2 + $0xec] sm:$0xff]  ;;  %v2933_v24 = vld [vmem:[#allocation2 + $0xf4] sm:$0xf]  ;;  %v6787_v29 = vmax.f32 %v8659_v32, %v2929_v53  ;;  %v6792_v25 = vmax.f32 %v8661_v9, %v2930_v59 }
 0x226   : > { %v2934_v17 = vld [vmem:[#allocation2 + $0x104] sm:$0xff]  ;;  %v2935_v33 = vld [vmem:[#allocation2 + $0x10c] sm:$0xff]  ;;  %v2936_v6 = vld [vmem:[#allocation2 + $0x114] sm:$0xf]  ;;  %v6797_v61 = vmax.f32 %v8663_v56, %v2931_v35 }
 0x227   : > { %v2937_v55 = vld [vmem:[#allocation2 + $0x124] sm:$0xff]  ;;  %v2938_v4 = vld [vmem:[#allocation2 + $0x12c] sm:$0xff]  ;;  %v2939_v40 = vld [vmem:[#allocation2 + $0x134] sm:$0xf]  ;;  %8660 = vst [vmem:[#allocation61_spill] sm:$0xff] %v6787_v29 }
 0x228   : > { %v2940_v20 = vld [vmem:[#allocation2 + $0x144] sm:$0xff]  ;;  %v2941_v21 = vld [vmem:[#allocation2 + $0x14c] sm:$0xff]  ;;  %v2942_v39 = vld [vmem:[#allocation2 + $0x154] sm:$0xf]  ;;  %8662 = vst [vmem:[#allocation62_spill] sm:$0xff] %v6792_v25 }
 0x229   : > { %v2943_v36 = vld [vmem:[#allocation2 + $0x164] sm:$0xff]  ;;  %8664 = vst [vmem:[#allocation63_spill] sm:$0xff] %v6797_v61  ;;  %v2944_v51 = vld [vmem:[#allocation2 + $0x16c] sm:$0xff]  ;;  %v2945_v54 = vld [vmem:[#allocation2 + $0x174] sm:$0xf] }
 0x22a   : > { %v2946_v41 = vld [vmem:[#allocation2 + $0x184] sm:$0xff]  ;;  %v2947_v43 = vld [vmem:[#allocation2 + $0x18c] sm:$0xff]  ;;  %v8672_v59 = vld [vmem:[#allocation6_spill] sm:$0xff] }
 0x22b   : > { %v8665_v18 = vld [vmem:[#allocation4_spill] sm:$0xff]  ;;  %v8668_v32 = vld [vmem:[#allocation5_spill] sm:$0xff]  ;;  %v8676_v35 = vld [vmem:[#allocation7_spill] sm:$0xff] }
 0x22c   : > { %v8666_v2 = vmax.f32 %v6506_v45, %v8665_v18  ;;  %v8667_v14 = vld [vmem:[#allocation44_spill] sm:$0xff]  ;;  %v8675_v19 = vld [vmem:[#allocation45_spill] sm:$0xff]  ;;  %v8679_v18 = vld [vmem:[#allocation10_spill] sm:$0xff] }
 0x22d   : > { %v8669_v53 = vmax.f32 %v8667_v14, %v8668_v32  ;;  %v8671_v37 = vld [vmem:[#allocation40_spill] sm:$0xff]  ;;  %v8677_v56 = vmax.f32 %v8675_v19, %v8676_v35  ;;  %v2948_v25 = vld [vmem:[#allocation2 + $0x194] sm:$0xf]  ;;  %v8690_v35 = vld [vmem:[#allocation14_spill] sm:$0xff] }
 0x22e   : > { %v6802_v23 = vmax.f32 %v8666_v2, %v2932_v63  ;;  %v8673_v9 = vmax.f32 %v8671_v37, %v8672_v59  ;;  %v2949_v29 = vld [vmem:[#allocation2 + $0x1a4] sm:$0xff]  ;;  %v2950_v45 = vld [vmem:[#allocation2 + $0x1ac] sm:$0xff]  ;;  %v2951_v63 = vld [vmem:[#allocation2 + $0x1b4] sm:$0xf]  ;;  %v8680_v2 = vmax.f32 %v6523_v5, %v8679_v18 }
 0x22f   : > { %v6807_v52 = vmax.f32 %v8669_v53, %v2933_v24  ;;  %v6817_v61 = vmax.f32 %v8677_v56, %v2935_v33  ;;  %v8681_v24 = vld [vmem:[#allocation8_spill] sm:$0xff]  ;;  %v8686_v59 = vld [vmem:[#allocation13_spill] sm:$0xff]  ;;  %v8689_v33 = vld [vmem:[#allocation11_spill] sm:$0xff] }
 0x230   : > { %v6812_v44 = vmax.f32 %v8673_v9, %v2934_v17  ;;  %v6822_v14 = vmax.f32 %v8680_v2, %v2936_v6  ;;  %v8682_v32 = vld [vmem:[#allocation12_spill] sm:$0xff]  ;;  %v8685_v17 = vld [vmem:[#allocation9_spill] sm:$0xff]  ;;  %v8691_v56 = vmax.f32 %v8689_v33, %v8690_v35  ;;  %v8693_v18 = vld [vmem:[#allocation18_spill] sm:$0xff] }
 0x231   : > { %8670 = vst [vmem:[#allocation4_spill] sm:$0xff] %v6807_v52  ;;  %8678 = vst [vmem:[#allocation5_spill] sm:$0xff] %v6817_v61  ;;  %v8683_v53 = vmax.f32 %v8681_v24, %v8682_v32  ;;  %v8687_v9 = vmax.f32 %v8685_v17, %v8686_v59  ;;  %v2953_v52 = vld [vmem:[#allocation2 + $0x1cc] sm:$0xff]  ;;  %v2954_v5 = vld [vmem:[#allocation2 + $0x1d4] sm:$0xf]  ;;  %v8694_v2 = vmax.f32 %v6539_v30, %v8693_v18 }
 0x232   : > { %8674 = vst [vmem:[#allocation44_spill] sm:$0xff] %v6812_v44  ;;  %v6837_v61 = vmax.f32 %v8691_v56, %v2939_v40  ;;  %v2952_v44 = vld [vmem:[#allocation2 + $0x1c4] sm:$0xff]  ;;  %v8703_v40 = vld [vmem:[#allocation17_spill] sm:$0xff] }
 0x233   : > { %v6827_v37 = vmax.f32 %v8683_v53, %v2937_v55  ;;  %v6832_v19 = vmax.f32 %v8687_v9, %v2938_v4  ;;  %v2955_v6 = vld [vmem:[#allocation2 + $0x1e4] sm:$0xff]  ;;  %v6842_v24 = vmax.f32 %v8694_v2, %v2940_v20  ;;  %v8704_v35 = vld [vmem:[#allocation21_spill] sm:$0xff] }
 0x234   : > { %8692 = vst [vmem:[#allocation45_spill] sm:$0xff] %v6837_v61  ;;  %v8695_v55 = vld [vmem:[#allocation15_spill] sm:$0xff]  ;;  %v8699_v4 = vld [vmem:[#allocation16_spill] sm:$0xff]  ;;  %v8705_v56 = vmax.f32 %v8703_v40, %v8704_v35 }
 0x235   : > { %8684 = vst [vmem:[#allocation40_spill] sm:$0xff] %v6827_v37  ;;  %8688 = vst [vmem:[#allocation6_spill] sm:$0xff] %v6832_v19  ;;  %v8696_v32 = vld [vmem:[#allocation19_spill] sm:$0xff]  ;;  %v8700_v59 = vld [vmem:[#allocation20_spill] sm:$0xff] }
 0x236   : > { %v8697_v53 = vmax.f32 %v8695_v55, %v8696_v32  ;;  %v8701_v9 = vmax.f32 %v8699_v4, %v8700_v59  ;;  %v6857_v61 = vmax.f32 %v8705_v56, %v2943_v36  ;;  %v2956_v19 = vld [vmem:[#allocation2 + $0x1ec] sm:$0xff]  ;;  %v2957_v37 = vld [vmem:[#allocation2 + $0x1f4] sm:$0xf]  ;;  %v2958_v30 = vld [vmem:[#allocation2 + $0x204] sm:$0xff] }
 0x237   : > { %v2959_v20 = vld [vmem:[#allocation2 + $0x20c] sm:$0xff]  ;;  %v8710_v32 = vld [vmem:[#allocation26_spill] sm:$0xff]  ;;  %v8713_v59 = vld [vmem:[#allocation27_spill] sm:$0xff] }
 0x238   : > { %v6847_v17 = vmax.f32 %v8697_v53, %v2941_v21  ;;  %v6852_v33 = vmax.f32 %v8701_v9, %v2942_v39  ;;  %8706 = vst [vmem:[#allocation8_spill] sm:$0xff] %v6857_v61  ;;  %v8707_v18 = vld [vmem:[#allocation24_spill] sm:$0xff]  ;;  %v8709_v21 = vld [vmem:[#allocation22_spill] sm:$0xff]  ;;  %v8712_v39 = vld [vmem:[#allocation23_spill] sm:$0xff] }
 0x239   : > { %v8708_v2 = vmax.f32 %v6555_v60, %v8707_v18  ;;  %v8711_v53 = vmax.f32 %v8709_v21, %v8710_v32  ;;  %v8714_v9 = vmax.f32 %v8712_v39, %v8713_v59  ;;  %v8716_v36 = vld [vmem:[#allocation25_spill] sm:$0xff]  ;;  %v8717_v35 = vld [vmem:[#allocation28_spill] sm:$0xff]  ;;  %v8720_v18 = vld [vmem:[#allocation47_spill] sm:$0xff] }
 0x23a   : > { %8698 = vst [vmem:[#allocation7_spill] sm:$0xff] %v6847_v17  ;;  %8702 = vst [vmem:[#allocation10_spill] sm:$0xff] %v6852_v33  ;;  %v8718_v56 = vmax.f32 %v8716_v36, %v8717_v35  ;;  %v2960_v33 = vld [vmem:[#allocation2 + $0x214] sm:$0xf]  ;;  %v2961_v17 = vld [vmem:[#allocation2 + $0x224] sm:$0xff] }
 0x23b   : > { %v6862_v55 = vmax.f32 %v8708_v2, %v2944_v51  ;;  %v6867_v4 = vmax.f32 %v8711_v53, %v2945_v54  ;;  %v6872_v40 = vmax.f32 %v8714_v9, %v2946_v41  ;;  %v2962_v60 = vld [vmem:[#allocation2 + $0x22c] sm:$0xff]  ;;  %v2963_v51 = vld [vmem:[#allocation2 + $0x234] sm:$0xf]  ;;  %v8721_v2 = vmax.f32 %v6571_v12, %v8720_v18  ;;  %v8728_v36 = vld [vmem:[#allocation30_spill] sm:$0xff] }
 0x23c   : > { %v6877_v61 = vmax.f32 %v8718_v56, %v2947_v43  ;;  %v8722_v54 = vld [vmem:[#allocation48_spill] sm:$0xff]  ;;  %v8724_v41 = vld [vmem:[#allocation29_spill] sm:$0xff]  ;;  %v8727_v43 = vld [vmem:[#allocation46_spill] sm:$0xff]  ;;  %v8731_v18 = vmax.f32 %v6595_v50, %v6603_v31 }
 0x23d   : > { %8715 = vst [vmem:[#allocation12_spill] sm:$0xff] %v6872_v40  ;;  %v6882_v21 = vmax.f32 %v8721_v2, %v2948_v25  ;;  %v8723_v32 = vmax.f32 %v6573_v49, %v8722_v54  ;;  %v8725_v39 = vld [vmem:[#allocation49_spill] sm:$0xff]  ;;  %v8729_v35 = vmax.f32 %v8727_v43, %v8728_v36  ;;  %v2967_v25 = vld [vmem:[#allocation2 + $0x264] sm:$0xff] }
 0x23e   : > { %8719 = vst [vmem:[#allocation9_spill] sm:$0xff] %v6877_v61  ;;  %v8726_v59 = vmax.f32 %v8724_v41, %v8725_v39  ;;  %v2964_v61 = vld [vmem:[#allocation2 + $0x244] sm:$0xff]  ;;  %v2965_v40 = vld [vmem:[#allocation2 + $0x24c] sm:$0xff]  ;;  %v2966_v12 = vld [vmem:[#allocation2 + $0x254] sm:$0xf]  ;;  %v6902_v49 = vmax.f32 %v8731_v18, %v2952_v44  ;;  %v8738_v44 = vmax.f32 %v6617_v16, %v6627_v1 }
 0x23f   : > { %v6887_v53 = vmax.f32 %v8723_v32, %v2949_v29  ;;  %v6897_v56 = vmax.f32 %v8729_v35, %v2951_v63  ;;  %v8732_v29 = vmax.f32 %v6597_v22, %v6605_v11  ;;  %v8735_v63 = vld [vmem:[#allocation31_spill] sm:$0xff]  ;;  %v2968_v43 = vld [vmem:[#allocation2 + $0x26c] sm:$0xff]  ;;  %v2969_v36 = vld [vmem:[#allocation2 + $0x274] sm:$0xf]  ;;  %v8739_v11 = vmax.f32 %v6619_v58, %v6629_v57 }
 0x240   : > { %v6892_v9 = vmax.f32 %v8726_v59, %v2950_v45  ;;  %v8733_v45 = vld [vmem:[#allocation43_spill] sm:$0xff]  ;;  %v2971_v31 = vld [vmem:[#allocation2 + $0x28c] sm:$0xff]  ;;  %v6922_v22 = vmax.f32 %v8738_v44, %v2956_v19  ;;  %v2975_v16 = vld [vmem:[#allocation2 + $0x2b4] sm:$0xf]  ;;  %v8757_v44 = vmax.f32 %v6663_v0, %v6693_v3  ;;  %v8765_v0 = vmax.f32 %v6683_v13, %v6715_v26 }
 0x241   : > { %8730 = vst [vmem:[#allocation13_spill] sm:$0xff] %v6897_v56  ;;  %v6907_v2 = vmax.f32 %v8732_v29, %v2953_v52  ;;  %v8734_v54 = vmax.f32 %v6599_v7, %v8733_v45  ;;  %v8736_v41 = vld [vmem:[#allocation3_spill] sm:$0xff]  ;;  %v6927_v7 = vmax.f32 %v8739_v11, %v2957_v37  ;;  %v8741_v52 = vmax.f32 %v6621_v10, %v6647_v34  ;;  %v2972_v45 = vld [vmem:[#allocation2 + $0x294] sm:$0xf]  ;;  %v2974_v1 = vld [vmem:[#allocation2 + $0x2ac] sm:$0xff] }
 0x242   : > { %v8737_v39 = vmax.f32 %v8735_v63, %v8736_v41  ;;  %v2970_v50 = vld [vmem:[#allocation2 + $0x284] sm:$0xff]  ;;  %v8746_v19 = vld [vmem:[#allocation37_spill] sm:$0xff]  ;;  %v8751_v10 = vmax.f32 %v6643_v8, %v6671_v48  ;;  %v8758_v11 = vld [vmem:[#allocation34_spill] sm:$0xff]  ;;  %v6990_v3 = vmax.f32 %v8765_v0, %v2968_v43 }
 0x243   : > { %v6912_v32 = vmax.f32 %v8734_v54, %v2954_v5  ;;  %8740 = vst [vmem:[#allocation11_spill] sm:$0xff] %v6927_v7  ;;  %v6932_v5 = vmax.f32 %v8741_v52, %v2958_v30  ;;  %v8743_v35 = vld [vmem:[#allocation35_spill] sm:$0xff]  ;;  %v8747_v63 = vmax.f32 %v6639_v15, %v8746_v19  ;;  %v8748_v58 = vld [vmem:[#allocation33_spill] sm:$0xff]  ;;  %v8749_v37 = vld [vmem:[#allocation36_spill] sm:$0xff]  ;;  %v8755_v15 = vmax.f32 %v6661_v62, %v6691_v38 }
 0x244   : > { %v6917_v59 = vmax.f32 %v8737_v39, %v2955_v6  ;;  %v8742_v6 = vld [vmem:[#allocation32_spill] sm:$0xff]  ;;  %v8750_v41 = vmax.f32 %v8748_v58, %v8749_v37  ;;  %v6952_v30 = vmax.f32 %v8751_v10, %v2962_v60  ;;  %v8759_v52 = vld [vmem:[#allocation42_spill] sm:$0xff]  ;;  %v8761_v60 = vld [vmem:[#allocation39_spill] sm:$0xff]  ;;  %8766 = vst [vmem:[#allocation20_spill] sm:$0xff] %v6990_v3 }
 0x245   : > { %v8744_v18 = vmax.f32 %v8742_v6, %v8743_v35  ;;  %v2973_v54 = vld [vmem:[#allocation2 + $0x2a4] sm:$0xff]  ;;  %v6942_v57 = vmax.f32 %v8747_v63, %v2960_v33  ;;  %v6962_v33 = vmax.f32 %v8755_v15, %v2964_v61  ;;  %v8760_v8 = vmax.f32 %v8758_v11, %v8759_v52  ;;  %v8762_v6 = vld [vmem:[#allocation53_spill] sm:$0xff]  ;;  %v8775_v37 = vld [vmem:[#allocation50_spill] sm:$0xff] }
 0x246   : > { %v6947_v34 = vmax.f32 %v8750_v41, %v2961_v17  ;;  %8752 = vst [vmem:[#allocation18_spill] sm:$0xff] %v6952_v30  ;;  %v6967_v17 = vmax.f32 %v8757_v44, %v2965_v40  ;;  %v6981_v62 = vld [vmem:[#allocation2 + $0xcd] sm:$0xff]  ;;  %v6983_v38 = vld [vmem:[#allocation2 + $0xd5] sm:$0xf]  ;;  %v6985_v61 = vld [vmem:[#allocation2 + $0xe5] sm:$0xff] }
 0x247   : > { %v6937_v29 = vmax.f32 %v8744_v18, %v2959_v20  ;;  %v8753_v20 = vmax.f32 %v6645_v46, %v6673_v42  ;;  %8756 = vst [vmem:[#allocation19_spill] sm:$0xff] %v6962_v33  ;;  %v6972_v48 = vmax.f32 %v8760_v8, %v2966_v12  ;;  %v8763_v46 = vmax.f32 %v8761_v60, %v8762_v6  ;;  %v8767_v40 = vld [vmem:[#allocation38_spill] sm:$0xff]  ;;  %v8772_v19 = vld [vmem:[#allocation55_spill] sm:$0xff]  ;;  %v8776_v41 = vld [vmem:[#allocation56_spill] sm:$0xff] }
 0x248   : > { %v8768_v12 = vld [vmem:[#allocation54_spill] sm:$0xff]  ;;  %v8777_v10 = vmax.f32 %v8775_v37, %v8776_v41  ;;  %v7007_v15 = vld [vmem:[#allocation2 + $0xed] sm:$0xff]  ;;  %v7011_v13 = vld [vmem:[#allocation2 + $0x105] sm:$0xff] }
 0x249   : > { %8745 = vst [vmem:[#allocation14_spill] sm:$0xff] %v6937_v29  ;;  %v6957_v39 = vmax.f32 %v8753_v20, %v2963_v51  ;;  %v6977_v42 = vmax.f32 %v8763_v46, %v2967_v25  ;;  %v6979_v51 = vld [vmem:[#allocation2 + $0xc5] sm:$0xff]  ;;  %v8769_v35 = vmax.f32 %v8767_v40, %v8768_v12  ;;  %v8771_v25 = vld [vmem:[#allocation41_spill] sm:$0xff] }
 0x24a   : > { %v8773_v63 = vmax.f32 %v8771_v25, %v8772_v19  ;;  %v7005_v20 = vmax.f32 %v8777_v10, %v2971_v31  ;;  %v7009_v26 = vld [vmem:[#allocation2 + $0xf5] sm:$0xf]  ;;  %v7013_v43 = vld [vmem:[#allocation2 + $0x10d] sm:$0xff]  ;;  %v8786_v31 = vld [vmem:[#allocation51_spill] sm:$0xff] }
 0x24b   : > { %8754 = vst [vmem:[#allocation15_spill] sm:$0xff] %v6957_v39  ;;  %8764 = vst [vmem:[#allocation16_spill] sm:$0xff] %v6977_v42  ;;  %v6995_v18 = vmax.f32 %v8769_v35, %v2969_v36  ;;  %v8780_v36 = vld [vmem:[#allocation57_spill] sm:$0xff]  ;;  %v8787_v60 = vld [vmem:[#allocation59_spill] sm:$0xff] }
 0x24c   : > { %v7000_v58 = vmax.f32 %v8773_v63, %v2970_v50  ;;  %8778 = vst [vmem:[#allocation24_spill] sm:$0xff] %v7005_v20  ;;  %8779 = vst [vmem:[#allocation22_spill] sm:$0xff] %v7013_v43  ;;  %v8781_v44 = vmax.f32 %v6705_v27, %v8780_v36  ;;  %v8783_v50 = vld [vmem:[#allocation58_spill] sm:$0xff]  ;;  %v8788_v6 = vmax.f32 %v8786_v31, %v8787_v60  ;;  %v8790_v0 = vld [vmem:[#allocation52_spill] sm:$0xff] }
 0x24d   : > { %8770 = vst [vmem:[#allocation17_spill] sm:$0xff] %v6995_v18  ;;  %v8784_v52 = vmax.f32 %v6707_v47, %v8783_v50  ;;  %v8791_v40 = vld [vmem:[#allocation60_spill] sm:$0xff]  ;;  %v7035_v25 = vld [vmem:[#allocation2 + $0x115] sm:$0xf] }
 0x24e   : > { %8774 = vst [vmem:[#allocation21_spill] sm:$0xff] %v7000_v58  ;;  %v7018_v11 = vmax.f32 %v8781_v44, %v2972_v45  ;;  %v7028_v46 = vmax.f32 %v8788_v6, %v2974_v1  ;;  %v8792_v12 = vmax.f32 %v8790_v0, %v8791_v40  ;;  %8794 = vst [vmem:[#allocation28_spill] sm:$0xff] %v7035_v25  ;;  %v7037_v27 = vld [vmem:[#allocation2 + $0x125] sm:$0xff]  ;;  %v7039_v45 = vld [vmem:[#allocation2 + $0x12d] sm:$0xff] }
 0x24f   : > { %v7023_v8 = vmax.f32 %v8784_v52, %v2973_v54  ;;  %8795 = vst [vmem:[#allocation47_spill] sm:$0xff] %v7037_v27  ;;  %8796 = vst [vmem:[#allocation48_spill] sm:$0xff] %v7039_v45  ;;  %v7041_v19 = vld [vmem:[#allocation2 + $0x135] sm:$0xf]  ;;  %v7043_v47 = vld [vmem:[#allocation2 + $0x145] sm:$0xff] }
 0x250   : > { %8782 = vst [vmem:[#allocation26_spill] sm:$0xff] %v7018_v11  ;;  %8789 = vst [vmem:[#allocation27_spill] sm:$0xff] %v7028_v46  ;;  %v7033_v35 = vmax.f32 %v8792_v12, %v2975_v16  ;;  %v7045_v54 = vld [vmem:[#allocation2 + $0x14d] sm:$0xff]  ;;  %v7047_v63 = vld [vmem:[#allocation2 + $0x155] sm:$0xf] }
 0x251   : > { %8785 = vst [vmem:[#allocation23_spill] sm:$0xff] %v7023_v8  ;;  %8797 = vst [vmem:[#allocation29_spill] sm:$0xff] %v7041_v19  ;;  %v7049_v1 = vld [vmem:[#allocation2 + $0x165] sm:$0xff]  ;;  %v8801_v37 = vld [vmem:[#allocation61_spill] sm:$0xff] }
 0x252   : > { %8793 = vst [vmem:[#allocation25_spill] sm:$0xff] %v7033_v35  ;;  %8798 = vst [vmem:[#allocation49_spill] sm:$0xff] %v7045_v54  ;;  %v8802_v10 = vld [vmem:[#allocation62_spill] sm:$0xff]  ;;  %v8803_v44 = vld [vmem:[#allocation63_spill] sm:$0xff]  ;;  %v8829_v56 = vmax.f32 %v8801_v37, %v6981_v62  ;;  %v8832_v62 = vmax.f32 %v6802_v23, %v7007_v15 }
 0x253   : > { %8799 = vst [vmem:[#allocation46_spill] sm:$0xff] %v7047_v63  ;;  %8800 = vst [vmem:[#allocation30_spill] sm:$0xff] %v7049_v1  ;;  %v7059_v52 = vld [vmem:[#allocation2 + $0x16d] sm:$0xff]  ;;  %v7061_v31 = vld [vmem:[#allocation2 + $0x175] sm:$0xf]  ;;  %v8830_v27 = vmax.f32 %v8802_v10, %v6983_v38 }
 0x254   : > { %v7063_v60 = vld [vmem:[#allocation2 + $0x185] sm:$0xff]  ;;  %v7065_v6 = vld [vmem:[#allocation2 + $0x18d] sm:$0xff]  ;;  %v7075_v35 = vld [vmem:[#allocation2 + $0x195] sm:$0xf] }
 0x255   : > { %8804 = vst [vmem:[#allocation43_spill] sm:$0xff] %v7063_v60  ;;  %8805 = vst [vmem:[#allocation31_spill] sm:$0xff] %v7065_v6  ;;  %v8806_v40 = vld [vmem:[#allocation4_spill] sm:$0xff]  ;;  %v8808_v16 = vld [vmem:[#allocation5_spill] sm:$0xff] }
 0x256   : > { %v8807_v41 = vld [vmem:[#allocation44_spill] sm:$0xff]  ;;  %v7089_v3 = vld [vmem:[#allocation2 + $0x1b5] sm:$0xf]  ;;  %v8814_v11 = vld [vmem:[#allocation7_spill] sm:$0xff] }
 0x257   : > { %v7077_v46 = vld [vmem:[#allocation2 + $0x1a5] sm:$0xff]  ;;  %v7079_v8 = vld [vmem:[#allocation2 + $0x1ad] sm:$0xff]  ;;  %8813 = vst [vmem:[#allocation32_spill] sm:$0xff] %v7089_v3  ;;  %v7103_v12 = vld [vmem:[#allocation2 + $0x1d5] sm:$0xf] }
 0x258   : > { %8809 = vst [vmem:[#allocation3_spill] sm:$0xff] %v7079_v8  ;;  %v8810_v0 = vld [vmem:[#allocation40_spill] sm:$0xff]  ;;  %8817 = vst [vmem:[#allocation35_spill] sm:$0xff] %v7103_v12  ;;  %v7117_v20 = vld [vmem:[#allocation2 + $0x1f5] sm:$0xf] }
 0x259   : > { %v7091_v50 = vld [vmem:[#allocation2 + $0x1c5] sm:$0xff]  ;;  %v7093_v42 = vld [vmem:[#allocation2 + $0x1cd] sm:$0xff]  ;;  %8821 = vst [vmem:[#allocation33_spill] sm:$0xff] %v7117_v20  ;;  %v7131_v60 = vld [vmem:[#allocation2 + $0x215] sm:$0xf] }
 0x25a   : > { %v7105_v18 = vld [vmem:[#allocation2 + $0x1e5] sm:$0xff]  ;;  %v7107_v19 = vld [vmem:[#allocation2 + $0x1ed] sm:$0xff]  ;;  %v7145_v8 = vld [vmem:[#allocation2 + $0x235] sm:$0xf] }
 0x25b   : > { %8818 = vst [vmem:[#allocation37_spill] sm:$0xff] %v7105_v18  ;;  %v8819_v25 = vld [vmem:[#allocation12_spill] sm:$0xff]  ;;  %8826 = vst [vmem:[#allocation53_spill] sm:$0xff] %v7145_v8  ;;  %v7159_v12 = vld [vmem:[#allocation2 + $0x255] sm:$0xf]  ;;  %v8828_v18 = vmax.f32 %v6782_v28, %v6979_v51  ;;  %v8831_v28 = vmax.f32 %v8803_v44, %v6985_v61  ;;  %v8834_v61 = vmax.f32 %v8807_v41, %v7011_v13 }
 0x25c   : > { %v7119_v45 = vld [vmem:[#allocation2 + $0x205] sm:$0xff]  ;;  %v7121_v1 = vld [vmem:[#allocation2 + $0x20d] sm:$0xff]  ;;  %v3170_v58 = vld [vmem:[#allocation2 + $0xd6] sm:$0xf] }
 0x25d   : > { %8822 = vst [vmem:[#allocation36_spill] sm:$0xff] %v7119_v45  ;;  %8823 = vst [vmem:[#allocation34_spill] sm:$0xff] %v7121_v1  ;;  %v7133_v63 = vld [vmem:[#allocation2 + $0x225] sm:$0xff]  ;;  %v7135_v6 = vld [vmem:[#allocation2 + $0x22d] sm:$0xff]  ;;  %v3230_v8 = vmax.f32 %v8830_v27, %v3170_v58  ;;  %v3146_v58 = vmax.f32 %v6972_v48, %v7159_v12 }
 0x25e   : > { %8824 = vst [vmem:[#allocation42_spill] sm:$0xff] %v7133_v63  ;;  %8825 = vst [vmem:[#allocation39_spill] sm:$0xff] %v7135_v6  ;;  %v7147_v54 = vld [vmem:[#allocation2 + $0x245] sm:$0xff]  ;;  %v7149_v3 = vld [vmem:[#allocation2 + $0x24d] sm:$0xff] }
 0x25f   : > { %8827 = vst [vmem:[#allocation38_spill] sm:$0xff] %v7147_v54  ;;  %v3168_v20 = vld [vmem:[#allocation2 + $0xc6] sm:$0xff]  ;;  %v3169_v7 = vld [vmem:[#allocation2 + $0xce] sm:$0xff]  ;;  %v3173_v43 = vld [vmem:[#allocation2 + $0xf6] sm:$0xf]  ;;  %v3145_v36 = vmax.f32 %v6967_v17, %v7149_v3 }
 0x260   : > { %v7169_v45 = vld [vmem:[#allocation2 + $0x265] sm:$0xff]  ;;  %v3172_v29 = vld [vmem:[#allocation2 + $0xee] sm:$0xff]  ;;  %v3228_v63 = vmax.f32 %v8828_v18, %v3168_v20  ;;  %v3229_v6 = vmax.f32 %v8829_v56, %v3169_v7  ;;  %v3176_v30 = vld [vmem:[#allocation2 + $0x116] sm:$0xf]  ;;  %v8833_v7 = vmax.f32 %v8806_v40, %v7009_v26  ;;  %3290 = vst.msk [vmem:[#allocation2 + $0xd4] sm:$0xf] %vm152_vm1, %v3230_v8 }
 0x261   : > { %v3171_v1 = vld [vmem:[#allocation2 + $0xe6] sm:$0xff]  ;;  %v3175_v33 = vld [vmem:[#allocation2 + $0x10e] sm:$0xff]  ;;  %v3232_v56 = vmax.f32 %v8832_v62, %v3172_v29  ;;  %v3179_v37 = vld [vmem:[#allocation2 + $0x136] sm:$0xf] }
 0x262   : > { %v7182_v39 = vld [vmem:[#allocation2 + $0x26d] sm:$0xff]  ;;  %v3231_v51 = vmax.f32 %v8831_v28, %v3171_v1  ;;  %v3233_v38 = vmax.f32 %v8833_v7, %v3173_v43  ;;  %v7195_v18 = vld [vmem:[#allocation2 + $0x275] sm:$0xf]  ;;  %3288 = vst.msk [vmem:[#allocation2 + $0xc4] sm:$0xff] %vm148_vm0, %v3228_v63  ;;  %3289 = vst.msk [vmem:[#allocation2 + $0xcc] sm:$0xff] %vm148_vm0, %v3229_v6 }
 0x263   : > { %v3174_v54 = vld [vmem:[#allocation2 + $0x106] sm:$0xff]  ;;  %v3178_v27 = vld [vmem:[#allocation2 + $0x12e] sm:$0xff]  ;;  %v8835_v10 = vld [vmem:[#allocation22_spill] sm:$0xff]  ;;  %3292 = vst.msk [vmem:[#allocation2 + $0xec] sm:$0xff] %vm148_vm0, %v3232_v56 }
 0x264   : > { %v3177_v20 = vld [vmem:[#allocation2 + $0x126] sm:$0xff]  ;;  %v3234_v1 = vmax.f32 %v8834_v61, %v3174_v54  ;;  %v8836_v23 = vmax.f32 %v8808_v16, %v8835_v10  ;;  %v3181_v41 = vld [vmem:[#allocation2 + $0x14e] sm:$0xff]  ;;  %v3182_v28 = vld [vmem:[#allocation2 + $0x156] sm:$0xf]  ;;  %3291 = vst.msk [vmem:[#allocation2 + $0xe4] sm:$0xff] %vm148_vm0, %v3231_v51 }
 0x265   : > { %v8837_v15 = vld [vmem:[#allocation28_spill] sm:$0xff]  ;;  %v8845_v61 = vld [vmem:[#allocation45_spill] sm:$0xff]  ;;  %3293 = vst.msk [vmem:[#allocation2 + $0xf4] sm:$0xf] %vm152_vm1, %v3233_v38  ;;  %v8853_v56 = vld [vmem:[#allocation46_spill] sm:$0xff] }
 0x266   : > { %v3235_v29 = vmax.f32 %v8836_v23, %v3175_v33  ;;  %v8838_v26 = vmax.f32 %v6822_v14, %v8837_v15  ;;  %v7211_v44 = vld [vmem:[#allocation2 + $0x285] sm:$0xff]  ;;  %v8842_v14 = vld [vmem:[#allocation6_spill] sm:$0xff]  ;;  %v8846_v6 = vld [vmem:[#allocation29_spill] sm:$0xff]  ;;  %3294 = vst.msk [vmem:[#allocation2 + $0x104] sm:$0xff] %vm148_vm0, %v3234_v1 }
 0x267   : > { %v8839_v40 = vld [vmem:[#allocation16_spill] sm:$0xff]  ;;  %v8840_v33 = vld [vmem:[#allocation47_spill] sm:$0xff]  ;;  %v8847_v10 = vmax.f32 %v8845_v61, %v8846_v6  ;;  %v7243_v61 = vld [vmem:[#allocation2 + $0x295] sm:$0xf] }
 0x268   : > { %v3236_v43 = vmax.f32 %v8838_v26, %v3176_v30  ;;  %v3147_v13 = vmax.f32 %v8839_v40, %v7169_v45  ;;  %v3180_v54 = vld [vmem:[#allocation2 + $0x146] sm:$0xff]  ;;  %v8841_v16 = vmax.f32 %v8810_v0, %v8840_v33  ;;  %v3184_v26 = vld [vmem:[#allocation2 + $0x16e] sm:$0xff]  ;;  %v3185_v33 = vld [vmem:[#allocation2 + $0x176] sm:$0xf]  ;;  %3295 = vst.msk [vmem:[#allocation2 + $0x10c] sm:$0xff] %vm148_vm0, %v3235_v29  ;;  %v8860_v29 = vmax.f32 %v6867_v4, %v7061_v31 }
 0x269   : > { %v8843_v30 = vld [vmem:[#allocation48_spill] sm:$0xff]  ;;  %v3239_v8 = vmax.f32 %v8847_v10, %v3179_v37  ;;  %v8850_v37 = vld [vmem:[#allocation49_spill] sm:$0xff]  ;;  %v8865_v31 = vld [vmem:[#allocation31_spill] sm:$0xff] }
 0x26a   : > { %v3237_v62 = vmax.f32 %v8841_v16, %v3177_v20  ;;  %v8844_v7 = vmax.f32 %v8842_v14, %v8843_v30  ;;  %v7227_v23 = vld [vmem:[#allocation2 + $0x28d] sm:$0xff]  ;;  %v8851_v14 = vmax.f32 %v8814_v11, %v8850_v37  ;;  %v8852_v30 = vld [vmem:[#allocation10_spill] sm:$0xff]  ;;  %3296 = vst.msk [vmem:[#allocation2 + $0x114] sm:$0xf] %vm152_vm1, %v3236_v43  ;;  %v3245_v43 = vmax.f32 %v8860_v29, %v3185_v33 }
 0x26b   : > { %v8848_v15 = vld [vmem:[#allocation20_spill] sm:$0xff]  ;;  %v8855_v6 = vld [vmem:[#allocation17_spill] sm:$0xff]  ;;  %3299 = vst.msk [vmem:[#allocation2 + $0x134] sm:$0xf] %vm152_vm1, %v3239_v8 }
 0x26c   : > { %v3238_v63 = vmax.f32 %v8844_v7, %v3178_v27  ;;  %v3148_v0 = vmax.f32 %v8848_v15, %v7182_v39  ;;  %v3183_v20 = vld [vmem:[#allocation2 + $0x166] sm:$0xff]  ;;  %v8849_v27 = vmax.f32 %v6842_v24, %v7043_v47  ;;  %v3241_v51 = vmax.f32 %v8851_v14, %v3181_v41  ;;  %v3188_v10 = vld [vmem:[#allocation2 + $0x196] sm:$0xf]  ;;  %3297 = vst.msk [vmem:[#allocation2 + $0x124] sm:$0xff] %vm148_vm0, %v3237_v62  ;;  %v3214_v45 = vld [vmem:[#allocation2 + $0x2ae] sm:$0xff] }
 0x26d   : > { %v8854_v7 = vmax.f32 %v8852_v30, %v8853_v56  ;;  %v3149_v24 = vmax.f32 %v8855_v6, %v7195_v18  ;;  %v3186_v47 = vld [vmem:[#allocation2 + $0x186] sm:$0xff]  ;;  %v8857_v41 = vld [vmem:[#allocation30_spill] sm:$0xff]  ;;  %v8861_v30 = vld [vmem:[#allocation21_spill] sm:$0xff]  ;;  %3305 = vst.msk [vmem:[#allocation2 + $0x174] sm:$0xf] %vm152_vm1, %v3245_v43 }
 0x26e   : > { %v3240_v16 = vmax.f32 %v8849_v27, %v3180_v54  ;;  %v3187_v54 = vld [vmem:[#allocation2 + $0x18e] sm:$0xff]  ;;  %3298 = vst.msk [vmem:[#allocation2 + $0x12c] sm:$0xff] %vm148_vm0, %v3238_v63  ;;  %v7259_v14 = vld [vmem:[#allocation2 + $0x2a5] sm:$0xff]  ;;  %v3150_v56 = vmax.f32 %v8861_v30, %v7211_v44  ;;  %v8867_v63 = vmax.f32 %v6882_v21, %v7075_v35  ;;  %3301 = vst.msk [vmem:[#allocation2 + $0x14c] sm:$0xff] %vm148_vm0, %v3241_v51 }
 0x26f   : > { %v3242_v38 = vmax.f32 %v8854_v7, %v3182_v28  ;;  %v8856_v11 = vld [vmem:[#allocation8_spill] sm:$0xff]  ;;  %v8859_v28 = vmax.f32 %v6862_v55, %v7059_v52  ;;  %v8862_v55 = vld [vmem:[#allocation43_spill] sm:$0xff]  ;;  %v8864_v4 = vld [vmem:[#allocation9_spill] sm:$0xff] }
 0x270   : > { %v8858_v27 = vmax.f32 %v8856_v11, %v8857_v41  ;;  %v3190_v7 = vld [vmem:[#allocation2 + $0x1ae] sm:$0xff]  ;;  %v3191_v11 = vld [vmem:[#allocation2 + $0x1b6] sm:$0xf]  ;;  %v8863_v52 = vmax.f32 %v8819_v25, %v8862_v55  ;;  %v8866_v33 = vmax.f32 %v8864_v4, %v8865_v31  ;;  %v3248_v8 = vmax.f32 %v8867_v63, %v3188_v10  ;;  %3300 = vst.msk [vmem:[#allocation2 + $0x144] sm:$0xff] %vm148_vm0, %v3240_v16  ;;  %v8870_v21 = vld [vmem:[#allocation3_spill] sm:$0xff] }
 0x271   : > { %v3244_v1 = vmax.f32 %v8859_v28, %v3184_v26  ;;  %3302 = vst.msk [vmem:[#allocation2 + $0x154] sm:$0xf] %vm152_vm1, %v3242_v38  ;;  %v7275_v41 = vld [vmem:[#allocation2 + $0x2ad] sm:$0xff]  ;;  %v3194_v29 = vld [vmem:[#allocation2 + $0x1d6] sm:$0xf]  ;;  %v8871_v35 = vmax.f32 %v6892_v9, %v8870_v21  ;;  %v7291_v4 = vld [vmem:[#allocation2 + $0x84] sm:$0xff] }
 0x272   : > { %v3243_v37 = vmax.f32 %v8858_v27, %v3183_v20  ;;  %v3189_v20 = vld [vmem:[#allocation2 + $0x1a6] sm:$0xff]  ;;  %v3246_v26 = vmax.f32 %v8863_v52, %v3186_v47  ;;  %v3247_v62 = vmax.f32 %v8866_v33, %v3187_v54  ;;  %v3193_v28 = vld [vmem:[#allocation2 + $0x1ce] sm:$0xff]  ;;  %v8869_v54 = vmax.f32 %v6887_v53, %v7077_v46  ;;  %v8875_v46 = vld [vmem:[#allocation26_spill] sm:$0xff]  ;;  %3308 = vst.msk [vmem:[#allocation2 + $0x194] sm:$0xf] %vm152_vm1, %v3248_v8 }
 0x273   : > { %v8868_v27 = vld [vmem:[#allocation24_spill] sm:$0xff]  ;;  %v3250_v16 = vmax.f32 %v8871_v35, %v3190_v7  ;;  %v8872_v10 = vld [vmem:[#allocation13_spill] sm:$0xff]  ;;  %3304 = vst.msk [vmem:[#allocation2 + $0x16c] sm:$0xff] %vm148_vm0, %v3244_v1  ;;  %v3152_v9 = vmax.f32 %v8875_v46, %v7243_v61  ;;  %v8877_v1 = vmax.f32 %v6907_v2, %v7093_v42  ;;  %v8878_v63 = vld [vmem:[#allocation35_spill] sm:$0xff] }
 0x274   : > { %v3151_v25 = vmax.f32 %v8868_v27, %v7227_v23  ;;  %v3192_v47 = vld [vmem:[#allocation2 + $0x1c6] sm:$0xff]  ;;  %v3249_v55 = vmax.f32 %v8869_v54, %v3189_v20  ;;  %3303 = vst.msk [vmem:[#allocation2 + $0x164] sm:$0xff] %vm148_vm0, %v3243_v37  ;;  %v7295_v53 = vld [vmem:[#allocation2 + $0x2b5] sm:$0xf]  ;;  %v8879_v54 = vmax.f32 %v6912_v32, %v8878_v63  ;;  %3306 = vst.msk [vmem:[#allocation2 + $0x184] sm:$0xff] %vm148_vm0, %v3246_v26 }
 0x275   : > { %v8873_v51 = vld [vmem:[#allocation32_spill] sm:$0xff]  ;;  %v3197_v33 = vld [vmem:[#allocation2 + $0x1f6] sm:$0xf]  ;;  %v3253_v43 = vmax.f32 %v8877_v1, %v3193_v28  ;;  %3307 = vst.msk [vmem:[#allocation2 + $0x18c] sm:$0xff] %vm148_vm0, %v3247_v62  ;;  %v8883_v26 = vmax.f32 %v6922_v22, %v7107_v19  ;;  %3310 = vst.msk [vmem:[#allocation2 + $0x1ac] sm:$0xff] %vm148_vm0, %v3250_v16 }
 0x276   : > { %v8874_v52 = vmax.f32 %v8872_v10, %v8873_v51  ;;  %v7293_v31 = vld [vmem:[#allocation2 + $0xa4] sm:$0xff]  ;;  %v3196_v7 = vld [vmem:[#allocation2 + $0x1ee] sm:$0xff]  ;;  %v3254_v21 = vmax.f32 %v8879_v54, %v3194_v29  ;;  %v3200_v42 = vld [vmem:[#allocation2 + $0x216] sm:$0xf]  ;;  %3309 = vst.msk [vmem:[#allocation2 + $0x1a4] sm:$0xff] %vm148_vm0, %v3249_v55  ;;  %v8893_v55 = vmax.f32 %v6942_v57, %v7131_v60 }
 0x277   : > { %v3195_v20 = vld [vmem:[#allocation2 + $0x1e6] sm:$0xff]  ;;  %v3199_v2 = vld [vmem:[#allocation2 + $0x20e] sm:$0xff]  ;;  %v3256_v62 = vmax.f32 %v8883_v26, %v3196_v7  ;;  %v8890_v7 = vld [vmem:[#allocation14_spill] sm:$0xff]  ;;  %3313 = vst.msk [vmem:[#allocation2 + $0x1cc] sm:$0xff] %vm148_vm0, %v3253_v43 }
 0x278   : > { %v3251_v38 = vmax.f32 %v8874_v52, %v3191_v11  ;;  %v8876_v11 = vmax.f32 %v6902_v49, %v7091_v50  ;;  %v7311_v35 = vld [vmem:[#allocation2 + $0x8c] sm:$0xff]  ;;  %v8880_v49 = vld [vmem:[#allocation23_spill] sm:$0xff]  ;;  %v3260_v16 = vmax.f32 %v8893_v55, %v3200_v42  ;;  %3314 = vst.msk [vmem:[#allocation2 + $0x1d4] sm:$0xf] %vm152_vm1, %v3254_v21  ;;  %v8895_v26 = vld [vmem:[#allocation42_spill] sm:$0xff] }
 0x279   : > { %v7313_v10 = vld [vmem:[#allocation2 + $0xac] sm:$0xff]  ;;  %v3153_v50 = vmax.f32 %v8880_v49, %v7259_v14  ;;  %v8884_v51 = vld [vmem:[#allocation11_spill] sm:$0xff]  ;;  %v8891_v49 = vld [vmem:[#allocation34_spill] sm:$0xff]  ;;  %3316 = vst.msk [vmem:[#allocation2 + $0x1ec] sm:$0xff] %vm148_vm0, %v3256_v62  ;;  %v3503_v62 = vmax.f32 %v7291_v4, %v7293_v31 }
 0x27a   : > { %v3252_v37 = vmax.f32 %v8876_v11, %v3192_v47  ;;  %v3198_v47 = vld [vmem:[#allocation2 + $0x206] sm:$0xff]  ;;  %v8881_v28 = vld [vmem:[#allocation37_spill] sm:$0xff]  ;;  %3311 = vst.msk [vmem:[#allocation2 + $0x1b4] sm:$0xf] %vm152_vm1, %v3251_v38  ;;  %3320 = vst.msk [vmem:[#allocation2 + $0x214] sm:$0xf] %vm152_vm1, %v3260_v16 }
 0x27b   : > { %v8882_v32 = vmax.f32 %v6917_v59, %v8881_v28  ;;  %v8885_v8 = vld [vmem:[#allocation33_spill] sm:$0xff]  ;;  %v8887_v14 = vld [vmem:[#allocation27_spill] sm:$0xff]  ;;  %v8888_v54 = vld [vmem:[#allocation36_spill] sm:$0xff]  ;;  %v8892_v28 = vmax.f32 %v8890_v7, %v8891_v49 }
 0x27c   : > { %v8886_v52 = vmax.f32 %v8884_v51, %v8885_v8  ;;  %v3154_v1 = vmax.f32 %v8887_v14, %v7275_v41  ;;  %v3201_v63 = vld [vmem:[#allocation2 + $0x226] sm:$0xff]  ;;  %v3202_v59 = vld [vmem:[#allocation2 + $0x22e] sm:$0xff]  ;;  %v8889_v22 = vmax.f32 %v6932_v5, %v8888_v54  ;;  %3312 = vst.msk [vmem:[#allocation2 + $0x1c4] sm:$0xff] %vm148_vm0, %v3252_v37  ;;  %v8896_v51 = vmax.f32 %v6947_v34, %v8895_v26  ;;  %v8897_v8 = vld [vmem:[#allocation18_spill] sm:$0xff] }
 0x27d   : > { %v3255_v29 = vmax.f32 %v8882_v32, %v3195_v20  ;;  %v3203_v20 = vld [vmem:[#allocation2 + $0x236] sm:$0xf]  ;;  %v3204_v32 = vld [vmem:[#allocation2 + $0x246] sm:$0xff]  ;;  %v3205_v5 = vld [vmem:[#allocation2 + $0x24e] sm:$0xff] }
 0x27e   : > { %v3257_v11 = vmax.f32 %v8886_v52, %v3197_v33  ;;  %v3258_v19 = vmax.f32 %v8889_v22, %v3198_v47  ;;  %v3259_v33 = vmax.f32 %v8892_v28, %v3199_v2  ;;  %v8894_v41 = vld [vmem:[#allocation25_spill] sm:$0xff]  ;;  %v3261_v2 = vmax.f32 %v8896_v51, %v3201_v63  ;;  %v8898_v52 = vld [vmem:[#allocation39_spill] sm:$0xff]  ;;  %v8904_v7 = vld [vmem:[#allocation38_spill] sm:$0xff] }
 0x27f   : > { %v3155_v38 = vmax.f32 %v8894_v41, %v7295_v53  ;;  %v3206_v47 = vld [vmem:[#allocation2 + $0x256] sm:$0xf]  ;;  %v8899_v57 = vmax.f32 %v8897_v8, %v8898_v52  ;;  %v8900_v42 = vld [vmem:[#allocation15_spill] sm:$0xff]  ;;  %3315 = vst.msk [vmem:[#allocation2 + $0x1e4] sm:$0xff] %vm148_vm0, %v3255_v29  ;;  %v3208_v63 = vld [vmem:[#allocation2 + $0x26e] sm:$0xff]  ;;  %v3274_v15 = vmax.f32 %v3154_v1, %v3214_v45 }
 0x280   : > { %v8901_v37 = vld [vmem:[#allocation53_spill] sm:$0xff]  ;;  %3317 = vst.msk [vmem:[#allocation2 + $0x1f4] sm:$0xf] %vm152_vm1, %v3257_v11  ;;  %v3207_v34 = vld [vmem:[#allocation2 + $0x266] sm:$0xff]  ;;  %v3266_v29 = vmax.f32 %v3146_v58, %v3206_v47  ;;  %v3268_v48 = vmax.f32 %v3148_v0, %v3208_v63 }
 0x281   : > { %v3262_v60 = vmax.f32 %v8899_v57, %v3202_v59  ;;  %v8902_v14 = vmax.f32 %v8900_v42, %v8901_v37  ;;  %v7357_v53 = vld [vmem:[#allocation2 + $0x94] sm:$0xf]  ;;  %v8903_v22 = vld [vmem:[#allocation19_spill] sm:$0xff]  ;;  %3318 = vst.msk [vmem:[#allocation2 + $0x204] sm:$0xff] %vm148_vm0, %v3258_v19  ;;  %3319 = vst.msk [vmem:[#allocation2 + $0x20c] sm:$0xff] %vm148_vm0, %v3259_v33  ;;  %v3267_v17 = vmax.f32 %v3147_v13, %v3207_v34 }
 0x282   : > { %v7359_v21 = vld [vmem:[#allocation2 + $0xb4] sm:$0xf]  ;;  %v8905_v59 = vmax.f32 %v8903_v22, %v8904_v7  ;;  %v3210_v11 = vld [vmem:[#allocation2 + $0x286] sm:$0xff]  ;;  %3321 = vst.msk [vmem:[#allocation2 + $0x224] sm:$0xff] %vm148_vm0, %v3261_v2  ;;  %3328 = vst.msk [vmem:[#allocation2 + $0x26c] sm:$0xff] %vm148_vm0, %v3268_v48 }
 0x283   : > { %v3263_v43 = vmax.f32 %v8902_v14, %v3203_v20  ;;  %v3209_v54 = vld [vmem:[#allocation2 + $0x276] sm:$0xf]  ;;  %v3265_v20 = vmax.f32 %v3145_v36, %v3205_v5  ;;  %v3211_v28 = vld [vmem:[#allocation2 + $0x28e] sm:$0xff]  ;;  %3322 = vst.msk [vmem:[#allocation2 + $0x22c] sm:$0xff] %vm148_vm0, %v3262_v60  ;;  %v3504_v36 = vmax.f32 %v7311_v35, %v7313_v10  ;;  %v3213_v12 = vld [vmem:[#allocation2 + $0x2a6] sm:$0xff]  ;;  %v3270_v39 = vmax.f32 %v3150_v56, %v3210_v11 }
 0x284   : > { %v3264_v49 = vmax.f32 %v8905_v59, %v3204_v32  ;;  %v3212_v55 = vld [vmem:[#allocation2 + $0x296] sm:$0xf]  ;;  %v3269_v3 = vmax.f32 %v3149_v24, %v3209_v54  ;;  %v3271_v18 = vmax.f32 %v3151_v25, %v3211_v28  ;;  %3326 = vst.msk [vmem:[#allocation2 + $0x254] sm:$0xf] %vm152_vm1, %v3266_v29  ;;  %v3273_v13 = vmax.f32 %v3153_v50, %v3213_v12  ;;  %v3413_v44 = vld [vmem:[#allocation2 + $0xc4] sm:$0xff]  ;;  %v3414_v23 = vld [vmem:[#allocation2 + $0xcc] sm:$0xff] }
 0x285   : > { %3323 = vst.msk [vmem:[#allocation2 + $0x234] sm:$0xf] %vm152_vm1, %v3263_v43  ;;  %v3215_v58 = vld [vmem:[#allocation2 + $0x2b6] sm:$0xf]  ;;  %v3272_v40 = vmax.f32 %v3152_v9, %v3212_v55  ;;  %v7412_v6 = vld [vmem:[#allocation2 + $0xe4] sm:$0xff]  ;;  %v7414_v24 = vld [vmem:[#allocation2 + $0xec] sm:$0xff]  ;;  %v3506_v30 = vmax.f32 %v7293_v31, %v3413_v44  ;;  %v3507_v56 = vmax.f32 %v7313_v10, %v3414_v23  ;;  %v7424_v9 = vmax.f32 %v3503_v62, %v3413_v44 }
 0x286   : > { %3324 = vst.msk [vmem:[#allocation2 + $0x244] sm:$0xff] %vm148_vm0, %v3264_v49  ;;  %3325 = vst.msk [vmem:[#allocation2 + $0x24c] sm:$0xff] %vm148_vm0, %v3265_v20  ;;  %v3275_v0 = vmax.f32 %v3155_v38, %v3215_v58  ;;  %v7418_v27 = vld [vmem:[#allocation2 + $0x104] sm:$0xff]  ;;  %v7420_v25 = vld [vmem:[#allocation2 + $0x10c] sm:$0xff]  ;;  %v3509_v4 = vmax.f32 %v3413_v44, %v7412_v6  ;;  %v3510_v46 = vmax.f32 %v3414_v23, %v7414_v24 }
 0x287   : > { %3327 = vst.msk [vmem:[#allocation2 + $0x264] sm:$0xff] %vm148_vm0, %v3267_v17  ;;  %3330 = vst.msk [vmem:[#allocation2 + $0x284] sm:$0xff] %vm148_vm0, %v3270_v39  ;;  %v7426_v35 = vmax.f32 %v3504_v36, %v3414_v23  ;;  %v7428_v50 = vld [vmem:[#allocation2 + $0x124] sm:$0xff]  ;;  %v7430_v1 = vld [vmem:[#allocation2 + $0x12c] sm:$0xff]  ;;  %v3512_v31 = vmax.f32 %v7412_v6, %v7418_v27  ;;  %v3513_v10 = vmax.f32 %v7414_v24, %v7420_v25 }
 0x288   : > { %3329 = vst.msk [vmem:[#allocation2 + $0x274] sm:$0xf] %vm152_vm1, %v3269_v3  ;;  %3332 = vst.msk [vmem:[#allocation2 + $0x294] sm:$0xf] %vm152_vm1, %v3272_v40  ;;  %v7437_v19 = vmax.f32 %v3506_v30, %v7412_v6  ;;  %v7440_v33 = vmax.f32 %v3507_v56, %v7414_v24  ;;  %v7442_v16 = vld [vmem:[#allocation2 + $0x144] sm:$0xff]  ;;  %v7444_v41 = vld [vmem:[#allocation2 + $0x14c] sm:$0xff]  ;;  %v3515_v38 = vmax.f32 %v7418_v27, %v7428_v50 }
 0x289   : > { %3331 = vst.msk [vmem:[#allocation2 + $0x28c] sm:$0xff] %vm148_vm0, %v3271_v18  ;;  %3333 = vst.msk [vmem:[#allocation2 + $0x2a4] sm:$0xff] %vm148_vm0, %v3273_v13  ;;  %v3516_v32 = vmax.f32 %v7420_v25, %v7430_v1  ;;  %v7451_v5 = vmax.f32 %v3509_v4, %v7418_v27  ;;  %v7454_v47 = vmax.f32 %v3510_v46, %v7420_v25  ;;  %v7456_v26 = vld [vmem:[#allocation2 + $0x164] sm:$0xff]  ;;  %v7458_v51 = vld [vmem:[#allocation2 + $0x16c] sm:$0xff] }
 0x28a   : > { %3334 = vst.msk [vmem:[#allocation2 + $0x2ac] sm:$0xff] %vm148_vm0, %v3274_v15  ;;  %8906 = vst [vmem:[#allocation54_spill] sm:$0xff] %v7412_v6  ;;  %v3518_v2 = vmax.f32 %v7428_v50, %v7442_v16  ;;  %v3519_v8 = vmax.f32 %v7430_v1, %v7444_v41  ;;  %v7465_v52 = vmax.f32 %v3512_v31, %v7428_v50  ;;  %v7470_v60 = vld [vmem:[#allocation2 + $0x184] sm:$0xff]  ;;  %v7472_v42 = vld [vmem:[#allocation2 + $0x18c] sm:$0xff] }
 0x28b   : > { %3335 = vst.msk [vmem:[#allocation2 + $0x2b4] sm:$0xf] %vm152_vm1, %v3275_v0  ;;  %8907 = vst [vmem:[#allocation41_spill] sm:$0xff] %v7414_v24  ;;  %v7468_v57 = vmax.f32 %v3513_v10, %v7430_v1  ;;  %v3521_v37 = vmax.f32 %v7442_v16, %v7456_v26  ;;  %v3522_v14 = vmax.f32 %v7444_v41, %v7458_v51  ;;  %v7484_v63 = vld [vmem:[#allocation2 + $0x1a4] sm:$0xff]  ;;  %v7486_v54 = vld [vmem:[#allocation2 + $0x1ac] sm:$0xff] }
 0x28c   : > { %8908 = vst [vmem:[#allocation55_spill] sm:$0xff] %v7426_v35  ;;  %v7479_v43 = vmax.f32 %v3515_v38, %v7442_v16  ;;  %v7482_v34 = vmax.f32 %v3516_v32, %v7444_v41  ;;  %8911 = vst [vmem:[#allocation57_spill] sm:$0xff] %v7484_v63  ;;  %v3524_v22 = vmax.f32 %v7456_v26, %v7470_v60  ;;  %v7498_v20 = vld [vmem:[#allocation2 + $0x1c4] sm:$0xff]  ;;  %v7500_v29 = vld [vmem:[#allocation2 + $0x1cc] sm:$0xff] }
 0x28d   : > { %8912 = vst [vmem:[#allocation58_spill] sm:$0xff] %v7486_v54  ;;  %v3525_v7 = vmax.f32 %v7458_v51, %v7472_v42  ;;  %v7493_v59 = vmax.f32 %v3518_v2, %v7456_v26  ;;  %v7496_v49 = vmax.f32 %v3519_v8, %v7458_v51  ;;  %8915 = vst [vmem:[#allocation52_spill] sm:$0xff] %v7498_v20  ;;  %v7512_v17 = vld [vmem:[#allocation2 + $0x1e4] sm:$0xff]  ;;  %v7514_v48 = vld [vmem:[#allocation2 + $0x1ec] sm:$0xff] }
 0x28e   : > { %8909 = vst [vmem:[#allocation50_spill] sm:$0xff] %v7479_v43  ;;  %8910 = vst [vmem:[#allocation56_spill] sm:$0xff] %v7482_v34  ;;  %v3527_v62 = vmax.f32 %v7470_v60, %v7484_v63  ;;  %v3528_v11 = vmax.f32 %v7472_v42, %v7486_v54  ;;  %v7507_v28 = vmax.f32 %v3521_v37, %v7470_v60  ;;  %v7526_v58 = vld [vmem:[#allocation2 + $0x204] sm:$0xff]  ;;  %v7528_v39 = vld [vmem:[#allocation2 + $0x20c] sm:$0xff] }
 0x28f   : > { %8913 = vst [vmem:[#allocation51_spill] sm:$0xff] %v7493_v59  ;;  %8914 = vst [vmem:[#allocation59_spill] sm:$0xff] %v7496_v49  ;;  %v7510_v55 = vmax.f32 %v3522_v14, %v7472_v42  ;;  %v3530_v3 = vmax.f32 %v7484_v63, %v7498_v20  ;;  %v3531_v36 = vmax.f32 %v7486_v54, %v7500_v29  ;;  %v7540_v0 = vld [vmem:[#allocation2 + $0x114] sm:$0xf]  ;;  %v7546_v30 = vld [vmem:[#allocation2 + $0x224] sm:$0xff] }
 0x290   : > { %8916 = vst [vmem:[#allocation60_spill] sm:$0xff] %v7500_v29  ;;  %8917 = vst [vmem:[#allocation61_spill] sm:$0xff] %v7507_v28  ;;  %v7521_v12 = vmax.f32 %v3524_v22, %v7484_v63  ;;  %v7524_v45 = vmax.f32 %v3525_v7, %v7486_v54  ;;  %v3533_v18 = vmax.f32 %v7498_v20, %v7512_v17  ;;  %v7542_v44 = vld [vmem:[#allocation2 + $0x134] sm:$0xf]  ;;  %v7548_v56 = vld [vmem:[#allocation2 + $0x22c] sm:$0xff] }
 0x291   : > { %8918 = vst [vmem:[#allocation62_spill] sm:$0xff] %v7510_v55  ;;  %8919 = vst [vmem:[#allocation63_spill] sm:$0xff] %v7512_v17  ;;  %v3534_v40 = vmax.f32 %v7500_v29, %v7514_v48  ;;  %v7535_v13 = vmax.f32 %v3527_v62, %v7498_v20  ;;  %v7538_v15 = vmax.f32 %v3528_v11, %v7500_v29  ;;  %v7544_v23 = vld [vmem:[#allocation2 + $0x154] sm:$0xf]  ;;  %v7572_v22 = vld [vmem:[#allocation2 + $0x244] sm:$0xff] }
 0x292   : > { %8920 = vst [vmem:[#allocation4_spill] sm:$0xff] %v7514_v48  ;;  %8921 = vst [vmem:[#allocation44_spill] sm:$0xff] %v7521_v12  ;;  %v3536_v4 = vmax.f32 %v7512_v17, %v7526_v58  ;;  %v3537_v46 = vmax.f32 %v7514_v48, %v7528_v39  ;;  %v7555_v31 = vmax.f32 %v3530_v3, %v7512_v17  ;;  %v7560_v38 = vld [vmem:[#allocation2 + $0xb4] sm:$0xf]  ;;  %v7574_v7 = vld [vmem:[#allocation2 + $0x24c] sm:$0xff] }
 0x293   : > { %8922 = vst [vmem:[#allocation5_spill] sm:$0xff] %v7524_v45  ;;  %8923 = vst [vmem:[#allocation40_spill] sm:$0xff] %v7526_v58  ;;  %v7558_v10 = vmax.f32 %v3531_v36, %v7514_v48  ;;  %v7562_v32 = vld [vmem:[#allocation2 + $0xd4] sm:$0xf]  ;;  %v3539_v62 = vmax.f32 %v7526_v58, %v7546_v30  ;;  %v3540_v11 = vmax.f32 %v7528_v39, %v7548_v56  ;;  %v7594_v48 = vld [vmem:[#allocation2 + $0x26c] sm:$0xff] }
 0x294   : > { %8924 = vst [vmem:[#allocation7_spill] sm:$0xff] %v7528_v39  ;;  %8925 = vst [vmem:[#allocation12_spill] sm:$0xff] %v7535_v13  ;;  %v7564_v2 = vld [vmem:[#allocation2 + $0xf4] sm:$0xf]  ;;  %v7581_v3 = vmax.f32 %v3533_v18, %v7526_v58  ;;  %v7584_v36 = vmax.f32 %v3534_v40, %v7528_v39  ;;  %v3542_v13 = vmax.f32 %v7546_v30, %v7572_v22 }
 0x295   : > { %8926 = vst [vmem:[#allocation22_spill] sm:$0xff] %v7538_v15  ;;  %8927 = vst [vmem:[#allocation28_spill] sm:$0xff] %v7546_v30  ;;  %v7566_v8 = vld [vmem:[#allocation2 + $0x174] sm:$0xf]  ;;  %v7592_v15 = vld [vmem:[#allocation2 + $0x264] sm:$0xff]  ;;  %v3543_v18 = vmax.f32 %v7548_v56, %v7574_v7  ;;  %v7604_v40 = vmax.f32 %v3537_v46, %v7548_v56  ;;  %v3546_v12 = vmax.f32 %v7574_v7, %v7594_v48 }
 0x296   : > { %8928 = vst [vmem:[#allocation16_spill] sm:$0xff] %v7548_v56  ;;  %8929 = vst [vmem:[#allocation47_spill] sm:$0xff] %v7555_v31  ;;  %v7568_v37 = vld [vmem:[#allocation2 + $0x194] sm:$0xf]  ;;  %v3545_v29 = vmax.f32 %v7572_v22, %v7592_v15  ;;  %v7615_v20 = vmax.f32 %v3539_v62, %v7572_v22  ;;  %v7626_v28 = vmax.f32 %v3542_v13, %v7592_v15 }
 0x297   : > { %8930 = vst [vmem:[#allocation6_spill] sm:$0xff] %v7558_v10  ;;  %v7570_v14 = vld [vmem:[#allocation2 + $0x1b4] sm:$0xf]  ;;  %8931 = vst [vmem:[#allocation48_spill] sm:$0xff] %v7572_v22  ;;  %v7632_v22 = vmax.f32 %v3543_v18, %v7594_v48 }
 0x298   : > { %8932 = vst [vmem:[#allocation45_spill] sm:$0xff] %v7574_v7  ;;  %8933 = vst [vmem:[#allocation29_spill] sm:$0xff] %v7581_v3  ;;  %v7586_v61 = vld [vmem:[#allocation2 + $0x1d4] sm:$0xf]  ;;  %v7601_v3 = vmax.f32 %v3536_v4, %v7546_v30  ;;  %v7618_v4 = vmax.f32 %v3540_v11, %v7574_v7 }
 0x299   : > { %8934 = vst [vmem:[#allocation20_spill] sm:$0xff] %v7584_v36  ;;  %v7588_v10 = vld [vmem:[#allocation2 + $0x1f4] sm:$0xf]  ;;  %8936 = vst [vmem:[#allocation10_spill] sm:$0xff] %v7604_v40 }
 0x29a   : > { %v7590_v31 = vld [vmem:[#allocation2 + $0x214] sm:$0xf]  ;;  %8935 = vst [vmem:[#allocation49_spill] sm:$0xff] %v7601_v3  ;;  %8937 = vst [vmem:[#allocation46_spill] sm:$0xff] %v7615_v20 }
 0x29b   : > { %v7606_v36 = vld [vmem:[#allocation2 + $0x234] sm:$0xf]  ;;  %8938 = vst [vmem:[#allocation17_spill] sm:$0xff] %v7618_v4  ;;  %8939 = vst [vmem:[#allocation8_spill] sm:$0xff] %v7626_v28  ;;  %v8977_v34 = vld [vmem:[#allocation7_spill] sm:$0xff] }
 0x29c   : > { %v7608_v39 = vld [vmem:[#allocation2 + $0x254] sm:$0xf]  ;;  %v3342_v28 = vld [vmem:[#allocation2 + $0xc6] sm:$0xff] }
 0x29d   : > { %v3460_v58 = vld [vmem:[#allocation2 + $0xd4] sm:$0xf]  ;;  %4365 = vst.msk [vmem:[%s6063_s17 + $0x100] sm:$0xff] %vm148_vm0, %v3342_v28 }
 0x29e   : > { %v3463_v17 = vld [vmem:[#allocation2 + $0xf4] sm:$0xf]  ;;  %v3508_v30 = vmax.f32 %v7560_v38, %v3460_v58  ;;  %v8987_v49 = vld [vmem:[#allocation48_spill] sm:$0xff] }
 0x29f   : > { %v3466_v45 = vld [vmem:[#allocation2 + $0x114] sm:$0xf]  ;;  %v3511_v55 = vmax.f32 %v7562_v32, %v3463_v17 }
 0x2a0   : > { %v7620_v46 = vld [vmem:[#allocation2 + $0x274] sm:$0xf]  ;;  %v3514_v54 = vmax.f32 %v7564_v2, %v3466_v45 }
 0x2a1   : > { %v3469_v40 = vld [vmem:[#allocation2 + $0x134] sm:$0xf] }
 0x2a2   : > { %v3472_v3 = vld [vmem:[#allocation2 + $0x154] sm:$0xf]  ;;  %v3517_v11 = vmax.f32 %v7540_v0, %v3469_v40 }
 0x2a3   : > { %v3475_v56 = vld [vmem:[#allocation2 + $0x174] sm:$0xf]  ;;  %v3520_v4 = vmax.f32 %v7542_v44, %v3472_v3  ;;  %v7639_v44 = vld [vmem:[#allocation2 + $0x284] sm:$0xff] }
 0x2a4   : > { %v3478_v63 = vld [vmem:[#allocation2 + $0x194] sm:$0xf]  ;;  %v3523_v7 = vmax.f32 %v7544_v23, %v3475_v56  ;;  %v3548_v18 = vmax.f32 %v7592_v15, %v7639_v44 }
 0x2a5   : > { %v3481_v62 = vld [vmem:[#allocation2 + $0x1b4] sm:$0xf]  ;;  %v3526_v45 = vmax.f32 %v7566_v8, %v3478_v63  ;;  %v7646_v8 = vld [vmem:[#allocation2 + $0x28c] sm:$0xff] }
 0x2a6   : > { %v3484_v20 = vld [vmem:[#allocation2 + $0x1d4] sm:$0xf]  ;;  %v3529_v13 = vmax.f32 %v7568_v37, %v3481_v62 }
 0x2a7   : > { %v3487_v58 = vld [vmem:[#allocation2 + $0x1f4] sm:$0xf]  ;;  %v3532_v32 = vmax.f32 %v7570_v14, %v3484_v20 }
 0x2a8   : > { %v3490_v38 = vld [vmem:[#allocation2 + $0x214] sm:$0xf]  ;;  %v3535_v23 = vmax.f32 %v7586_v61, %v3487_v58  ;;  %v7653_v61 = vmax.f32 %v3545_v29, %v7639_v44 }
 0x2a9   : > { %v3493_v17 = vld [vmem:[#allocation2 + $0x234] sm:$0xf]  ;;  %v3538_v56 = vmax.f32 %v7588_v10, %v3490_v38 }
 0x2aa   : > { %v3496_v0 = vld [vmem:[#allocation2 + $0x254] sm:$0xf]  ;;  %v3541_v3 = vmax.f32 %v7590_v31, %v3493_v17  ;;  %8940 = vst [vmem:[#allocation30_spill] sm:$0xff] %v7653_v61  ;;  %v3549_v31 = vmax.f32 %v7594_v48, %v7646_v8 }
 0x2ab   : > { %v3499_v40 = vld [vmem:[#allocation2 + $0x274] sm:$0xf]  ;;  %v3544_v20 = vmax.f32 %v7606_v36, %v3496_v0  ;;  %v8941_v36 = vmax.f32 %v7357_v53, %v7359_v21 }
 0x2ac   : > { %v3502_v37 = vld [vmem:[#allocation2 + $0x294] sm:$0xf]  ;;  %v3547_v14 = vmax.f32 %v7608_v39, %v3499_v40  ;;  %v7664_v39 = vmax.f32 %v3546_v12, %v7646_v8 }
 0x2ad   : > { %v3553_v62 = vld [vmem:[#allocation2 + $0xd4] sm:$0xf]  ;;  %v3550_v10 = vmax.f32 %v7620_v46, %v3502_v37 }
 0x2ae   : > { %v3556_v58 = vld [vmem:[#allocation2 + $0xf4] sm:$0xf]  ;;  %v7661_v0 = vmax.f32 %v8941_v36, %v3553_v62  ;;  %8942 = vst [vmem:[#allocation21_spill] sm:$0xff] %v7664_v39  ;;  %v3344_v39 = vld [vmem:[#allocation2 + $0xe6] sm:$0xff] }
 0x2af   : > { %v3559_v38 = vld [vmem:[#allocation2 + $0x114] sm:$0xf]  ;;  %v7666_v2 = vmax.f32 %v3508_v30, %v3556_v58  ;;  %4367 = vst.msk [vmem:[%s6063_s17 + $0x110] sm:$0xff] %vm148_vm0, %v3344_v39  ;;  %v9004_v39 = vmax.f32 %v7454_v47, %v7430_v1 }
 0x2b0   : > { %v3562_v17 = vld [vmem:[#allocation2 + $0x134] sm:$0xf]  ;;  %v7668_v24 = vmax.f32 %v3511_v55, %v3559_v38 }
 0x2b1   : > { %v3565_v40 = vld [vmem:[#allocation2 + $0x154] sm:$0xf]  ;;  %v7670_v35 = vmax.f32 %v3514_v54, %v3562_v17 }
 0x2b2   : > { %v3568_v63 = vld [vmem:[#allocation2 + $0x174] sm:$0xf]  ;;  %v7674_v21 = vmax.f32 %v3517_v11, %v3565_v40 }
 0x2b3   : > { %v3571_v29 = vld [vmem:[#allocation2 + $0x194] sm:$0xf]  ;;  %8943 = vst [vmem:[#allocation43_spill] sm:$0xff] %v7670_v35  ;;  %v7676_v62 = vmax.f32 %v3520_v4, %v3568_v63  ;;  %v7690_v63 = vld [vmem:[#allocation2 + $0x2a4] sm:$0xff] }
 0x2b4   : > { %v3574_v37 = vld [vmem:[#allocation2 + $0x1b4] sm:$0xf]  ;;  %8944 = vst [vmem:[#allocation9_spill] sm:$0xff] %v7674_v21  ;;  %v7678_v12 = vmax.f32 %v3523_v7, %v3571_v29  ;;  %v8973_v35 = vld [vmem:[#allocation4_spill] sm:$0xff] }
 0x2b5   : > { %v3577_v6 = vld [vmem:[#allocation2 + $0x1d4] sm:$0xf]  ;;  %8945 = vst [vmem:[#allocation31_spill] sm:$0xff] %v7676_v62  ;;  %v7682_v54 = vmax.f32 %v3526_v45, %v3574_v37  ;;  %v8974_v45 = vld [vmem:[#allocation22_spill] sm:$0xff]  ;;  %v8975_v21 = vld [vmem:[#allocation40_spill] sm:$0xff] }
 0x2b6   : > { %v3580_v53 = vld [vmem:[#allocation2 + $0x1f4] sm:$0xf]  ;;  %8946 = vst [vmem:[#allocation24_spill] sm:$0xff] %v7678_v12  ;;  %v7684_v17 = vmax.f32 %v3529_v13, %v3577_v6  ;;  %v7700_v6 = vld [vmem:[#allocation2 + $0x2ac] sm:$0xff]  ;;  %v8994_v62 = vld [vmem:[#allocation54_spill] sm:$0xff] }
 0x2b7   : > { %v3583_v58 = vld [vmem:[#allocation2 + $0x214] sm:$0xf]  ;;  %8947 = vst [vmem:[#allocation3_spill] sm:$0xff] %v7682_v54  ;;  %v7686_v36 = vmax.f32 %v3532_v32, %v3580_v53  ;;  %v7707_v53 = vmax.f32 %v3548_v18, %v7690_v63  ;;  %v8996_v12 = vld [vmem:[#allocation55_spill] sm:$0xff] }
 0x2b8   : > { %v3586_v55 = vld [vmem:[#allocation2 + $0x234] sm:$0xf]  ;;  %8948 = vst [vmem:[#allocation13_spill] sm:$0xff] %v7684_v17  ;;  %v7692_v7 = vmax.f32 %v3535_v23, %v3583_v58 }
 0x2b9   : > { %v3589_v38 = vld [vmem:[#allocation2 + $0x254] sm:$0xf]  ;;  %8949 = vst [vmem:[#allocation32_spill] sm:$0xff] %v7686_v36  ;;  %v7694_v29 = vmax.f32 %v3538_v56, %v3586_v55  ;;  %8953 = vst [vmem:[#allocation37_spill] sm:$0xff] %v7707_v53  ;;  %v7714_v56 = vmax.f32 %v3549_v31, %v7700_v6  ;;  %v7794_v31 = vld [vmem:[#allocation2 + $0x2cc] sm:$0xff] }
 0x2ba   : > { %v3592_v40 = vld [vmem:[#allocation2 + $0x274] sm:$0xf]  ;;  %8950 = vst [vmem:[#allocation26_spill] sm:$0xff] %v7692_v7  ;;  %v7696_v30 = vmax.f32 %v3541_v3, %v3589_v38  ;;  %8984 = vst [vmem:[#allocation15_spill] sm:$0xff] %v7794_v31  ;;  %v8990_v36 = vld [vmem:[#allocation10_spill] sm:$0xff] }
 0x2bb   : > { %v3595_v4 = vld [vmem:[#allocation2 + $0x294] sm:$0xf]  ;;  %v7702_v32 = vmax.f32 %v3544_v20, %v3592_v40  ;;  %8954 = vst [vmem:[#allocation11_spill] sm:$0xff] %v7714_v56  ;;  %v3346_v53 = vld [vmem:[#allocation2 + $0x106] sm:$0xff] }
 0x2bc   : > { %8951 = vst [vmem:[#allocation35_spill] sm:$0xff] %v7696_v30  ;;  %v3598_v13 = vld [vmem:[#allocation2 + $0x2b4] sm:$0xf]  ;;  %v7704_v37 = vmax.f32 %v3547_v14, %v3595_v4  ;;  %4369 = vst.msk [vmem:[%s6063_s17 + $0x120] sm:$0xff] %vm148_vm0, %v3346_v53 }
 0x2bd   : > { %v7709_v11 = vld [vmem:[#allocation2 + $0xf4] sm:$0xf]  ;;  %v7716_v3 = vmax.f32 %v3550_v10, %v3598_v13 }
 0x2be   : > { %8952 = vst [vmem:[#allocation23_spill] sm:$0xff] %v7704_v37  ;;  %v7718_v58 = vld [vmem:[#allocation2 + $0x114] sm:$0xf] }
 0x2bf   : > { %v7720_v55 = vld [vmem:[#allocation2 + $0x134] sm:$0xf] }
 0x2c0   : > { %v7722_v20 = vld [vmem:[#allocation2 + $0x154] sm:$0xf]  ;;  %v9005_v53 = vmax.f32 %v7668_v24, %v7720_v55  ;;  %v9006_v24 = vmax.f32 %v7465_v52, %v7442_v16 }
 0x2c1   : > { %8955 = vst [vmem:[#allocation33_spill] sm:$0xff] %v7722_v20  ;;  %v7728_v38 = vld [vmem:[#allocation2 + $0x174] sm:$0xf]  ;;  %v8999_v20 = vmax.f32 %v7661_v0, %v7709_v11 }
 0x2c2   : > { %8956 = vst [vmem:[#allocation27_spill] sm:$0xff] %v7728_v38  ;;  %v7738_v13 = vld [vmem:[#allocation2 + $0x194] sm:$0xf]  ;;  %v3802_v47 = vmax.f32 %v9006_v24, %v7456_v26  ;;  %v9026_v24 = vld [vmem:[#allocation52_spill] sm:$0xff] }
 0x2c3   : > { %8957 = vst [vmem:[#allocation36_spill] sm:$0xff] %v7738_v13  ;;  %v7740_v23 = vld [vmem:[#allocation2 + $0x1b4] sm:$0xf] }
 0x2c4   : > { %8958 = vst [vmem:[#allocation14_spill] sm:$0xff] %v7740_v23  ;;  %v7750_v40 = vld [vmem:[#allocation2 + $0x1d4] sm:$0xf] }
 0x2c5   : > { %8959 = vst [vmem:[#allocation34_spill] sm:$0xff] %v7750_v40  ;;  %v8960_v46 = vld [vmem:[#allocation57_spill] sm:$0xff] }
 0x2c6   : > { %v7760_v38 = vld [vmem:[#allocation2 + $0x1f4] sm:$0xf] }
 0x2c7   : > { %8964 = vst [vmem:[#allocation25_spill] sm:$0xff] %v7760_v38  ;;  %v7770_v14 = vld [vmem:[#allocation2 + $0x214] sm:$0xf]  ;;  %v7792_v38 = vld [vmem:[#allocation2 + $0x2c4] sm:$0xff] }
 0x2c8   : > { %8971 = vst [vmem:[#allocation42_spill] sm:$0xff] %v7770_v14  ;;  %v7772_v18 = vld [vmem:[#allocation2 + $0x234] sm:$0xf]  ;;  %8983 = vst [vmem:[#allocation39_spill] sm:$0xff] %v7792_v38 }
 0x2c9   : > { %8972 = vst [vmem:[#allocation18_spill] sm:$0xff] %v7772_v18  ;;  %v7782_v4 = vld [vmem:[#allocation2 + $0x254] sm:$0xf] }
 0x2ca   : > { %v7796_v59 = vld [vmem:[#allocation2 + $0x2d4] sm:$0xf] }
 0x2cb   : > { %8985 = vst [vmem:[#allocation53_spill] sm:$0xff] %v7796_v59  ;;  %v7798_v10 = vld [vmem:[#allocation2 + $0x274] sm:$0xf] }
 0x2cc   : > { %8986 = vst [vmem:[#allocation19_spill] sm:$0xff] %v7798_v10  ;;  %v8988_v17 = vld [vmem:[#allocation49_spill] sm:$0xff] }
 0x2cd   : > { %v8989_v14 = vld [vmem:[#allocation45_spill] sm:$0xff] }
 0x2ce   : > { %v7808_v18 = vld [vmem:[#allocation2 + $0x294] sm:$0xf] }
 0x2cf   : > { %v7810_v7 = vld [vmem:[#allocation2 + $0x2b4] sm:$0xf] }
 0x2d0   : > { %8992 = vst [vmem:[#allocation38_spill] sm:$0xff] %v7810_v7  ;;  %v8993_v40 = vld [vmem:[#allocation17_spill] sm:$0xff]  ;;  %v8995_v7 = vmax.f32 %v7424_v9, %v8994_v62  ;;  %v9000_v9 = vmax.f32 %v7437_v19, %v7418_v27  ;;  %v9001_v62 = vmax.f32 %v7440_v33, %v7420_v25  ;;  %v9002_v19 = vmax.f32 %v7666_v2, %v7718_v58  ;;  %v3352_v2 = vld [vmem:[#allocation2 + $0x166] sm:$0xff] }
 0x2d1   : > { %v3747_v54 = vld [vmem:[#allocation2 + $0x114] sm:$0xf]  ;;  %v9008_v58 = vld [vmem:[#allocation43_spill] sm:$0xff]  ;;  %4375 = vst.msk [vmem:[%s6063_s17 + $0x150] sm:$0xff] %vm148_vm0, %v3352_v2 }
 0x2d2   : > { %v3750_v10 = vld [vmem:[#allocation2 + $0x134] sm:$0xf]  ;;  %v3793_v37 = vmax.f32 %v8995_v7, %v7418_v27  ;;  %v3795_v59 = vmax.f32 %v8999_v20, %v3747_v54  ;;  %v3796_v28 = vmax.f32 %v9000_v9, %v7428_v50 }
 0x2d3   : > { %v3753_v43 = vld [vmem:[#allocation2 + $0x154] sm:$0xf]  ;;  %v3798_v7 = vmax.f32 %v9002_v19, %v3750_v10  ;;  %v9011_v10 = vld [vmem:[#allocation50_spill] sm:$0xff] }
 0x2d4   : > { %v3343_v30 = vld [vmem:[#allocation2 + $0xce] sm:$0xff]  ;;  %3841 = vst.msk [vmem:[#allocation2 + $0xc4] sm:$0xff] %vm148_vm0, %v3793_v37  ;;  %v9012_v9 = vmax.f32 %v9011_v10, %v7456_v26  ;;  %3844 = vst.msk [vmem:[#allocation2 + $0xe4] sm:$0xff] %vm148_vm0, %v3796_v28  ;;  %v9016_v28 = vld [vmem:[#allocation27_spill] sm:$0xff] }
 0x2d5   : > { %v3756_v13 = vld [vmem:[#allocation2 + $0x174] sm:$0xf]  ;;  %4366 = vst.msk [vmem:[%s6063_s17 + $0x108] sm:$0xff] %vm148_vm0, %v3343_v30  ;;  %v3797_v30 = vmax.f32 %v9001_v62, %v7430_v1 }
 0x2d6   : > { %v3345_v23 = vld [vmem:[#allocation2 + $0xee] sm:$0xff]  ;;  %v3805_v62 = vmax.f32 %v9012_v9, %v7470_v60  ;;  %3843 = vst.msk [vmem:[#allocation2 + $0xd4] sm:$0xf] %vm152_vm1, %v3795_v59 }
 0x2d7   : > { %v3759_v61 = vld [vmem:[#allocation2 + $0x194] sm:$0xf]  ;;  %4368 = vst.msk [vmem:[%s6063_s17 + $0x118] sm:$0xff] %vm148_vm0, %v3345_v23  ;;  %v3800_v23 = vmax.f32 %v9004_v39, %v7444_v41  ;;  %3845 = vst.msk [vmem:[#allocation2 + $0xec] sm:$0xff] %vm148_vm0, %v3797_v30  ;;  %v9021_v39 = vld [vmem:[#allocation59_spill] sm:$0xff] }
 0x2d8   : > { %v8997_v56 = vld [vmem:[#allocation41_spill] sm:$0xff]  ;;  %3846 = vst.msk [vmem:[#allocation2 + $0xf4] sm:$0xf] %vm152_vm1, %v3798_v7 }
 0x2d9   : > { %v8998_v31 = vmax.f32 %v8996_v12, %v8997_v56  ;;  %v3347_v0 = vld [vmem:[#allocation2 + $0x10e] sm:$0xff]  ;;  %v3348_v12 = vld [vmem:[#allocation2 + $0x126] sm:$0xff]  ;;  %v3801_v56 = vmax.f32 %v9005_v53, %v3753_v43  ;;  %v9007_v43 = vmax.f32 %v7468_v57, %v7444_v41  ;;  %v9022_v53 = vmax.f32 %v9021_v39, %v7472_v42 }
 0x2da   : > { %v3349_v54 = vld [vmem:[#allocation2 + $0x12e] sm:$0xff]  ;;  %4370 = vst.msk [vmem:[%s6063_s17 + $0x128] sm:$0xff] %vm148_vm0, %v3347_v0  ;;  %4371 = vst.msk [vmem:[%s6063_s17 + $0x130] sm:$0xff] %vm148_vm0, %v3348_v12  ;;  %v3354_v41 = vld [vmem:[#allocation2 + $0x186] sm:$0xff] }
 0x2db   : > { %v3794_v38 = vmax.f32 %v8998_v31, %v7420_v25  ;;  %v3762_v11 = vld [vmem:[#allocation2 + $0x1b4] sm:$0xf]  ;;  %v9003_v25 = vmax.f32 %v7451_v5, %v7428_v50  ;;  %4372 = vst.msk [vmem:[%s6063_s17 + $0x138] sm:$0xff] %vm148_vm0, %v3349_v54  ;;  %v3350_v50 = vld [vmem:[#allocation2 + $0x146] sm:$0xff]  ;;  %v3803_v37 = vmax.f32 %v9007_v43, %v7458_v51  ;;  %3848 = vst.msk [vmem:[#allocation2 + $0x10c] sm:$0xff] %vm148_vm0, %v3800_v23 }
 0x2dc   : > { %v3765_v27 = vld [vmem:[#allocation2 + $0x1d4] sm:$0xf]  ;;  %4373 = vst.msk [vmem:[%s6063_s17 + $0x140] sm:$0xff] %vm148_vm0, %v3350_v50  ;;  %v9013_v57 = vld [vmem:[#allocation56_spill] sm:$0xff]  ;;  %v9018_v12 = vld [vmem:[#allocation51_spill] sm:$0xff] }
 0x2dd   : > { %v3799_v33 = vmax.f32 %v9003_v25, %v7442_v16  ;;  %v3351_v5 = vld [vmem:[#allocation2 + $0x14e] sm:$0xff]  ;;  %3842 = vst.msk [vmem:[#allocation2 + $0xcc] sm:$0xff] %vm148_vm0, %v3794_v38  ;;  %v9014_v59 = vmax.f32 %v9013_v57, %v7458_v51  ;;  %v9019_v54 = vmax.f32 %v9018_v12, %v7470_v60  ;;  %v9020_v25 = vld [vmem:[#allocation58_spill] sm:$0xff]  ;;  %4377 = vst.msk [vmem:[%s6063_s17 + $0x160] sm:$0xff] %vm148_vm0, %v3354_v41 }
 0x2de   : > { %v3768_v1 = vld [vmem:[#allocation2 + $0x1f4] sm:$0xf]  ;;  %4374 = vst.msk [vmem:[%s6063_s17 + $0x148] sm:$0xff] %vm148_vm0, %v3351_v5  ;;  %v3809_v50 = vmax.f32 %v9022_v53, %v9020_v25  ;;  %v3356_v51 = vld [vmem:[#allocation2 + $0x1a6] sm:$0xff]  ;;  %v9033_v41 = vld [vmem:[#allocation14_spill] sm:$0xff] }
 0x2df   : > { %v9009_v55 = vld [vmem:[#allocation33_spill] sm:$0xff]  ;;  %v3806_v38 = vmax.f32 %v9014_v59, %v7472_v42  ;;  %v3808_v19 = vmax.f32 %v9019_v54, %v8960_v46  ;;  %3847 = vst.msk [vmem:[#allocation2 + $0x104] sm:$0xff] %vm148_vm0, %v3799_v33  ;;  %v3358_v42 = vld [vmem:[#allocation2 + $0x1c6] sm:$0xff]  ;;  %3850 = vst.msk [vmem:[#allocation2 + $0x124] sm:$0xff] %vm148_vm0, %v3802_v47 }
 0x2e0   : > { %v9010_v20 = vmax.f32 %v9008_v58, %v9009_v55  ;;  %v3353_v16 = vld [vmem:[#allocation2 + $0x16e] sm:$0xff]  ;;  %3849 = vst.msk [vmem:[#allocation2 + $0x114] sm:$0xf] %vm152_vm1, %v3801_v56  ;;  %v9023_v5 = vld [vmem:[#allocation31_spill] sm:$0xff]  ;;  %v9041_v54 = vld [vmem:[#allocation34_spill] sm:$0xff] }
 0x2e1   : > { %v3355_v26 = vld [vmem:[#allocation2 + $0x18e] sm:$0xff]  ;;  %4376 = vst.msk [vmem:[%s6063_s17 + $0x158] sm:$0xff] %vm148_vm0, %v3353_v16  ;;  %3851 = vst.msk [vmem:[#allocation2 + $0x12c] sm:$0xff] %vm148_vm0, %v3803_v37  ;;  %v9035_v47 = vld [vmem:[#allocation63_spill] sm:$0xff] }
 0x2e2   : > { %v3804_v31 = vmax.f32 %v9010_v20, %v3756_v13  ;;  %v3771_v52 = vld [vmem:[#allocation2 + $0x214] sm:$0xf]  ;;  %4378 = vst.msk [vmem:[%s6063_s17 + $0x168] sm:$0xff] %vm148_vm0, %v3355_v26  ;;  %v9024_v33 = vld [vmem:[#allocation36_spill] sm:$0xff]  ;;  %v9030_v20 = vld [vmem:[#allocation62_spill] sm:$0xff] }
 0x2e3   : > { %v9015_v13 = vld [vmem:[#allocation9_spill] sm:$0xff]  ;;  %v9025_v2 = vmax.f32 %v9023_v5, %v9024_v33  ;;  %v9029_v55 = vld [vmem:[#allocation60_spill] sm:$0xff]  ;;  %v9031_v10 = vmax.f32 %v9030_v20, %v9020_v25  ;;  %3853 = vst.msk [vmem:[#allocation2 + $0x144] sm:$0xff] %vm148_vm0, %v3805_v62  ;;  %4379 = vst.msk [vmem:[%s6063_s17 + $0x170] sm:$0xff] %vm148_vm0, %v3356_v51 }
 0x2e4   : > { %v9017_v30 = vmax.f32 %v9015_v13, %v9016_v28  ;;  %v3357_v60 = vld [vmem:[#allocation2 + $0x1ae] sm:$0xff]  ;;  %3852 = vst.msk [vmem:[#allocation2 + $0x134] sm:$0xf] %vm152_vm1, %v3804_v31  ;;  %v9040_v12 = vld [vmem:[#allocation3_spill] sm:$0xff] }
 0x2e5   : > { %v3777_v7 = vld [vmem:[#allocation2 + $0x254] sm:$0xf]  ;;  %v3810_v23 = vmax.f32 %v9025_v2, %v3762_v11  ;;  %v3812_v9 = vmax.f32 %v9031_v10, %v9029_v55  ;;  %v9032_v16 = vld [vmem:[#allocation24_spill] sm:$0xff]  ;;  %4380 = vst.msk [vmem:[%s6063_s17 + $0x178] sm:$0xff] %vm148_vm0, %v3357_v60  ;;  %4381 = vst.msk [vmem:[%s6063_s17 + $0x180] sm:$0xff] %vm148_vm0, %v3358_v42  ;;  %v9042_v25 = vmax.f32 %v9040_v12, %v9041_v54 }
 0x2e6   : > { %v3807_v0 = vmax.f32 %v9017_v30, %v3759_v61  ;;  %v3774_v61 = vld [vmem:[#allocation2 + $0x234] sm:$0xf]  ;;  %v9034_v26 = vmax.f32 %v9032_v16, %v9033_v41  ;;  %v3360_v11 = vld [vmem:[#allocation2 + $0x1e6] sm:$0xff]  ;;  %3854 = vst.msk [vmem:[#allocation2 + $0x14c] sm:$0xff] %vm148_vm0, %v3806_v38  ;;  %3856 = vst.msk [vmem:[#allocation2 + $0x164] sm:$0xff] %vm148_vm0, %v3808_v19  ;;  %v9045_v38 = vmax.f32 %v8974_v45, %v8973_v35 }
 0x2e7   : > { %v9027_v56 = vld [vmem:[#allocation61_spill] sm:$0xff]  ;;  %v9036_v13 = vld [vmem:[#allocation44_spill] sm:$0xff]  ;;  %v3816_v39 = vmax.f32 %v9042_v25, %v3768_v1  ;;  %3857 = vst.msk [vmem:[#allocation2 + $0x16c] sm:$0xff] %vm148_vm0, %v3809_v50  ;;  %4383 = vst.msk [vmem:[%s6063_s17 + $0x190] sm:$0xff] %vm148_vm0, %v3360_v11 }
 0x2e8   : > { %v9028_v43 = vmax.f32 %v9027_v56, %v8960_v46  ;;  %v3813_v57 = vmax.f32 %v9034_v26, %v3765_v27  ;;  %v3359_v46 = vld [vmem:[#allocation2 + $0x1ce] sm:$0xff]  ;;  %v9037_v37 = vmax.f32 %v9036_v13, %v9026_v24  ;;  %3855 = vst.msk [vmem:[#allocation2 + $0x154] sm:$0xf] %vm152_vm1, %v3807_v0  ;;  %v3362_v1 = vld [vmem:[#allocation2 + $0x206] sm:$0xff]  ;;  %v3818_v0 = vmax.f32 %v9045_v38, %v8977_v34  ;;  %v9053_v16 = vld [vmem:[#allocation6_spill] sm:$0xff] }
 0x2e9   : > { %v3361_v27 = vld [vmem:[#allocation2 + $0x1ee] sm:$0xff]  ;;  %4382 = vst.msk [vmem:[%s6063_s17 + $0x188] sm:$0xff] %vm148_vm0, %v3359_v46  ;;  %v3364_v5 = vld [vmem:[#allocation2 + $0x226] sm:$0xff]  ;;  %v9054_v41 = vmax.f32 %v9053_v16, %v8977_v34  ;;  %3860 = vst.msk [vmem:[#allocation2 + $0x18c] sm:$0xff] %vm148_vm0, %v3812_v9 }
 0x2ea   : > { %v3811_v58 = vmax.f32 %v9028_v43, %v9026_v24  ;;  %v3780_v59 = vld [vmem:[#allocation2 + $0x274] sm:$0xf]  ;;  %v3814_v31 = vmax.f32 %v9037_v37, %v9035_v47  ;;  %v9043_v53 = vld [vmem:[#allocation12_spill] sm:$0xff]  ;;  %4384 = vst.msk [vmem:[%s6063_s17 + $0x198] sm:$0xff] %vm148_vm0, %v3361_v27  ;;  %v9050_v43 = vld [vmem:[#allocation47_spill] sm:$0xff] }
 0x2eb   : > { %v9038_v62 = vld [vmem:[#allocation5_spill] sm:$0xff]  ;;  %v9044_v51 = vmax.f32 %v9043_v53, %v9035_v47  ;;  %v9049_v56 = vld [vmem:[#allocation28_spill] sm:$0xff]  ;;  %3858 = vst.msk [vmem:[#allocation2 + $0x174] sm:$0xf] %vm152_vm1, %v3810_v23  ;;  %3861 = vst.msk [vmem:[#allocation2 + $0x194] sm:$0xf] %vm152_vm1, %v3813_v57 }
 0x2ec   : > { %v9039_v28 = vmax.f32 %v9038_v62, %v9029_v55  ;;  %v3363_v42 = vld [vmem:[#allocation2 + $0x20e] sm:$0xff]  ;;  %v9051_v55 = vmax.f32 %v9050_v43, %v8975_v21  ;;  %3859 = vst.msk [vmem:[#allocation2 + $0x184] sm:$0xff] %vm148_vm0, %v3811_v58  ;;  %4385 = vst.msk [vmem:[%s6063_s17 + $0x1a0] sm:$0xff] %vm148_vm0, %v3362_v1  ;;  %v3366_v34 = vld [vmem:[#allocation2 + $0x246] sm:$0xff] }
 0x2ed   : > { %v3817_v60 = vmax.f32 %v9044_v51, %v8975_v21  ;;  %v3783_v33 = vld [vmem:[#allocation2 + $0x294] sm:$0xf]  ;;  %v9052_v10 = vld [vmem:[#allocation16_spill] sm:$0xff]  ;;  %4386 = vst.msk [vmem:[%s6063_s17 + $0x1a8] sm:$0xff] %vm148_vm0, %v3363_v42  ;;  %4387 = vst.msk [vmem:[%s6063_s17 + $0x1b0] sm:$0xff] %vm148_vm0, %v3364_v5  ;;  %v9067_v51 = vmax.f32 %v7694_v29, %v7782_v4  ;;  %v9070_v29 = vmax.f32 %v8993_v40, %v7594_v48 }
 0x2ee   : > { %v3815_v30 = vmax.f32 %v9039_v28, %v8973_v35  ;;  %v9046_v19 = vld [vmem:[#allocation13_spill] sm:$0xff]  ;;  %v3820_v20 = vmax.f32 %v9051_v55, %v9049_v56  ;;  %v3821_v26 = vmax.f32 %v9054_v41, %v9052_v10  ;;  %v9056_v23 = vld [vmem:[#allocation42_spill] sm:$0xff]  ;;  %v9060_v27 = vld [vmem:[#allocation20_spill] sm:$0xff]  ;;  %3862 = vst.msk [vmem:[#allocation2 + $0x1a4] sm:$0xff] %vm148_vm0, %v3814_v31  ;;  %v9065_v31 = vmax.f32 %v8988_v17, %v8987_v49 }
 0x2ef   : > { %v9047_v50 = vld [vmem:[#allocation25_spill] sm:$0xff]  ;;  %v9061_v47 = vmax.f32 %v9060_v27, %v9052_v10  ;;  %v9062_v37 = vld [vmem:[#allocation26_spill] sm:$0xff]  ;;  %3864 = vst.msk [vmem:[#allocation2 + $0x1b4] sm:$0xf] %vm152_vm1, %v3816_v39  ;;  %v3790_v25 = vld [vmem:[#allocation2 + $0x2e4] sm:$0xff]  ;;  %v9066_v39 = vmax.f32 %v8990_v36, %v8989_v14 }
 0x2f0   : > { %v9048_v2 = vmax.f32 %v9046_v19, %v9047_v50  ;;  %v3365_v35 = vld [vmem:[#allocation2 + $0x22e] sm:$0xff]  ;;  %v9063_v62 = vld [vmem:[#allocation18_spill] sm:$0xff]  ;;  %3863 = vst.msk [vmem:[#allocation2 + $0x1ac] sm:$0xff] %vm148_vm0, %v3815_v30  ;;  %3865 = vst.msk [vmem:[#allocation2 + $0x1c4] sm:$0xff] %vm148_vm0, %v3817_v60  ;;  %v3826_v30 = vmax.f32 %v9065_v31, %v7592_v15  ;;  %v3828_v60 = vmax.f32 %v9067_v51, %v3780_v59 }
 0x2f1   : > { %v3367_v21 = vld [vmem:[#allocation2 + $0x24e] sm:$0xff]  ;;  %v3824_v13 = vmax.f32 %v9061_v47, %v8989_v14  ;;  %v9064_v28 = vmax.f32 %v9062_v37, %v9063_v62  ;;  %4388 = vst.msk [vmem:[%s6063_s17 + $0x1b8] sm:$0xff] %vm148_vm0, %v3365_v35  ;;  %4389 = vst.msk [vmem:[%s6063_s17 + $0x1c0] sm:$0xff] %vm148_vm0, %v3366_v34  ;;  %v3827_v53 = vmax.f32 %v9066_v39, %v7594_v48  ;;  %v9068_v1 = vld [vmem:[#allocation46_spill] sm:$0xff] }
 0x2f2   : > { %v3819_v24 = vmax.f32 %v9048_v2, %v3771_v52  ;;  %v3789_v45 = vld [vmem:[#allocation2 + $0x2d4] sm:$0xf]  ;;  %v9055_v52 = vld [vmem:[#allocation32_spill] sm:$0xff]  ;;  %4390 = vst.msk [vmem:[%s6063_s17 + $0x1c8] sm:$0xff] %vm148_vm0, %v3367_v21  ;;  %v9069_v42 = vmax.f32 %v9068_v1, %v7592_v15  ;;  %3866 = vst.msk [vmem:[#allocation2 + $0x1cc] sm:$0xff] %vm148_vm0, %v3818_v0  ;;  %v3830_v14 = vmax.f32 %v9070_v29, %v7646_v8 }
 0x2f3   : > { %v9057_v58 = vmax.f32 %v9055_v52, %v9056_v23  ;;  %v9058_v9 = vld [vmem:[#allocation29_spill] sm:$0xff]  ;;  %v3825_v12 = vmax.f32 %v9064_v28, %v3777_v7  ;;  %v3370_v7 = vld [vmem:[#allocation2 + $0x286] sm:$0xff]  ;;  %3868 = vst.msk [vmem:[#allocation2 + $0x1e4] sm:$0xff] %vm148_vm0, %v3820_v20  ;;  %3869 = vst.msk [vmem:[#allocation2 + $0x1ec] sm:$0xff] %vm148_vm0, %v3821_v26 }
 0x2f4   : > { %v9059_v57 = vmax.f32 %v9058_v9, %v9049_v56  ;;  %v3369_v54 = vld [vmem:[#allocation2 + $0x26e] sm:$0xff]  ;;  %v3829_v5 = vmax.f32 %v9069_v42, %v7639_v44  ;;  %3867 = vst.msk [vmem:[#allocation2 + $0x1d4] sm:$0xf] %vm152_vm1, %v3819_v24  ;;  %v3372_v15 = vld [vmem:[#allocation2 + $0x2a6] sm:$0xff]  ;;  %v9076_v24 = vmax.f32 %v7632_v22, %v7646_v8  ;;  %v9077_v22 = vmax.f32 %v7702_v32, %v7808_v18  ;;  %v9079_v55 = vld [vmem:[#allocation30_spill] sm:$0xff] }
 0x2f5   : > { %v3822_v46 = vmax.f32 %v9057_v58, %v3774_v61  ;;  %v3368_v61 = vld [vmem:[#allocation2 + $0x266] sm:$0xff]  ;;  %4392 = vst.msk [vmem:[%s6063_s17 + $0x1d8] sm:$0xff] %vm148_vm0, %v3369_v54  ;;  %4393 = vst.msk [vmem:[%s6063_s17 + $0x1e0] sm:$0xff] %vm148_vm0, %v3370_v7  ;;  %v3373_v17 = vld [vmem:[#allocation2 + $0x2ae] sm:$0xff]  ;;  %v9080_v20 = vmax.f32 %v9079_v55, %v7690_v63 }
 0x2f6   : > { %v3823_v11 = vmax.f32 %v9059_v57, %v8987_v49  ;;  %4391 = vst.msk [vmem:[%s6063_s17 + $0x1d0] sm:$0xff] %vm148_vm0, %v3368_v61  ;;  %v3371_v49 = vld [vmem:[#allocation2 + $0x28e] sm:$0xff]  ;;  %v9071_v4 = vld [vmem:[#allocation35_spill] sm:$0xff]  ;;  %v3833_v56 = vmax.f32 %v9076_v24, %v7700_v6  ;;  %3872 = vst.msk [vmem:[#allocation2 + $0x20c] sm:$0xff] %vm148_vm0, %v3824_v13 }
 0x2f7   : > { %v3786_v36 = vld [vmem:[#allocation2 + $0x2b4] sm:$0xf]  ;;  %v9072_v59 = vld [vmem:[#allocation19_spill] sm:$0xff]  ;;  %v9074_v19 = vld [vmem:[#allocation8_spill] sm:$0xff]  ;;  %3870 = vst.msk [vmem:[#allocation2 + $0x1f4] sm:$0xf] %vm152_vm1, %v3822_v46 }
 0x2f8   : > { %v9073_v38 = vmax.f32 %v9071_v4, %v9072_v59  ;;  %v9075_v50 = vmax.f32 %v9074_v19, %v7639_v44  ;;  %3871 = vst.msk [vmem:[#allocation2 + $0x204] sm:$0xff] %vm148_vm0, %v3823_v11  ;;  %4394 = vst.msk [vmem:[%s6063_s17 + $0x1e8] sm:$0xff] %vm148_vm0, %v3371_v49  ;;  %v3889_v48 = vld [vmem:[#allocation2 + $0xc4] sm:$0xff]  ;;  %v3791_v40 = vld [vmem:[#allocation2 + $0x2ec] sm:$0xff]  ;;  %v3834_v8 = vmax.f32 %v9077_v22, %v3786_v36 }
 0x2f9   : > { %3873 = vst.msk [vmem:[#allocation2 + $0x214] sm:$0xf] %vm152_vm1, %v3825_v12  ;;  %v3921_v44 = vld [vmem:[#allocation2 + $0xc5] sm:$0xff]  ;;  %v9082_v41 = vld [vmem:[#allocation21_spill] sm:$0xff]  ;;  %v9085_v21 = vld [vmem:[#allocation38_spill] sm:$0xff] }
 0x2fa   : > { %v3831_v0 = vmax.f32 %v9073_v38, %v3783_v33  ;;  %v3832_v2 = vmax.f32 %v9075_v50, %v7690_v63  ;;  %4395 = vst.msk [vmem:[%s6063_s17 + $0x1f0] sm:$0xff] %vm148_vm0, %v3372_v15  ;;  %4396 = vst.msk [vmem:[%s6063_s17 + $0x1f8] sm:$0xff] %vm148_vm0, %v3373_v17  ;;  %v3792_v33 = vld [vmem:[#allocation2 + $0x2f4] sm:$0xf]  ;;  %v9078_v43 = vld [vmem:[#allocation39_spill] sm:$0xff]  ;;  %v9083_v26 = vmax.f32 %v9082_v41, %v7700_v6 }
 0x2fb   : > { %v3835_v10 = vmax.f32 %v9080_v20, %v9078_v43  ;;  %v9081_v16 = vld [vmem:[#allocation15_spill] sm:$0xff]  ;;  %3874 = vst.msk [vmem:[#allocation2 + $0x224] sm:$0xff] %vm148_vm0, %v3826_v30  ;;  %3875 = vst.msk [vmem:[#allocation2 + $0x22c] sm:$0xff] %vm148_vm0, %v3827_v53  ;;  %v3890_v32 = vld [vmem:[#allocation2 + $0xcc] sm:$0xff]  ;;  %v3953_v27 = vmax.f32 %v3889_v48, %v3921_v44 }
 0x2fc   : > { %v3836_v35 = vmax.f32 %v9083_v26, %v9081_v16  ;;  %v9084_v34 = vld [vmem:[#allocation23_spill] sm:$0xff]  ;;  %3876 = vst.msk [vmem:[#allocation2 + $0x234] sm:$0xf] %vm152_vm1, %v3828_v60  ;;  %v9087_v63 = vld [vmem:[#allocation37_spill] sm:$0xff]  ;;  %3879 = vst.msk [vmem:[#allocation2 + $0x254] sm:$0xf] %vm152_vm1, %v3831_v0 }
 0x2fd   : > { %v9086_v52 = vmax.f32 %v9084_v34, %v9085_v21  ;;  %3877 = vst.msk [vmem:[#allocation2 + $0x244] sm:$0xff] %vm148_vm0, %v3829_v5  ;;  %v9088_v18 = vmax.f32 %v9087_v63, %v9078_v43  ;;  %v9089_v46 = vld [vmem:[#allocation11_spill] sm:$0xff]  ;;  %v9091_v57 = vld [vmem:[#allocation53_spill] sm:$0xff]  ;;  %3878 = vst.msk [vmem:[#allocation2 + $0x24c] sm:$0xff] %vm148_vm0, %v3830_v14 }
 0x2fe   : > { %v9090_v6 = vmax.f32 %v9089_v46, %v9081_v16  ;;  %3880 = vst.msk [vmem:[#allocation2 + $0x264] sm:$0xff] %vm148_vm0, %v3832_v2  ;;  %3881 = vst.msk [vmem:[#allocation2 + $0x26c] sm:$0xff] %vm148_vm0, %v3833_v56  ;;  %v3922_v47 = vld [vmem:[#allocation2 + $0xcd] sm:$0xff]  ;;  %v3891_v37 = vld [vmem:[#allocation2 + $0xe4] sm:$0xff] }
 0x2ff   : > { %v3837_v23 = vmax.f32 %v9086_v52, %v3789_v45  ;;  %v3838_v58 = vmax.f32 %v9088_v18, %v3790_v25  ;;  %v9092_v45 = vmax.f32 %v7716_v3, %v9091_v57  ;;  %3882 = vst.msk [vmem:[#allocation2 + $0x274] sm:$0xf] %vm152_vm1, %v3834_v8  ;;  %v3985_v3 = vld [vmem:[#allocation2 + $0xc6] sm:$0xff]  ;;  %v3954_v13 = vmax.f32 %v3890_v32, %v3922_v47  ;;  %v3986_v61 = vld [vmem:[#allocation2 + $0xce] sm:$0xff]  ;;  %v330_v26 = vld [vmem:[%s4715_s13 + $0x18] sm:$0xff] }
 0x300   : > { %v3839_v9 = vmax.f32 %v9090_v6, %v3791_v40  ;;  %3883 = vst.msk [vmem:[#allocation2 + $0x284] sm:$0xff] %vm148_vm0, %v3835_v10  ;;  %3884 = vst.msk [vmem:[#allocation2 + $0x28c] sm:$0xff] %vm148_vm0, %v3836_v35  ;;  %v3923_v62 = vld [vmem:[#allocation2 + $0xe5] sm:$0xff]  ;;  %v4017_v28 = vmax.f32 %v3953_v27, %v3985_v3  ;;  %v4050_v54 = vld [vmem:[#allocation2 + $0xcf] sm:$0xff] }
 0x301   : > { %v3840_v11 = vmax.f32 %v9092_v45, %v3792_v33  ;;  %3885 = vst.msk [vmem:[#allocation2 + $0x294] sm:$0xf] %vm152_vm1, %v3837_v23  ;;  %v4049_v12 = vld [vmem:[#allocation2 + $0xc7] sm:$0xff]  ;;  %v3955_v7 = vmax.f32 %v3891_v37, %v3923_v62  ;;  %v4018_v31 = vmax.f32 %v3954_v13, %v3986_v61  ;;  %v4114_v60 = vld [vmem:[#allocation2 + $0xd0] sm:$0xff]  ;;  %v334_v63 = vld [vmem:[%s4715_s13 + $0x38] sm:$0xff] }
 0x302   : > { %3886 = vst.msk [vmem:[#allocation2 + $0x2a4] sm:$0xff] %vm148_vm0, %v3838_v58  ;;  %3887 = vst.msk [vmem:[#allocation2 + $0x2ac] sm:$0xff] %vm148_vm0, %v3839_v9  ;;  %v4113_v25 = vld [vmem:[#allocation2 + $0xc8] sm:$0xff]  ;;  %v4081_v51 = vmax.f32 %v4017_v28, %v4049_v12  ;;  %v4116_v24 = vld [vmem:[#allocation2 + $0xf0] sm:$0xff] }
 0x303   : > { %3888 = vst.msk [vmem:[#allocation2 + $0x2b4] sm:$0xf] %vm152_vm1, %v3840_v11  ;;  %v3987_v30 = vld [vmem:[#allocation2 + $0xe6] sm:$0xff]  ;;  %v4082_v15 = vmax.f32 %v4018_v31, %v4050_v54  ;;  %v3988_v36 = vld [vmem:[#allocation2 + $0xee] sm:$0xff]  ;;  %v338_v9 = vld [vmem:[%s4715_s13 + $0x58] sm:$0xff] }
 0x304   : > { %v3892_v39 = vld [vmem:[#allocation2 + $0xec] sm:$0xff]  ;;  %v4019_v1 = vmax.f32 %v3955_v7, %v3987_v30  ;;  %v3893_v49 = vld [vmem:[#allocation2 + $0x104] sm:$0xff]  ;;  %v4145_v14 = vmax.f32 %v4081_v51, %v4113_v25  ;;  %4304 = vst.msk [vmem:[%s6063_s17 + $0x318] sm:$0xff] %vm148_vm0, %v330_v26  ;;  %4308 = vst.msk [vmem:[%s6063_s17 + $0x338] sm:$0xff] %vm148_vm0, %v334_v63 }
 0x305   : > { %v3924_v53 = vld [vmem:[#allocation2 + $0xed] sm:$0xff]  ;;  %v3925_v29 = vld [vmem:[#allocation2 + $0x105] sm:$0xff]  ;;  %v4146_v2 = vmax.f32 %v4082_v15, %v4114_v60  ;;  %4312 = vst.msk [vmem:[%s6063_s17 + $0x358] sm:$0xff] %vm148_vm0, %v338_v9  ;;  %v342_v3 = vld [vmem:[%s4715_s13 + $0x78] sm:$0xff] }
 0x306   : > { %v4051_v42 = vld [vmem:[#allocation2 + $0xe7] sm:$0xff]  ;;  %v3956_v5 = vmax.f32 %v3892_v39, %v3924_v53  ;;  %v4052_v38 = vld [vmem:[#allocation2 + $0xef] sm:$0xff]  ;;  %v3957_v0 = vmax.f32 %v3893_v49, %v3925_v29  ;;  %4177 = vst.msk [vmem:[%s6063_s17] sm:$0xff] %vm148_vm0, %v4145_v14  ;;  %4316 = vst.msk [vmem:[%s6063_s17 + $0x378] sm:$0xff] %vm148_vm0, %v342_v3 }
 0x307   : > { %v4115_v17 = vld [vmem:[#allocation2 + $0xe8] sm:$0xff]  ;;  %v4083_v4 = vmax.f32 %v4019_v1, %v4051_v42  ;;  %v327_v55 = vld [vmem:[%s4715_s13] sm:$0xff]  ;;  %v329_v10 = vld [vmem:[%s4715_s13 + $0x10] sm:$0xff]  ;;  %4178 = vst.msk [vmem:[%s6063_s17 + $0x8] sm:$0xff] %vm148_vm0, %v4146_v2 }
 0x308   : > { %v4020_v59 = vmax.f32 %v3956_v5, %v3988_v36  ;;  %v3894_v19 = vld [vmem:[#allocation2 + $0x10c] sm:$0xff]  ;;  %4301 = vst.msk [vmem:[%s6063_s17 + $0x300] sm:$0xff] %vm148_vm0, %v327_v55  ;;  %4303 = vst.msk [vmem:[%s6063_s17 + $0x310] sm:$0xff] %vm148_vm0, %v329_v10  ;;  %v331_v35 = vld [vmem:[%s4715_s13 + $0x20] sm:$0xff] }
 0x309   : > { %v3926_v50 = vld [vmem:[#allocation2 + $0x10d] sm:$0xff]  ;;  %v4147_v33 = vmax.f32 %v4083_v4, %v4115_v17  ;;  %4305 = vst.msk [vmem:[%s6063_s17 + $0x320] sm:$0xff] %vm148_vm0, %v331_v35  ;;  %v335_v18 = vld [vmem:[%s4715_s13 + $0x40] sm:$0xff]  ;;  %v346_v28 = vld [vmem:[%s4715_s13 + $0x98] sm:$0xff] }
 0x30a   : > { %v3989_v56 = vld [vmem:[#allocation2 + $0x106] sm:$0xff]  ;;  %v3958_v44 = vmax.f32 %v3894_v19, %v3926_v50  ;;  %v3990_v40 = vld [vmem:[#allocation2 + $0x10e] sm:$0xff]  ;;  %v4084_v22 = vmax.f32 %v4020_v59, %v4052_v38  ;;  %4309 = vst.msk [vmem:[%s6063_s17 + $0x340] sm:$0xff] %vm148_vm0, %v335_v18  ;;  %4320 = vst.msk [vmem:[%s6063_s17 + $0x398] sm:$0xff] %vm148_vm0, %v346_v28 }
 0x30b   : > { %v4053_v48 = vld [vmem:[#allocation2 + $0x107] sm:$0xff]  ;;  %v4021_v8 = vmax.f32 %v3957_v0, %v3989_v56  ;;  %v4054_v43 = vld [vmem:[#allocation2 + $0x10f] sm:$0xff]  ;;  %4179 = vst.msk [vmem:[%s6063_s17 + $0x10] sm:$0xff] %vm148_vm0, %v4147_v33  ;;  %v350_v7 = vld [vmem:[%s4715_s13 + $0xb8] sm:$0xff] }
 0x30c   : > { %v328_v20 = vld [vmem:[%s4715_s13 + $0x8] sm:$0xff]  ;;  %v4022_v41 = vmax.f32 %v3958_v44, %v3990_v40  ;;  %v4148_v21 = vmax.f32 %v4084_v22, %v4116_v24  ;;  %v4118_v23 = vld [vmem:[#allocation2 + $0x110] sm:$0xff]  ;;  %v339_v45 = vld [vmem:[%s4715_s13 + $0x60] sm:$0xff]  ;;  %4324 = vst.msk [vmem:[%s6063_s17 + $0x3b8] sm:$0xff] %vm148_vm0, %v350_v7 }
 0x30d   : > { %v4117_v16 = vld [vmem:[#allocation2 + $0x108] sm:$0xff]  ;;  %4302 = vst.msk [vmem:[%s6063_s17 + $0x308] sm:$0xff] %vm148_vm0, %v328_v20  ;;  %v4085_v52 = vmax.f32 %v4021_v8, %v4053_v48  ;;  %v333_v32 = vld [vmem:[%s4715_s13 + $0x30] sm:$0xff]  ;;  %4313 = vst.msk [vmem:[%s6063_s17 + $0x360] sm:$0xff] %vm148_vm0, %v339_v45 }
 0x30e   : > { %v332_v34 = vld [vmem:[%s4715_s13 + $0x28] sm:$0xff]  ;;  %v4086_v58 = vmax.f32 %v4022_v41, %v4054_v43  ;;  %4307 = vst.msk [vmem:[%s6063_s17 + $0x330] sm:$0xff] %vm148_vm0, %v333_v32  ;;  %v337_v6 = vld [vmem:[%s4715_s13 + $0x50] sm:$0xff]  ;;  %4180 = vst.msk [vmem:[%s6063_s17 + $0x18] sm:$0xff] %vm148_vm0, %v4148_v21 }
 0x30f   : > { %4306 = vst.msk [vmem:[%s6063_s17 + $0x328] sm:$0xff] %vm148_vm0, %v332_v34  ;;  %v336_v46 = vld [vmem:[%s4715_s13 + $0x48] sm:$0xff]  ;;  %v4149_v57 = vmax.f32 %v4085_v52, %v4117_v16  ;;  %4311 = vst.msk [vmem:[%s6063_s17 + $0x350] sm:$0xff] %vm148_vm0, %v337_v6  ;;  %v341_v27 = vld [vmem:[%s4715_s13 + $0x70] sm:$0xff] }
 0x310   : > { %4310 = vst.msk [vmem:[%s6063_s17 + $0x348] sm:$0xff] %vm148_vm0, %v336_v46  ;;  %v340_v11 = vld [vmem:[%s4715_s13 + $0x68] sm:$0xff]  ;;  %v4150_v47 = vmax.f32 %v4086_v58, %v4118_v23  ;;  %4315 = vst.msk [vmem:[%s6063_s17 + $0x370] sm:$0xff] %vm148_vm0, %v341_v27  ;;  %v343_v13 = vld [vmem:[%s4715_s13 + $0x80] sm:$0xff] }
 0x311   : > { %4314 = vst.msk [vmem:[%s6063_s17 + $0x368] sm:$0xff] %vm148_vm0, %v340_v11  ;;  %v344_v37 = vld [vmem:[%s4715_s13 + $0x88] sm:$0xff]  ;;  %4181 = vst.msk [vmem:[%s6063_s17 + $0x20] sm:$0xff] %vm148_vm0, %v4149_v57  ;;  %v345_v62 = vld [vmem:[%s4715_s13 + $0x90] sm:$0xff] }
 0x312   : > { %4317 = vst.msk [vmem:[%s6063_s17 + $0x380] sm:$0xff] %vm148_vm0, %v343_v13  ;;  %4318 = vst.msk [vmem:[%s6063_s17 + $0x388] sm:$0xff] %vm148_vm0, %v344_v37  ;;  %v347_v12 = vld [vmem:[%s4715_s13 + $0xa0] sm:$0xff]  ;;  %v348_v61 = vld [vmem:[%s4715_s13 + $0xa8] sm:$0xff] }
 0x313   : > { %4182 = vst.msk [vmem:[%s6063_s17 + $0x28] sm:$0xff] %vm148_vm0, %v4150_v47  ;;  %4319 = vst.msk [vmem:[%s6063_s17 + $0x390] sm:$0xff] %vm148_vm0, %v345_v62  ;;  %v349_v54 = vld [vmem:[%s4715_s13 + $0xb0] sm:$0xff]  ;;  %v351_v25 = vld [vmem:[%s4715_s13 + $0xc0] sm:$0xff] }
 0x314   : > { %4321 = vst.msk [vmem:[%s6063_s17 + $0x3a0] sm:$0xff] %vm148_vm0, %v347_v12  ;;  %4322 = vst.msk [vmem:[%s6063_s17 + $0x3a8] sm:$0xff] %vm148_vm0, %v348_v61  ;;  %v352_v31 = vld [vmem:[%s4715_s13 + $0xc8] sm:$0xff]  ;;  %v353_v30 = vld [vmem:[%s4715_s13 + $0xd0] sm:$0xff] }
 0x315   : > { %4323 = vst.msk [vmem:[%s6063_s17 + $0x3b0] sm:$0xff] %vm148_vm0, %v349_v54  ;;  %4325 = vst.msk [vmem:[%s6063_s17 + $0x3c0] sm:$0xff] %vm148_vm0, %v351_v25  ;;  %v354_v39 = vld [vmem:[%s4715_s13 + $0xd8] sm:$0xff]  ;;  %v355_v53 = vld [vmem:[%s4715_s13 + $0xe0] sm:$0xff] }
 0x316   : > { %4326 = vst.msk [vmem:[%s6063_s17 + $0x3c8] sm:$0xff] %vm148_vm0, %v352_v31  ;;  %4327 = vst.msk [vmem:[%s6063_s17 + $0x3d0] sm:$0xff] %vm148_vm0, %v353_v30  ;;  %v356_v51 = vld [vmem:[%s4715_s13 + $0xe8] sm:$0xff]  ;;  %v357_v60 = vld [vmem:[%s4715_s13 + $0xf0] sm:$0xff] }
 0x317   : > { %4328 = vst.msk [vmem:[%s6063_s17 + $0x3d8] sm:$0xff] %vm148_vm0, %v354_v39  ;;  %4329 = vst.msk [vmem:[%s6063_s17 + $0x3e0] sm:$0xff] %vm148_vm0, %v355_v53  ;;  %v358_v1 = vld [vmem:[%s4715_s13 + $0xf8] sm:$0xff]  ;;  %v3895_v42 = vld [vmem:[#allocation2 + $0x124] sm:$0xff] }
 0x318   : > { %4330 = vst.msk [vmem:[%s6063_s17 + $0x3e8] sm:$0xff] %vm148_vm0, %v356_v51  ;;  %4331 = vst.msk [vmem:[%s6063_s17 + $0x3f0] sm:$0xff] %vm148_vm0, %v357_v60  ;;  %v3927_v5 = vld [vmem:[#allocation2 + $0x125] sm:$0xff]  ;;  %v3928_v17 = vld [vmem:[#allocation2 + $0x12d] sm:$0xff] }
 0x319   : > { %4332 = vst.msk [vmem:[%s6063_s17 + $0x3f8] sm:$0xff] %vm148_vm0, %v358_v1  ;;  %v3959_v49 = vmax.f32 %v3895_v42, %v3927_v5  ;;  %v3896_v15 = vld [vmem:[#allocation2 + $0x12c] sm:$0xff]  ;;  %v3897_v59 = vld [vmem:[#allocation2 + $0x144] sm:$0xff] }
 0x31a   : > { %v3991_v36 = vld [vmem:[#allocation2 + $0x126] sm:$0xff]  ;;  %v3960_v29 = vmax.f32 %v3896_v15, %v3928_v17  ;;  %v3992_v4 = vld [vmem:[#allocation2 + $0x12e] sm:$0xff] }
 0x31b   : > { %v4023_v14 = vmax.f32 %v3959_v49, %v3991_v36  ;;  %v3929_v38 = vld [vmem:[#allocation2 + $0x145] sm:$0xff]  ;;  %v4056_v56 = vld [vmem:[#allocation2 + $0x12f] sm:$0xff] }
 0x31c   : > { %v4055_v0 = vld [vmem:[#allocation2 + $0x127] sm:$0xff]  ;;  %v4024_v19 = vmax.f32 %v3960_v29, %v3992_v4  ;;  %v3961_v50 = vmax.f32 %v3897_v59, %v3929_v38  ;;  %v4120_v10 = vld [vmem:[#allocation2 + $0x130] sm:$0xff] }
 0x31d   : > { %v3898_v2 = vld [vmem:[#allocation2 + $0x14c] sm:$0xff]  ;;  %v4087_v24 = vmax.f32 %v4023_v14, %v4055_v0  ;;  %v3899_v43 = vld [vmem:[#allocation2 + $0x164] sm:$0xff] }
 0x31e   : > { %v3993_v48 = vld [vmem:[#allocation2 + $0x146] sm:$0xff]  ;;  %v4088_v33 = vmax.f32 %v4024_v19, %v4056_v56  ;;  %v3994_v41 = vld [vmem:[#allocation2 + $0x14e] sm:$0xff] }
 0x31f   : > { %v3930_v44 = vld [vmem:[#allocation2 + $0x14d] sm:$0xff]  ;;  %v4025_v22 = vmax.f32 %v3961_v50, %v3993_v48  ;;  %v3931_v55 = vld [vmem:[#allocation2 + $0x165] sm:$0xff] }
 0x320   : > { %v4119_v40 = vld [vmem:[#allocation2 + $0x128] sm:$0xff]  ;;  %v3962_v8 = vmax.f32 %v3898_v2, %v3930_v44  ;;  %v3963_v26 = vmax.f32 %v3899_v43, %v3931_v55  ;;  %v4152_v35 = vmax.f32 %v4088_v33, %v4120_v10  ;;  %v4122_v47 = vld [vmem:[#allocation2 + $0x150] sm:$0xff] }
 0x321   : > { %v4151_v20 = vmax.f32 %v4087_v24, %v4119_v40  ;;  %v4057_v16 = vld [vmem:[#allocation2 + $0x147] sm:$0xff]  ;;  %v4058_v18 = vld [vmem:[#allocation2 + $0x14f] sm:$0xff] }
 0x322   : > { %v4089_v34 = vmax.f32 %v4025_v22, %v4057_v16  ;;  %v4026_v21 = vmax.f32 %v3962_v8, %v3994_v41  ;;  %v3995_v52 = vld [vmem:[#allocation2 + $0x166] sm:$0xff]  ;;  %4184 = vst.msk [vmem:[%s6063_s17 + $0x38] sm:$0xff] %vm148_vm0, %v4152_v35  ;;  %v3996_v11 = vld [vmem:[#allocation2 + $0x16e] sm:$0xff] }
 0x323   : > { %v3900_v23 = vld [vmem:[#allocation2 + $0x16c] sm:$0xff]  ;;  %4183 = vst.msk [vmem:[%s6063_s17 + $0x30] sm:$0xff] %vm148_vm0, %v4151_v20  ;;  %v4027_v58 = vmax.f32 %v3963_v26, %v3995_v52  ;;  %v3901_v6 = vld [vmem:[#allocation2 + $0x184] sm:$0xff] }
 0x324   : > { %v3932_v32 = vld [vmem:[#allocation2 + $0x16d] sm:$0xff]  ;;  %v4090_v57 = vmax.f32 %v4026_v21, %v4058_v18  ;;  %v3933_v27 = vld [vmem:[#allocation2 + $0x185] sm:$0xff] }
 0x325   : > { %v4121_v63 = vld [vmem:[#allocation2 + $0x148] sm:$0xff]  ;;  %v3964_v46 = vmax.f32 %v3900_v23, %v3932_v32  ;;  %v3965_v37 = vmax.f32 %v3901_v6, %v3933_v27  ;;  %v4124_v1 = vld [vmem:[#allocation2 + $0x170] sm:$0xff] }
 0x326   : > { %v4153_v9 = vmax.f32 %v4089_v34, %v4121_v63  ;;  %v4059_v45 = vld [vmem:[#allocation2 + $0x167] sm:$0xff]  ;;  %v4154_v12 = vmax.f32 %v4090_v57, %v4122_v47  ;;  %v4060_v54 = vld [vmem:[#allocation2 + $0x16f] sm:$0xff] }
 0x327   : > { %v4091_v3 = vmax.f32 %v4027_v58, %v4059_v45  ;;  %v4028_v13 = vmax.f32 %v3964_v46, %v3996_v11  ;;  %v3902_v62 = vld [vmem:[#allocation2 + $0x18c] sm:$0xff]  ;;  %v3903_v51 = vld [vmem:[#allocation2 + $0x1a4] sm:$0xff] }
 0x328   : > { %v3934_v28 = vld [vmem:[#allocation2 + $0x18d] sm:$0xff]  ;;  %4185 = vst.msk [vmem:[%s6063_s17 + $0x40] sm:$0xff] %vm148_vm0, %v4153_v9  ;;  %v3935_v60 = vld [vmem:[#allocation2 + $0x1a5] sm:$0xff]  ;;  %4186 = vst.msk [vmem:[%s6063_s17 + $0x48] sm:$0xff] %vm148_vm0, %v4154_v12 }
 0x329   : > { %v4123_v61 = vld [vmem:[#allocation2 + $0x168] sm:$0xff]  ;;  %v3966_v25 = vmax.f32 %v3902_v62, %v3934_v28  ;;  %v4092_v30 = vmax.f32 %v4028_v13, %v4060_v54  ;;  %v3967_v49 = vmax.f32 %v3903_v51, %v3935_v60  ;;  %v4126_v56 = vld [vmem:[#allocation2 + $0x190] sm:$0xff] }
 0x32a   : > { %v3997_v7 = vld [vmem:[#allocation2 + $0x186] sm:$0xff]  ;;  %v4155_v31 = vmax.f32 %v4091_v3, %v4123_v61  ;;  %v3998_v53 = vld [vmem:[#allocation2 + $0x18e] sm:$0xff] }
 0x32b   : > { %v4029_v39 = vmax.f32 %v3965_v37, %v3997_v7  ;;  %v4061_v42 = vld [vmem:[#allocation2 + $0x187] sm:$0xff]  ;;  %v4030_v5 = vmax.f32 %v3966_v25, %v3998_v53  ;;  %v4156_v17 = vmax.f32 %v4092_v30, %v4124_v1  ;;  %v4062_v29 = vld [vmem:[#allocation2 + $0x18f] sm:$0xff] }
 0x32c   : > { %v3904_v15 = vld [vmem:[#allocation2 + $0x1ac] sm:$0xff]  ;;  %4187 = vst.msk [vmem:[%s6063_s17 + $0x50] sm:$0xff] %vm148_vm0, %v4155_v31  ;;  %v3905_v50 = vld [vmem:[#allocation2 + $0x1c4] sm:$0xff] }
 0x32d   : > { %v4093_v36 = vmax.f32 %v4029_v39, %v4061_v42  ;;  %v3999_v14 = vld [vmem:[#allocation2 + $0x1a6] sm:$0xff]  ;;  %v4094_v38 = vmax.f32 %v4030_v5, %v4062_v29  ;;  %4188 = vst.msk [vmem:[%s6063_s17 + $0x58] sm:$0xff] %vm148_vm0, %v4156_v17  ;;  %v4000_v44 = vld [vmem:[#allocation2 + $0x1ae] sm:$0xff] }
 0x32e   : > { %v3936_v4 = vld [vmem:[#allocation2 + $0x1ad] sm:$0xff]  ;;  %v4031_v0 = vmax.f32 %v3967_v49, %v3999_v14  ;;  %v3937_v2 = vld [vmem:[#allocation2 + $0x1c5] sm:$0xff] }
 0x32f   : > { %v4125_v59 = vld [vmem:[#allocation2 + $0x188] sm:$0xff]  ;;  %v3968_v19 = vmax.f32 %v3904_v15, %v3936_v4  ;;  %v3969_v40 = vmax.f32 %v3905_v50, %v3937_v2  ;;  %v4158_v33 = vmax.f32 %v4094_v38, %v4126_v56  ;;  %v4128_v63 = vld [vmem:[#allocation2 + $0x1b0] sm:$0xff] }
 0x330   : > { %v4157_v24 = vmax.f32 %v4093_v36, %v4125_v59  ;;  %v4063_v48 = vld [vmem:[#allocation2 + $0x1a7] sm:$0xff]  ;;  %v4064_v16 = vld [vmem:[#allocation2 + $0x1af] sm:$0xff] }
 0x331   : > { %v4095_v22 = vmax.f32 %v4031_v0, %v4063_v48  ;;  %v4032_v8 = vmax.f32 %v3968_v19, %v4000_v44  ;;  %v4001_v43 = vld [vmem:[#allocation2 + $0x1c6] sm:$0xff]  ;;  %4190 = vst.msk [vmem:[%s6063_s17 + $0x68] sm:$0xff] %vm148_vm0, %v4158_v33  ;;  %v4002_v23 = vld [vmem:[#allocation2 + $0x1ce] sm:$0xff] }
 0x332   : > { %v3906_v55 = vld [vmem:[#allocation2 + $0x1cc] sm:$0xff]  ;;  %4189 = vst.msk [vmem:[%s6063_s17 + $0x60] sm:$0xff] %vm148_vm0, %v4157_v24  ;;  %v4033_v41 = vmax.f32 %v3969_v40, %v4001_v43  ;;  %v3907_v35 = vld [vmem:[#allocation2 + $0x1e4] sm:$0xff] }
 0x333   : > { %v3938_v20 = vld [vmem:[#allocation2 + $0x1cd] sm:$0xff]  ;;  %v4096_v21 = vmax.f32 %v4032_v8, %v4064_v16  ;;  %v3939_v32 = vld [vmem:[#allocation2 + $0x1e5] sm:$0xff] }
 0x334   : > { %v4127_v10 = vld [vmem:[#allocation2 + $0x1a8] sm:$0xff]  ;;  %v3970_v26 = vmax.f32 %v3906_v55, %v3938_v20  ;;  %v3971_v46 = vmax.f32 %v3907_v35, %v3939_v32  ;;  %v4130_v61 = vld [vmem:[#allocation2 + $0x1d0] sm:$0xff] }
 0x335   : > { %v4159_v34 = vmax.f32 %v4095_v22, %v4127_v10  ;;  %v4065_v52 = vld [vmem:[#allocation2 + $0x1c7] sm:$0xff]  ;;  %v4160_v57 = vmax.f32 %v4096_v21, %v4128_v63  ;;  %v4066_v11 = vld [vmem:[#allocation2 + $0x1cf] sm:$0xff] }
 0x336   : > { %v4097_v18 = vmax.f32 %v4033_v41, %v4065_v52  ;;  %v4034_v58 = vmax.f32 %v3970_v26, %v4002_v23  ;;  %v3908_v6 = vld [vmem:[#allocation2 + $0x1ec] sm:$0xff]  ;;  %v3909_v28 = vld [vmem:[#allocation2 + $0x204] sm:$0xff] }
 0x337   : > { %v3940_v9 = vld [vmem:[#allocation2 + $0x1ed] sm:$0xff]  ;;  %4191 = vst.msk [vmem:[%s6063_s17 + $0x70] sm:$0xff] %vm148_vm0, %v4159_v34  ;;  %v3941_v12 = vld [vmem:[#allocation2 + $0x205] sm:$0xff]  ;;  %4192 = vst.msk [vmem:[%s6063_s17 + $0x78] sm:$0xff] %vm148_vm0, %v4160_v57 }
 0x338   : > { %v4129_v45 = vld [vmem:[#allocation2 + $0x1c8] sm:$0xff]  ;;  %v3972_v47 = vmax.f32 %v3908_v6, %v3940_v9  ;;  %v4098_v13 = vmax.f32 %v4034_v58, %v4066_v11  ;;  %v3973_v25 = vmax.f32 %v3909_v28, %v3941_v12  ;;  %v4132_v29 = vld [vmem:[#allocation2 + $0x1f0] sm:$0xff] }
 0x339   : > { %v4003_v27 = vld [vmem:[#allocation2 + $0x1e6] sm:$0xff]  ;;  %v4161_v3 = vmax.f32 %v4097_v18, %v4129_v45  ;;  %v4004_v62 = vld [vmem:[#allocation2 + $0x1ee] sm:$0xff] }
 0x33a   : > { %v4035_v37 = vmax.f32 %v3971_v46, %v4003_v27  ;;  %v4067_v54 = vld [vmem:[#allocation2 + $0x1e7] sm:$0xff]  ;;  %v4036_v7 = vmax.f32 %v3972_v47, %v4004_v62  ;;  %v4162_v30 = vmax.f32 %v4098_v13, %v4130_v61  ;;  %v4068_v53 = vld [vmem:[#allocation2 + $0x1ef] sm:$0xff] }
 0x33b   : > { %v3910_v31 = vld [vmem:[#allocation2 + $0x20c] sm:$0xff]  ;;  %4193 = vst.msk [vmem:[%s6063_s17 + $0x80] sm:$0xff] %vm148_vm0, %v4161_v3  ;;  %v3911_v15 = vld [vmem:[#allocation2 + $0x224] sm:$0xff] }
 0x33c   : > { %v4099_v39 = vmax.f32 %v4035_v37, %v4067_v54  ;;  %v4005_v51 = vld [vmem:[#allocation2 + $0x206] sm:$0xff]  ;;  %v4100_v42 = vmax.f32 %v4036_v7, %v4068_v53  ;;  %4194 = vst.msk [vmem:[%s6063_s17 + $0x88] sm:$0xff] %vm148_vm0, %v4162_v30  ;;  %v4006_v4 = vld [vmem:[#allocation2 + $0x20e] sm:$0xff] }
 0x33d   : > { %v3942_v60 = vld [vmem:[#allocation2 + $0x20d] sm:$0xff]  ;;  %v4037_v5 = vmax.f32 %v3973_v25, %v4005_v51  ;;  %v3943_v17 = vld [vmem:[#allocation2 + $0x225] sm:$0xff] }
 0x33e   : > { %v4131_v1 = vld [vmem:[#allocation2 + $0x1e8] sm:$0xff]  ;;  %v3974_v49 = vmax.f32 %v3910_v31, %v3942_v60  ;;  %v3975_v59 = vmax.f32 %v3911_v15, %v3943_v17  ;;  %v4164_v38 = vmax.f32 %v4100_v42, %v4132_v29  ;;  %v4134_v10 = vld [vmem:[#allocation2 + $0x210] sm:$0xff] }
 0x33f   : > { %v4163_v36 = vmax.f32 %v4099_v39, %v4131_v1  ;;  %v4069_v14 = vld [vmem:[#allocation2 + $0x207] sm:$0xff]  ;;  %v4070_v48 = vld [vmem:[#allocation2 + $0x20f] sm:$0xff] }
 0x340   : > { %v4101_v0 = vmax.f32 %v4037_v5, %v4069_v14  ;;  %v4038_v19 = vmax.f32 %v3974_v49, %v4006_v4  ;;  %v4007_v50 = vld [vmem:[#allocation2 + $0x226] sm:$0xff]  ;;  %4196 = vst.msk [vmem:[%s6063_s17 + $0x98] sm:$0xff] %vm148_vm0, %v4164_v38  ;;  %v4008_v55 = vld [vmem:[#allocation2 + $0x22e] sm:$0xff] }
 0x341   : > { %v3912_v2 = vld [vmem:[#allocation2 + $0x22c] sm:$0xff]  ;;  %4195 = vst.msk [vmem:[%s6063_s17 + $0x90] sm:$0xff] %vm148_vm0, %v4163_v36  ;;  %v4039_v44 = vmax.f32 %v3975_v59, %v4007_v50  ;;  %v3913_v33 = vld [vmem:[#allocation2 + $0x244] sm:$0xff] }
 0x342   : > { %v3944_v24 = vld [vmem:[#allocation2 + $0x22d] sm:$0xff]  ;;  %v4102_v8 = vmax.f32 %v4038_v19, %v4070_v48  ;;  %v3945_v20 = vld [vmem:[#allocation2 + $0x245] sm:$0xff] }
 0x343   : > { %v4133_v56 = vld [vmem:[#allocation2 + $0x208] sm:$0xff]  ;;  %v3976_v40 = vmax.f32 %v3912_v2, %v3944_v24  ;;  %v3977_v26 = vmax.f32 %v3913_v33, %v3945_v20  ;;  %v4136_v45 = vld [vmem:[#allocation2 + $0x230] sm:$0xff] }
 0x344   : > { %v4165_v22 = vmax.f32 %v4101_v0, %v4133_v56  ;;  %v4071_v43 = vld [vmem:[#allocation2 + $0x227] sm:$0xff]  ;;  %v4166_v21 = vmax.f32 %v4102_v8, %v4134_v10  ;;  %v4072_v23 = vld [vmem:[#allocation2 + $0x22f] sm:$0xff] }
 0x345   : > { %v4103_v16 = vmax.f32 %v4039_v44, %v4071_v43  ;;  %v4040_v41 = vmax.f32 %v3976_v40, %v4008_v55  ;;  %v3914_v35 = vld [vmem:[#allocation2 + $0x24c] sm:$0xff]  ;;  %v3915_v9 = vld [vmem:[#allocation2 + $0x264] sm:$0xff] }
 0x346   : > { %v3946_v34 = vld [vmem:[#allocation2 + $0x24d] sm:$0xff]  ;;  %4197 = vst.msk [vmem:[%s6063_s17 + $0xa0] sm:$0xff] %vm148_vm0, %v4165_v22  ;;  %v3947_v57 = vld [vmem:[#allocation2 + $0x265] sm:$0xff]  ;;  %4198 = vst.msk [vmem:[%s6063_s17 + $0xa8] sm:$0xff] %vm148_vm0, %v4166_v21 }
 0x347   : > { %v4135_v52 = vld [vmem:[#allocation2 + $0x228] sm:$0xff]  ;;  %v3978_v63 = vmax.f32 %v3914_v35, %v3946_v34  ;;  %v4104_v58 = vmax.f32 %v4040_v41, %v4072_v23  ;;  %v3979_v47 = vmax.f32 %v3915_v9, %v3947_v57  ;;  %v4138_v53 = vld [vmem:[#allocation2 + $0x250] sm:$0xff] }
 0x348   : > { %v4009_v32 = vld [vmem:[#allocation2 + $0x246] sm:$0xff]  ;;  %v4167_v18 = vmax.f32 %v4103_v16, %v4135_v52  ;;  %v4010_v6 = vld [vmem:[#allocation2 + $0x24e] sm:$0xff] }
 0x349   : > { %v4041_v46 = vmax.f32 %v3977_v26, %v4009_v32  ;;  %v4073_v11 = vld [vmem:[#allocation2 + $0x247] sm:$0xff]  ;;  %v4042_v27 = vmax.f32 %v3978_v63, %v4010_v6  ;;  %v4168_v13 = vmax.f32 %v4104_v58, %v4136_v45  ;;  %v4074_v62 = vld [vmem:[#allocation2 + $0x24f] sm:$0xff] }
 0x34a   : > { %v3916_v3 = vld [vmem:[#allocation2 + $0x26c] sm:$0xff]  ;;  %4199 = vst.msk [vmem:[%s6063_s17 + $0xb0] sm:$0xff] %vm148_vm0, %v4167_v18  ;;  %v3917_v31 = vld [vmem:[#allocation2 + $0x284] sm:$0xff] }
 0x34b   : > { %v4105_v37 = vmax.f32 %v4041_v46, %v4073_v11  ;;  %v4011_v28 = vld [vmem:[#allocation2 + $0x266] sm:$0xff]  ;;  %v4106_v54 = vmax.f32 %v4042_v27, %v4074_v62  ;;  %4200 = vst.msk [vmem:[%s6063_s17 + $0xb8] sm:$0xff] %vm148_vm0, %v4168_v13  ;;  %v4012_v60 = vld [vmem:[#allocation2 + $0x26e] sm:$0xff] }
 0x34c   : > { %v3948_v12 = vld [vmem:[#allocation2 + $0x26d] sm:$0xff]  ;;  %v4043_v7 = vmax.f32 %v3979_v47, %v4011_v28  ;;  %v3949_v30 = vld [vmem:[#allocation2 + $0x285] sm:$0xff] }
 0x34d   : > { %v4137_v61 = vld [vmem:[#allocation2 + $0x248] sm:$0xff]  ;;  %v3980_v25 = vmax.f32 %v3916_v3, %v3948_v12  ;;  %v3981_v1 = vmax.f32 %v3917_v31, %v3949_v30  ;;  %v4170_v42 = vmax.f32 %v4106_v54, %v4138_v53  ;;  %v4140_v56 = vld [vmem:[#allocation2 + $0x270] sm:$0xff] }
 0x34e   : > { %v4169_v39 = vmax.f32 %v4105_v37, %v4137_v61  ;;  %v4075_v51 = vld [vmem:[#allocation2 + $0x267] sm:$0xff]  ;;  %v4076_v14 = vld [vmem:[#allocation2 + $0x26f] sm:$0xff] }
 0x34f   : > { %v4107_v5 = vmax.f32 %v4043_v7, %v4075_v51  ;;  %v4044_v49 = vmax.f32 %v3980_v25, %v4012_v60  ;;  %v4013_v15 = vld [vmem:[#allocation2 + $0x286] sm:$0xff]  ;;  %4202 = vst.msk [vmem:[%s6063_s17 + $0xc8] sm:$0xff] %vm148_vm0, %v4170_v42  ;;  %v4014_v2 = vld [vmem:[#allocation2 + $0x28e] sm:$0xff] }
 0x350   : > { %v3918_v17 = vld [vmem:[#allocation2 + $0x28c] sm:$0xff]  ;;  %4201 = vst.msk [vmem:[%s6063_s17 + $0xc0] sm:$0xff] %vm148_vm0, %v4169_v39  ;;  %v4045_v4 = vmax.f32 %v3981_v1, %v4013_v15  ;;  %v3919_v38 = vld [vmem:[#allocation2 + $0x2a4] sm:$0xff] }
 0x351   : > { %v3950_v36 = vld [vmem:[#allocation2 + $0x28d] sm:$0xff]  ;;  %v4108_v19 = vmax.f32 %v4044_v49, %v4076_v14  ;;  %v3951_v24 = vld [vmem:[#allocation2 + $0x2a5] sm:$0xff] }
 0x352   : > { %v4139_v29 = vld [vmem:[#allocation2 + $0x268] sm:$0xff]  ;;  %v3982_v59 = vmax.f32 %v3918_v17, %v3950_v36  ;;  %v3983_v40 = vmax.f32 %v3919_v38, %v3951_v24  ;;  %v4142_v34 = vld [vmem:[#allocation2 + $0x290] sm:$0xff] }
 0x353   : > { %v4171_v0 = vmax.f32 %v4107_v5, %v4139_v29  ;;  %v4077_v50 = vld [vmem:[#allocation2 + $0x287] sm:$0xff]  ;;  %v4172_v8 = vmax.f32 %v4108_v19, %v4140_v56  ;;  %v4078_v55 = vld [vmem:[#allocation2 + $0x28f] sm:$0xff] }
 0x354   : > { %v4109_v48 = vmax.f32 %v4045_v4, %v4077_v50  ;;  %v4046_v44 = vmax.f32 %v3982_v59, %v4014_v2  ;;  %v3920_v33 = vld [vmem:[#allocation2 + $0x2ac] sm:$0xff] }
 0x355   : > { %v3952_v22 = vld [vmem:[#allocation2 + $0x2ad] sm:$0xff]  ;;  %4203 = vst.msk [vmem:[%s6063_s17 + $0xd0] sm:$0xff] %vm148_vm0, %v4171_v0  ;;  %4204 = vst.msk [vmem:[%s6063_s17 + $0xd8] sm:$0xff] %vm148_vm0, %v4172_v8 }
 0x356   : > { %v4141_v43 = vld [vmem:[#allocation2 + $0x288] sm:$0xff]  ;;  %v3984_v10 = vmax.f32 %v3920_v33, %v3952_v22  ;;  %v4110_v41 = vmax.f32 %v4046_v44, %v4078_v55  ;;  %v4144_v6 = vld [vmem:[#allocation2 + $0x2b0] sm:$0xff] }
 0x357   : > { %v4015_v20 = vld [vmem:[#allocation2 + $0x2a6] sm:$0xff]  ;;  %v4173_v16 = vmax.f32 %v4109_v48, %v4141_v43  ;;  %v4016_v35 = vld [vmem:[#allocation2 + $0x2ae] sm:$0xff] }
 0x358   : > { %v4047_v26 = vmax.f32 %v3983_v40, %v4015_v20  ;;  %v4079_v21 = vld [vmem:[#allocation2 + $0x2a7] sm:$0xff]  ;;  %v4048_v52 = vmax.f32 %v3984_v10, %v4016_v35  ;;  %v4174_v23 = vmax.f32 %v4110_v41, %v4142_v34  ;;  %v4080_v63 = vld [vmem:[#allocation2 + $0x2af] sm:$0xff] }
 0x359   : > { %4205 = vst.msk [vmem:[%s6063_s17 + $0xe0] sm:$0xff] %vm148_vm0, %v4173_v16  ;;  %v4143_v18 = vld [vmem:[#allocation2 + $0x2a8] sm:$0xff] }
 0x35a   : > { %v4111_v32 = vmax.f32 %v4047_v26, %v4079_v21  ;;  %v4112_v58 = vmax.f32 %v4048_v52, %v4080_v63  ;;  %4206 = vst.msk [vmem:[%s6063_s17 + $0xe8] sm:$0xff] %vm148_vm0, %v4174_v23 }
 0x35c   : > { %v4175_v46 = vmax.f32 %v4111_v32, %v4143_v18  ;;  %v4176_v9 = vmax.f32 %v4112_v58, %v4144_v6 }
 0x35e   : > { %4207 = vst.msk [vmem:[%s6063_s17 + $0xf0] sm:$0xff] %vm148_vm0, %v4175_v46  ;;  %4208 = vst.msk [vmem:[%s6063_s17 + $0xf8] sm:$0xff] %vm148_vm0, %v4176_v9 }
 0x35f PF: > { %s11_s8 = sadd.s32 1, %s4448_s8   ;;  %s9093_s6 = smov %s4444_s7 }
 0x360   : > { %p8_p5 = scmp.ge.s32.totalorder %s11_s8, 4   ;;  %s9094_s7 = smov %s9096_s9 }
 0x362   :  { %10 = sbr.rel (!%p8_p5) target bundleno = 2 (0x2), region = 65 }

</bundles_post_ra>
